<compile_context>
chip_gen: v7x
topology: tpu7x:2x2x1
jax: 0.10.0
libtpu: 0.0.40
codegen_flags: <defaults>
</compile_context>

<pallas_src>
import math
from functools import partial

import jax
import jax.numpy as jnp
from jax.experimental import pallas as pl
from jax.experimental.pallas import tpu as pltpu


def _round_up(x, m):
    return ((x + m - 1) // m) * m


def _cdiv(a, b):
    return (a + b - 1) // b


def _sine_layer_kernel(x_ref, w_ref, b_ref, o_ref):
    """One (tm, tn) output tile.

    x_ref: (tm, K)   row tile of the flattened input (ragged last tile masked)
    w_ref: (K,  tn)  omega_0-scaled weight, [in, out] layout (grid-invariant along i)
    b_ref: (1,  tn)  omega_0-scaled bias, f32
    o_ref: (tm, tn)  output tile
    """
    z = jnp.dot(x_ref[...], w_ref[...], preferred_element_type=jnp.float32)
    o_ref[...] = jnp.sin(z + b_ref[...]).astype(o_ref.dtype)


def sine_layer_forward(x, weight, bias, omega_0=30.0, *, tm_target=512,
                       stream_dtype=None):
    """x: [..., in_features]; weight: [out_features, in_features]; bias: [out_features].

    stream_dtype: optionally cast the streamed x / weight (e.g. jnp.bfloat16 on
    v6e/v7x) while keeping f32 accumulation + epilogue.  Default: keep x.dtype.
    """
    out_features, in_features = weight.shape
    orig_shape = x.shape
    out_dtype = x.dtype
    K, N = in_features, out_features

    cdtype = jnp.dtype(stream_dtype) if stream_dtype is not None else jnp.dtype(out_dtype)

    x2d = x.reshape(-1, K)
    if cdtype != x2d.dtype:
        x2d = x2d.astype(cdtype)
    M = x2d.shape[0]

    # Fold omega_0 into the tiny, grid-invariant weight/bias (exact up to f32
    # rounding):  sin(w0*(x@W.T + b)) == sin(x@(w0*W).T + w0*b).
    w_t = (jnp.asarray(weight, jnp.float32) * omega_0).astype(cdtype).T   # [K, N]
    b_r = (jnp.asarray(bias, jnp.float32) * omega_0).reshape(1, N)        # f32 epilogue

    itemsize = cdtype.itemsize

    # Row tile: big (fewer ~0.35us grid steps), multiple of 8; keep >= 2 row
    # tiles when possible so v7x megacore has something to shard on axis 0.
    tm = min(tm_target, _round_up(M, 8))
    if M > 8 and _cdiv(M, tm) < 2:
        tm = max(8, _round_up(_cdiv(M, 2), 8))

    # Column tile: keep the full weight resident when the double-buffered
    # blocks fit a conservative VMEM budget (safe on v7x's 64 MiB physical
    # ceiling); otherwise stream 512-lane slabs.
    vmem_budget = 24 * 1024 * 1024

    def _fits(tm_, tn_):
        x_blk = tm_ * K * itemsize
        w_blk = K * tn_ * itemsize
        o_blk = tm_ * tn_ * jnp.dtype(out_dtype).itemsize
        b_blk = tn_ * 4
        return 2 * (x_blk + w_blk + o_blk + b_blk) < vmem_budget

    tn = N if _fits(tm, N) else 512
    while tm > 8 and not _fits(tm, tn):
        tm = max(8, _round_up(tm // 2, 8))
    # TODO(synk): if K ever gets so large that even (K, 512) weight blocks blow
    # VMEM, reintroduce a K grid axis with an f32 accumulator scratch.

    grid = (_cdiv(M, tm), _cdiv(N, tn))

    cost = pl.CostEstimate(
        flops=2 * M * K * N,
        transcendentals=M * N,
        bytes_accessed=(M * K + K * N) * itemsize + N * 4
                       + M * N * jnp.dtype(out_dtype).itemsize,
    )

    out2d = pl.pallas_call(
        _sine_layer_kernel,
        out_shape=jax.ShapeDtypeStruct((M, N), out_dtype),
        grid_spec=pltpu.PrefetchScalarGridSpec(
            num_scalar_prefetch=0,
            grid=grid,
            in_specs=[
                pl.BlockSpec((tm, K), lambda i, j: (i, 0)),   # x row tile (full K)
                pl.BlockSpec((K, tn), lambda i, j: (0, j)),   # resident weight slab
                pl.BlockSpec((1, tn), lambda i, j: (0, j)),   # bias slab (f32)
            ],
            out_specs=pl.BlockSpec((tm, tn), lambda i, j: (i, j)),
        ),
        compiler_params=pltpu.CompilerParams(
            dimension_semantics=("parallel", "parallel"),
            vmem_limit_bytes=32 * 1024 * 1024,
        ),
        cost_estimate=cost,
    )(x2d, w_t, b_r)

    return out2d.reshape(*orig_shape[:-1], N)


def init_sine_layer_params(key, in_features, out_features, is_first=False, omega_0=30.0):
    """Deterministic replication of SineLayer.init_weights + nn.Linear bias init."""
    kw, kb = jax.random.split(key)
    if is_first:
        bound_w = 1.0 / in_features
    else:
        bound_w = math.sqrt(6.0 / in_features) / omega_0
    weight = jax.random.uniform(
        kw, (out_features, in_features), jnp.float32, minval=-bound_w, maxval=bound_w
    )
    # nn.Linear default bias init: U(-1/sqrt(in_features), 1/sqrt(in_features))
    bound_b = 1.0 / math.sqrt(in_features)
    bias = jax.random.uniform(
        kb, (out_features,), jnp.float32, minval=-bound_b, maxval=bound_b
    )
    return weight, bias


if __name__ == "__main__":
    key = jax.random.PRNGKey(0)
    k_x, k_p = jax.random.split(key)

    # SIREN-style shapes; deliberately non-multiples of 8/128 to exercise the
    # ragged-tile path (M = 600 -> two 512-row tiles, the second masked;
    # out_features = 40 -> full-dim lane tile with masked stores).
    batch, seq, in_features, out_features = 2, 300, 48, 40
    omega_0 = 30.0

    x = jax.random.normal(k_x, (batch, seq, in_features), jnp.float32)
    weight, bias = init_sine_layer_params(
        k_p, in_features, out_features, is_first=False, omega_0=omega_0
    )

    out = sine_layer_forward(x, weight, bias, omega_0=omega_0)
    out = jax.block_until_ready(out)

    # Pure-JAX reference check of the fused kernel.
    ref = jnp.sin(omega_0 * (x @ weight.T + bias))
    assert out.shape == (batch, seq, out_features)
    assert jnp.allclose(out, ref, atol=1e-4, rtol=1e-5)

    print("KERNEL_OK")
</pallas_src>

<mosaic_0001>
module attributes {stable_mosaic.version = 11 : i64} {
  func.func @_sine_layer_kernel(%arg0: i32, %arg1: i32, %arg2: memref<512x48xf32, #tpu.memory_space<vmem>>, %arg3: memref<48x40xf32, #tpu.memory_space<vmem>>, %arg4: memref<1x40xf32, #tpu.memory_space<vmem>>, %arg5: memref<512x40xf32, #tpu.memory_space<vmem>>) attributes {dimension_semantics = [#tpu.dimension_semantics<parallel>, #tpu.dimension_semantics<parallel>], iteration_bounds = array<i64: 2, 1>, scalar_prefetch = 0 : i64, scratch_operands = 0 : i64, tpu.core_type = #tpu.core_type<tc>, window_params = [{transform_indices = @transform_0, window_bounds = array<i64: 512, 48>}, {transform_indices = @transform_1, window_bounds = array<i64: 48, 40>}, {transform_indices = @transform_2, window_bounds = array<i64: 1, 40>}, {transform_indices = @transform_3, window_bounds = array<i64: 512, 40>}]} {
    %c0 = arith.constant 0 : index
    %c0_0 = arith.constant 0 : index
    %0 = vector.load %arg2[%c0, %c0_0] : memref<512x48xf32, #tpu.memory_space<vmem>>, vector<512x48xf32>
    %c0_1 = arith.constant 0 : index
    %c0_2 = arith.constant 0 : index
    %1 = vector.load %arg3[%c0_1, %c0_2] : memref<48x40xf32, #tpu.memory_space<vmem>>, vector<48x40xf32>
    %cst = arith.constant dense<0.000000e+00> : vector<512x40xf32>
    %2 = tpu.matmul %0, %1, %cst {dimension_numbers = #tpu.dot_dimension_numbers<[1], [0], [0], [1], [0, 0, 1, 1], [], []>} : vector<512x48xf32>, vector<48x40xf32>, vector<512x40xf32> -> vector<512x40xf32>
    %c0_3 = arith.constant 0 : index
    %c0_4 = arith.constant 0 : index
    %3 = vector.load %arg4[%c0_3, %c0_4] : memref<1x40xf32, #tpu.memory_space<vmem>>, vector<1x40xf32>
    %4 = vector.broadcast %3 : vector<1x40xf32> to vector<512x40xf32>
    %5 = arith.addf %2, %4 : vector<512x40xf32>
    %6 = math.sin %5 : vector<512x40xf32>
    %c0_5 = arith.constant 0 : index
    %c0_6 = arith.constant 0 : index
    %7 = vector.load %arg5[%c0_5, %c0_6] : memref<512x40xf32, #tpu.memory_space<vmem>>, vector<512x40xf32>
    tpu.vector_store %arg5[%c0_5, %c0_6], %6 {strides = array<i32>} : memref<512x40xf32, #tpu.memory_space<vmem>>, vector<512x40xf32>,
    return
  }
  func.func @transform_0(%arg0: i32, %arg1: i32) -> (i32, i32) {
    %c0_i32 = arith.constant 0 : i32
    %c0_i32_0 = arith.constant 0 : i32
    return %arg0, %c0_i32 : i32, i32
  }
  func.func @transform_1(%arg0: i32, %arg1: i32) -> (i32, i32) {
    %c0_i32 = arith.constant 0 : i32
    %c0_i32_0 = arith.constant 0 : i32
    return %c0_i32, %arg1 : i32, i32
  }
  func.func @transform_2(%arg0: i32, %arg1: i32) -> (i32, i32) {
    %c0_i32 = arith.constant 0 : i32
    %c0_i32_0 = arith.constant 0 : i32
    return %c0_i32, %arg1 : i32, i32
  }
  func.func @transform_3(%arg0: i32, %arg1: i32) -> (i32, i32) {
    %c0_i32 = arith.constant 0 : i32
    return %arg0, %arg1 : i32, i32
  }
}

</mosaic_0001>

<bundles_post_ra>
// kernel: tpu_custom_call.1
= control target key start
LH: loop header
LB: loop body
LE: loop exit
PB: predicated region body
PF: predicated region fallthrough
CT: control target
= control target key end

     0   :  { %s9427_s12 = smov 0   ;;  %s9429_s13 = smov 0   ;;  %s15261_s0 = inlined_call_operand.vmem [shape: f32[600,48], index: 0, kind: input, shape index: {}]   ;;  %s15262_s1 = inlined_call_operand.vmem [shape: f32[48,40], index: 1, kind: input, shape index: {}]   ;;  %s15263_s2 = inlined_call_operand.vmem [shape: f32[1,40], index: 2, kind: input, shape index: {}]   ;;  %s15264_s3 = inlined_call_operand.vmem [shape: f32[600,40], index: 3, kind: output, shape index: {}]  }
   0x1   :  { %s9431_s14 = smov 0   ;;  %s9433_s15 = smov 0  }
   0x2   :  { %s9435_s16 = smov 0  }
   0x3 LB: > { %s8118_s17 = sadd.s32 4294967295, %s9367_s16   ;;  %s25_s18 = sadd.s32 1, %s9363_s15  ;;  %s9367_s16 = sphi %s9435_s16, %s13_s16   ;;  %s9363_s15 = sphi %s9433_s15, %s15398_s15   ;;  %s9359_s14 = sphi %s9431_s14, %s15397_s14   ;;  %s9355_s13 = sphi %s9429_s13, %s15396_s13   ;;  %s9351_s12 = sphi %s9427_s12, %s15395_s12  }
   0x4   : > { %p27_p0 = scmp.ge.s32.totalorder %s25_s18, 2  ;;  %s112_s19 = sadd.s32 1, %s9355_s13 }
   0x5   : > { %p122_p1 = scmp.ne.s32.totalorder %s9355_s13, %s9351_s12  ;;  %p123_p2 = scmp.eq.s32.totalorder %s8118_s17, 1 }
   0x6   : > { %s15400_s18 = smov (%p27_p0, %s25_s18), 0  ;;  %p8124_p4 = scmp.ge.s32.totalorder %s9367_s16, 1 }
   0x7   : > { %p9459_p3 = por %p123_p2, %p122_p1  ;;  %s107_s21 = ssub.s32 %s9363_s15, %s15400_s18 }
   0x8   : > { %p177_p5 = scmp.lt.s32.totalorder %s9367_s16, 3  ;;  %p110_p6 = scmp.eq.s32.totalorder %s107_s21, 0 }
   0xa   : > { %p178_p7 = pnand %p8124_p4, %p177_p5 }
   0xb   : > { %s9468_s22 = scalar_select %p110_p6, %s9355_s13, %s112_s19  }
   0xc   : > { %181 = sbr.rel (%p178_p7) target bundleno = 1933 (0x78d), region = 32  ;;  %v301_v0 = vld [vmem:[%s15262_s1] sm:$0xff] (!%p178_p7)  ;;  %v302_v1 = vld [vmem:[%s15262_s1 + $0x8] sm:$0xff] (!%p178_p7)  ;;  %v303_v2 = vld [vmem:[%s15262_s1 + $0x10] sm:$0xff] (!%p178_p7)  ;;  %s9480_s29 = sshll.u32 (!%p178_p7), %s9359_s14, 6  ;;  %vm314_vm0 = vcmask (!%p178_p7), 392192  }
   0xd   : > { %v8647_v3 = vpack.c.bf16 (!%p178_p7), %v302_v1, %v301_v0  ;;  %v304_v4 = vld [vmem:[%s15262_s1 + $0x18] sm:$0xff] (!%p178_p7)  ;;  %p216_p8 = scmp.lt.s32.totalorder (!%p178_p7), %s9480_s29, 74  ;;  %v305_v6 = vld [vmem:[%s15262_s1 + $0x20] sm:$0xff] (!%p178_p7)  ;;  %v306_v7 = vld [vmem:[%s15262_s1 + $0x28] sm:$0xff] (!%p178_p7)  ;;  %s208_s24 = sand.u32 (!%p178_p7), 1, %s9351_s12  }
   0xe   : > { %v8651_v5 = vpack.c.bf16 (!%p178_p7), %v304_v4, %v303_v2  ;;  %v8655_v8 = vpack.c.bf16 (!%p178_p7), %v306_v7, %v305_v6  ;;  %s8125_s12 = sshll.u32 (!%p178_p7), %s208_s24, 9 }
   0xf   : > { %8648 = vmatprep.subr.bf16.mxu0 (!%p178_p7), %v8647_v3  ;;  %8659 = vmatprep.subr.bf16.mxu1 (!%p178_p7), %v8647_v3  ;;  %s9945_s25 = scalar_lea.vmem (!%p178_p7), [#allocation2], %s8125_s12  }
  0x10   : > { %8650 = vmatpush3.bf16.msra.mxu0 (!%p178_p7), %v8647_v3  ;;  %8662 = vmatpush3.bf16.msra.mxu1 (!%p178_p7), %v8647_v3 }
  0x11   : > { %8652 = vmatprep.subr.bf16.mxu0 (!%p178_p7), %v8651_v5  ;;  %8660 = vmatprep.subr.bf16.mxu1 (!%p178_p7), %v8651_v5 }
  0x13   : > { %s217_s9 = scalar_select %p216_p8, %s9480_s29, 74 }
  0x14   : > { %8654 = vmatpush3.bf16.msra.mxu0 %v8651_v5  ;;  %8663 = vmatpush3.bf16.msra.mxu1 %v8651_v5  ;;  %s7621_s28 = ssub.s32 (%p9459_p3), 75, %s9480_s29  ;;  %s8466_s30 = sshll.u32 (%p9459_p3), %s9359_s14, 9 }
  0x15   : > { %s8127_s10 = sshll.u32 %s217_s9, 3  ;;  %8656 = vmatprep.subr.bf16.mxu0 %v8655_v8  ;;  %8661 = vmatprep.subr.bf16.mxu1 %v8655_v8  ;;  %p7622_p9 = scmp.lt.s32.totalorder (%p9459_p3), %s7621_s28, 64 }
  0x16   : > { %s9496_s19 = scalar_lea.vmem %s15261_s0, %s8127_s10  ;;  %s15057_s6 = scalar_lea.vmem (%p9459_p3), %s15264_s3, %s8466_s30  }
  0x17   : > { %v237_v9 = vld [vmem:[%s9496_s19] sm:$0xff]  ;;  %v238_v11 = vld [vmem:[%s9496_s19 + $0x8] sm:$0xff]  ;;  %v239_v13 = vld [vmem:[%s9496_s19 + $0x10] sm:$0xff] }
  0x18   : > { %v269_v10 = vld [vmem:[%s9496_s19 + $0x100] sm:$0xff]  ;;  %8551 = vmatprep.mubr.msk.f32.mxu0 %vm314_vm0, %v237_v9  ;;  %8658 = vmatpush3.bf16.msra.mxu0 %v8655_v8  ;;  %v270_v12 = vld [vmem:[%s9496_s19 + $0x108] sm:$0xff]  ;;  %v271_v14 = vld [vmem:[%s9496_s19 + $0x110] sm:$0xff] }
  0x19   : > { %8599 = vmatprep.mubr.msk.f32.mxu1 %vm314_vm0, %v269_v10  ;;  %8664 = vmatpush3.bf16.msra.mxu1 %v8655_v8  ;;  %v240_v15 = vld [vmem:[%s9496_s19 + $0x18] sm:$0xff]  ;;  %v241_v17 = vld [vmem:[%s9496_s19 + $0x20] sm:$0xff]  ;;  %v242_v19 = vld [vmem:[%s9496_s19 + $0x28] sm:$0xff] }
  0x1a   : > { %v272_v16 = vld [vmem:[%s9496_s19 + $0x118] sm:$0xff]  ;;  %v273_v18 = vld [vmem:[%s9496_s19 + $0x120] sm:$0xff]  ;;  %v274_v20 = vld [vmem:[%s9496_s19 + $0x128] sm:$0xff] }
  0x1b   : > { %8552 = vmatmul.mubr.msk.f32.vlgmr.msra.gmra.mrb[0].mxu0 %vm314_vm0, %v238_v11  ;;  %v243_v21 = vld [vmem:[%s9496_s19 + $0x30] sm:$0xff]  ;;  %v244_v23 = vld [vmem:[%s9496_s19 + $0x38] sm:$0xff]  ;;  %v245_v25 = vld [vmem:[%s9496_s19 + $0x40] sm:$0xff] }
  0x1c   : > { %8600 = vmatmul.mubr.msk.f32.vlgmr.msra.gmra.mrb[0].mxu1 %vm314_vm0, %v270_v12  ;;  %8554 = vmatprep.mubr.msk.f32.mxu0 %vm314_vm0, %v239_v13  ;;  %v275_v22 = vld [vmem:[%s9496_s19 + $0x130] sm:$0xff]  ;;  %v276_v24 = vld [vmem:[%s9496_s19 + $0x138] sm:$0xff]  ;;  %v277_v26 = vld [vmem:[%s9496_s19 + $0x140] sm:$0xff] }
  0x1d   : > { %8602 = vmatprep.mubr.msk.f32.mxu1 %vm314_vm0, %v271_v14  ;;  %v246_v27 = vld [vmem:[%s9496_s19 + $0x48] sm:$0xff]  ;;  %v247_v29 = vld [vmem:[%s9496_s19 + $0x50] sm:$0xff]  ;;  %v248_v31 = vld [vmem:[%s9496_s19 + $0x58] sm:$0xff] }
  0x1e   : > { %v278_v28 = vld [vmem:[%s9496_s19 + $0x148] sm:$0xff]  ;;  %v279_v30 = vld [vmem:[%s9496_s19 + $0x150] sm:$0xff]  ;;  %v280_v32 = vld [vmem:[%s9496_s19 + $0x158] sm:$0xff] }
  0x1f   : > { %8555 = vmatmul.mubr.msk.f32.gmra.mrb[2].mxu0 %vm314_vm0, %v240_v15  ;;  %v249_v33 = vld [vmem:[%s9496_s19 + $0x60] sm:$0xff]  ;;  %v250_v35 = vld [vmem:[%s9496_s19 + $0x68] sm:$0xff]  ;;  %v251_v37 = vld [vmem:[%s9496_s19 + $0x70] sm:$0xff] }
  0x20   : > { %8603 = vmatmul.mubr.msk.f32.gmra.mrb[2].mxu1 %vm314_vm0, %v272_v16  ;;  %8557 = vmatprep.mubr.msk.f32.mxu0 %vm314_vm0, %v241_v17  ;;  %v281_v34 = vld [vmem:[%s9496_s19 + $0x160] sm:$0xff]  ;;  %v282_v36 = vld [vmem:[%s9496_s19 + $0x168] sm:$0xff]  ;;  %v283_v38 = vld [vmem:[%s9496_s19 + $0x170] sm:$0xff] }
  0x21   : > { %8605 = vmatprep.mubr.msk.f32.mxu1 %vm314_vm0, %v273_v18  ;;  %v252_v39 = vld [vmem:[%s9496_s19 + $0x78] sm:$0xff]  ;;  %v253_v41 = vld [vmem:[%s9496_s19 + $0x80] sm:$0xff]  ;;  %v254_v43 = vld [vmem:[%s9496_s19 + $0x88] sm:$0xff] }
  0x22   : > { %v284_v40 = vld [vmem:[%s9496_s19 + $0x178] sm:$0xff]  ;;  %v285_v42 = vld [vmem:[%s9496_s19 + $0x180] sm:$0xff]  ;;  %v286_v44 = vld [vmem:[%s9496_s19 + $0x188] sm:$0xff] }
  0x23   : > { %8558 = vmatmul.mubr.msk.f32.gmra.mrb[4].mxu0 %vm314_vm0, %v242_v19  ;;  %v255_v45 = vld [vmem:[%s9496_s19 + $0x90] sm:$0xff]  ;;  %v256_v47 = vld [vmem:[%s9496_s19 + $0x98] sm:$0xff]  ;;  %v257_v49 = vld [vmem:[%s9496_s19 + $0xa0] sm:$0xff] }
  0x24   : > { %8606 = vmatmul.mubr.msk.f32.gmra.mrb[4].mxu1 %vm314_vm0, %v274_v20  ;;  %8560 = vmatprep.mubr.msk.f32.mxu0 %vm314_vm0, %v243_v21  ;;  %v287_v46 = vld [vmem:[%s9496_s19 + $0x190] sm:$0xff]  ;;  %v288_v48 = vld [vmem:[%s9496_s19 + $0x198] sm:$0xff]  ;;  %v289_v50 = vld [vmem:[%s9496_s19 + $0x1a0] sm:$0xff] }
  0x25   : > { %8608 = vmatprep.mubr.msk.f32.mxu1 %vm314_vm0, %v275_v22  ;;  %v258_v51 = vld [vmem:[%s9496_s19 + $0xa8] sm:$0xff]  ;;  %v259_v53 = vld [vmem:[%s9496_s19 + $0xb0] sm:$0xff]  ;;  %v260_v55 = vld [vmem:[%s9496_s19 + $0xb8] sm:$0xff] }
  0x26   : > { %v290_v52 = vld [vmem:[%s9496_s19 + $0x1a8] sm:$0xff]  ;;  %v291_v54 = vld [vmem:[%s9496_s19 + $0x1b0] sm:$0xff]  ;;  %v292_v56 = vld [vmem:[%s9496_s19 + $0x1b8] sm:$0xff] }
  0x27   : > { %8561 = vmatmul.mubr.msk.f32.gmra.mrb[6].mxu0 %vm314_vm0, %v244_v23  ;;  %v261_v57 = vld [vmem:[%s9496_s19 + $0xc0] sm:$0xff]  ;;  %v262_v59 = vld [vmem:[%s9496_s19 + $0xc8] sm:$0xff]  ;;  %v263_v61 = vld [vmem:[%s9496_s19 + $0xd0] sm:$0xff] }
  0x28   : > { %8609 = vmatmul.mubr.msk.f32.gmra.mrb[6].mxu1 %vm314_vm0, %v276_v24  ;;  %8563 = vmatprep.mubr.msk.f32.mxu0 %vm314_vm0, %v245_v25  ;;  %v293_v58 = vld [vmem:[%s9496_s19 + $0x1c0] sm:$0xff]  ;;  %v294_v60 = vld [vmem:[%s9496_s19 + $0x1c8] sm:$0xff]  ;;  %v295_v62 = vld [vmem:[%s9496_s19 + $0x1d0] sm:$0xff] }
  0x29   : > { %8611 = vmatprep.mubr.msk.f32.mxu1 %vm314_vm0, %v277_v26  ;;  %v264_v63 = vld [vmem:[%s9496_s19 + $0xd8] sm:$0xff]  ;;  %v265_v1 = vld [vmem:[%s9496_s19 + $0xe0] sm:$0xff]  ;;  %v266_v3 = vld [vmem:[%s9496_s19 + $0xe8] sm:$0xff] }
  0x2a   : > { %v296_v0 = vld [vmem:[%s9496_s19 + $0x1d8] sm:$0xff]  ;;  %v297_v2 = vld [vmem:[%s9496_s19 + $0x1e0] sm:$0xff]  ;;  %v298_v4 = vld [vmem:[%s9496_s19 + $0x1e8] sm:$0xff] }
  0x2b   : > { %8564 = vmatmul.mubr.msk.f32.gmra.mrb[8].mxu0 %vm314_vm0, %v246_v27  ;;  %v267_v5 = vld [vmem:[%s9496_s19 + $0xf0] sm:$0xff]  ;;  %v268_v7 = vld [vmem:[%s9496_s19 + $0xf8] sm:$0xff]  ;;  %v9629_v9 = vld [vmem:[%s15263_s2] ss:$0 sm:$0xff] }
  0x2c   : > { %8612 = vmatmul.mubr.msk.f32.gmra.mrb[8].mxu1 %vm314_vm0, %v278_v28  ;;  %8566 = vmatprep.mubr.msk.f32.mxu0 %vm314_vm0, %v247_v29  ;;  %v299_v6 = vld [vmem:[%s9496_s19 + $0x1f0] sm:$0xff]  ;;  %v300_v8 = vld [vmem:[%s9496_s19 + $0x1f8] sm:$0xff] }
  0x2d   : > { %8614 = vmatprep.mubr.msk.f32.mxu1 %vm314_vm0, %v279_v30 }
  0x2f   : > { %8567 = vmatmul.mubr.msk.f32.gmra.mrb[10].mxu0 %vm314_vm0, %v248_v31 }
  0x30   : > { %8615 = vmatmul.mubr.msk.f32.gmra.mrb[10].mxu1 %vm314_vm0, %v280_v32  ;;  %8569 = vmatprep.mubr.msk.f32.mxu0 %vm314_vm0, %v249_v33 }
  0x31   : > { %8617 = vmatprep.mubr.msk.f32.mxu1 %vm314_vm0, %v281_v34 }
  0x33   : > { %8570 = vmatmul.mubr.msk.f32.gmra.mrb[12].mxu0 %vm314_vm0, %v250_v35 }
  0x34   : > { %8618 = vmatmul.mubr.msk.f32.gmra.mrb[12].mxu1 %vm314_vm0, %v282_v36  ;;  %8572 = vmatprep.mubr.msk.f32.mxu0 %vm314_vm0, %v251_v37 }
  0x35   : > { %8620 = vmatprep.mubr.msk.f32.mxu1 %vm314_vm0, %v283_v38 }
  0x37   : > { %8573 = vmatmul.mubr.msk.f32.gmra.mrb[14].mxu0 %vm314_vm0, %v252_v39 }
  0x38   : > { %8621 = vmatmul.mubr.msk.f32.gmra.mrb[14].mxu1 %vm314_vm0, %v284_v40  ;;  %8575 = vmatprep.mubr.msk.f32.mxu0 %vm314_vm0, %v253_v41 }
  0x39   : > { %8623 = vmatprep.mubr.msk.f32.mxu1 %vm314_vm0, %v285_v42 }
  0x3b   : > { %8576 = vmatmul.mubr.msk.f32.gmra.mrb[16].mxu0 %vm314_vm0, %v254_v43 }
  0x3c   : > { %8624 = vmatmul.mubr.msk.f32.gmra.mrb[16].mxu1 %vm314_vm0, %v286_v44  ;;  %8578 = vmatprep.mubr.msk.f32.mxu0 %vm314_vm0, %v255_v45 }
  0x3d   : > { %8626 = vmatprep.mubr.msk.f32.mxu1 %vm314_vm0, %v287_v46 }
  0x3f   : > { %8579 = vmatmul.mubr.msk.f32.gmra.mrb[18].mxu0 %vm314_vm0, %v256_v47 }
  0x40   : > { %8627 = vmatmul.mubr.msk.f32.gmra.mrb[18].mxu1 %vm314_vm0, %v288_v48  ;;  %8581 = vmatprep.mubr.msk.f32.mxu0 %vm314_vm0, %v257_v49 }
  0x41   : > { %8629 = vmatprep.mubr.msk.f32.mxu1 %vm314_vm0, %v289_v50  ;;  %v9401_v50 = vmov 683565275  }
  0x43   : > { %8582 = vmatmul.mubr.msk.f32.gmra.mrb[20].mxu0 %vm314_vm0, %v258_v51 }
  0x44   : > { %8630 = vmatmul.mubr.msk.f32.gmra.mrb[20].mxu1 %vm314_vm0, %v290_v52  ;;  %8584 = vmatprep.mubr.msk.f32.mxu0 %vm314_vm0, %v259_v53 }
  0x45   : > { %8632 = vmatprep.mubr.msk.f32.mxu1 %vm314_vm0, %v291_v54  ;;  %v9402_v54 = vmov 2475754826  }
  0x47   : > { %8585 = vmatmul.mubr.msk.f32.gmra.mrb[22].mxu0 %vm314_vm0, %v260_v55 }
  0x48   : > { %8633 = vmatmul.mubr.msk.f32.gmra.mrb[22].mxu1 %vm314_vm0, %v292_v56  ;;  %8587 = vmatprep.mubr.msk.f32.mxu0 %vm314_vm0, %v261_v57  ;;  %v9403_v56 = vmov 2131351028  }
  0x49   : > { %8635 = vmatprep.mubr.msk.f32.mxu1 %vm314_vm0, %v293_v58  ;;  %v9404_v58 = vmov 2102212464  }
  0x4b   : > { %8588 = vmatmul.mubr.msk.f32.gmra.mrb[24].mxu0 %vm314_vm0, %v262_v59 }
  0x4c   : > { %8636 = vmatmul.mubr.msk.f32.gmra.mrb[24].mxu1 %vm314_vm0, %v294_v60  ;;  %8590 = vmatprep.mubr.msk.f32.mxu0 %vm314_vm0, %v263_v61  ;;  %v9405_v60 = vmov 920167782  }
  0x4d   : > { %8638 = vmatprep.mubr.msk.f32.mxu1 %vm314_vm0, %v295_v62 }
  0x4f   : > { %8591 = vmatmul.mubr.msk.f32.gmra.mrb[26].mxu0 %vm314_vm0, %v264_v63 }
  0x50   : > { %8639 = vmatmul.mubr.msk.f32.gmra.mrb[26].mxu1 %vm314_vm0, %v296_v0  ;;  %8593 = vmatprep.mubr.msk.f32.mxu0 %vm314_vm0, %v265_v1 }
  0x51   : > { %8641 = vmatprep.mubr.msk.f32.mxu1 %vm314_vm0, %v297_v2 }
  0x53   : > { %8594 = vmatmul.mubr.msk.f32.gmra.mrb[28].mxu0 %vm314_vm0, %v266_v3  ;;  %v9406_v3 = vmov 1326507024  }
  0x54   : > { %8642 = vmatmul.mubr.msk.f32.gmra.mrb[28].mxu1 %vm314_vm0, %v298_v4  ;;  %8596 = vmatprep.mubr.msk.f32.mxu0 %vm314_vm0, %v267_v5 }
  0x55   : > { %8644 = vmatprep.mubr.msk.f32.mxu1 %vm314_vm0, %v299_v6 }
  0x57   : > { %8597 = vmatmul.mubr.msk.f32.gmra.mrb[30].mxu0 %vm314_vm0, %v268_v7 }
  0x58   : > { %8645 = vmatmul.mubr.msk.f32.gmra.mrb[30].mxu1 %vm314_vm0, %v300_v8 }
  0xee   : > { %v8553_v10 = vpop.f32.mrb[0].mxu0 }
  0xef   : > { %v8601_v11 = vpop.f32.mrb[0].mxu1  ;;  %v9632_v12 = vadd.f32 %v8553_v10, %v9629_v9  ;;  %v573_v14 = vpop.f32.mrb[1].mxu0 }
  0xf0   : > { %v9635_v13 = vadd.f32 %v8601_v11, %v9629_v9  ;;  %v733_v15 = vpop.f32.mrb[1].mxu1  ;;  %v9638_v16 = vadd.f32 %v9629_v9, %v573_v14 }
  0xf1   : > { %v996_v17 = vand.u32 2147483647, %v9632_v12  ;;  %v999_v18 = vand.u32 2139095040, %v9632_v12  ;;  %v9656_v34 = vadd.f32 %v9629_v9, %v733_v15  ;;  %vm998_vm14 = vcmp.lt.s32.totalorder %v9632_v12, 0 }
  0xf2   : > { %v4324_v19 = vand.u32 2147483647, %v9635_v13  ;;  %v4327_v20 = vand.u32 2139095040, %v9635_v13  ;;  %v9644_v21 = vpop.f32.mrb[2].mxu0  ;;  %v895_v27 = vand.u32 2139095040, %v9638_v16 }
  0xf3   : > { %v9646_v22 = vpop.f32.mrb[2].mxu1  ;;  %v1000_v23 = vshrl.u32 %v999_v18, 23  ;;  %v1003_v24 = vand.u32 8388607, %v996_v17  ;;  %v9653_v29 = vpop.f32.mrb[3].mxu0  ;;  %v4223_v48 = vand.u32 2139095040, %v9656_v34 }
  0xf4   : > { %v4328_v25 = vshrl.u32 %v4327_v20, 23  ;;  %v4331_v26 = vand.u32 8388607, %v4324_v19  ;;  %v896_v31 = vshrl.u32 %v895_v27, 23  ;;  %v892_v37 = vand.u32 2147483647, %v9638_v16 }
  0xf5   : > { %v8197_v28 = vadd.s32 4294967169, %v1000_v23  ;;  %v1004_v32 = vor.u32 8388608, %v1003_v24  ;;  %v9659_v39 = vpop.f32.mrb[3].mxu1  ;;  %vm9759_vm15 = vcmp.le.f32.partialorder %v996_v17, 0.7853982 }
  0xf6   : > { %v8325_v30 = vadd.s32 4294967169, %v4328_v25  ;;  %v4332_v35 = vor.u32 8388608, %v4331_v26  ;;  %v8193_v38 = vadd.s32 4294967169, %v896_v31  ;;  %v9667_v46 = vand.u32 8388607, %v892_v37 }
  0xf7   : > { %v1006_v33 = vadd.s32 1, %v8197_v28  ;;  %v9661_v43 = vshll.u32 %v1004_v32, 8 }
  0xf8   : > { %v4334_v36 = vadd.s32 1, %v8325_v30  ;;  %v9663_v45 = vshll.u32 %v4332_v35, 8  ;;  %v9669_v47 = vadd.s32 1, %v8193_v38 }
  0xf9   : > { %vm1007_vm1 = vcmp.gt.s32.totalorder %v1006_v33, 0 }
  0xfa   : > { %v1008_v40 = vsel %vm1007_vm1, %v1006_v33, 0  ;;  %vm4335_vm2 = vcmp.gt.s32.totalorder %v4334_v36, 0  ;;  %vm903_vm7 = vcmp.gt.s32.totalorder %v9669_v47, 0 }
  0xfb   : > { %v1009_v41 = vshrl.u32 %v1008_v40, 5  ;;  %v1010_v42 = vand.u32 31, %v1008_v40  ;;  %v4336_v44 = vsel %vm4335_vm2, %v4334_v36, 0 }
  0xfc   : > { %v9673_v52 = vshrl.u32 %v4336_v44, 5  ;;  %v4338_v53 = vand.u32 31, %v4336_v44 }
  0xfd   : > { %v1011_v49 = vsub.s32 32, %v1010_v42  ;;  %v1013_v51 = vshll.u32 %v9401_v50, %v1010_v42  ;;  %v1016_v55 = vshll.u32 %v9402_v54, %v1010_v42  ;;  %v1019_v57 = vshll.u32 %v9403_v56, %v1010_v42 }
  0xfe   : > { %v1022_v59 = vshll.u32 %v9404_v58, %v1010_v42  ;;  %v1025_v61 = vshll.u32 %v9405_v60, %v1010_v42  ;;  %vm1028_vm3 = vcmp.lt.s32.totalorder %v1009_v41, 1  ;;  %vm1029_vm4 = vcmp.lt.s32.totalorder %v1009_v41, 2 }
  0xff   : > { %v1014_v62 = vshrl.u32 %v9402_v54, %v1011_v49  ;;  %v1017_v63 = vshrl.u32 %v9403_v56, %v1011_v49  ;;  %v1020_v0 = vshrl.u32 %v9404_v58, %v1011_v49  ;;  %v1012_v1 = vshrl.u32 %v9401_v50, %v1011_v49 }
 0x100   : > { %v1023_v2 = vshrl.u32 %v9405_v60, %v1011_v49  ;;  %v1026_v4 = vshrl.u32 %v9406_v3, %v1011_v49  ;;  %v4339_v8 = vsub.s32 32, %v4338_v53  ;;  %vm1030_vm5 = vcmp.lt.s32.totalorder %v1009_v41, 3 }
 0x101   : > { %v1015_v5 = vor.u32 %v1014_v62, %v1013_v51  ;;  %v1018_v6 = vor.u32 %v1017_v63, %v1016_v55  ;;  %v1021_v7 = vor.u32 %v1020_v0, %v1019_v57  ;;  %vm1031_vm6 = vcmp.lt.s32.totalorder %v1009_v41, 4 }
 0x102   : > { %v1024_v10 = vor.u32 %v1023_v2, %v1022_v59  ;;  %v1027_v11 = vor.u32 %v1026_v4, %v1025_v61  ;;  %v4341_v26 = vshll.u32 %v9401_v50, %v4338_v53  ;;  %v4342_v30 = vshrl.u32 %v9402_v54, %v4339_v8 }
 0x103   : > { %v1032_v14 = vsel %vm1028_vm3, %v1012_v1, %v1015_v5  ;;  %v1033_v15 = vsel %vm1031_vm6, %v1021_v7, 2102212464  ;;  %v1036_v18 = vsel %vm1028_vm3, %v1015_v5, %v1018_v6  ;;  %v1040_v20 = vsel %vm1028_vm3, %v1018_v6, %v1021_v7 }
 0x104   : > { %v1034_v23 = vsel %vm1030_vm5, %v1018_v6, %v1033_v15  ;;  %v1037_v24 = vsel %vm1031_vm6, %v1024_v10, 920167782  ;;  %v1041_v25 = vsel %vm1031_vm6, %v1027_v11, 1326507024  ;;  %v4344_v31 = vshll.u32 %v9402_v54, %v4338_v53 }
 0x105   : > { %v1038_v27 = vsel %vm1030_vm5, %v1021_v7, %v1037_v24  ;;  %v1042_v28 = vsel %vm1030_vm5, %v1024_v10, %v1041_v25  ;;  %v1035_v32 = vsel %vm1029_vm4, %v1032_v14, %v1034_v23  ;;  %v4345_v36 = vshrl.u32 %v9403_v56, %v4339_v8 }
 0x106   : > { %v1039_v33 = vsel %vm1029_vm4, %v1036_v18, %v1038_v27  ;;  %v1043_v35 = vsel %vm1029_vm4, %v1040_v20, %v1042_v28  ;;  %v4343_v49 = vor.u32 %v4342_v30, %v4341_v26  ;;  %v4347_v55 = vshll.u32 %v9403_v56, %v4338_v53 }
 0x107   : > { %v9697_v38 = vmul.u32.u64.low %v9661_v43, %v1043_v35  ;;  %v9698_v40 = vmul.u32.u64.high %v9661_v43, %v1043_v35, %v9697_v38  ;;  %v9701_v42 = vmul.u32.u64.low %v9661_v43, %v1039_v33  ;;  %v9702_v44 = vmul.u32.u64.high %v9661_v43, %v1039_v33, %v9701_v42 }
 0x108   : > { %v4346_v51 = vor.u32 %v4345_v36, %v4344_v31  ;;  %v4348_v57 = vshrl.u32 %v9404_v58, %v4339_v8  ;;  %v4340_v59 = vshrl.u32 %v9401_v50, %v4339_v8  ;;  %v4350_v41 = vshll.u32 %v9404_v58, %v4338_v53 }
 0x109   : > { %v4351_v61 = vshrl.u32 %v9405_v60, %v4339_v8  ;;  %v4354_v62 = vshrl.u32 %v9406_v3, %v4339_v8  ;;  %v1051_v63 = vmul.u32 %v9661_v43, %v1035_v32  ;;  %v4353_v1 = vshll.u32 %v9405_v60, %v4338_v53 }
 0x10a   : > { %v4349_v0 = vor.u32 %v4348_v57, %v4347_v55  ;;  %vm4356_vm8 = vcmp.lt.s32.totalorder %v9673_v52, 1  ;;  %vm1053_vm9 = vc.u32 %v9698_v40, %v9701_v42  ;;  %v1054_v2 = vadd.s32 1, %v9702_v44  ;;  %v9742_v55 = vpop.f32.mrb[4].mxu0 }
 0x10b   : > { %v4352_v4 = vor.u32 %v4351_v61, %v4350_v41  ;;  %vm4357_vm10 = vcmp.lt.s32.totalorder %v9673_v52, 2  ;;  %v4355_v5 = vor.u32 %v4354_v62, %v4353_v1  ;;  %vm4358_vm11 = vcmp.lt.s32.totalorder %v9673_v52, 3 }
 0x10c   : > { %vm4359_vm12 = vcmp.lt.s32.totalorder %v9673_v52, 4  ;;  %v4364_v6 = vsel %vm4356_vm8, %v4343_v49, %v4346_v51  ;;  %v1055_v43 = vsel %vm1053_vm9, %v1054_v2, %v9702_v44  ;;  %v4368_v53 = vsel %vm4356_vm8, %v4346_v51, %v4349_v0 }
 0x10d   : > { %v4361_v7 = vsel %vm4359_vm12, %v4349_v0, 2102212464  ;;  %v4365_v8 = vsel %vm4359_vm12, %v4352_v4, 920167782  ;;  %v1056_v10 = vadd.s32 %v1055_v43, %v1051_v63  ;;  %v4360_v11 = vsel %vm4356_vm8, %v4340_v59, %v4343_v49 }
 0x10e   : > { %v4366_v14 = vsel %vm4358_vm11, %v4349_v0, %v4365_v8  ;;  %v4369_v15 = vsel %vm4359_vm12, %v4355_v5, 1326507024  ;;  %v4362_v18 = vsel %vm4358_vm11, %v4346_v51, %v4361_v7  ;;  %v904_v24 = vsel %vm903_vm7, %v9669_v47, 0 }
 0x10f   : > { %v4367_v20 = vsel %vm4357_vm10, %v4364_v6, %v4366_v14  ;;  %v4370_v23 = vsel %vm4358_vm11, %v4352_v4, %v4369_v15  ;;  %v1057_v25 = vadd.s32 536870912, %v1056_v10  ;;  %v4220_v32 = vand.u32 2147483647, %v9656_v34 }
 0x110   : > { %v4371_v26 = vsel %vm4357_vm10, %v4368_v53, %v4370_v23  ;;  %v9727_v27 = vmul.u32.u64.low %v9663_v45, %v4367_v20  ;;  %v9728_v28 = vmul.u32.u64.high %v9663_v45, %v4367_v20, %v9727_v27  ;;  %v4363_v35 = vsel %vm4357_vm10, %v4360_v11, %v4362_v18 }
 0x111   : > { %v9732_v30 = vmul.u32.u64.low %v9663_v45, %v4371_v26  ;;  %v9733_v31 = vmul.u32.u64.high %v9663_v45, %v4371_v26, %v9732_v30  ;;  %v1058_v33 = vshrl.u32 %v1057_v25, 30  ;;  %v900_v47 = vor.u32 8388608, %v9667_v46 }
 0x112   : > { %v906_v36 = vand.u32 31, %v904_v24  ;;  %v4382_v44 = vadd.s32 1, %v9728_v28  ;;  %v4224_v51 = vshrl.u32 %v4223_v48, 23  ;;  %v4379_v57 = vmul.u32 %v9663_v45, %v4363_v35 }
 0x113   : > { %v1059_v38 = vshll.u32 %v1058_v33, 30  ;;  %vm4381_vm13 = vc.u32 %v9733_v31, %v9727_v27  ;;  %v9749_v52 = vand.u32 8388607, %v4220_v32  ;;  %v9755_v41 = vshll.u32 %v900_v47, 8 }
 0x114   : > { %v907_v49 = vsub.s32 32, %v906_v36  ;;  %v4383_v59 = vsel %vm4381_vm13, %v4382_v44, %v9728_v28  ;;  %v1052_v45 = vadd.s32 %v9701_v42, %v9698_v40  ;;  %v9764_v62 = vshrl.u32 %v904_v24, 5 }
 0x115   : > { %v9752_v46 = vsub.s32 %v1056_v10, %v1059_v38  ;;  %v4384_v61 = vadd.s32 %v4383_v59, %v4379_v57  ;;  %v8321_v4 = vadd.s32 4294967169, %v4224_v51  ;;  %v1082_v5 = vsub.s32 4, %v1058_v33 }
 0x116   : > { %v910_v63 = vshrl.u32 %v9402_v54, %v907_v49  ;;  %v913_v1 = vshrl.u32 %v9403_v56, %v907_v49  ;;  %v916_v2 = vshrl.u32 %v9404_v58, %v907_v49  ;;  %v909_v17 = vshll.u32 %v9401_v50, %v906_v36 }
 0x117   : > { %v1062_v0 = vsub.s32 0, %v9752_v46  ;;  %v4385_v6 = vadd.s32 536870912, %v4384_v61  ;;  %v4228_v43 = vor.u32 8388608, %v9749_v52  ;;  %v912_v42 = vshll.u32 %v9402_v54, %v906_v36 }
 0x118   : > { %v915_v7 = vshll.u32 %v9403_v56, %v906_v36  ;;  %v919_v8 = vshrl.u32 %v9405_v60, %v907_v49  ;;  %v911_v10 = vor.u32 %v910_v63, %v909_v17  ;;  %v918_v11 = vshll.u32 %v9404_v58, %v906_v36 }
 0x119   : > { %v8198_v40 = vmin.u32 %v1062_v0, %v9752_v46  ;;  %v4386_v53 = vshrl.u32 %v4385_v6, 30  ;;  %v922_v14 = vshrl.u32 %v9406_v3, %v907_v49  ;;  %v914_v18 = vor.u32 %v913_v1, %v912_v42 }
 0x11a   : > { %v917_v20 = vor.u32 %v916_v2, %v915_v7  ;;  %v921_v23 = vshll.u32 %v9405_v60, %v906_v36  ;;  %v1083_v24 = vsel %vm998_vm14, %v1082_v5, %v1058_v33  ;;  %v920_v26 = vor.u32 %v919_v8, %v918_v11 }
 0x11b   : > { %v1064_v15 = vclz %v8198_v40  ;;  %v4387_v25 = vshll.u32 %v4386_v53, 30  ;;  %vm924_vm0 = vcmp.lt.s32.totalorder %v9764_v62, 1  ;;  %vm925_vm1 = vcmp.lt.s32.totalorder %v9764_v62, 2 }
 0x11c   : > { %v923_v30 = vor.u32 %v922_v14, %v921_v23  ;;  %vm927_vm2 = vcmp.lt.s32.totalorder %v9764_v62, 4  ;;  %vm4326_vm3 = vcmp.lt.s32.totalorder %v9635_v13, 0  ;;  %v908_v47 = vshrl.u32 %v9401_v50, %v907_v49 }
 0x11d   : > { %v8199_v28 = vadd.s32 4294967294, %v1064_v15  ;;  %v9785_v35 = vsub.s32 %v4384_v61, %v4387_v25  ;;  %vm926_vm4 = vcmp.lt.s32.totalorder %v9764_v62, 3  ;;  %v933_v33 = vsel %vm927_vm2, %v920_v26, 920167782 }
 0x11e   : > { %v1085_v36 = vsel %vm9759_vm15, 0, %v1083_v24  ;;  %v932_v38 = vsel %vm924_vm0, %v911_v10, %v914_v18  ;;  %v934_v44 = vsel %vm926_vm4, %v917_v20, %v933_v33  ;;  %v4410_v59 = vsub.s32 4, %v4386_v53 }
 0x11f   : > { %vm8200_vm5 = vcmp.lt.s32.totalorder %v8199_v28, 0  ;;  %v4390_v57 = vsub.s32 0, %v9785_v35  ;;  %v936_v49 = vsel %vm924_vm0, %v914_v18, %v917_v20  ;;  %vm9802_vm6 = vcmp.le.f32.partialorder %v4324_v19, 0.7853982 }
 0x120   : > { %v1067_v51 = vsel %vm8200_vm5, 0, %v8199_v28  ;;  %v929_v1 = vsel %vm927_vm2, %v917_v20, 2102212464  ;;  %v937_v2 = vsel %vm927_vm2, %v923_v30, 1326507024  ;;  %v935_v17 = vsel %vm925_vm1, %v932_v38, %v934_v44  ;;  %v9822_v20 = vpop.f32.mrb[4].mxu1 }
 0x121   : > { %v1068_v61 = vsub.s32 32, %v1067_v51  ;;  %v1072_v63 = vsub.s32 4294967266, %v1067_v51  ;;  %v1069_v5 = vshll.u32 %v9752_v46, %v1067_v51  ;;  %v8326_v6 = vmin.u32 %v4390_v57, %v9785_v35 }
 0x122   : > { %v938_v40 = vsel %vm926_vm4, %v920_v26, %v937_v2  ;;  %v4230_v8 = vadd.s32 1, %v8321_v4  ;;  %v1089_v11 = vadd.s32 3, %v1085_v36  ;;  %v928_v15 = vsel %vm924_vm0, %v908_v47, %v911_v10 }
 0x123   : > { %v1070_v19 = vshrl.u32 %v1052_v45, %v1068_v61  ;;  %v1073_v42 = vadd.s32 127, %v1072_v63  ;;  %v939_v7 = vsel %vm925_vm1, %v936_v49, %v938_v40  ;;  %v4392_v14 = vclz %v8326_v6 }
 0x124   : > { %v930_v46 = vsel %vm926_vm4, %v914_v18, %v929_v1  ;;  %v9825_v25 = vmul.u32.u64.low %v9755_v41, %v939_v7  ;;  %v9826_v45 = vmul.u32.u64.high %v9755_v41, %v939_v7, %v9825_v25  ;;  %vm4231_vm7 = vcmp.gt.s32.totalorder %v4230_v8, 0 }
 0x125   : > { %v1071_v23 = vor.u32 %v1070_v19, %v1069_v5  ;;  %v1074_v24 = vshll.u32 %v1073_v42, 23  ;;  %v8327_v26 = vadd.s32 4294967294, %v4392_v14  ;;  %v4380_v10 = vadd.s32 %v9727_v27, %v9733_v31 }
 0x126   : > { %v9829_v28 = vmul.u32.u64.low %v9755_v41, %v935_v17  ;;  %v9830_v4 = vmul.u32.u64.high %v9755_v41, %v935_v17, %v9829_v28  ;;  %v4411_v18 = vsel %vm4326_vm3, %v4410_v59, %v4386_v53  ;;  %v4232_v47 = vsel %vm4231_vm7, %v4230_v8, 0 }
 0x127   : > { %v1075_v30 = vor.u32 4788187, %v1074_v24  ;;  %v9837_v33 = vand.u32 3, %v1089_v11  ;;  %vm8328_vm8 = vcmp.lt.s32.totalorder %v8327_v26, 0  ;;  %v931_v36 = vsel %vm925_vm1, %v928_v15, %v930_v46 }
 0x128   : > { %v4234_v38 = vand.u32 31, %v4232_v47  ;;  %v1078_v51 = vcvt.s32.f32 %v1071_v23  ;;  %v4395_v57 = vsel %vm8328_vm8, 0, %v8327_v26  ;;  %vm949_vm9 = vc.u32 %v9826_v45, %v9829_v28 }
 0x129   : > { %v1076_v44 = vand.u32 2147483647, %v1075_v30  ;;  %v4396_v49 = vsub.s32 32, %v4395_v57  ;;  %v4400_v61 = vsub.s32 4294967266, %v4395_v57  ;;  %v4413_v27 = vsel %vm9802_vm6, 0, %v4411_v18 }
 0x12a   : > { %v950_v31 = vadd.s32 1, %v9830_v4  ;;  %v947_v59 = vmul.u32 %v9755_v41, %v931_v36  ;;  %v9847_v63 = vshrl.u32 %v4232_v47, 5  ;;  %v4235_v62 = vsub.s32 32, %v4234_v38 }
 0x12b   : > { %v1079_v53 = vmul.f32 %v1078_v51, %v1076_v44  ;;  %v4397_v1 = vshll.u32 %v9785_v35, %v4395_v57  ;;  %v4398_v2 = vshrl.u32 %v4380_v10, %v4396_v49  ;;  %v4401_v5 = vadd.s32 127, %v4400_v61 }
 0x12c   : > { %v951_v6 = vsel %vm949_vm9, %v950_v31, %v9830_v4  ;;  %v4237_v19 = vshll.u32 %v9401_v50, %v4234_v38  ;;  %v4238_v42 = vshrl.u32 %v9402_v54, %v4235_v62  ;;  %v4240_v11 = vshll.u32 %v9402_v54, %v4234_v38 }
 0x12d   : > { %v1080_v17 = vxor.u32 2147483648, %v1079_v53  ;;  %v952_v40 = vadd.s32 %v951_v6, %v947_v59  ;;  %v4399_v7 = vor.u32 %v4398_v2, %v4397_v1  ;;  %v4402_v8 = vshll.u32 %v4401_v5, 23 }
 0x12e   : > { %v4241_v41 = vshrl.u32 %v9403_v56, %v4235_v62  ;;  %v4243_v15 = vshll.u32 %v9403_v56, %v4234_v38  ;;  %v4244_v46 = vshrl.u32 %v9404_v58, %v4235_v62  ;;  %v4239_v25 = vor.u32 %v4238_v42, %v4237_v19 }
 0x12f   : > { %v1081_v14 = vsel %vm998_vm14, %v1080_v17, %v1079_v53  ;;  %v953_v35 = vadd.s32 536870912, %v952_v40  ;;  %v4403_v24 = vor.u32 4788187, %v4402_v8  ;;  %v4246_v26 = vshll.u32 %v9404_v58, %v4234_v38 }
 0x130   : > { %v1084_v23 = vsel %vm9759_vm15, %v9632_v12, %v1081_v14  ;;  %v4406_v4 = vcvt.s32.f32 %v4399_v7  ;;  %v4247_v10 = vshrl.u32 %v9405_v60, %v4235_v62  ;;  %v4242_v47 = vor.u32 %v4241_v41, %v4240_v11 }
 0x131   : > { %9031 = vcosq.f32 %v1084_v23  ;;  %v9863_v30 = vshrl.u32 %v953_v35, 30  ;;  %v4404_v18 = vand.u32 2147483647, %v4403_v24  ;;  %v4250_v36 = vshrl.u32 %v9406_v3, %v4235_v62 }
 0x132   : > { %9033 = vsinq.f32 %v1084_v23  ;;  %v4248_v51 = vor.u32 %v4247_v10, %v4246_v26  ;;  %v4245_v57 = vor.u32 %v4244_v46, %v4243_v15  ;;  %v4249_v49 = vshll.u32 %v9405_v60, %v4234_v38 }
 0x133   : > { %v955_v44 = vshll.u32 %v9863_v30, 30  ;;  %v4407_v48 = vmul.f32 %v4406_v4, %v4404_v18  ;;  %v4417_v61 = vadd.s32 3, %v4413_v27  ;;  %vm4252_vm10 = vcmp.lt.s32.totalorder %v9847_v63, 1 }
 0x134   : > { %v9874_v53 = vshll.u32 %v4228_v43, 8  ;;  %vm1092_vm11 = vcmp.eq.s32.totalorder %v9837_v33, 0  ;;  %v4251_v1 = vor.u32 %v4250_v36, %v4249_v49  ;;  %vm4255_vm12 = vcmp.lt.s32.totalorder %v9847_v63, 4 }
 0x135   : > { %v9869_v31 = vsub.s32 %v952_v40, %v955_v44  ;;  %v4408_v59 = vxor.u32 2147483648, %v4407_v48  ;;  %v4260_v2 = vsel %vm4252_vm10, %v4239_v25, %v4242_v47  ;;  %vm1091_vm13 = vcmp.lt.s32.totalorder %v9837_v33, 2 }
 0x136   : > { %vm7548_vm14 = vcmask 326656   ;;  %v4236_v27 = vshrl.u32 %v9401_v50, %v4235_v62  ;;  %vm4254_vm15 = vcmp.lt.s32.totalorder %v9847_v63, 3  ;;  %v4261_v52 = vsel %vm4255_vm12, %v4248_v51, 920167782 }
 0x137   : > { %v958_v38 = vsub.s32 0, %v9869_v31  ;;  %vm1088_vm0 = vweird.f32 %v9632_v12  ;;  %v4409_v43 = vsel %vm4326_vm3, %v4408_v59, %v4407_v48  ;;  %vm894_vm1 = vcmp.lt.s32.totalorder %v9638_v16, 0 }
 0x138   : > { %vm4253_vm2 = vcmp.lt.s32.totalorder %v9847_v63, 2  ;;  %v4257_v5 = vsel %vm4255_vm12, %v4245_v57, 2102212464  ;;  %v4262_v62 = vsel %vm4254_vm15, %v4245_v57, %v4261_v52  ;;  %v4412_v6 = vsel %vm9802_vm6, %v9635_v13, %v4409_v43 }
 0x139   : > { %v8194_v17 = vmin.u32 %v958_v38, %v9869_v31  ;;  %v4263_v40 = vsel %vm4253_vm2, %v4260_v2, %v4262_v62  ;;  %v4264_v19 = vsel %vm4252_vm10, %v4242_v47, %v4245_v57  ;;  %9035 = vcosq.f32 %v4412_v6 }
 0x13a   : > { %v4265_v42 = vsel %vm4255_vm12, %v4251_v1, 1326507024  ;;  %v9907_v7 = vmul.u32.u64.low %v9874_v53, %v4263_v40  ;;  %v9908_v8 = vmul.u32.u64.high %v9874_v53, %v4263_v40, %v9907_v7  ;;  %vm1095_vm3 = vcmp.eq.s32.totalorder %v9837_v33, 2 }
 0x13b   : > { %v9032_v11 = vpop.eup %9031  ;;  %9037 = vsinq.f32 %v4412_v6  ;;  %v960_v0 = vclz %v8194_v17  ;;  %v978_v41 = vsub.s32 4, %v9863_v30  ;;  %v4256_v15 = vsel %vm4252_vm10, %v4236_v27, %v4239_v25 }
 0x13c   : > { %v9034_v14 = vpop.eup %9033  ;;  %v1096_v35 = vxor.u32 2147483648, %v9032_v11  ;;  %v4258_v46 = vsel %vm4254_vm15, %v4242_v47, %v4257_v5  ;;  %v4266_v23 = vsel %vm4254_vm15, %v4248_v51, %v4265_v42  ;;  %v9923_v10 = vadd.f32 %v9644_v21, %v9629_v9 }
 0x13d   : > { %v1093_v24 = vxor.u32 2147483648, %v9034_v14  ;;  %v8195_v26 = vadd.s32 4294967294, %v960_v0  ;;  %v4267_v4 = vsel %vm4253_vm2, %v4264_v19, %v4266_v23  ;;  %v4418_v36 = vand.u32 3, %v4417_v61 }
 0x13e   : > { %v1097_v18 = vsel %vm1095_vm3, %v1096_v35, %v9034_v14  ;;  %v9926_v44 = vmul.u32.u64.low %v9874_v53, %v4267_v4  ;;  %v9927_v25 = vmul.u32.u64.high %v9874_v53, %v4267_v4, %v9926_v44  ;;  %v4259_v51 = vsel %vm4253_vm2, %v4256_v15, %v4258_v46 }
 0x13f   : > { %v1094_v47 = vsel %vm1092_vm11, %v9032_v11, %v1093_v24  ;;  %vm8196_vm4 = vcmp.lt.s32.totalorder %v8195_v26, 0  ;;  %v4278_v48 = vadd.s32 1, %v9908_v8  ;;  %v948_v21 = vadd.s32 %v9829_v28, %v9826_v45 }
 0x140   : > { %v1098_v57 = vsel %vm1091_vm13, %v1094_v47, %v1097_v18  ;;  %v963_v49 = vsel %vm8196_vm4, 0, %v8195_v26  ;;  %v1207_v61 = vand.u32 2139095040, %v9923_v10  ;;  %vm4416_vm5 = vweird.f32 %v9635_v13 }
 0x141   : > { %v1099_v59 = vsel %vm1088_vm0, nan, %v1098_v57  ;;  %v964_v1 = vsub.s32 32, %v963_v49  ;;  %v968_v2 = vsub.s32 4294967266, %v963_v49  ;;  %v979_v63 = vsel %vm894_vm1, %v978_v41, %v9863_v30  ;;  %v9955_v30 = vpop.f32.mrb[5].mxu0 }
 0x142   : > { %7550 = vst.msk [vmem:[%s9945_s25 + $0x8] sm:$0xff] %vm7548_vm14, %v1099_v59  ;;  %v4275_v45 = vmul.u32 %v9874_v53, %v4259_v51  ;;  %vm4277_vm6 = vc.u32 %v9927_v25, %v9907_v7  ;;  %v1204_v12 = vand.u32 2147483647, %v9923_v10  ;;  %v1208_v28 = vshrl.u32 %v1207_v61, 23 }
 0x143   : > { %v965_v33 = vshll.u32 %v9869_v31, %v963_v49  ;;  %v966_v38 = vshrl.u32 %v948_v21, %v964_v1  ;;  %v969_v27 = vadd.s32 127, %v968_v2  ;;  %v4279_v52 = vsel %vm4277_vm6, %v4278_v48, %v9908_v8  ;;  %v9036_v43 = vpop.eup %9035 }
 0x144   : > { %vm4423_vm7 = vcmp.eq.s32.totalorder %v4418_v36, 2  ;;  %vm9959_vm8 = vcmp.le.f32.partialorder %v892_v37, 0.7853982  ;;  %v4280_v5 = vadd.s32 %v4279_v52, %v4275_v45  ;;  %v8205_v62 = vadd.s32 4294967169, %v1208_v28 }
 0x145   : > { %v9038_v6 = vpop.eup %9037  ;;  %v4424_v17 = vxor.u32 2147483648, %v9036_v43  ;;  %v967_v40 = vor.u32 %v966_v38, %v965_v33  ;;  %v970_v31 = vshll.u32 %v969_v27, 23  ;;  %v981_v19 = vsel %vm9959_vm8, 0, %v979_v63 }
 0x146   : > { %v4421_v42 = vxor.u32 2147483648, %v9038_v6  ;;  %v4281_v8 = vadd.s32 536870912, %v4280_v5  ;;  %v1211_v11 = vand.u32 8388607, %v1204_v12  ;;  %v1214_v0 = vadd.s32 1, %v8205_v62 }
 0x147   : > { %vm4419_vm9 = vcmp.lt.s32.totalorder %v4418_v36, 2  ;;  %vm4420_vm10 = vcmp.eq.s32.totalorder %v4418_v36, 0  ;;  %v4425_v37 = vsel %vm4423_vm7, %v4424_v17, %v9038_v6  ;;  %v971_v41 = vor.u32 4788187, %v970_v31 }
 0x148   : > { %v4422_v14 = vsel %vm4420_vm10, %v9036_v43, %v4421_v42  ;;  %v985_v35 = vadd.s32 3, %v981_v19  ;;  %v9967_v15 = vshrl.u32 %v4281_v8, 30  ;;  %vm1215_vm11 = vcmp.gt.s32.totalorder %v1214_v0, 0 }
 0x149   : > { %v4426_v46 = vsel %vm4419_vm9, %v4422_v14, %v4425_v37  ;;  %v972_v23 = vand.u32 2147483647, %v971_v41  ;;  %v974_v24 = vcvt.s32.f32 %v967_v40  ;;  %v1216_v26 = vsel %vm1215_vm11, %v1214_v0, 0  ;;  %v10023_v37 = vpop.f32.mrb[5].mxu1 }
 0x14a   : > { %v4427_v4 = vsel %vm4416_vm5, nan, %v4426_v46  ;;  %v4283_v18 = vshll.u32 %v9967_v15, 30  ;;  %v1212_v44 = vor.u32 8388608, %v1211_v11  ;;  %v1218_v47 = vand.u32 31, %v1216_v26 }
 0x14b   : > { %7582 = vst.msk [vmem:[%s9945_s25 + $0x108] sm:$0xff] %vm7548_vm14, %v4427_v4  ;;  %v975_v36 = vmul.f32 %v974_v24, %v972_v23  ;;  %v9974_v51 = vand.u32 3, %v985_v35  ;;  %v4276_v21 = vadd.s32 %v9907_v7, %v9927_v25  ;;  %v9982_v13 = vadd.f32 %v9646_v22, %v9629_v9 }
 0x14c   : > { %v9976_v48 = vsub.s32 %v4280_v5, %v4283_v18  ;;  %v1219_v49 = vsub.s32 32, %v1218_v47  ;;  %v9985_v59 = vshrl.u32 %v1216_v26, 5  ;;  %v9987_v1 = vshll.u32 %v1212_v44, 8 }
 0x14d   : > { %v976_v57 = vxor.u32 2147483648, %v975_v36  ;;  %v9991_v2 = vadd.f32 %v9629_v9, %v9653_v29  ;;  %v1221_v7 = vshll.u32 %v9401_v50, %v1218_v47  ;;  %v1224_v33 = vshll.u32 %v9402_v54, %v1218_v47 }
 0x14e   : > { %v4286_v61 = vsub.s32 0, %v9976_v48  ;;  %v1222_v25 = vshrl.u32 %v9402_v54, %v1219_v49  ;;  %v1225_v22 = vshrl.u32 %v9403_v56, %v1219_v49  ;;  %v1228_v9 = vshrl.u32 %v9404_v58, %v1219_v49 }
 0x14f   : > { %v977_v63 = vsel %vm894_vm1, %v976_v57, %v975_v36  ;;  %v4306_v29 = vsub.s32 4, %v9967_v15  ;;  %v1227_v38 = vshll.u32 %v9403_v56, %v1218_v47  ;;  %v4535_v27 = vand.u32 2139095040, %v9982_v13 }
 0x150   : > { %v980_v45 = vsel %vm9959_vm8, %v9638_v16, %v977_v63  ;;  %v8322_v28 = vmin.u32 %v4286_v61, %v9976_v48  ;;  %v1223_v43 = vor.u32 %v1222_v25, %v1221_v7  ;;  %v1226_v5 = vor.u32 %v1225_v22, %v1224_v33 }
 0x151   : > { %9039 = vcosq.f32 %v980_v45  ;;  %v1229_v62 = vor.u32 %v1228_v9, %v1227_v38  ;;  %v1230_v53 = vshll.u32 %v9404_v58, %v1218_v47  ;;  %v1231_v6 = vshrl.u32 %v9405_v60, %v1219_v49 }
 0x152   : > { %9041 = vsinq.f32 %v980_v45  ;;  %v4288_v52 = vclz %v8322_v28  ;;  %vm1236_vm12 = vcmp.lt.s32.totalorder %v9985_v59, 1  ;;  %v1233_v40 = vshll.u32 %v9405_v60, %v1218_v47 }
 0x153   : > { %v1234_v31 = vshrl.u32 %v9406_v3, %v1219_v49  ;;  %vm1237_vm13 = vcmp.lt.s32.totalorder %v9985_v59, 2  ;;  %vm991_vm15 = vcmp.eq.s32.totalorder %v9974_v51, 2  ;;  %v1220_v19 = vshrl.u32 %v9401_v50, %v1219_v49 }
 0x154   : > { %v8323_v17 = vadd.s32 4294967294, %v4288_v52  ;;  %v1232_v42 = vor.u32 %v1231_v6, %v1230_v53  ;;  %vm1238_vm0 = vcmp.lt.s32.totalorder %v9985_v59, 3  ;;  %vm1239_vm1 = vcmp.lt.s32.totalorder %v9985_v59, 4 }
 0x155   : > { %vm988_vm2 = vcmp.eq.s32.totalorder %v9974_v51, 0  ;;  %vm4222_vm3 = vcmp.lt.s32.totalorder %v9656_v34, 0  ;;  %v1235_v8 = vor.u32 %v1234_v31, %v1233_v40  ;;  %v1241_v11 = vsel %vm1239_vm1, %v1229_v62, 2102212464 }
 0x156   : > { %vm8324_vm4 = vcmp.lt.s32.totalorder %v8323_v17, 0  ;;  %v1244_v0 = vsel %vm1236_vm12, %v1223_v43, %v1226_v5  ;;  %vm987_vm5 = vcmp.lt.s32.totalorder %v9974_v51, 2  ;;  %v1240_v14 = vsel %vm1236_vm12, %v1220_v19, %v1223_v43 }
 0x157   : > { %v4291_v41 = vsel %vm8324_vm4, 0, %v8323_v17  ;;  %v1245_v35 = vsel %vm1239_vm1, %v1232_v42, 920167782  ;;  %v4536_v46 = vshrl.u32 %v4535_v27, 23  ;;  %vm984_vm6 = vweird.f32 %v9638_v16 }
 0x158   : > { %v4292_v23 = vsub.s32 32, %v4291_v41  ;;  %v4296_v24 = vsub.s32 4294967266, %v4291_v41  ;;  %v1246_v26 = vsel %vm1238_vm0, %v1229_v62, %v1245_v35  ;;  %v1248_v4 = vsel %vm1236_vm12, %v1226_v5, %v1229_v62 }
 0x159   : > { %vm10037_vm7 = vcmp.le.f32.partialorder %v4220_v32, 0.7853982  ;;  %v1242_v44 = vsel %vm1238_vm0, %v1226_v5, %v1241_v11  ;;  %v1247_v36 = vsel %vm1237_vm13, %v1244_v0, %v1246_v26  ;;  %v1249_v47 = vsel %vm1239_vm1, %v1235_v8, 1326507024 }
 0x15a   : > { %v8333_v57 = vadd.s32 4294967169, %v4536_v46  ;;  %v4293_v49 = vshll.u32 %v9976_v48, %v4291_v41  ;;  %v4294_v61 = vshrl.u32 %v4276_v21, %v4292_v23  ;;  %v4297_v63 = vadd.s32 127, %v4296_v24 }
 0x15b   : > { %v1250_v32 = vsel %vm1238_vm0, %v1232_v42, %v1249_v47  ;;  %v9040_v7 = vpop.eup %9039  ;;  %v10053_v22 = vmul.u32.u64.low %v9987_v1, %v1247_v36  ;;  %v10054_v45 = vmul.u32.u64.high %v9987_v1, %v1247_v36, %v10053_v22  ;;  %v4532_v48 = vand.u32 2147483647, %v9982_v13 }
 0x15c   : > { %v1251_v25 = vsel %vm1237_vm13, %v1248_v4, %v1250_v32  ;;  %v4542_v28 = vadd.s32 1, %v8333_v57  ;;  %v9042_v33 = vpop.eup %9041  ;;  %v992_v9 = vxor.u32 2147483648, %v9040_v7  ;;  %v4295_v38 = vor.u32 %v4294_v61, %v4293_v49 }
 0x15d   : > { %v4298_v27 = vshll.u32 %v4297_v63, 23  ;;  %v989_v21 = vxor.u32 2147483648, %v9042_v33  ;;  %v10059_v52 = vmul.u32.u64.low %v9987_v1, %v1251_v25  ;;  %v10060_v43 = vmul.u32.u64.high %v9987_v1, %v1251_v25, %v10059_v52 }
 0x15e   : > { %vm4543_vm8 = vcmp.gt.s32.totalorder %v4542_v28, 0  ;;  %v993_v5 = vsel %vm991_vm15, %v992_v9, %v9042_v33  ;;  %v1243_v53 = vsel %vm1237_vm13, %v1240_v14, %v1242_v44  ;;  %v4307_v40 = vsel %vm4222_vm3, %v4306_v29, %v9967_v15 }
 0x15f   : > { %v4299_v62 = vor.u32 4788187, %v4298_v27  ;;  %v4544_v6 = vsel %vm4543_vm8, %v4542_v28, 0  ;;  %v990_v17 = vsel %vm988_vm2, %v9040_v7, %v989_v21  ;;  %v1262_v31 = vadd.s32 1, %v10054_v45 }
 0x160   : > { %v4546_v19 = vand.u32 31, %v4544_v6  ;;  %v994_v42 = vsel %vm987_vm5, %v990_v17, %v993_v5  ;;  %v4302_v11 = vcvt.s32.f32 %v4295_v38  ;;  %v4539_v59 = vand.u32 8388607, %v4532_v48 }
 0x161   : > { %v4300_v8 = vand.u32 2147483647, %v4299_v62  ;;  %v995_v0 = vsel %vm984_vm6, nan, %v994_v42  ;;  %v1259_v41 = vmul.u32 %v9987_v1, %v1243_v53  ;;  %vm1261_vm9 = vc.u32 %v10060_v43, %v10053_v22 }
 0x162   : > { %v4547_v15 = vsub.s32 32, %v4546_v19  ;;  %7549 = vst.msk [vmem:[%s9945_s25] sm:$0xff] %vm7548_vm14, %v995_v0  ;;  %v4309_v51 = vsel %vm10037_vm7, 0, %v4307_v40  ;;  %v1263_v14 = vsel %vm1261_vm9, %v1262_v31, %v10054_v45  ;;  %v4545_v35 = vshrl.u32 %v4544_v6, 5 }
 0x163   : > { %v4303_v29 = vmul.f32 %v4302_v11, %v4300_v8  ;;  %v1264_v46 = vadd.s32 %v1263_v14, %v1259_v41  ;;  %v4549_v23 = vshll.u32 %v9401_v50, %v4546_v19  ;;  %v4552_v26 = vshll.u32 %v9402_v54, %v4546_v19 }
 0x164   : > { %v4550_v16 = vshrl.u32 %v9402_v54, %v4547_v15  ;;  %v4553_v1 = vshrl.u32 %v9403_v56, %v4547_v15  ;;  %v4555_v4 = vshll.u32 %v9403_v56, %v4546_v19  ;;  %v4556_v44 = vshrl.u32 %v9404_v58, %v4547_v15 }
 0x165   : > { %v4304_v24 = vxor.u32 2147483648, %v4303_v29  ;;  %v1265_v36 = vadd.s32 536870912, %v1264_v46  ;;  %v4558_v57 = vshll.u32 %v9404_v58, %v4546_v19  ;;  %v4559_v49 = vshrl.u32 %v9405_v60, %v4547_v15 }
 0x166   : > { %v4551_v47 = vor.u32 %v4550_v16, %v4549_v23  ;;  %v4554_v63 = vor.u32 %v4553_v1, %v4552_v26  ;;  %v4557_v32 = vor.u32 %v4556_v44, %v4555_v4  ;;  %v4562_v7 = vshrl.u32 %v9406_v3, %v4547_v15 }
 0x167   : > { %v4305_v61 = vsel %vm4222_vm3, %v4304_v24, %v4303_v29  ;;  %v1266_v45 = vshrl.u32 %v1265_v36, 30  ;;  %v4560_v28 = vor.u32 %v4559_v49, %v4558_v57  ;;  %v4561_v33 = vshll.u32 %v9405_v60, %v4546_v19 }
 0x168   : > { %v4308_v25 = vsel %vm10037_vm7, %v9656_v34, %v4305_v61  ;;  %v4313_v9 = vadd.s32 3, %v4309_v51  ;;  %v4540_v38 = vor.u32 8388608, %v4539_v59  ;;  %vm4564_vm10 = vcmp.lt.s32.totalorder %v4545_v35, 1 }
 0x169   : > { %9043 = vcosq.f32 %v4308_v25  ;;  %v1267_v27 = vshll.u32 %v1266_v45, 30  ;;  %v4563_v21 = vor.u32 %v4562_v7, %v4561_v33  ;;  %vm4567_vm11 = vcmp.lt.s32.totalorder %v4545_v35, 4 }
 0x16a   : > { %9045 = vsinq.f32 %v4308_v25  ;;  %v4548_v52 = vshrl.u32 %v9401_v50, %v4547_v15  ;;  %vm4566_vm12 = vcmp.lt.s32.totalorder %v4545_v35, 3  ;;  %v4572_v5 = vsel %vm4564_vm10, %v4551_v47, %v4554_v63 }
 0x16b   : > { %v4573_v18 = vsel %vm4567_vm11, %v4560_v28, 920167782  ;;  %v10106_v62 = vsub.s32 %v1264_v46, %v1267_v27  ;;  %vm4565_vm13 = vcmp.lt.s32.totalorder %v4545_v35, 2  ;;  %v4569_v53 = vsel %vm4567_vm11, %v4557_v32, 2102212464 }
 0x16c   : > { %v4574_v6 = vsel %vm4566_vm12, %v4557_v32, %v4573_v18  ;;  %v1290_v17 = vsub.s32 4, %v1266_v45  ;;  %v4576_v31 = vsel %vm4564_vm10, %v4554_v63, %v4557_v32  ;;  %v4580_v19 = vshll.u32 %v4540_v38, 8 }
 0x16d   : > { %v4575_v40 = vsel %vm4565_vm13, %v4572_v5, %v4574_v6  ;;  %v4314_v42 = vand.u32 3, %v4313_v9  ;;  %v1270_v8 = vsub.s32 0, %v10106_v62  ;;  %v4568_v11 = vsel %vm4564_vm10, %v4548_v52, %v4551_v47 }
 0x16e   : > { %v4577_v59 = vsel %vm4567_vm11, %v4563_v21, 1326507024  ;;  %v4570_v0 = vsel %vm4566_vm12, %v4554_v63, %v4569_v53  ;;  %v10117_v15 = vmul.u32.u64.low %v4580_v19, %v4575_v40  ;;  %v10118_v29 = vmul.u32.u64.high %v4580_v19, %v4575_v40, %v10117_v15  ;;  %v10151_v40 = vpop.f32.mrb[6].mxu0 }
 0x16f   : > { %v4578_v41 = vsel %vm4566_vm12, %v4560_v28, %v4577_v59  ;;  %vm4312_vm15 = vweird.f32 %v9656_v34  ;;  %vm1206_vm0 = vcmp.lt.s32.totalorder %v9923_v10, 0  ;;  %v8206_v51 = vmin.u32 %v1270_v8, %v10106_v62 }
 0x170   : > { %v4579_v14 = vsel %vm4565_vm13, %v4576_v31, %v4578_v41  ;;  %v1291_v46 = vsel %vm1206_vm0, %v1290_v17, %v1266_v45  ;;  %v1103_v1 = vand.u32 2139095040, %v9991_v2  ;;  %vm10132_vm1 = vcmp.le.f32.partialorder %v1204_v12, 0.7853982 }
 0x171   : > { %v10126_v23 = vmul.u32.u64.low %v4580_v19, %v4579_v14  ;;  %v10127_v16 = vmul.u32.u64.high %v4580_v19, %v4579_v14, %v10126_v23  ;;  %v1272_v26 = vclz %v8206_v51  ;;  %v4571_v4 = vsel %vm4565_vm13, %v4568_v11, %v4570_v0 }
 0x172   : > { %v1100_v44 = vand.u32 2147483647, %v9991_v2  ;;  %vm4315_vm2 = vcmp.lt.s32.totalorder %v4314_v42, 2  ;;  %vm4316_vm3 = vcmp.eq.s32.totalorder %v4314_v42, 0  ;;  %v4590_v47 = vadd.s32 1, %v10118_v29 }
 0x173   : > { %v9044_v36 = vpop.eup %9043  ;;  %v1104_v57 = vshrl.u32 %v1103_v1, 23  ;;  %vm4319_vm4 = vcmp.eq.s32.totalorder %v4314_v42, 2  ;;  %v8207_v63 = vadd.s32 4294967294, %v1272_v26  ;;  %v1293_v12 = vsel %vm10132_vm1, 0, %v1291_v46 }
 0x174   : > { %v9046_v49 = vpop.eup %9045  ;;  %v4320_v61 = vxor.u32 2147483648, %v9044_v36  ;;  %v4587_v7 = vmul.u32 %v4580_v19, %v4571_v4  ;;  %vm4589_vm5 = vc.u32 %v10127_v16, %v10117_v15  ;;  %v1107_v28 = vand.u32 8388607, %v1100_v44 }
 0x175   : > { %v4317_v32 = vxor.u32 2147483648, %v9046_v49  ;;  %v8201_v35 = vadd.s32 4294967169, %v1104_v57  ;;  %vm8208_vm6 = vcmp.lt.s32.totalorder %v8207_v63, 0  ;;  %v4591_v45 = vsel %vm4589_vm5, %v4590_v47, %v10118_v29 }
 0x176   : > { %v4321_v25 = vsel %vm4319_vm4, %v4320_v61, %v9046_v49  ;;  %v1275_v9 = vsel %vm8208_vm6, 0, %v8207_v63  ;;  %v4592_v38 = vadd.s32 %v4591_v45, %v4587_v7  ;;  %v1260_v52 = vadd.s32 %v10053_v22, %v10060_v43 }
 0x177   : > { %v4318_v33 = vsel %vm4316_vm3, %v9044_v36, %v4317_v32  ;;  %v1110_v27 = vadd.s32 1, %v8201_v35  ;;  %v1276_v5 = vsub.s32 32, %v1275_v9  ;;  %v1280_v18 = vsub.s32 4294967266, %v1275_v9 }
 0x178   : > { %v4322_v21 = vsel %vm4315_vm2, %v4318_v33, %v4321_v25  ;;  %v1297_v6 = vadd.s32 3, %v1293_v12  ;;  %v4593_v17 = vadd.s32 536870912, %v4592_v38  ;;  %v1277_v31 = vshll.u32 %v10106_v62, %v1275_v9  ;;  %v10163_v62 = vld [vmem:[%s15263_s2] ss:$0 sm:$0xff] }
 0x179   : > { %v4323_v53 = vsel %vm4312_vm15, nan, %v4322_v21  ;;  %vm1111_vm7 = vcmp.gt.s32.totalorder %v1110_v27, 0  ;;  %v1278_v19 = vshrl.u32 %v1260_v52, %v1276_v5  ;;  %v1281_v42 = vadd.s32 127, %v1280_v18 }
 0x17a   : > { %7581 = vst.msk [vmem:[%s9945_s25 + $0x100] sm:$0xff] %vm7548_vm14, %v4323_v53  ;;  %v1112_v8 = vsel %vm1111_vm7, %v1110_v27, 0  ;;  %v4594_v11 = vshrl.u32 %v4593_v17, 30  ;;  %v1108_v59 = vor.u32 8388608, %v1107_v28  ;;  %v10156_v41 = vand.u32 3, %v1297_v6 }
 0x17b   : > { %v1114_v22 = vand.u32 31, %v1112_v8  ;;  %v1279_v43 = vor.u32 %v1278_v19, %v1277_v31  ;;  %v1282_v0 = vshll.u32 %v1281_v42, 23  ;;  %vm4534_vm8 = vcmp.lt.s32.totalorder %v9982_v13, 0 }
 0x17c   : > { %v4595_v34 = vshll.u32 %v4594_v11, 30  ;;  %v4588_v14 = vadd.s32 %v10117_v15, %v10127_v16  ;;  %v10167_v46 = vadd.f32 %v10163_v62, %v9659_v39  ;;  %v10171_v23 = vadd.f32 %v10163_v62, %v9742_v55 }
 0x17d   : > { %v1115_v29 = vsub.s32 32, %v1114_v22  ;;  %v1283_v51 = vor.u32 4788187, %v1282_v0  ;;  %v1113_v26 = vshrl.u32 %v1112_v8, 5  ;;  %v10176_v36 = vshll.u32 %v1108_v59, 8 }
 0x17e   : > { %v10173_v1 = vsub.s32 %v4592_v38, %v4595_v34  ;;  %v1286_v16 = vcvt.s32.f32 %v1279_v43  ;;  %v4618_v49 = vsub.s32 4, %v4594_v11  ;;  %v1117_v61 = vshll.u32 %v9401_v50, %v1114_v22 }
 0x17f   : > { %v1118_v4 = vshrl.u32 %v9402_v54, %v1115_v29  ;;  %v1284_v15 = vand.u32 2147483647, %v1283_v51  ;;  %v1121_v47 = vshrl.u32 %v9403_v56, %v1115_v29  ;;  %v1124_v57 = vshrl.u32 %v9404_v58, %v1115_v29 }
 0x180   : > { %v4598_v39 = vsub.s32 0, %v10173_v1  ;;  %v1120_v55 = vshll.u32 %v9402_v54, %v1114_v22  ;;  %v1123_v12 = vshll.u32 %v9403_v56, %v1114_v22  ;;  %v1126_v32 = vshll.u32 %v9404_v58, %v1114_v22 }
 0x181   : > { %v1287_v63 = vmul.f32 %v1286_v16, %v1284_v15  ;;  %v1127_v7 = vshrl.u32 %v9405_v60, %v1115_v29  ;;  %v1119_v25 = vor.u32 %v1118_v4, %v1117_v61  ;;  %v1130_v28 = vshrl.u32 %v9406_v3, %v1115_v29 }
 0x182   : > { %v8334_v35 = vmin.u32 %v4598_v39, %v10173_v1  ;;  %v1122_v45 = vor.u32 %v1121_v47, %v1120_v55  ;;  %v1125_v9 = vor.u32 %v1124_v57, %v1123_v12  ;;  %v1129_v27 = vshll.u32 %v9405_v60, %v1114_v22  ;;  %v10201_v22 = vpop.f32.mrb[6].mxu1 }
 0x183   : > { %v1288_v33 = vxor.u32 2147483648, %v1287_v63  ;;  %v1128_v38 = vor.u32 %v1127_v7, %v1126_v32  ;;  %v4619_v52 = vsel %vm4534_vm8, %v4618_v49, %v4594_v11  ;;  %v1116_v5 = vshrl.u32 %v9401_v50, %v1115_v29 }
 0x184   : > { %v4600_v21 = vclz %v8334_v35  ;;  %v4431_v18 = vand.u32 2139095040, %v10167_v46  ;;  %v1131_v6 = vor.u32 %v1130_v28, %v1129_v27  ;;  %vm1132_vm9 = vcmp.lt.s32.totalorder %v1113_v26, 1 }
 0x185   : > { %v1289_v53 = vsel %vm1206_vm0, %v1288_v33, %v1287_v63  ;;  %vm1133_vm10 = vcmp.lt.s32.totalorder %v1113_v26, 2  ;;  %vm1134_vm11 = vcmp.lt.s32.totalorder %v1113_v26, 3  ;;  %vm1135_vm12 = vcmp.lt.s32.totalorder %v1113_v26, 4 }
 0x186   : > { %v1292_v17 = vsel %vm10132_vm1, %v9923_v10, %v1289_v53  ;;  %v8335_v31 = vadd.s32 4294967294, %v4600_v21  ;;  %v1137_v19 = vsel %vm1135_vm12, %v1125_v9, 2102212464  ;;  %v1140_v42 = vsel %vm1132_vm9, %v1119_v25, %v1122_v45 }
 0x187   : > { %9047 = vcosq.f32 %v1292_v17  ;;  %v1141_v8 = vsel %vm1135_vm12, %v1128_v38, 920167782  ;;  %v1136_v11 = vsel %vm1132_vm9, %v1116_v5, %v1119_v25  ;;  %v1144_v0 = vsel %vm1132_vm9, %v1122_v45, %v1125_v9 }
 0x188   : > { %9049 = vsinq.f32 %v1292_v17  ;;  %vm8336_vm13 = vcmp.lt.s32.totalorder %v8335_v31, 0  ;;  %v1142_v59 = vsel %vm1134_vm11, %v1125_v9, %v1141_v8  ;;  %v1145_v34 = vsel %vm1135_vm12, %v1131_v6, 1326507024 }
 0x189   : > { %v4603_v43 = vsel %vm8336_vm13, 0, %v8335_v31  ;;  %v1143_v24 = vsel %vm1133_vm10, %v1140_v42, %v1142_v59  ;;  %v1138_v4 = vsel %vm1134_vm11, %v1122_v45, %v1137_v19  ;;  %v1146_v15 = vsel %vm1134_vm11, %v1128_v38, %v1145_v34 }
 0x18a   : > { %v4604_v29 = vsub.s32 32, %v4603_v43  ;;  %v4608_v51 = vsub.s32 4294967266, %v4603_v43  ;;  %v4605_v16 = vshll.u32 %v10173_v1, %v4603_v43  ;;  %v1147_v47 = vsel %vm1133_vm10, %v1144_v0, %v1146_v15 }
 0x18b   : > { %v10210_v57 = vmul.u32.u64.low %v10176_v36, %v1143_v24  ;;  %v10211_v39 = vmul.u32.u64.high %v10176_v36, %v1143_v24, %v10210_v57  ;;  %v10215_v55 = vmul.u32.u64.low %v10176_v36, %v1147_v47  ;;  %v10216_v63 = vmul.u32.u64.high %v10176_v36, %v1147_v47, %v10215_v55 }
 0x18c   : > { %v4606_v49 = vshrl.u32 %v4588_v14, %v4604_v29  ;;  %v4609_v61 = vadd.s32 127, %v4608_v51  ;;  %vm10220_vm15 = vcmp.le.f32.partialorder %v4532_v48, 0.7853982  ;;  %v1139_v1 = vsel %vm1133_vm10, %v1136_v11, %v1138_v4 }
 0x18d   : > { %v4432_v32 = vshrl.u32 %v4431_v18, 23  ;;  %v4621_v25 = vsel %vm10220_vm15, 0, %v4619_v52  ;;  %v1158_v14 = vadd.s32 1, %v10211_v39  ;;  %v4428_v45 = vand.u32 2147483647, %v10167_v46 }
 0x18e   : > { %v4607_v7 = vor.u32 %v4606_v49, %v4605_v16  ;;  %v4610_v35 = vshll.u32 %v4609_v61, 23  ;;  %v1415_v33 = vand.u32 2139095040, %v10171_v23  ;;  %vm1300_vm0 = vcmp.eq.s32.totalorder %v10156_v41, 0 }
 0x18f   : > { %v8329_v28 = vadd.s32 4294967169, %v4432_v32  ;;  %v1155_v9 = vmul.u32 %v10176_v36, %v1139_v1  ;;  %vm1157_vm1 = vc.u32 %v10216_v63, %v10210_v57  ;;  %vm1303_vm2 = vcmp.eq.s32.totalorder %v10156_v41, 2 }
 0x190   : > { %v4611_v48 = vor.u32 4788187, %v4610_v35  ;;  %v4625_v38 = vadd.s32 3, %v4621_v25  ;;  %v1159_v27 = vsel %vm1157_vm1, %v1158_v14, %v10211_v39  ;;  %v4614_v53 = vcvt.s32.f32 %v4607_v7 }
 0x191   : > { %v9048_v26 = vpop.eup %9047  ;;  %v4438_v21 = vadd.s32 1, %v8329_v28  ;;  %v1160_v6 = vadd.s32 %v1159_v27, %v1155_v9  ;;  %v4435_v31 = vand.u32 8388607, %v4428_v45  ;;  %v1416_v36 = vshrl.u32 %v1415_v33, 23 }
 0x192   : > { %v9050_v52 = vpop.eup %9049  ;;  %v1304_v5 = vxor.u32 2147483648, %v9048_v26  ;;  %v4612_v18 = vand.u32 2147483647, %v4611_v48  ;;  %vm1296_vm4 = vweird.f32 %v9923_v10  ;;  %vm1299_vm5 = vcmp.lt.s32.totalorder %v10156_v41, 2 }
 0x193   : > { %v1301_v17 = vxor.u32 2147483648, %v9050_v52  ;;  %vm4439_vm3 = vcmp.gt.s32.totalorder %v4438_v21, 0  ;;  %v1161_v8 = vadd.s32 536870912, %v1160_v6  ;;  %v10242_v34 = vand.u32 3, %v4625_v38 }
 0x194   : > { %v1305_v19 = vsel %vm1303_vm2, %v1304_v5, %v9050_v52  ;;  %v4615_v42 = vmul.f32 %v4614_v53, %v4612_v18  ;;  %v4440_v11 = vsel %vm4439_vm3, %v4438_v21, 0  ;;  %v4436_v4 = vor.u32 8388608, %v4435_v31 }
 0x195   : > { %v1302_v59 = vsel %vm1300_vm0, %v9048_v26, %v1301_v17  ;;  %v4442_v43 = vand.u32 31, %v4440_v11  ;;  %v10244_v29 = vshrl.u32 %v1161_v8, 30  ;;  %v1412_v16 = vand.u32 2147483647, %v10171_v23 }
 0x196   : > { %v1306_v24 = vsel %vm1299_vm5, %v1302_v59, %v1305_v19  ;;  %v4616_v0 = vxor.u32 2147483648, %v4615_v42  ;;  %v8213_v39 = vadd.s32 4294967169, %v1416_v36  ;;  %v1156_v25 = vadd.s32 %v10210_v57, %v10216_v63 }
 0x197   : > { %v1307_v51 = vsel %vm1296_vm4, nan, %v1306_v24  ;;  %v4443_v15 = vsub.s32 32, %v4442_v43  ;;  %v1163_v41 = vshll.u32 %v10244_v29, 30  ;;  %v4445_v47 = vshll.u32 %v9401_v50, %v4442_v43 }
 0x198   : > { %7552 = vst.msk [vmem:[%s9945_s25 + $0x18] sm:$0xff] %vm7548_vm14, %v1307_v51  ;;  %v4617_v10 = vsel %vm4534_vm8, %v4616_v0, %v4615_v42  ;;  %v4448_v55 = vshll.u32 %v9402_v54, %v4442_v43  ;;  %v4451_v7 = vshll.u32 %v9403_v56, %v4442_v43  ;;  %v4441_v14 = vshrl.u32 %v4440_v11, 5 }
 0x199   : > { %v4620_v49 = vsel %vm10220_vm15, %v9982_v13, %v4617_v10  ;;  %v4446_v61 = vshrl.u32 %v9402_v54, %v4443_v15  ;;  %v4449_v1 = vshrl.u32 %v9403_v56, %v4443_v15  ;;  %v10259_v32 = vsub.s32 %v1160_v6, %v1163_v41 }
 0x19a   : > { %9051 = vcosq.f32 %v4620_v49  ;;  %v4452_v35 = vshrl.u32 %v9404_v58, %v4443_v15  ;;  %v10265_v12 = vshll.u32 %v4436_v4, 8  ;;  %v4454_v26 = vshll.u32 %v9404_v58, %v4442_v43 }
 0x19b   : > { %9053 = vsinq.f32 %v4620_v49  ;;  %v1166_v28 = vsub.s32 0, %v10259_v32  ;;  %v4447_v33 = vor.u32 %v4446_v61, %v4445_v47  ;;  %v4450_v48 = vor.u32 %v4449_v1, %v4448_v55  ;;  %v10295_v1 = vpop.f32.mrb[7].mxu0 }
 0x19c   : > { %v4453_v9 = vor.u32 %v4452_v35, %v4451_v7  ;;  %v4455_v38 = vshrl.u32 %v9405_v60, %v4443_v15  ;;  %v4457_v27 = vshll.u32 %v9405_v60, %v4442_v43  ;;  %v4458_v21 = vshrl.u32 %v9406_v3, %v4443_v15 }
 0x19d   : > { %vm4631_vm6 = vcmp.eq.s32.totalorder %v10242_v34, 2  ;;  %v8202_v57 = vmin.u32 %v1166_v28, %v10259_v32  ;;  %v1186_v63 = vsub.s32 4, %v10244_v29  ;;  %v10277_v52 = vand.u32 8388607, %v1412_v16 }
 0x19e   : > { %v1422_v5 = vadd.s32 1, %v8213_v39  ;;  %vm4628_vm7 = vcmp.eq.s32.totalorder %v10242_v34, 0  ;;  %v4444_v18 = vshrl.u32 %v9401_v50, %v4443_v15  ;;  %v4456_v53 = vor.u32 %v4455_v38, %v4454_v26 }
 0x19f   : > { %v4459_v6 = vor.u32 %v4458_v21, %v4457_v27  ;;  %vm4460_vm8 = vcmp.lt.s32.totalorder %v4441_v14, 1  ;;  %vm4627_vm9 = vcmp.lt.s32.totalorder %v10242_v34, 2  ;;  %vm1102_vm10 = vcmp.lt.s32.totalorder %v9991_v2, 0 }
 0x1a0   : > { %v1168_v17 = vclz %v8202_v57  ;;  %vm4461_vm11 = vcmp.lt.s32.totalorder %v4441_v14, 2  ;;  %vm4462_vm12 = vcmp.lt.s32.totalorder %v4441_v14, 3  ;;  %vm4463_vm13 = vcmp.lt.s32.totalorder %v4441_v14, 4 }
 0x1a1   : > { %vm4624_vm15 = vweird.f32 %v9982_v13  ;;  %v4465_v31 = vsel %vm4463_vm13, %v4453_v9, 2102212464  ;;  %v4468_v36 = vsel %vm4460_vm8, %v4447_v33, %v4450_v48  ;;  %v4469_v19 = vsel %vm4463_vm13, %v4456_v53, 920167782 }
 0x1a2   : > { %v4472_v42 = vsel %vm4460_vm8, %v4450_v48, %v4453_v9  ;;  %v8203_v8 = vadd.s32 4294967294, %v1168_v17  ;;  %v4464_v11 = vsel %vm4460_vm8, %v4444_v18, %v4447_v33  ;;  %v4470_v59 = vsel %vm4462_vm12, %v4453_v9, %v4469_v19 }
 0x1a3   : > { %v4473_v43 = vsel %vm4463_vm13, %v4459_v6, 1326507024  ;;  %v4466_v24 = vsel %vm4462_vm12, %v4450_v48, %v4465_v31  ;;  %v4471_v0 = vsel %vm4461_vm11, %v4468_v36, %v4470_v59  ;;  %vm1423_vm0 = vcmp.gt.s32.totalorder %v1422_v5, 0 }
 0x1a4   : > { %v4474_v51 = vsel %vm4462_vm12, %v4456_v53, %v4473_v43  ;;  %v9052_v4 = vpop.eup %9051  ;;  %vm8204_vm1 = vcmp.lt.s32.totalorder %v8203_v8, 0  ;;  %v10287_v10 = vmul.u32.u64.low %v10265_v12, %v4471_v0  ;;  %v10288_v41 = vmul.u32.u64.high %v10265_v12, %v4471_v0, %v10287_v10 }
 0x1a5   : > { %v4475_v15 = vsel %vm4461_vm11, %v4472_v42, %v4474_v51  ;;  %v9054_v47 = vpop.eup %9053  ;;  %v4632_v39 = vxor.u32 2147483648, %v9052_v4  ;;  %v1171_v49 = vsel %vm8204_vm1, 0, %v8203_v8  ;;  %v4467_v33 = vsel %vm4461_vm11, %v4464_v11, %v4466_v24 }
 0x1a6   : > { %v10292_v61 = vmul.u32.u64.low %v10265_v12, %v4475_v15  ;;  %v10293_v55 = vmul.u32.u64.high %v10265_v12, %v4475_v15, %v10292_v61  ;;  %v4629_v7 = vxor.u32 2147483648, %v9054_v47  ;;  %v1172_v35 = vsub.s32 32, %v1171_v49 }
 0x1a7   : > { %v1176_v28 = vsub.s32 4294967266, %v1171_v49  ;;  %v4633_v48 = vsel %vm4631_vm6, %v4632_v39, %v9054_v47  ;;  %v1173_v9 = vshll.u32 %v10259_v32, %v1171_v49  ;;  %v1420_v26 = vor.u32 8388608, %v10277_v52 }
 0x1a8   : > { %v1424_v38 = vsel %vm1423_vm0, %v1422_v5, 0  ;;  %v4630_v27 = vsel %vm4628_vm7, %v9052_v4, %v4629_v7  ;;  %v1174_v21 = vshrl.u32 %v1156_v25, %v1172_v35  ;;  %v4486_v18 = vadd.s32 1, %v10288_v41 }
 0x1a9   : > { %v1177_v57 = vadd.s32 127, %v1176_v28  ;;  %v4634_v14 = vsel %vm4627_vm9, %v4630_v27, %v4633_v48  ;;  %v1187_v53 = vsel %vm1102_vm10, %v1186_v63, %v10244_v29  ;;  %v4483_v32 = vmul.u32 %v10265_v12, %v4467_v33 }
 0x1aa   : > { %vm4485_vm2 = vc.u32 %v10293_v55, %v10287_v10  ;;  %v4635_v52 = vsel %vm4624_vm15, nan, %v4634_v14  ;;  %v1175_v5 = vor.u32 %v1174_v21, %v1173_v9  ;;  %vm10321_vm3 = vcmp.le.f32.partialorder %v1100_v44, 0.7853982 }
 0x1ab   : > { %v1178_v25 = vshll.u32 %v1177_v57, 23  ;;  %v4487_v6 = vsel %vm4485_vm2, %v4486_v18, %v10288_v41  ;;  %7584 = vst.msk [vmem:[%s9945_s25 + $0x118] sm:$0xff] %vm7548_vm14, %v4635_v52  ;;  %v1426_v12 = vand.u32 31, %v1424_v38  ;;  %v1189_v17 = vsel %vm10321_vm3, 0, %v1187_v53 }
 0x1ac   : > { %v4488_v29 = vadd.s32 %v4487_v6, %v4483_v32  ;;  %v10327_v13 = vshll.u32 %v1420_v26, 8  ;;  %v1182_v31 = vcvt.s32.f32 %v1175_v5  ;;  %v10329_v19 = vshrl.u32 %v1424_v38, 5 }
 0x1ad   : > { %v1179_v63 = vor.u32 4788187, %v1178_v25  ;;  %v1427_v42 = vsub.s32 32, %v1426_v12  ;;  %v1429_v11 = vshll.u32 %v9401_v50, %v1426_v12  ;;  %v1432_v44 = vshll.u32 %v9402_v54, %v1426_v12 }
 0x1ae   : > { %v4489_v36 = vadd.s32 536870912, %v4488_v29  ;;  %v1435_v59 = vshll.u32 %v9403_v56, %v1426_v12  ;;  %v1438_v51 = vshll.u32 %v9404_v58, %v1426_v12  ;;  %v1193_v39 = vadd.s32 3, %v1189_v17 }
 0x1af   : > { %v1180_v8 = vand.u32 2147483647, %v1179_v63  ;;  %v1430_v24 = vshrl.u32 %v9402_v54, %v1427_v42  ;;  %v1433_v0 = vshrl.u32 %v9403_v56, %v1427_v42  ;;  %v1436_v15 = vshrl.u32 %v9404_v58, %v1427_v42 }
 0x1b0   : > { %v4490_v43 = vshrl.u32 %v4489_v36, 30  ;;  %v1439_v41 = vshrl.u32 %v9405_v60, %v1427_v42  ;;  %v1442_v47 = vshrl.u32 %v9406_v3, %v1427_v42  ;;  %v1441_v48 = vshll.u32 %v9405_v60, %v1426_v12 }
 0x1b1   : > { %v1183_v4 = vmul.f32 %v1182_v31, %v1180_v8  ;;  %v1431_v61 = vor.u32 %v1430_v24, %v1429_v11  ;;  %v1434_v7 = vor.u32 %v1433_v0, %v1432_v44  ;;  %v1437_v28 = vor.u32 %v1436_v15, %v1435_v59  ;;  %v10378_v31 = vpop.f32.mrb[7].mxu1 }
 0x1b2   : > { %v4491_v49 = vshll.u32 %v4490_v43, 30  ;;  %v1440_v33 = vor.u32 %v1439_v41, %v1438_v51  ;;  %vm1444_vm4 = vcmp.lt.s32.totalorder %v10329_v19, 1  ;;  %vm1447_vm5 = vcmp.lt.s32.totalorder %v10329_v19, 4 }
 0x1b3   : > { %v1184_v35 = vxor.u32 2147483648, %v1183_v4  ;;  %v10347_v26 = vadd.f32 %v10163_v62, %v9822_v20  ;;  %v1443_v27 = vor.u32 %v1442_v47, %v1441_v48  ;;  %v1452_v21 = vsel %vm1444_vm4, %v1431_v61, %v1434_v7 }
 0x1b4   : > { %v10341_v9 = vsub.s32 %v4488_v29, %v4491_v49  ;;  %v1453_v57 = vsel %vm1447_vm5, %v1440_v33, 920167782  ;;  %vm1445_vm6 = vcmp.lt.s32.totalorder %v10329_v19, 2  ;;  %vm1446_vm7 = vcmp.lt.s32.totalorder %v10329_v19, 3 }
 0x1b5   : > { %v1185_v38 = vsel %vm1102_vm10, %v1184_v35, %v1183_v4  ;;  %v4514_v20 = vsub.s32 4, %v4490_v43  ;;  %v1428_v53 = vshrl.u32 %v9401_v50, %v1427_v42  ;;  %v1454_v32 = vsel %vm1446_vm7, %v1437_v28, %v1453_v57 }
 0x1b6   : > { %v1188_v18 = vsel %vm10321_vm3, %v9991_v2, %v1185_v38  ;;  %v4494_v14 = vsub.s32 0, %v10341_v9  ;;  %v1449_v5 = vsel %vm1447_vm5, %v1437_v28, 2102212464  ;;  %v1455_v25 = vsel %vm1445_vm6, %v1452_v21, %v1454_v32 }
 0x1b7   : > { %9055 = vcosq.f32 %v1188_v18  ;;  %v1456_v6 = vsel %vm1444_vm4, %v1434_v7, %v1437_v28  ;;  %v1457_v34 = vsel %vm1447_vm5, %v1443_v27, 1326507024  ;;  %v1194_v63 = vand.u32 3, %v1193_v39 }
 0x1b8   : > { %9057 = vsinq.f32 %v1188_v18  ;;  %v8330_v52 = vmin.u32 %v4494_v14, %v10341_v9  ;;  %v10374_v29 = vmul.u32.u64.low %v10327_v13, %v1455_v25  ;;  %v10375_v12 = vmul.u32.u64.high %v10327_v13, %v1455_v25, %v10374_v29 }
 0x1b9   : > { %v1448_v36 = vsel %vm1444_vm4, %v1428_v53, %v1431_v61  ;;  %v1450_v42 = vsel %vm1446_vm7, %v1434_v7, %v1449_v5  ;;  %v1458_v8 = vsel %vm1446_vm7, %v1440_v33, %v1457_v34  ;;  %v4743_v11 = vand.u32 2139095040, %v10347_v26 }
 0x1ba   : > { %v4496_v17 = vclz %v8330_v52  ;;  %vm10389_vm8 = vcmp.le.f32.partialorder %v4428_v45, 0.7853982  ;;  %vm4430_vm9 = vcmp.lt.s32.totalorder %v10167_v46, 0  ;;  %v1459_v24 = vsel %vm1445_vm6, %v1456_v6, %v1458_v8 }
 0x1bb   : > { %v4515_v0 = vsel %vm4430_vm9, %v4514_v20, %v4490_v43  ;;  %v10399_v51 = vmul.u32.u64.low %v10327_v13, %v1459_v24  ;;  %v10400_v4 = vmul.u32.u64.high %v10327_v13, %v1459_v24, %v10399_v51  ;;  %v4740_v15 = vand.u32 2147483647, %v10347_v26 }
 0x1bc   : > { %v8331_v59 = vadd.s32 4294967294, %v4496_v17  ;;  %vm1192_vm10 = vweird.f32 %v9991_v2  ;;  %v1451_v45 = vsel %vm1445_vm6, %v1448_v36, %v1450_v42  ;;  %v1470_v41 = vadd.s32 1, %v10375_v12 }
 0x1bd   : > { %v4744_v47 = vshrl.u32 %v4743_v11, 23  ;;  %vm1195_vm12 = vcmp.lt.s32.totalorder %v1194_v63, 2  ;;  %vm1199_vm13 = vcmp.eq.s32.totalorder %v1194_v63, 2  ;;  %v4484_v43 = vadd.s32 %v10287_v10, %v10293_v55 }
 0x1be   : > { %vm8332_vm11 = vcmp.lt.s32.totalorder %v8331_v59, 0  ;;  %v4517_v7 = vsel %vm10389_vm8, 0, %v4515_v0  ;;  %v1467_v19 = vmul.u32 %v10327_v13, %v1451_v45  ;;  %vm1469_vm15 = vc.u32 %v10400_v4, %v10374_v29 }
 0x1bf   : > { %v4499_v39 = vsel %vm8332_vm11, 0, %v8331_v59  ;;  %v8341_v35 = vadd.s32 4294967169, %v4744_v47  ;;  %v4747_v48 = vand.u32 8388607, %v4740_v15  ;;  %v1471_v21 = vsel %vm1469_vm15, %v1470_v41, %v10375_v12 }
 0x1c0   : > { %v4500_v49 = vsub.s32 32, %v4499_v39  ;;  %v4504_v61 = vsub.s32 4294967266, %v4499_v39  ;;  %v4501_v33 = vshll.u32 %v10341_v9, %v4499_v39  ;;  %v1472_v18 = vadd.s32 %v1471_v21, %v1467_v19 }
 0x1c1   : > { %v9056_v28 = vpop.eup %9055  ;;  %v4750_v14 = vadd.s32 1, %v8341_v35  ;;  %v10420_v9 = vadd.f32 %v10163_v62, %v9955_v30  ;;  %vm1196_vm0 = vcmp.eq.s32.totalorder %v1194_v63, 0  ;;  %v4521_v52 = vadd.s32 3, %v4517_v7 }
 0x1c2   : > { %v9058_v38 = vpop.eup %9057  ;;  %v1200_v10 = vxor.u32 2147483648, %v9056_v28  ;;  %v4502_v55 = vshrl.u32 %v4484_v43, %v4500_v49  ;;  %v4505_v27 = vadd.s32 127, %v4504_v61  ;;  %v1473_v5 = vadd.s32 536870912, %v1472_v18 }
 0x1c3   : > { %v1197_v57 = vxor.u32 2147483648, %v9058_v38  ;;  %vm4751_vm1 = vcmp.gt.s32.totalorder %v4750_v14, 0  ;;  %v4748_v34 = vor.u32 8388608, %v4747_v48  ;;  %v1311_v42 = vand.u32 2139095040, %v10420_v9 }
 0x1c4   : > { %v1201_v13 = vsel %vm1199_vm13, %v1200_v10, %v9058_v38  ;;  %v4503_v20 = vor.u32 %v4502_v55, %v4501_v33  ;;  %v4506_v53 = vshll.u32 %v4505_v27, 23  ;;  %v4752_v12 = vsel %vm4751_vm1, %v4750_v14, 0 }
 0x1c5   : > { %v1198_v32 = vsel %vm1196_vm0, %v9056_v28, %v1197_v57  ;;  %v1474_v30 = vshrl.u32 %v1473_v5, 30  ;;  %v4754_v36 = vand.u32 31, %v4752_v12  ;;  %vm1414_vm2 = vcmp.lt.s32.totalorder %v10171_v23, 0 }
 0x1c6   : > { %v1202_v25 = vsel %vm1195_vm12, %v1198_v32, %v1201_v13  ;;  %v4507_v6 = vor.u32 4788187, %v4506_v53  ;;  %v4510_v11 = vcvt.s32.f32 %v4503_v20  ;;  %v10430_v59 = vand.u32 3, %v4521_v52 }
 0x1c7   : > { %v1203_v17 = vsel %vm1192_vm10, nan, %v1202_v25  ;;  %vm10434_vm3 = vcmp.le.f32.partialorder %v1412_v16, 0.7853982  ;;  %v1475_v2 = vshll.u32 %v1474_v30, 30  ;;  %v4755_v24 = vsub.s32 32, %v4754_v36 }
 0x1c8   : > { %7551 = vst.msk [vmem:[%s9945_s25 + $0x10] sm:$0xff] %vm7548_vm14, %v1203_v17  ;;  %v4508_v8 = vand.u32 2147483647, %v4507_v6  ;;  %v1308_v0 = vand.u32 2147483647, %v10420_v9  ;;  %v1468_v45 = vadd.s32 %v10374_v29, %v10400_v4  ;;  %v1498_v41 = vsub.s32 4, %v1474_v30 }
 0x1c9   : > { %v10441_v47 = vshll.u32 %v4748_v34, 8  ;;  %v10443_v43 = vsub.s32 %v1472_v18, %v1475_v2  ;;  %v10445_v39 = vshrl.u32 %v4752_v12, 5  ;;  %v4758_v16 = vshrl.u32 %v9402_v54, %v4755_v24 }
 0x1ca   : > { %v4511_v51 = vmul.f32 %v4510_v11, %v4508_v8  ;;  %v1312_v49 = vshrl.u32 %v1311_v42, 23  ;;  %v4757_v7 = vshll.u32 %v9401_v50, %v4754_v36  ;;  %v4761_v35 = vshrl.u32 %v9403_v56, %v4755_v24 }
 0x1cb   : > { %v4764_v28 = vshrl.u32 %v9404_v58, %v4755_v24  ;;  %v1478_v33 = vsub.s32 0, %v10443_v43  ;;  %v4760_v29 = vshll.u32 %v9402_v54, %v4754_v36  ;;  %v4763_v4 = vshll.u32 %v9403_v56, %v4754_v36 }
 0x1cc   : > { %v4512_v61 = vxor.u32 2147483648, %v4511_v51  ;;  %v4767_v19 = vshrl.u32 %v9405_v60, %v4755_v24  ;;  %v1499_v38 = vsel %vm1414_vm2, %v1498_v41, %v1474_v30  ;;  %v4759_v10 = vor.u32 %v4758_v16, %v4757_v7 }
 0x1cd   : > { %v4766_v55 = vshll.u32 %v9404_v58, %v4754_v36  ;;  %v8214_v21 = vmin.u32 %v1478_v33, %v10443_v43  ;;  %v4762_v57 = vor.u32 %v4761_v35, %v4760_v29  ;;  %v4765_v18 = vor.u32 %v4764_v28, %v4763_v4 }
 0x1ce   : > { %v4513_v48 = vsel %vm4430_vm9, %v4512_v61, %v4511_v51  ;;  %v4769_v13 = vshll.u32 %v9405_v60, %v4754_v36  ;;  %v4770_v20 = vshrl.u32 %v9406_v3, %v4755_v24  ;;  %v8209_v32 = vadd.s32 4294967169, %v1312_v49 }
 0x1cf   : > { %v4516_v27 = vsel %vm10389_vm8, %v10167_v46, %v4513_v48  ;;  %v4768_v14 = vor.u32 %v4767_v19, %v4766_v55  ;;  %v1480_v53 = vclz %v8214_v21  ;;  %v10468_v52 = vand.u32 8388607, %v1308_v0  ;;  %v10499_v48 = vpop.f32.mrb[8].mxu0 }
 0x1d0   : > { %9059 = vcosq.f32 %v4516_v27  ;;  %v1501_v44 = vsel %vm10434_vm3, 0, %v1499_v38  ;;  %v4756_v5 = vshrl.u32 %v9401_v50, %v4755_v24  ;;  %v4771_v25 = vor.u32 %v4770_v20, %v4769_v13 }
 0x1d1   : > { %9061 = vsinq.f32 %v4516_v27  ;;  %vm4772_vm4 = vcmp.lt.s32.totalorder %v10445_v39, 1  ;;  %v8215_v6 = vadd.s32 4294967294, %v1480_v53  ;;  %vm4774_vm5 = vcmp.lt.s32.totalorder %v10445_v39, 3 }
 0x1d2   : > { %vm4775_vm6 = vcmp.lt.s32.totalorder %v10445_v39, 4  ;;  %v4780_v34 = vsel %vm4772_vm4, %v4759_v10, %v4762_v57  ;;  %v4784_v30 = vsel %vm4772_vm4, %v4762_v57, %v4765_v18  ;;  %vm4773_vm8 = vcmp.lt.s32.totalorder %v10445_v39, 2 }
 0x1d3   : > { %v4777_v12 = vsel %vm4775_vm6, %v4765_v18, 2102212464  ;;  %v4781_v17 = vsel %vm4775_vm6, %v4768_v14, 920167782  ;;  %v4785_v36 = vsel %vm4775_vm6, %v4771_v25, 1326507024  ;;  %v4776_v2 = vsel %vm4772_vm4, %v4756_v5, %v4759_v10 }
 0x1d4   : > { %vm8216_vm7 = vcmp.lt.s32.totalorder %v8215_v6, 0  ;;  %v4782_v42 = vsel %vm4774_vm5, %v4765_v18, %v4781_v17  ;;  %v4786_v8 = vsel %vm4774_vm5, %v4768_v14, %v4785_v36  ;;  %vm4523_vm9 = vcmp.lt.s32.totalorder %v10430_v59, 2 }
 0x1d5   : > { %v1483_v11 = vsel %vm8216_vm7, 0, %v8215_v6  ;;  %v4783_v24 = vsel %vm4773_vm8, %v4780_v34, %v4782_v42  ;;  %v4787_v51 = vsel %vm4773_vm8, %v4784_v30, %v4786_v8  ;;  %vm4520_vm10 = vweird.f32 %v10167_v46 }
 0x1d6   : > { %v1484_v41 = vsub.s32 32, %v1483_v11  ;;  %v1488_v16 = vsub.s32 4294967266, %v1483_v11  ;;  %v4778_v49 = vsel %vm4774_vm5, %v4762_v57, %v4777_v12  ;;  %v1318_v61 = vadd.s32 1, %v8209_v32 }
 0x1d7   : > { %v10490_v7 = vmul.u32.u64.low %v10441_v47, %v4787_v51  ;;  %v10491_v35 = vmul.u32.u64.high %v10441_v47, %v4787_v51, %v10490_v7  ;;  %v10494_v28 = vmul.u32.u64.low %v10441_v47, %v4783_v24  ;;  %v10495_v33 = vmul.u32.u64.high %v10441_v47, %v4783_v24, %v10494_v28 }
 0x1d8   : > { %v1485_v29 = vshll.u32 %v10443_v43, %v1483_v11  ;;  %v1486_v4 = vshrl.u32 %v1468_v45, %v1484_v41  ;;  %v1489_v19 = vadd.s32 127, %v1488_v16  ;;  %vm1319_vm11 = vcmp.gt.s32.totalorder %v1318_v61, 0 }
 0x1d9   : > { %vm4524_vm12 = vcmp.eq.s32.totalorder %v10430_v59, 0  ;;  %vm4527_vm13 = vcmp.eq.s32.totalorder %v10430_v59, 2  ;;  %v4779_v10 = vsel %vm4773_vm8, %v4776_v2, %v4778_v49  ;;  %v1320_v55 = vsel %vm1319_vm11, %v1318_v61, 0 }
 0x1da   : > { %v9060_v38 = vpop.eup %9059  ;;  %v1487_v57 = vor.u32 %v1486_v4, %v1485_v29  ;;  %v1490_v18 = vshll.u32 %v1489_v19, 23  ;;  %v1316_v43 = vor.u32 8388608, %v10468_v52  ;;  %v1505_v14 = vadd.s32 3, %v1501_v44 }
 0x1db   : > { %v9062_v27 = vpop.eup %9061  ;;  %v4528_v21 = vxor.u32 2147483648, %v9060_v38  ;;  %vm4797_vm15 = vc.u32 %v10491_v35, %v10494_v28  ;;  %v4798_v13 = vadd.s32 1, %v10495_v33  ;;  %v4795_v39 = vmul.u32 %v10441_v47, %v4779_v10 }
 0x1dc   : > { %v4525_v45 = vxor.u32 2147483648, %v9062_v27  ;;  %v1491_v53 = vor.u32 4788187, %v1490_v18  ;;  %v1322_v32 = vand.u32 31, %v1320_v55  ;;  %v1494_v25 = vcvt.s32.f32 %v1487_v57 }
 0x1dd   : > { %v4529_v20 = vsel %vm4527_vm13, %v4528_v21, %v9062_v27  ;;  %v4799_v6 = vsel %vm4797_vm15, %v4798_v13, %v10495_v33  ;;  %v10515_v52 = vadd.f32 %v10163_v62, %v10023_v37  ;;  %v10521_v30 = vand.u32 3, %v1505_v14 }
 0x1de   : > { %v4526_v5 = vsel %vm4524_vm12, %v9060_v38, %v4525_v45  ;;  %v1492_v34 = vand.u32 2147483647, %v1491_v53  ;;  %v4800_v12 = vadd.s32 %v4799_v6, %v4795_v39  ;;  %v1323_v17 = vsub.s32 32, %v1322_v32 }
 0x1df   : > { %v4530_v44 = vsel %vm4523_vm9, %v4526_v5, %v4529_v20  ;;  %v1321_v36 = vshrl.u32 %v1320_v55, 5  ;;  %v1325_v42 = vshll.u32 %v9401_v50, %v1322_v32  ;;  %v1328_v59 = vshll.u32 %v9402_v54, %v1322_v32 }
 0x1e0   : > { %v4531_v47 = vsel %vm4520_vm10, nan, %v4530_v44  ;;  %v1495_v8 = vmul.f32 %v1494_v25, %v1492_v34  ;;  %v4801_v11 = vadd.s32 536870912, %v4800_v12  ;;  %v1326_v37 = vshrl.u32 %v9402_v54, %v1323_v17 }
 0x1e1   : > { %7583 = vst.msk [vmem:[%s9945_s25 + $0x110] sm:$0xff] %vm7548_vm14, %v4531_v47  ;;  %v1329_v2 = vshrl.u32 %v9403_v56, %v1323_v17  ;;  %v1331_v24 = vshll.u32 %v9403_v56, %v1322_v32  ;;  %v1332_v46 = vshrl.u32 %v9404_v58, %v1323_v17  ;;  %v1335_v51 = vshrl.u32 %v9405_v60, %v1323_v17 }
 0x1e2   : > { %v1496_v41 = vxor.u32 2147483648, %v1495_v8  ;;  %v4802_v16 = vshrl.u32 %v4801_v11, 30  ;;  %v1327_v49 = vor.u32 %v1326_v37, %v1325_v42  ;;  %v1334_v61 = vshll.u32 %v9404_v58, %v1322_v32 }
 0x1e3   : > { %v1330_v7 = vor.u32 %v1329_v2, %v1328_v59  ;;  %v1333_v33 = vor.u32 %v1332_v46, %v1331_v24  ;;  %v1337_v29 = vshll.u32 %v9405_v60, %v1322_v32  ;;  %v1338_v4 = vshrl.u32 %v9406_v3, %v1323_v17 }
 0x1e4   : > { %v1497_v19 = vsel %vm1414_vm2, %v1496_v41, %v1495_v8  ;;  %v4803_v38 = vshll.u32 %v4802_v16, 30  ;;  %v1336_v10 = vor.u32 %v1335_v51, %v1334_v61  ;;  %v10537_v55 = vshll.u32 %v1316_v43, 8 }
 0x1e5   : > { %v1500_v27 = vsel %vm10434_vm3, %v10171_v23, %v1497_v19  ;;  %v1339_v21 = vor.u32 %v1338_v4, %v1337_v29  ;;  %vm1340_vm0 = vcmp.lt.s32.totalorder %v1321_v36, 1  ;;  %v4639_v57 = vand.u32 2139095040, %v10515_v52 }
 0x1e6   : > { %9063 = vcosq.f32 %v1500_v27  ;;  %v10543_v18 = vsub.s32 %v4800_v12, %v4803_v38  ;;  %vm1341_vm1 = vcmp.lt.s32.totalorder %v1321_v36, 2  ;;  %vm1343_vm4 = vcmp.lt.s32.totalorder %v1321_v36, 4 }
 0x1e7   : > { %9065 = vsinq.f32 %v1500_v27  ;;  %v1324_v45 = vshrl.u32 %v9401_v50, %v1323_v17  ;;  %v1345_v14 = vsel %vm1343_vm4, %v1333_v33, 2102212464  ;;  %v1348_v43 = vsel %vm1340_vm0, %v1327_v49, %v1330_v7 }
 0x1e8   : > { %v4806_v13 = vsub.s32 0, %v10543_v18  ;;  %v4826_v20 = vsub.s32 4, %v4802_v16  ;;  %vm1342_vm2 = vcmp.lt.s32.totalorder %v1321_v36, 3  ;;  %v1349_v63 = vsel %vm1343_vm4, %v1336_v10, 920167782  ;;  %v10577_v36 = vpop.f32.mrb[8].mxu1 }
 0x1e9   : > { %v1344_v53 = vsel %vm1340_vm0, %v1324_v45, %v1327_v49  ;;  %v1350_v39 = vsel %vm1342_vm2, %v1333_v33, %v1349_v63  ;;  %v1352_v32 = vsel %vm1340_vm0, %v1330_v7, %v1333_v33  ;;  %v1353_v5 = vsel %vm1343_vm4, %v1339_v21, 1326507024 }
 0x1ea   : > { %v8342_v25 = vmin.u32 %v4806_v13, %v10543_v18  ;;  %v1346_v6 = vsel %vm1342_vm2, %v1330_v7, %v1345_v14  ;;  %v1351_v44 = vsel %vm1341_vm1, %v1348_v43, %v1350_v39  ;;  %v1354_v34 = vsel %vm1342_vm2, %v1336_v10, %v1353_v5 }
 0x1eb   : > { %vm4742_vm3 = vcmp.lt.s32.totalorder %v10347_v26, 0  ;;  %v1355_v12 = vsel %vm1341_vm1, %v1352_v32, %v1354_v34  ;;  %v10555_v17 = vmul.u32.u64.low %v10537_v55, %v1351_v44  ;;  %v10556_v47 = vmul.u32.u64.high %v10537_v55, %v1351_v44, %v10555_v17 }
 0x1ec   : > { %v4808_v42 = vclz %v8342_v25  ;;  %v4827_v8 = vsel %vm4742_vm3, %v4826_v20, %v4802_v16  ;;  %v4636_v11 = vand.u32 2147483647, %v10515_v52  ;;  %v1347_v37 = vsel %vm1341_vm1, %v1344_v53, %v1346_v6 }
 0x1ed   : > { %v10563_v59 = vmul.u32.u64.low %v10537_v55, %v1355_v12  ;;  %v10564_v2 = vmul.u32.u64.high %v10537_v55, %v1355_v12, %v10563_v59  ;;  %v4640_v24 = vshrl.u32 %v4639_v57, 23  ;;  %vm1507_vm5 = vcmp.lt.s32.totalorder %v10521_v30, 2 }
 0x1ee   : > { %vm10569_vm6 = vcmp.le.f32.partialorder %v4740_v15, 0.7853982  ;;  %v8343_v51 = vadd.s32 4294967294, %v4808_v42  ;;  %v10575_v41 = vadd.f32 %v10163_v62, %v10151_v40  ;;  %vm1508_vm7 = vcmp.eq.s32.totalorder %v10521_v30, 0 }
 0x1ef   : > { %vm1511_vm8 = vcmp.eq.s32.totalorder %v10521_v30, 2  ;;  %v1366_v16 = vadd.s32 1, %v10556_v47  ;;  %v8337_v49 = vadd.s32 4294967169, %v4640_v24  ;;  %v4796_v15 = vadd.s32 %v10494_v28, %v10491_v35 }
 0x1f0   : > { %v9064_v61 = vpop.eup %9063  ;;  %vm8344_vm9 = vcmp.lt.s32.totalorder %v8343_v51, 0  ;;  %v4829_v7 = vsel %vm10569_vm6, 0, %v4827_v8  ;;  %v1363_v40 = vmul.u32 %v10537_v55, %v1347_v37  ;;  %vm1365_vm10 = vc.u32 %v10564_v2, %v10555_v17 }
 0x1f1   : > { %v9066_v62 = vpop.eup %9065  ;;  %v1512_v33 = vxor.u32 2147483648, %v9064_v61  ;;  %v4811_v29 = vsel %vm8344_vm9, 0, %v8343_v51  ;;  %v4643_v4 = vand.u32 8388607, %v4636_v11  ;;  %v1623_v27 = vand.u32 2139095040, %v10575_v41 }
 0x1f2   : > { %v1509_v19 = vxor.u32 2147483648, %v9066_v62  ;;  %v4812_v38 = vsub.s32 32, %v4811_v29  ;;  %v4816_v10 = vsub.s32 4294967266, %v4811_v29  ;;  %v4813_v28 = vshll.u32 %v10543_v18, %v4811_v29 }
 0x1f3   : > { %v1513_v35 = vsel %vm1511_vm8, %v1512_v33, %v9066_v62  ;;  %v1367_v55 = vsel %vm1365_vm10, %v1366_v16, %v10556_v47  ;;  %v4646_v21 = vadd.s32 1, %v8337_v49  ;;  %vm1504_vm11 = vweird.f32 %v10171_v23 }
 0x1f4   : > { %v1510_v57 = vsel %vm1508_vm7, %v9064_v61, %v1509_v19  ;;  %v4814_v45 = vshrl.u32 %v4796_v15, %v4812_v38  ;;  %v4817_v14 = vadd.s32 127, %v4816_v10  ;;  %v1368_v43 = vadd.s32 %v1367_v55, %v1363_v40 }
 0x1f5   : > { %v1514_v13 = vsel %vm1507_vm5, %v1510_v57, %v1513_v35  ;;  %v4833_v20 = vadd.s32 3, %v4829_v7  ;;  %vm4647_vm12 = vcmp.gt.s32.totalorder %v4646_v21, 0  ;;  %v4644_v32 = vor.u32 8388608, %v4643_v4 }
 0x1f6   : > { %v1515_v63 = vsel %vm1504_vm11, nan, %v1514_v13  ;;  %v4815_v53 = vor.u32 %v4814_v45, %v4813_v28  ;;  %v4818_v39 = vshll.u32 %v4817_v14, 23  ;;  %v1369_v18 = vadd.s32 536870912, %v1368_v43 }
 0x1f7   : > { %7554 = vst.msk [vmem:[%s9945_s25 + $0x28] sm:$0xff] %vm7548_vm14, %v1515_v63  ;;  %v4648_v5 = vsel %vm4647_vm12, %v4646_v21, 0  ;;  %v1624_v44 = vshrl.u32 %v1623_v27, 23  ;;  %v10602_v23 = vand.u32 3, %v4833_v20  ;;  %vm1310_vm13 = vcmp.lt.s32.totalorder %v10420_v9, 0 }
 0x1f8   : > { %v4819_v25 = vor.u32 4788187, %v4818_v39  ;;  %v1370_v6 = vshrl.u32 %v1369_v18, 30  ;;  %v4650_v34 = vand.u32 31, %v4648_v5  ;;  %v4822_v47 = vcvt.s32.f32 %v4815_v53 }
 0x1f9   : > { %v10606_v42 = vadd.s32 %v10555_v17, %v10564_v2  ;;  %v10608_v37 = vshll.u32 %v4644_v32, 8  ;;  %v1620_v59 = vand.u32 2147483647, %v10575_v41  ;;  %v10613_v16 = vshrl.u32 %v4648_v5, 5 }
 0x1fa   : > { %v4820_v12 = vand.u32 2147483647, %v4819_v25  ;;  %v1371_v30 = vshll.u32 %v1370_v6, 30  ;;  %v4651_v8 = vsub.s32 32, %v4650_v34  ;;  %v8221_v49 = vadd.s32 4294967169, %v1624_v44 }
 0x1fb   : > { %v1394_v61 = vsub.s32 4, %v1370_v6  ;;  %v4653_v15 = vshll.u32 %v9401_v50, %v4650_v34  ;;  %vm10620_vm15 = vcmp.le.f32.partialorder %v1308_v0, 0.7853982  ;;  %v4656_v33 = vshll.u32 %v9402_v54, %v4650_v34 }
 0x1fc   : > { %v4823_v24 = vmul.f32 %v4822_v47, %v4820_v12  ;;  %v10611_v51 = vsub.s32 %v1368_v43, %v1371_v30  ;;  %v4654_v7 = vshrl.u32 %v9402_v54, %v4651_v8  ;;  %v4657_v40 = vshrl.u32 %v9403_v56, %v4651_v8  ;;  %v10660_v30 = vpop.f32.mrb[9].mxu0 }
 0x1fd   : > { %v4660_v29 = vshrl.u32 %v9404_v58, %v4651_v8  ;;  %v4659_v19 = vshll.u32 %v9403_v56, %v4650_v34  ;;  %v4662_v38 = vshll.u32 %v9404_v58, %v4650_v34  ;;  %v4663_v10 = vshrl.u32 %v9405_v60, %v4651_v8 }
 0x1fe   : > { %v4824_v17 = vxor.u32 2147483648, %v4823_v24  ;;  %v1374_v62 = vsub.s32 0, %v10611_v51  ;;  %v4655_v4 = vor.u32 %v4654_v7, %v4653_v15  ;;  %v4658_v35 = vor.u32 %v4657_v40, %v4656_v33 }
 0x1ff   : > { %v4665_v28 = vshll.u32 %v9405_v60, %v4650_v34  ;;  %v4661_v21 = vor.u32 %v4660_v29, %v4659_v19  ;;  %v4664_v57 = vor.u32 %v4663_v10, %v4662_v38  ;;  %v4666_v45 = vshrl.u32 %v9406_v3, %v4651_v8 }
 0x200   : > { %v4825_v27 = vsel %vm4742_vm3, %v4824_v17, %v4823_v24  ;;  %v8210_v0 = vmin.u32 %v1374_v62, %v10611_v51  ;;  %vm4668_vm0 = vcmp.lt.s32.totalorder %v10613_v16, 1  ;;  %v1630_v43 = vadd.s32 1, %v8221_v49 }
 0x201   : > { %v4828_v55 = vsel %vm10569_vm6, %v10347_v26, %v4825_v27  ;;  %v1395_v13 = vsel %vm1310_vm13, %v1394_v61, %v1370_v6  ;;  %v4652_v20 = vshrl.u32 %v9401_v50, %v4651_v8  ;;  %v4667_v63 = vor.u32 %v4666_v45, %v4665_v28 }
 0x202   : > { %9067 = vcosq.f32 %v4828_v55  ;;  %v1376_v14 = vclz %v8210_v0  ;;  %vm4670_vm1 = vcmp.lt.s32.totalorder %v10613_v16, 3  ;;  %vm4671_vm4 = vcmp.lt.s32.totalorder %v10613_v16, 4 }
 0x203   : > { %9069 = vsinq.f32 %v4828_v55  ;;  %v4676_v46 = vsel %vm4668_vm0, %v4655_v4, %v4658_v35  ;;  %v4673_v39 = vsel %vm4671_vm4, %v4661_v21, 2102212464  ;;  %v4677_v18 = vsel %vm4671_vm4, %v4664_v57, 920167782 }
 0x204   : > { %v8211_v53 = vadd.s32 4294967294, %v1376_v14  ;;  %v4680_v32 = vsel %vm4668_vm0, %v4658_v35, %v4661_v21  ;;  %v4681_v5 = vsel %vm4671_vm4, %v4667_v63, 1326507024  ;;  %vm4669_vm3 = vcmp.lt.s32.totalorder %v10613_v16, 2  ;;  %v10690_v16 = vld [vmem:[%s15263_s2] ss:$0 sm:$0xff] }
 0x205   : > { %v4678_v25 = vsel %vm4670_vm1, %v4661_v21, %v4677_v18  ;;  %v4682_v6 = vsel %vm4670_vm1, %v4664_v57, %v4681_v5  ;;  %vm4836_vm5 = vcmp.eq.s32.totalorder %v10602_v23, 0  ;;  %v1397_v34 = vsel %vm10620_vm15, 0, %v1395_v13 }
 0x206   : > { %vm8212_vm2 = vcmp.lt.s32.totalorder %v8211_v53, 0  ;;  %v4679_v12 = vsel %vm4669_vm3, %v4676_v46, %v4678_v25  ;;  %v4683_v47 = vsel %vm4669_vm3, %v4680_v32, %v4682_v6  ;;  %vm4835_vm6 = vcmp.lt.s32.totalorder %v10602_v23, 2 }
 0x207   : > { %v1379_v44 = vsel %vm8212_vm2, 0, %v8211_v53  ;;  %v4672_v49 = vsel %vm4668_vm0, %v4652_v20, %v4655_v4  ;;  %v4674_v61 = vsel %vm4670_vm1, %v4658_v35, %v4673_v39  ;;  %vm4832_vm7 = vweird.f32 %v10347_v26 }
 0x208   : > { %v1380_v8 = vsub.s32 32, %v1379_v44  ;;  %v1384_v24 = vsub.s32 4294967266, %v1379_v44  ;;  %v10669_v15 = vmul.u32.u64.low %v10608_v37, %v4683_v47  ;;  %v10670_v7 = vmul.u32.u64.high %v10608_v37, %v4683_v47, %v10669_v15 }
 0x209   : > { %v10673_v40 = vmul.u32.u64.low %v10608_v37, %v4679_v12  ;;  %v10674_v17 = vmul.u32.u64.high %v10608_v37, %v4679_v12, %v10673_v40  ;;  %v1381_v62 = vshll.u32 %v10611_v51, %v1379_v44  ;;  %vm1631_vm8 = vcmp.gt.s32.totalorder %v1630_v43, 0 }
 0x20a   : > { %v1382_v33 = vshrl.u32 %v10606_v42, %v1380_v8  ;;  %v1385_v29 = vadd.s32 127, %v1384_v24  ;;  %v1401_v4 = vadd.s32 3, %v1397_v34  ;;  %v4675_v19 = vsel %vm4669_vm3, %v4672_v49, %v4674_v61 }
 0x20b   : > { %v1627_v38 = vand.u32 8388607, %v1620_v59  ;;  %v1632_v10 = vsel %vm1631_vm8, %v1630_v43, 0  ;;  %vm4839_vm9 = vcmp.eq.s32.totalorder %v10602_v23, 2  ;;  %vm4693_vm10 = vc.u32 %v10670_v7, %v10673_v40 }
 0x20c   : > { %v9068_v27 = vpop.eup %9067  ;;  %v1383_v0 = vor.u32 %v1382_v33, %v1381_v62  ;;  %v1386_v35 = vshll.u32 %v1385_v29, 23  ;;  %v1634_v28 = vand.u32 31, %v1632_v10  ;;  %v4694_v42 = vadd.s32 1, %v10674_v17 }
 0x20d   : > { %v9070_v55 = vpop.eup %9069  ;;  %v4840_v51 = vxor.u32 2147483648, %v9068_v27  ;;  %v10694_v21 = vadd.f32 %v10690_v16, %v10201_v22  ;;  %v4691_v14 = vmul.u32 %v10608_v37, %v4675_v19  ;;  %v10697_v20 = vand.u32 3, %v1401_v4 }
 0x20e   : > { %v4837_v57 = vxor.u32 2147483648, %v9070_v55  ;;  %v1387_v45 = vor.u32 4788187, %v1386_v35  ;;  %v1635_v43 = vsub.s32 32, %v1634_v28  ;;  %v4695_v63 = vsel %vm4693_vm10, %v4694_v42, %v10674_v17 }
 0x20f   : > { %v4841_v13 = vsel %vm4839_vm9, %v4840_v51, %v9070_v55  ;;  %v1628_v53 = vor.u32 8388608, %v1627_v38  ;;  %v1390_v18 = vcvt.s32.f32 %v1383_v0  ;;  %v4696_v32 = vadd.s32 %v4695_v63, %v4691_v14 }
 0x210   : > { %v4838_v46 = vsel %vm4836_vm5, %v9068_v27, %v4837_v57  ;;  %v1388_v39 = vand.u32 2147483647, %v1387_v45  ;;  %v1637_v5 = vshll.u32 %v9401_v50, %v1634_v28  ;;  %v1638_v37 = vshrl.u32 %v9402_v54, %v1635_v43 }
 0x211   : > { %v4842_v22 = vsel %vm4835_vm6, %v4838_v46, %v4841_v13  ;;  %v1641_v25 = vshrl.u32 %v9403_v56, %v1635_v43  ;;  %v4697_v34 = vadd.s32 536870912, %v4696_v32  ;;  %v1644_v12 = vshrl.u32 %v9404_v58, %v1635_v43 }
 0x212   : > { %v4843_v6 = vsel %vm4832_vm7, nan, %v4842_v22  ;;  %v1391_v44 = vmul.f32 %v1390_v18, %v1388_v39  ;;  %v1633_v47 = vshrl.u32 %v1632_v10, 5  ;;  %v1640_v8 = vshll.u32 %v9402_v54, %v1634_v28 }
 0x213   : > { %7586 = vst.msk [vmem:[%s9945_s25 + $0x128] sm:$0xff] %vm7548_vm14, %v4843_v6  ;;  %v1643_v23 = vshll.u32 %v9403_v56, %v1634_v28  ;;  %v1647_v24 = vshrl.u32 %v9405_v60, %v1635_v43  ;;  %v4698_v61 = vshrl.u32 %v4697_v34, 30  ;;  %v1639_v15 = vor.u32 %v1638_v37, %v1637_v5 }
 0x214   : > { %v1392_v49 = vxor.u32 2147483648, %v1391_v44  ;;  %v1646_v17 = vshll.u32 %v9404_v58, %v1634_v28  ;;  %v1642_v26 = vor.u32 %v1641_v25, %v1640_v8  ;;  %v1649_v33 = vshll.u32 %v9405_v60, %v1634_v28  ;;  %v10737_v25 = vpop.f32.mrb[9].mxu1 }
 0x215   : > { %v1645_v62 = vor.u32 %v1644_v12, %v1643_v23  ;;  %v1650_v29 = vshrl.u32 %v9406_v3, %v1635_v43  ;;  %v4699_v19 = vshll.u32 %v4698_v61, 30  ;;  %v10720_v10 = vshll.u32 %v1628_v53, 8 }
 0x216   : > { %v1393_v4 = vsel %vm1310_vm13, %v1392_v49, %v1391_v44  ;;  %v1648_v38 = vor.u32 %v1647_v24, %v1646_v17  ;;  %v1636_v0 = vshrl.u32 %v9401_v50, %v1635_v43  ;;  %v4951_v55 = vand.u32 2139095040, %v10694_v21 }
 0x217   : > { %v1396_v27 = vsel %vm10620_vm15, %v10420_v9, %v1393_v4  ;;  %v1651_v35 = vor.u32 %v1650_v29, %v1649_v33  ;;  %v10727_v28 = vsub.s32 %v4696_v32, %v4699_v19  ;;  %vm1652_vm11 = vcmp.lt.s32.totalorder %v1633_v47, 1 }
 0x218   : > { %9071 = vcosq.f32 %v1396_v27  ;;  %vm1655_vm12 = vcmp.lt.s32.totalorder %v1633_v47, 4  ;;  %vm1653_vm13 = vcmp.lt.s32.totalorder %v1633_v47, 2  ;;  %v1660_v42 = vsel %vm1652_vm11, %v1639_v15, %v1642_v26 }
 0x219   : > { %9073 = vsinq.f32 %v1396_v27  ;;  %v1657_v51 = vsel %vm1655_vm12, %v1645_v62, 2102212464  ;;  %v4702_v57 = vsub.s32 0, %v10727_v28  ;;  %v4722_v45 = vsub.s32 4, %v4698_v61 }
 0x21a   : > { %vm1654_vm0 = vcmp.lt.s32.totalorder %v1633_v47, 3  ;;  %v1661_v2 = vsel %vm1655_vm12, %v1648_v38, 920167782  ;;  %v1656_v14 = vsel %vm1652_vm11, %v1636_v0, %v1639_v15  ;;  %v1664_v43 = vsel %vm1652_vm11, %v1642_v26, %v1645_v62 }
 0x21b   : > { %v1662_v13 = vsel %vm1654_vm0, %v1645_v62, %v1661_v2  ;;  %v1665_v63 = vsel %vm1655_vm12, %v1651_v35, 1326507024  ;;  %v8338_v53 = vmin.u32 %v4702_v57, %v10727_v28  ;;  %v1658_v46 = vsel %vm1654_vm0, %v1642_v26, %v1657_v51 }
 0x21c   : > { %v1663_v39 = vsel %vm1653_vm13, %v1660_v42, %v1662_v13  ;;  %v1666_v18 = vsel %vm1654_vm0, %v1648_v38, %v1665_v63  ;;  %v4952_v37 = vshrl.u32 %v4951_v55, 23  ;;  %vm10741_vm15 = vcmp.le.f32.partialorder %v4636_v11, 0.7853982 }
 0x21d   : > { %v1667_v32 = vsel %vm1653_vm13, %v1664_v43, %v1666_v18  ;;  %v10734_v22 = vmul.u32.u64.low %v10720_v10, %v1663_v39  ;;  %v10735_v5 = vmul.u32.u64.high %v10720_v10, %v1663_v39, %v10734_v22  ;;  %vm4638_vm1 = vcmp.lt.s32.totalorder %v10515_v52, 0 }
 0x21e   : > { %v4704_v44 = vclz %v8338_v53  ;;  %vm1400_vm4 = vweird.f32 %v10420_v9  ;;  %v4723_v34 = vsel %vm4638_vm1, %v4722_v45, %v4698_v61  ;;  %v8349_v23 = vadd.s32 4294967169, %v4952_v37 }
 0x21f   : > { %v10750_v12 = vmul.u32.u64.low %v10720_v10, %v1667_v32  ;;  %v10751_v8 = vmul.u32.u64.high %v10720_v10, %v1667_v32, %v10750_v12  ;;  %v1659_v49 = vsel %vm1653_vm13, %v1656_v14, %v1658_v46  ;;  %v4948_v11 = vand.u32 2147483647, %v10694_v21 }
 0x220   : > { %v8339_v24 = vadd.s32 4294967294, %v4704_v44  ;;  %v10757_v15 = vadd.f32 %v10690_v16, %v10295_v1  ;;  %vm1403_vm2 = vcmp.lt.s32.totalorder %v10697_v20, 2  ;;  %vm1404_vm3 = vcmp.eq.s32.totalorder %v10697_v20, 0 }
 0x221   : > { %v1678_v61 = vadd.s32 1, %v10735_v5  ;;  %v4958_v17 = vadd.s32 1, %v8349_v23  ;;  %vm1407_vm5 = vcmp.eq.s32.totalorder %v10697_v20, 2  ;;  %v4692_v47 = vadd.s32 %v10673_v40, %v10670_v7 }
 0x222   : > { %v9072_v26 = vpop.eup %9071  ;;  %vm8340_vm6 = vcmp.lt.s32.totalorder %v8339_v24, 0  ;;  %v4725_v62 = vsel %vm10741_vm15, 0, %v4723_v34  ;;  %v1675_v4 = vmul.u32 %v10720_v10, %v1659_v49  ;;  %vm1677_vm7 = vc.u32 %v10751_v8, %v10734_v22 }
 0x223   : > { %v9074_v33 = vpop.eup %9073  ;;  %v1408_v1 = vxor.u32 2147483648, %v9072_v26  ;;  %v4707_v29 = vsel %vm8340_vm6, 0, %v8339_v24  ;;  %v4955_v0 = vand.u32 8388607, %v4948_v11  ;;  %v1679_v40 = vsel %vm1677_vm7, %v1678_v61, %v10735_v5 }
 0x224   : > { %v1405_v19 = vxor.u32 2147483648, %v9074_v33  ;;  %v4708_v38 = vsub.s32 32, %v4707_v29  ;;  %v4712_v27 = vsub.s32 4294967266, %v4707_v29  ;;  %v4709_v7 = vshll.u32 %v10727_v28, %v4707_v29 }
 0x225   : > { %v1409_v35 = vsel %vm1407_vm5, %v1408_v1, %v9074_v33  ;;  %vm4959_vm8 = vcmp.gt.s32.totalorder %v4958_v17, 0  ;;  %v1680_v42 = vadd.s32 %v1679_v40, %v1675_v4  ;;  %v4729_v45 = vadd.s32 3, %v4725_v62 }
 0x226   : > { %v1406_v55 = vsel %vm1404_vm3, %v9072_v26, %v1405_v19  ;;  %v4710_v51 = vshrl.u32 %v4692_v47, %v4708_v38  ;;  %v4713_v10 = vadd.s32 127, %v4712_v27  ;;  %v4960_v2 = vsel %vm4959_vm8, %v4958_v17, 0 }
 0x227   : > { %v1410_v57 = vsel %vm1403_vm2, %v1406_v55, %v1409_v35  ;;  %v1516_v14 = vand.u32 2147483647, %v10757_v15  ;;  %v1681_v63 = vadd.s32 536870912, %v1680_v42  ;;  %v4956_v53 = vor.u32 8388608, %v4955_v0 }
 0x228   : > { %v1411_v13 = vsel %vm1400_vm4, nan, %v1410_v57  ;;  %v4711_v28 = vor.u32 %v4710_v51, %v4709_v7  ;;  %v4714_v43 = vshll.u32 %v4713_v10, 23  ;;  %v4962_v46 = vand.u32 31, %v4960_v2 }
 0x229   : > { %7553 = vst.msk [vmem:[%s9945_s25 + $0x20] sm:$0xff] %vm7548_vm14, %v1411_v13  ;;  %v10782_v18 = vshrl.u32 %v1681_v63, 30  ;;  %v10784_v32 = vand.u32 3, %v4729_v45  ;;  %v1519_v5 = vand.u32 2139095040, %v10757_v15  ;;  %v10789_v37 = vand.u32 8388607, %v1516_v14 }
 0x22a   : > { %v4715_v39 = vor.u32 4788187, %v4714_v43  ;;  %v4963_v20 = vsub.s32 32, %v4962_v46  ;;  %v4718_v44 = vcvt.s32.f32 %v4711_v28  ;;  %v10792_v34 = vadd.s32 %v10734_v22, %v10751_v8 }
 0x22b   : > { %v1683_v12 = vshll.u32 %v10782_v18, 30  ;;  %v10798_v61 = vshll.u32 %v4956_v53, 8  ;;  %v4965_v47 = vshll.u32 %v9401_v50, %v4962_v46  ;;  %v4961_v33 = vshrl.u32 %v4960_v2, 5 }
 0x22c   : > { %v4716_v9 = vand.u32 2147483647, %v4715_v39  ;;  %v4966_v23 = vshrl.u32 %v9402_v54, %v4963_v20  ;;  %v4969_v24 = vshrl.u32 %v9403_v56, %v4963_v20  ;;  %v4972_v49 = vshrl.u32 %v9404_v58, %v4963_v20 }
 0x22d   : > { %v10800_v26 = vsub.s32 %v1680_v42, %v1683_v12  ;;  %v4975_v62 = vshrl.u32 %v9405_v60, %v4963_v20  ;;  %v4968_v22 = vshll.u32 %v9402_v54, %v4962_v46  ;;  %v4971_v8 = vshll.u32 %v9403_v56, %v4962_v46 }
 0x22e   : > { %v4719_v17 = vmul.f32 %v4718_v44, %v4716_v9  ;;  %v1520_v1 = vshrl.u32 %v1519_v5, 23  ;;  %v4967_v19 = vor.u32 %v4966_v23, %v4965_v47  ;;  %v4974_v38 = vshll.u32 %v9404_v58, %v4962_v46 }
 0x22f   : > { %v1686_v4 = vsub.s32 0, %v10800_v26  ;;  %v4970_v27 = vor.u32 %v4969_v24, %v4968_v22  ;;  %v4973_v0 = vor.u32 %v4972_v49, %v4971_v8  ;;  %v4977_v35 = vshll.u32 %v9405_v60, %v4962_v46 }
 0x230   : > { %v4720_v29 = vxor.u32 2147483648, %v4719_v17  ;;  %v4978_v7 = vshrl.u32 %v9406_v3, %v4963_v20  ;;  %v4976_v51 = vor.u32 %v4975_v62, %v4974_v38  ;;  %v1524_v10 = vor.u32 8388608, %v10789_v37 }
 0x231   : > { %v8222_v55 = vmin.u32 %v1686_v4, %v10800_v26  ;;  %v4964_v57 = vshrl.u32 %v9401_v50, %v4963_v20  ;;  %v8217_v2 = vadd.s32 4294967169, %v1520_v1  ;;  %vm4980_vm9 = vcmp.lt.s32.totalorder %v4961_v33, 1  ;;  %v10833_v4 = vpop.f32.mrb[10].mxu0 }
 0x232   : > { %v4721_v40 = vsel %vm4638_vm1, %v4720_v29, %v4719_v17  ;;  %v4979_v45 = vor.u32 %v4978_v7, %v4977_v35  ;;  %vm4983_vm10 = vcmp.lt.s32.totalorder %v4961_v33, 4  ;;  %vm1622_vm11 = vcmp.lt.s32.totalorder %v10575_v41, 0 }
 0x233   : > { %v4724_v42 = vsel %vm10741_vm15, %v10515_v52, %v4721_v40  ;;  %v1688_v13 = vclz %v8222_v55  ;;  %vm4981_vm12 = vcmp.lt.s32.totalorder %v4961_v33, 2  ;;  %v4985_v28 = vsel %vm4983_vm10, %v4973_v0, 2102212464 }
 0x234   : > { %9075 = vcosq.f32 %v4724_v42  ;;  %v4988_v43 = vsel %vm4980_vm9, %v4967_v19, %v4970_v27  ;;  %vm4982_vm13 = vcmp.lt.s32.totalorder %v4961_v33, 3  ;;  %v4989_v53 = vsel %vm4983_vm10, %v4976_v51, 920167782 }
 0x235   : > { %9077 = vsinq.f32 %v4724_v42  ;;  %v8223_v63 = vadd.s32 4294967294, %v1688_v13  ;;  %v4992_v46 = vsel %vm4980_vm9, %v4970_v27, %v4973_v0  ;;  %v4984_v6 = vsel %vm4980_vm9, %v4964_v57, %v4967_v19 }
 0x236   : > { %v4990_v39 = vsel %vm4982_vm13, %v4973_v0, %v4989_v53  ;;  %v4993_v5 = vsel %vm4983_vm10, %v4979_v45, 1326507024  ;;  %v1526_v20 = vadd.s32 1, %v8217_v2  ;;  %v4986_v37 = vsel %vm4982_vm13, %v4970_v27, %v4985_v28 }
 0x237   : > { %vm8224_vm0 = vcmp.lt.s32.totalorder %v8223_v63, 0  ;;  %v4991_v9 = vsel %vm4981_vm12, %v4988_v43, %v4990_v39  ;;  %v4994_v44 = vsel %vm4982_vm13, %v4976_v51, %v4993_v5  ;;  %v1706_v62 = vsub.s32 4, %v10782_v18 }
 0x238   : > { %v1691_v12 = vsel %vm8224_vm0, 0, %v8223_v63  ;;  %v4995_v23 = vsel %vm4981_vm12, %v4992_v46, %v4994_v44  ;;  %v10822_v24 = vmul.u32.u64.low %v10798_v61, %v4991_v9  ;;  %v10823_v49 = vmul.u32.u64.high %v10798_v61, %v4991_v9, %v10822_v24 }
 0x239   : > { %v1692_v17 = vsub.s32 32, %v1691_v12  ;;  %v1696_v47 = vsub.s32 4294967266, %v1691_v12  ;;  %vm1527_vm15 = vcmp.gt.s32.totalorder %v1526_v20, 0  ;;  %vm4728_vm1 = vweird.f32 %v10515_v52 }
 0x23a   : > { %v4987_v22 = vsel %vm4981_vm12, %v4984_v6, %v4986_v37  ;;  %v10830_v8 = vmul.u32.u64.low %v10798_v61, %v4995_v23  ;;  %v10831_v1 = vmul.u32.u64.high %v10798_v61, %v4995_v23, %v10830_v8  ;;  %v1528_v29 = vsel %vm1527_vm15, %v1526_v20, 0 }
 0x23b   : > { %v1693_v19 = vshll.u32 %v10800_v26, %v1691_v12  ;;  %v1694_v38 = vshrl.u32 %v10792_v34, %v1692_v17  ;;  %v1697_v27 = vadd.s32 127, %v1696_v47  ;;  %v1530_v0 = vand.u32 31, %v1528_v29 }
 0x23c   : > { %vm4731_vm4 = vcmp.lt.s32.totalorder %v10784_v32, 2  ;;  %vm4732_vm2 = vcmp.eq.s32.totalorder %v10784_v32, 0  ;;  %vm10841_vm3 = vcmp.le.f32.partialorder %v1620_v59, 0.7853982  ;;  %v5006_v35 = vadd.s32 1, %v10823_v49 }
 0x23d   : > { %vm4735_vm5 = vcmp.eq.s32.totalorder %v10784_v32, 2  ;;  %v1695_v26 = vor.u32 %v1694_v38, %v1693_v19  ;;  %v1698_v40 = vshll.u32 %v1697_v27, 23  ;;  %v1707_v34 = vsel %vm1622_vm11, %v1706_v62, %v10782_v18 }
 0x23e   : > { %v9076_v7 = vpop.eup %9075  ;;  %v5003_v42 = vmul.u32 %v10798_v61, %v4987_v22  ;;  %vm5005_vm6 = vc.u32 %v10831_v1, %v10822_v24  ;;  %v1531_v59 = vsub.s32 32, %v1530_v0  ;;  %v10854_v13 = vshll.u32 %v1524_v10, 8 }
 0x23f   : > { %v9078_v55 = vpop.eup %9077  ;;  %v4736_v51 = vxor.u32 2147483648, %v9076_v7  ;;  %v1699_v45 = vor.u32 4788187, %v1698_v40  ;;  %v5007_v2 = vsel %vm5005_vm6, %v5006_v35, %v10823_v49  ;;  %v1709_v43 = vsel %vm10841_vm3, 0, %v1707_v34 }
 0x240   : > { %v4733_v57 = vxor.u32 2147483648, %v9078_v55  ;;  %v5008_v18 = vadd.s32 %v5007_v2, %v5003_v42  ;;  %v10860_v63 = vadd.f32 %v10690_v16, %v10378_v31  ;;  %v1702_v46 = vcvt.s32.f32 %v1695_v26 }
 0x241   : > { %v4737_v28 = vsel %vm4735_vm5, %v4736_v51, %v9078_v55  ;;  %v1700_v53 = vand.u32 2147483647, %v1699_v45  ;;  %v10864_v6 = vshrl.u32 %v1528_v29, 5  ;;  %v1534_v5 = vshrl.u32 %v9402_v54, %v1531_v59 }
 0x242   : > { %v4734_v61 = vsel %vm4732_vm2, %v9076_v7, %v4733_v57  ;;  %v5009_v39 = vadd.s32 536870912, %v5008_v18  ;;  %v1537_v20 = vshrl.u32 %v9403_v56, %v1531_v59  ;;  %v1533_v9 = vshll.u32 %v9401_v50, %v1530_v0 }
 0x243   : > { %v4738_v10 = vsel %vm4731_vm4, %v4734_v61, %v4737_v28  ;;  %v1703_v31 = vmul.f32 %v1702_v46, %v1700_v53  ;;  %v1540_v44 = vshrl.u32 %v9404_v58, %v1531_v59  ;;  %v1536_v23 = vshll.u32 %v9402_v54, %v1530_v0 }
 0x244   : > { %v4739_v37 = vsel %vm4728_vm1, nan, %v4738_v10  ;;  %v5010_v12 = vshrl.u32 %v5009_v39, 30  ;;  %v1539_v32 = vshll.u32 %v9403_v56, %v1530_v0  ;;  %v1543_v49 = vshrl.u32 %v9405_v60, %v1531_v59 }
 0x245   : > { %7585 = vst.msk [vmem:[%s9945_s25 + $0x120] sm:$0xff] %vm7548_vm14, %v4739_v37  ;;  %v1704_v17 = vxor.u32 2147483648, %v1703_v31  ;;  %v1542_v47 = vshll.u32 %v9404_v58, %v1530_v0  ;;  %v1545_v52 = vshll.u32 %v9405_v60, %v1530_v0  ;;  %v1546_v62 = vshrl.u32 %v9406_v3, %v1531_v59 }
 0x246   : > { %v1713_v22 = vadd.s32 3, %v1709_v43  ;;  %v5011_v8 = vshll.u32 %v5010_v12, 30  ;;  %v1535_v29 = vor.u32 %v1534_v5, %v1533_v9  ;;  %v1538_v19 = vor.u32 %v1537_v20, %v1536_v23 }
 0x247   : > { %v1705_v38 = vsel %vm1622_vm11, %v1704_v17, %v1703_v31  ;;  %v1541_v27 = vor.u32 %v1540_v44, %v1539_v32  ;;  %v1544_v35 = vor.u32 %v1543_v49, %v1542_v47  ;;  %v1547_v7 = vor.u32 %v1546_v62, %v1545_v52 }
 0x248   : > { %v1708_v26 = vsel %vm10841_vm3, %v10575_v41, %v1705_v38  ;;  %v10887_v40 = vsub.s32 %v5008_v18, %v5011_v8  ;;  %v1532_v0 = vshrl.u32 %v9401_v50, %v1531_v59  ;;  %v4847_v34 = vand.u32 2139095040, %v10860_v63 }
 0x249   : > { %9079 = vcosq.f32 %v1708_v26  ;;  %vm1548_vm7 = vcmp.lt.s32.totalorder %v10864_v6, 1  ;;  %vm1549_vm8 = vcmp.lt.s32.totalorder %v10864_v6, 2  ;;  %vm1550_vm9 = vcmp.lt.s32.totalorder %v10864_v6, 3 }
 0x24a   : > { %9081 = vsinq.f32 %v1708_v26  ;;  %v5014_v55 = vsub.s32 0, %v10887_v40  ;;  %vm1551_vm10 = vcmp.lt.s32.totalorder %v10864_v6, 4  ;;  %v1556_v33 = vsel %vm1548_vm7, %v1535_v29, %v1538_v19 }
 0x24b   : > { %v1553_v51 = vsel %vm1551_vm10, %v1541_v27, 2102212464  ;;  %v1557_v42 = vsel %vm1551_vm10, %v1544_v35, 920167782  ;;  %v1560_v59 = vsel %vm1548_vm7, %v1538_v19, %v1541_v27  ;;  %v1561_v57 = vsel %vm1551_vm10, %v1547_v7, 1326507024 }
 0x24c   : > { %v8350_v45 = vmin.u32 %v5014_v55, %v10887_v40  ;;  %v5034_v2 = vsub.s32 4, %v5010_v12  ;;  %v1558_v28 = vsel %vm1550_vm9, %v1541_v27, %v1557_v42  ;;  %v1562_v43 = vsel %vm1550_vm9, %v1544_v35, %v1561_v57 }
 0x24d   : > { %v1714_v18 = vand.u32 3, %v1713_v22  ;;  %v1559_v61 = vsel %vm1549_vm8, %v1556_v33, %v1558_v28  ;;  %v1563_v53 = vsel %vm1549_vm8, %v1560_v59, %v1562_v43  ;;  %v4848_v46 = vshrl.u32 %v4847_v34, 23 }
 0x24e   : > { %vm4950_vm11 = vcmp.lt.s32.totalorder %v10694_v21, 0  ;;  %v5016_v10 = vclz %v8350_v45  ;;  %v1552_v39 = vsel %vm1548_vm7, %v1532_v0, %v1535_v29  ;;  %v1554_v5 = vsel %vm1550_vm9, %v1538_v19, %v1553_v51 }
 0x24f   : > { %v10915_v20 = vmul.u32.u64.low %v10854_v13, %v1563_v53  ;;  %v10916_v37 = vmul.u32.u64.high %v10854_v13, %v1563_v53, %v10915_v20  ;;  %v10919_v31 = vmul.u32.u64.low %v10854_v13, %v1559_v61  ;;  %v10920_v9 = vmul.u32.u64.high %v10854_v13, %v1559_v61, %v10919_v31 }
 0x250   : > { %vm1712_vm12 = vweird.f32 %v10575_v41  ;;  %vm10926_vm13 = vcmp.le.f32.partialorder %v4948_v11, 0.7853982  ;;  %v8351_v23 = vadd.s32 4294967294, %v5016_v10  ;;  %v5035_v32 = vsel %vm4950_vm11, %v5034_v2, %v5010_v12 }
 0x251   : > { %v8345_v49 = vadd.s32 4294967169, %v4848_v46  ;;  %vm1715_vm0 = vcmp.lt.s32.totalorder %v1714_v18, 2  ;;  %vm1716_vm15 = vcmp.eq.s32.totalorder %v1714_v18, 0  ;;  %vm1719_vm1 = vcmp.eq.s32.totalorder %v1714_v18, 2 }
 0x252   : > { %v1555_v17 = vsel %vm1549_vm8, %v1552_v39, %v1554_v5  ;;  %v5004_v47 = vadd.s32 %v10822_v24, %v10831_v1  ;;  %vm8352_vm4 = vcmp.lt.s32.totalorder %v8351_v23, 0  ;;  %v4844_v11 = vand.u32 2147483647, %v10860_v63 }
 0x253   : > { %v4854_v52 = vadd.s32 1, %v8345_v49  ;;  %v9080_v62 = vpop.eup %9079  ;;  %v5019_v22 = vsel %vm8352_vm4, 0, %v8351_v23  ;;  %v5037_v8 = vsel %vm10926_vm13, 0, %v5035_v32  ;;  %vm1573_vm2 = vc.u32 %v10916_v37, %v10919_v31  ;;  %v10966_v23 = vpop.f32.mrb[10].mxu1 }
 0x254   : > { %v1574_v12 = vadd.s32 1, %v10920_v9  ;;  %v9082_v29 = vpop.eup %9081  ;;  %v1720_v6 = vxor.u32 2147483648, %v9080_v62  ;;  %v5020_v19 = vsub.s32 32, %v5019_v22  ;;  %v5024_v38 = vsub.s32 4294967266, %v5019_v22 }
 0x255   : > { %v1571_v24 = vmul.u32 %v10854_v13, %v1555_v17  ;;  %v1717_v1 = vxor.u32 2147483648, %v9082_v29  ;;  %v5021_v27 = vshll.u32 %v10887_v40, %v5019_v22  ;;  %vm4855_vm3 = vcmp.gt.s32.totalorder %v4854_v52, 0 }
 0x256   : > { %v1575_v35 = vsel %vm1573_vm2, %v1574_v12, %v10920_v9  ;;  %v1721_v7 = vsel %vm1719_vm1, %v1720_v6, %v9082_v29  ;;  %v5022_v26 = vshrl.u32 %v5004_v47, %v5020_v19  ;;  %v5025_v0 = vadd.s32 127, %v5024_v38 }
 0x257   : > { %v1576_v34 = vadd.s32 %v1575_v35, %v1571_v24  ;;  %v1718_v55 = vsel %vm1716_vm15, %v9080_v62, %v1717_v1  ;;  %v5041_v33 = vadd.s32 3, %v5037_v8  ;;  %v4851_v51 = vand.u32 8388607, %v4844_v11 }
 0x258   : > { %v4856_v42 = vsel %vm4855_vm3, %v4854_v52, 0  ;;  %v1722_v13 = vsel %vm1715_vm0, %v1718_v55, %v1721_v7  ;;  %v5023_v59 = vor.u32 %v5022_v26, %v5021_v27  ;;  %v5026_v40 = vshll.u32 %v5025_v0, 23 }
 0x259   : > { %v1577_v57 = vadd.s32 536870912, %v1576_v34  ;;  %v1723_v45 = vsel %vm1712_vm12, nan, %v1722_v13  ;;  %v4858_v2 = vand.u32 31, %v4856_v42  ;;  %v4852_v61 = vor.u32 8388608, %v4851_v51 }
 0x25a   : > { %7556 = vst.msk [vmem:[%s9945_s25 + $0x38] sm:$0xff] %vm7548_vm14, %v1723_v45  ;;  %v5027_v28 = vor.u32 4788187, %v5026_v40  ;;  %v5030_v10 = vcvt.s32.f32 %v5023_v59  ;;  %v10956_v39 = vand.u32 3, %v5041_v33  ;;  %v10964_v9 = vadd.f32 %v10690_v16, %v10499_v48 }
 0x25b   : > { %v10954_v43 = vshrl.u32 %v1577_v57, 30  ;;  %v4859_v53 = vsub.s32 32, %v4858_v2  ;;  %v4861_v17 = vshll.u32 %v9401_v50, %v4858_v2  ;;  %v4857_v52 = vshrl.u32 %v4856_v42, 5 }
 0x25c   : > { %v5028_v46 = vand.u32 2147483647, %v5027_v28  ;;  %v4864_v62 = vshll.u32 %v9402_v54, %v4858_v2  ;;  %v4867_v22 = vshll.u32 %v9403_v56, %v4858_v2  ;;  %v10974_v8 = vshll.u32 %v4852_v61, 8 }
 0x25d   : > { %v1579_v18 = vshll.u32 %v10954_v43, 30  ;;  %v4862_v5 = vshrl.u32 %v9402_v54, %v4859_v53  ;;  %v4865_v20 = vshrl.u32 %v9403_v56, %v4859_v53  ;;  %v4868_v41 = vshrl.u32 %v9404_v58, %v4859_v53 }
 0x25e   : > { %v5031_v32 = vmul.f32 %v5030_v10, %v5028_v46  ;;  %v4871_v47 = vshrl.u32 %v9405_v60, %v4859_v53  ;;  %v4870_v6 = vshll.u32 %v9404_v58, %v4858_v2  ;;  %v4873_v24 = vshll.u32 %v9405_v60, %v4858_v2 }
 0x25f   : > { %v10968_v49 = vsub.s32 %v1576_v34, %v1579_v18  ;;  %v4863_v29 = vor.u32 %v4862_v5, %v4861_v17  ;;  %v4866_v19 = vor.u32 %v4865_v20, %v4864_v62  ;;  %v4869_v38 = vor.u32 %v4868_v41, %v4867_v22 }
 0x260   : > { %v5032_v12 = vxor.u32 2147483648, %v5031_v32  ;;  %v4874_v1 = vshrl.u32 %v9406_v3, %v4859_v53  ;;  %vm1518_vm5 = vcmp.lt.s32.totalorder %v10757_v15, 0  ;;  %v4872_v7 = vor.u32 %v4871_v47, %v4870_v6 }
 0x261   : > { %v1582_v48 = vsub.s32 0, %v10968_v49  ;;  %v1831_v26 = vand.u32 2139095040, %v10964_v9  ;;  %v1602_v34 = vsub.s32 4, %v10954_v43  ;;  %v4860_v55 = vshrl.u32 %v9401_v50, %v4859_v53 }
 0x262   : > { %v5033_v27 = vsel %vm4950_vm11, %v5032_v12, %v5031_v32  ;;  %v4875_v33 = vor.u32 %v4874_v1, %v4873_v24  ;;  %vm4876_vm6 = vcmp.lt.s32.totalorder %v4857_v52, 1  ;;  %vm4879_vm7 = vcmp.lt.s32.totalorder %v4857_v52, 4 }
 0x263   : > { %v8218_v35 = vmin.u32 %v1582_v48, %v10968_v49  ;;  %v5036_v0 = vsel %vm10926_vm13, %v10694_v21, %v5033_v27  ;;  %vm10992_vm8 = vcmp.le.f32.partialorder %v1516_v14, 0.7853982  ;;  %vm4877_vm9 = vcmp.lt.s32.totalorder %v4857_v52, 2 }
 0x264   : > { %9083 = vcosq.f32 %v5036_v0  ;;  %v4881_v13 = vsel %vm4879_vm7, %v4869_v38, 2102212464  ;;  %v4884_v44 = vsel %vm4876_vm6, %v4863_v29, %v4866_v19  ;;  %vm4878_vm10 = vcmp.lt.s32.totalorder %v4857_v52, 3 }
 0x265   : > { %v1584_v51 = vclz %v8218_v35  ;;  %9085 = vsinq.f32 %v5036_v0  ;;  %v4885_v40 = vsel %vm4879_vm7, %v4872_v7, 920167782  ;;  %v4888_v57 = vsel %vm4876_vm6, %v4866_v19, %v4869_v38 }
 0x266   : > { %v4880_v45 = vsel %vm4876_vm6, %v4860_v55, %v4863_v29  ;;  %v4886_v2 = vsel %vm4878_vm10, %v4869_v38, %v4885_v40  ;;  %v4889_v28 = vsel %vm4879_vm7, %v4875_v33, 1326507024  ;;  %v1832_v61 = vshrl.u32 %v1831_v26, 23 }
 0x267   : > { %v8219_v59 = vadd.s32 4294967294, %v1584_v51  ;;  %v4882_v53 = vsel %vm4878_vm10, %v4866_v19, %v4881_v13  ;;  %v4887_v46 = vsel %vm4877_vm9, %v4884_v44, %v4886_v2  ;;  %v4890_v10 = vsel %vm4878_vm10, %v4872_v7, %v4889_v28 }
 0x268   : > { %vm5044_vm12 = vcmp.eq.s32.totalorder %v10956_v39, 0  ;;  %v4891_v18 = vsel %vm4877_vm9, %v4888_v57, %v4890_v10  ;;  %v11000_v5 = vmul.u32.u64.low %v10974_v8, %v4887_v46  ;;  %v11001_v20 = vmul.u32.u64.high %v10974_v8, %v4887_v46, %v11000_v5 }
 0x269   : > { %vm8220_vm11 = vcmp.lt.s32.totalorder %v8219_v59, 0  ;;  %vm5043_vm13 = vcmp.lt.s32.totalorder %v10956_v39, 2  ;;  %v1572_v41 = vadd.s32 %v10919_v31, %v10916_v37  ;;  %v8229_v47 = vadd.s32 4294967169, %v1832_v61  ;;  %v11017_v31 = vpop.f32.mrb[11].mxu0 }
 0x26a   : > { %v1587_v14 = vsel %vm8220_vm11, 0, %v8219_v59  ;;  %vm5040_vm0 = vweird.f32 %v10694_v21  ;;  %v1603_v62 = vsel %vm1518_vm5, %v1602_v34, %v10954_v43  ;;  %v4883_v22 = vsel %vm4877_vm9, %v4880_v45, %v4882_v53 }
 0x26b   : > { %v1588_v32 = vsub.s32 32, %v1587_v14  ;;  %v1592_v17 = vsub.s32 4294967266, %v1587_v14  ;;  %v11013_v12 = vmul.u32.u64.low %v10974_v8, %v4891_v18  ;;  %v11014_v48 = vmul.u32.u64.high %v10974_v8, %v4891_v18, %v11013_v12 }
 0x26c   : > { %v1589_v29 = vshll.u32 %v10968_v49, %v1587_v14  ;;  %v1838_v37 = vadd.s32 1, %v8229_v47  ;;  %vm5047_vm15 = vcmp.eq.s32.totalorder %v10956_v39, 2  ;;  %v4902_v38 = vadd.s32 1, %v11001_v20 }
 0x26d   : > { %v1590_v6 = vshrl.u32 %v1572_v41, %v1588_v32  ;;  %v1593_v19 = vadd.s32 127, %v1592_v17  ;;  %v1828_v24 = vand.u32 2147483647, %v10964_v9  ;;  %v11024_v43 = vadd.f32 %v10690_v16, %v10577_v36 }
 0x26e   : > { %v9084_v52 = vpop.eup %9083  ;;  %v1605_v49 = vsel %vm10992_vm8, 0, %v1603_v62  ;;  %vm1839_vm1 = vcmp.gt.s32.totalorder %v1838_v37, 0  ;;  %v4899_v26 = vmul.u32 %v10974_v8, %v4883_v22  ;;  %vm4901_vm4 = vc.u32 %v11014_v48, %v11000_v5 }
 0x26f   : > { %v1591_v1 = vor.u32 %v1590_v6, %v1589_v29  ;;  %v1594_v27 = vshll.u32 %v1593_v19, 23  ;;  %v9086_v35 = vpop.eup %9085  ;;  %v5048_v7 = vxor.u32 2147483648, %v9084_v52  ;;  %v1840_v0 = vsel %vm1839_vm1, %v1838_v37, 0 }
 0x270   : > { %v5045_v34 = vxor.u32 2147483648, %v9086_v35  ;;  %v4903_v36 = vsel %vm4901_vm4, %v4902_v38, %v11001_v20  ;;  %v11034_v33 = vadd.f32 %v10690_v16, %v10660_v30  ;;  %v1835_v8 = vand.u32 8388607, %v1828_v24 }
 0x271   : > { %v1595_v55 = vor.u32 4788187, %v1594_v27  ;;  %v5049_v51 = vsel %vm5047_vm15, %v5048_v7, %v9086_v35  ;;  %v4904_v13 = vadd.s32 %v4903_v36, %v4899_v26  ;;  %v1842_v44 = vand.u32 31, %v1840_v0 }
 0x272   : > { %v5046_v59 = vsel %vm5044_vm12, %v9084_v52, %v5045_v34  ;;  %v1598_v57 = vcvt.s32.f32 %v1591_v1  ;;  %v1609_v45 = vadd.s32 3, %v1605_v49  ;;  %v5159_v28 = vand.u32 2139095040, %v11024_v43 }
 0x273   : > { %v1596_v40 = vand.u32 2147483647, %v1595_v55  ;;  %v5050_v2 = vsel %vm5043_vm13, %v5046_v59, %v5049_v51  ;;  %v4905_v30 = vadd.s32 536870912, %v4904_v13  ;;  %v1843_v16 = vsub.s32 32, %v1842_v44 }
 0x274   : > { %v5051_v61 = vsel %vm5040_vm0, nan, %v5050_v2  ;;  %v1845_v46 = vshll.u32 %v9401_v50, %v1842_v44  ;;  %v1848_v10 = vshll.u32 %v9402_v54, %v1842_v44  ;;  %v1851_v20 = vshll.u32 %v9403_v56, %v1842_v44 }
 0x275   : > { %v1599_v53 = vmul.f32 %v1598_v57, %v1596_v40  ;;  %7588 = vst.msk [vmem:[%s9945_s25 + $0x138] sm:$0xff] %vm7548_vm14, %v5051_v61  ;;  %v4906_v14 = vshrl.u32 %v4905_v30, 30  ;;  %v1846_v18 = vshrl.u32 %v9402_v54, %v1843_v16  ;;  %v1849_v39 = vshrl.u32 %v9403_v56, %v1843_v16  ;;  %v11080_v57 = vpop.f32.mrb[11].mxu1 }
 0x276   : > { %v1852_v32 = vshrl.u32 %v9404_v58, %v1843_v16  ;;  %v1854_v21 = vshll.u32 %v9404_v58, %v1842_v44  ;;  %v1855_v17 = vshrl.u32 %v9405_v60, %v1843_v16  ;;  %v11057_v47 = vand.u32 3, %v1609_v45 }
 0x277   : > { %v1600_v41 = vxor.u32 2147483648, %v1599_v53  ;;  %vm4846_vm2 = vcmp.lt.s32.totalorder %v10860_v63, 0  ;;  %v4907_v62 = vshll.u32 %v4906_v14, 30  ;;  %v1841_v22 = vshrl.u32 %v1840_v0, 5 }
 0x278   : > { %v1847_v12 = vor.u32 %v1846_v18, %v1845_v46  ;;  %v1850_v6 = vor.u32 %v1849_v39, %v1848_v10  ;;  %v1853_v19 = vor.u32 %v1852_v32, %v1851_v20  ;;  %v1856_v37 = vor.u32 %v1855_v17, %v1854_v21 }
 0x279   : > { %v1601_v29 = vsel %vm1518_vm5, %v1600_v41, %v1599_v53  ;;  %v11065_v52 = vsub.s32 %v4904_v13, %v4907_v62  ;;  %v1857_v1 = vshll.u32 %v9405_v60, %v1842_v44  ;;  %v1858_v27 = vshrl.u32 %v9406_v3, %v1843_v16 }
 0x27a   : > { %v1604_v38 = vsel %vm10992_vm8, %v10757_v15, %v1601_v29  ;;  %v1836_v49 = vor.u32 8388608, %v1835_v8  ;;  %v5156_v35 = vand.u32 2147483647, %v11024_v43  ;;  %v5160_v7 = vshrl.u32 %v5159_v28, 23 }
 0x27b   : > { %9087 = vcosq.f32 %v1604_v38  ;;  %vm11072_vm3 = vcmp.le.f32.partialorder %v4844_v11, 0.7853982  ;;  %v4910_v42 = vsub.s32 0, %v11065_v52  ;;  %v1844_v0 = vshrl.u32 %v9401_v50, %v1843_v16 }
 0x27c   : > { %9089 = vsinq.f32 %v1604_v38  ;;  %v1859_v34 = vor.u32 %v1858_v27, %v1857_v1  ;;  %v4930_v55 = vsub.s32 4, %v4906_v14  ;;  %vm1860_vm5 = vcmp.lt.s32.totalorder %v1841_v22, 1 }
 0x27d   : > { %vm1862_vm6 = vcmp.lt.s32.totalorder %v1841_v22, 3  ;;  %vm1863_vm7 = vcmp.lt.s32.totalorder %v1841_v22, 4  ;;  %v8346_v36 = vmin.u32 %v4910_v42, %v11065_v52  ;;  %v1868_v13 = vsel %vm1860_vm5, %v1847_v12, %v1850_v6 }
 0x27e   : > { %v1865_v51 = vsel %vm1863_vm7, %v1853_v19, 2102212464  ;;  %v1869_v8 = vsel %vm1863_vm7, %v1856_v37, 920167782  ;;  %v1872_v11 = vsel %vm1860_vm5, %v1850_v6, %v1853_v19  ;;  %v1873_v59 = vsel %vm1863_vm7, %v1859_v34, 1326507024 }
 0x27f   : > { %v1870_v44 = vsel %vm1862_vm6, %v1853_v19, %v1869_v8  ;;  %v1876_v40 = vshll.u32 %v1836_v49, 8  ;;  %v4912_v45 = vclz %v8346_v36  ;;  %vm1861_vm8 = vcmp.lt.s32.totalorder %v1841_v22, 2 }
 0x280   : > { %v1864_v2 = vsel %vm1860_vm5, %v1844_v0, %v1847_v12  ;;  %v1866_v30 = vsel %vm1862_vm6, %v1850_v6, %v1865_v51  ;;  %v4931_v16 = vsel %vm4846_vm2, %v4930_v55, %v4906_v14  ;;  %v1871_v28 = vsel %vm1861_vm8, %v1868_v13, %v1870_v44 }
 0x281   : > { %v1874_v61 = vsel %vm1862_vm6, %v1856_v37, %v1873_v59  ;;  %v8357_v53 = vadd.s32 4294967169, %v5160_v7  ;;  %vm1608_vm9 = vweird.f32 %v10757_v15  ;;  %v8347_v46 = vadd.s32 4294967294, %v4912_v45 }
 0x282   : > { %v1875_v10 = vsel %vm1861_vm8, %v1872_v11, %v1874_v61  ;;  %v11087_v18 = vmul.u32.u64.low %v1876_v40, %v1871_v28  ;;  %v11088_v39 = vmul.u32.u64.high %v1876_v40, %v1871_v28, %v11087_v18  ;;  %vm1611_vm10 = vcmp.lt.s32.totalorder %v11057_v47, 2 }
 0x283   : > { %v1867_v20 = vsel %vm1861_vm8, %v1864_v2, %v1866_v30  ;;  %v11092_v41 = vmul.u32.u64.low %v1876_v40, %v1875_v10  ;;  %v11093_v32 = vmul.u32.u64.high %v1876_v40, %v1875_v10, %v11092_v41  ;;  %vm1612_vm11 = vcmp.eq.s32.totalorder %v11057_v47, 0 }
 0x284   : > { %vm1615_vm12 = vcmp.eq.s32.totalorder %v11057_v47, 2  ;;  %vm8348_vm13 = vcmp.lt.s32.totalorder %v8347_v46, 0  ;;  %v5166_v14 = vadd.s32 1, %v8357_v53  ;;  %v4900_v17 = vadd.s32 %v11000_v5, %v11014_v48 }
 0x285   : > { %v9088_v21 = vpop.eup %9087  ;;  %v4915_v62 = vsel %vm8348_vm13, 0, %v8347_v46  ;;  %v4933_v22 = vsel %vm11072_vm3, 0, %v4931_v16  ;;  %v5163_v12 = vand.u32 8388607, %v5156_v35  ;;  %v1883_v38 = vmul.u32 %v1876_v40, %v1867_v20 }
 0x286   : > { %v9090_v29 = vpop.eup %9089  ;;  %v1616_v6 = vxor.u32 2147483648, %v9088_v21  ;;  %v4916_v19 = vsub.s32 32, %v4915_v62  ;;  %v4920_v37 = vsub.s32 4294967266, %v4915_v62  ;;  %v4917_v27 = vshll.u32 %v11065_v52, %v4915_v62 }
 0x287   : > { %v1613_v1 = vxor.u32 2147483648, %v9090_v29  ;;  %vm1885_vm0 = vc.u32 %v11093_v32, %v11087_v18  ;;  %v1886_v5 = vadd.s32 1, %v11088_v39  ;;  %vm5167_vm15 = vcmp.gt.s32.totalorder %v5166_v14, 0 }
 0x288   : > { %v1617_v48 = vsel %vm1615_vm12, %v1616_v6, %v9090_v29  ;;  %v4918_v49 = vshrl.u32 %v4900_v17, %v4916_v19  ;;  %v4921_v7 = vadd.s32 127, %v4920_v37  ;;  %v4937_v0 = vadd.s32 3, %v4933_v22 }
 0x289   : > { %v1614_v42 = vsel %vm1612_vm11, %v9088_v21, %v1613_v1  ;;  %v1887_v34 = vsel %vm1885_vm0, %v1886_v5, %v11088_v39  ;;  %v5168_v55 = vsel %vm5167_vm15, %v5166_v14, 0  ;;  %v5164_v45 = vor.u32 8388608, %v5163_v12 }
 0x28a   : > { %v1618_v52 = vsel %vm1611_vm10, %v1614_v42, %v1617_v48  ;;  %v4919_v36 = vor.u32 %v4918_v49, %v4917_v27  ;;  %v4922_v51 = vshll.u32 %v4921_v7, 23  ;;  %v1888_v13 = vadd.s32 %v1887_v34, %v1883_v38 }
 0x28b   : > { %v1619_v8 = vsel %vm1608_vm9, nan, %v1618_v52  ;;  %v5170_v44 = vand.u32 31, %v5168_v55  ;;  %v11118_v40 = vand.u32 3, %v4937_v0  ;;  %v1727_v47 = vand.u32 2139095040, %v11034_v33 }
 0x28c   : > { %7555 = vst.msk [vmem:[%s9945_s25 + $0x30] sm:$0xff] %vm7548_vm14, %v1619_v8  ;;  %v4923_v11 = vor.u32 4788187, %v4922_v51  ;;  %v1889_v59 = vadd.s32 536870912, %v1888_v13  ;;  %v4926_v16 = vcvt.s32.f32 %v4919_v36  ;;  %v5169_v61 = vshrl.u32 %v5168_v55, 5 }
 0x28d   : > { %v5171_v2 = vsub.s32 32, %v5170_v44  ;;  %v5179_v20 = vshll.u32 %v9403_v56, %v5170_v44  ;;  %v5173_v14 = vshll.u32 %v9401_v50, %v5170_v44  ;;  %v5176_v21 = vshll.u32 %v9402_v54, %v5170_v44 }
 0x28e   : > { %v4924_v30 = vand.u32 2147483647, %v4923_v11  ;;  %v11120_v28 = vshrl.u32 %v1889_v59, 30  ;;  %v5182_v17 = vshll.u32 %v9404_v58, %v5170_v44  ;;  %v1724_v6 = vand.u32 2147483647, %v11034_v33 }
 0x28f   : > { %v5174_v53 = vshrl.u32 %v9402_v54, %v5171_v2  ;;  %v5177_v15 = vshrl.u32 %v9403_v56, %v5171_v2  ;;  %v5180_v46 = vshrl.u32 %v9404_v58, %v5171_v2  ;;  %v5183_v41 = vshrl.u32 %v9405_v60, %v5171_v2 }
 0x290   : > { %v4927_v10 = vmul.f32 %v4926_v16, %v4924_v30  ;;  %v1891_v39 = vshll.u32 %v11120_v28, 30  ;;  %v5186_v62 = vshrl.u32 %v9406_v3, %v5171_v2  ;;  %v5185_v1 = vshll.u32 %v9405_v60, %v5170_v44 }
 0x291   : > { %v5181_v29 = vor.u32 %v5180_v46, %v5179_v20  ;;  %v5175_v19 = vor.u32 %v5174_v53, %v5173_v14  ;;  %v5178_v37 = vor.u32 %v5177_v15, %v5176_v21  ;;  %v5184_v38 = vor.u32 %v5183_v41, %v5182_v17 }
 0x292   : > { %v4928_v22 = vxor.u32 2147483648, %v4927_v10  ;;  %v11133_v12 = vsub.s32 %v1888_v13, %v1891_v39  ;;  %v11140_v48 = vshll.u32 %v5164_v45, 8  ;;  %v1728_v49 = vshrl.u32 %v1727_v47, 23 }
 0x293   : > { %v5172_v42 = vshrl.u32 %v9401_v50, %v5171_v2  ;;  %v5187_v0 = vor.u32 %v5186_v62, %v5185_v1  ;;  %vm5191_vm1 = vcmp.lt.s32.totalorder %v5169_v61, 4  ;;  %vm5188_vm4 = vcmp.lt.s32.totalorder %v5169_v61, 1 }
 0x294   : > { %v4929_v27 = vsel %vm4846_vm2, %v4928_v22, %v4927_v10  ;;  %v1894_v5 = vsub.s32 0, %v11133_v12  ;;  %v5193_v55 = vsel %vm5191_vm1, %v5181_v29, 2102212464  ;;  %vm5190_vm2 = vcmp.lt.s32.totalorder %v5169_v61, 3 }
 0x295   : > { %v4932_v7 = vsel %vm11072_vm3, %v10860_v63, %v4929_v27  ;;  %v5196_v52 = vsel %vm5188_vm4, %v5175_v19, %v5178_v37  ;;  %v5197_v36 = vsel %vm5191_vm1, %v5184_v38, 920167782  ;;  %vm11151_vm5 = vcmp.le.f32.partialorder %v1828_v24, 0.7853982 }
 0x296   : > { %9091 = vcosq.f32 %v4932_v7  ;;  %v8230_v34 = vmin.u32 %v1894_v5, %v11133_v12  ;;  %v5192_v13 = vsel %vm5188_vm4, %v5172_v42, %v5175_v19  ;;  %v5194_v8 = vsel %vm5190_vm2, %v5178_v37, %v5193_v55 }
 0x297   : > { %9093 = vsinq.f32 %v4932_v7  ;;  %v5200_v44 = vsel %vm5188_vm4, %v5178_v37, %v5181_v29  ;;  %vm5189_vm3 = vcmp.lt.s32.totalorder %v5169_v61, 2  ;;  %v5198_v11 = vsel %vm5190_vm2, %v5181_v29, %v5197_v36 }
 0x298   : > { %v1896_v51 = vclz %v8230_v34  ;;  %v5201_v59 = vsel %vm5191_vm1, %v5187_v0, 1326507024  ;;  %v8225_v45 = vadd.s32 4294967169, %v1728_v49  ;;  %v1914_v30 = vsub.s32 4, %v11120_v28  ;;  %v11184_v49 = vpop.f32.mrb[12].mxu0 }
 0x299   : > { %v5199_v16 = vsel %vm5189_vm3, %v5196_v52, %v5198_v11  ;;  %v5202_v47 = vsel %vm5190_vm2, %v5184_v38, %v5201_v59  ;;  %v5195_v53 = vsel %vm5189_vm3, %v5192_v13, %v5194_v8  ;;  %vm4936_vm7 = vweird.f32 %v10860_v63  ;;  %v11192_v52 = vld [vmem:[%s15263_s2] ss:$0 sm:$0xff] }
 0x29a   : > { %v8231_v2 = vadd.s32 4294967294, %v1896_v51  ;;  %v5203_v15 = vsel %vm5189_vm3, %v5200_v44, %v5202_v47  ;;  %v11158_v24 = vmul.u32.u64.low %v11140_v48, %v5199_v16  ;;  %v11159_v46 = vmul.u32.u64.high %v11140_v48, %v5199_v16, %v11158_v24 }
 0x29b   : > { %v11163_v10 = vmul.u32.u64.low %v11140_v48, %v5203_v15  ;;  %v11164_v39 = vmul.u32.u64.high %v11140_v48, %v5203_v15, %v11163_v10  ;;  %v1734_v61 = vadd.s32 1, %v8225_v45  ;;  %vm4943_vm8 = vcmp.eq.s32.totalorder %v11118_v40, 2 }
 0x29c   : > { %vm8232_vm6 = vcmp.lt.s32.totalorder %v8231_v2, 0  ;;  %vm1830_vm9 = vcmp.lt.s32.totalorder %v10964_v9, 0  ;;  %v1884_v20 = vadd.s32 %v11087_v18, %v11093_v32  ;;  %v5211_v62 = vmul.u32 %v11140_v48, %v5195_v53 }
 0x29d   : > { %v1899_v41 = vsel %vm8232_vm6, 0, %v8231_v2  ;;  %v1915_v17 = vsel %vm1830_vm9, %v1914_v30, %v11120_v28  ;;  %vm1735_vm10 = vcmp.gt.s32.totalorder %v1734_v61, 0  ;;  %v5214_v22 = vadd.s32 1, %v11159_v46 }
 0x29e   : > { %v1900_v14 = vsub.s32 32, %v1899_v41  ;;  %v1904_v21 = vsub.s32 4294967266, %v1899_v41  ;;  %v1731_v29 = vand.u32 8388607, %v1724_v6  ;;  %v1736_v19 = vsel %vm1735_vm10, %v1734_v61, 0 }
 0x29f   : > { %v1901_v38 = vshll.u32 %v11133_v12, %v1899_v41  ;;  %vm5213_vm11 = vc.u32 %v11164_v39, %v11158_v24  ;;  %v1917_v28 = vsel %vm11151_vm5, 0, %v1915_v17  ;;  %v1738_v48 = vand.u32 31, %v1736_v19 }
 0x2a0   : > { %v9092_v37 = vpop.eup %9091  ;;  %v1902_v18 = vshrl.u32 %v1884_v20, %v1900_v14  ;;  %v1905_v32 = vadd.s32 127, %v1904_v21  ;;  %v5215_v5 = vsel %vm5213_vm11, %v5214_v22, %v11159_v46  ;;  %vm4940_vm12 = vcmp.eq.s32.totalorder %v11118_v40, 0 }
 0x2a1   : > { %v9094_v1 = vpop.eup %9093  ;;  %v4944_v27 = vxor.u32 2147483648, %v9092_v37  ;;  %v5216_v34 = vadd.s32 %v5215_v5, %v5211_v62  ;;  %v1739_v55 = vsub.s32 32, %v1738_v48  ;;  %v11196_v36 = vadd.f32 %v11192_v52, %v10737_v25 }
 0x2a2   : > { %v4941_v7 = vxor.u32 2147483648, %v9094_v1  ;;  %v1903_v42 = vor.u32 %v1902_v18, %v1901_v38  ;;  %v1906_v0 = vshll.u32 %v1905_v32, 23  ;;  %vm4939_vm13 = vcmp.lt.s32.totalorder %v11118_v40, 2 }
 0x2a3   : > { %v4945_v12 = vsel %vm4943_vm8, %v4944_v27, %v9094_v1  ;;  %v5217_v8 = vadd.s32 536870912, %v5216_v34  ;;  %v1921_v11 = vadd.s32 3, %v1917_v28  ;;  %v1732_v59 = vor.u32 8388608, %v1731_v29 }
 0x2a4   : > { %v4942_v51 = vsel %vm4940_vm12, %v9092_v37, %v4941_v7  ;;  %v1907_v13 = vor.u32 4788187, %v1906_v0  ;;  %v11201_v45 = vadd.f32 %v11192_v52, %v10833_v4  ;;  %v1910_v16 = vcvt.s32.f32 %v1903_v42 }
 0x2a5   : > { %v4946_v44 = vsel %vm4939_vm13, %v4942_v51, %v4945_v12  ;;  %v5218_v47 = vshrl.u32 %v5217_v8, 30  ;;  %v1737_v25 = vshrl.u32 %v1736_v19, 5  ;;  %v1742_v40 = vshrl.u32 %v9402_v54, %v1739_v55 }
 0x2a6   : > { %v4947_v2 = vsel %vm4936_vm7, nan, %v4946_v44  ;;  %v1908_v30 = vand.u32 2147483647, %v1907_v13  ;;  %v1745_v53 = vshrl.u32 %v9403_v56, %v1739_v55  ;;  %v1748_v15 = vshrl.u32 %v9404_v58, %v1739_v55 }
 0x2a7   : > { %7587 = vst.msk [vmem:[%s9945_s25 + $0x130] sm:$0xff] %vm7548_vm14, %v4947_v2  ;;  %v5219_v10 = vshll.u32 %v5218_v47, 30  ;;  %v1747_v4 = vshll.u32 %v9403_v56, %v1738_v48  ;;  %v1751_v61 = vshrl.u32 %v9405_v60, %v1739_v55  ;;  %vm5158_vm0 = vcmp.lt.s32.totalorder %v11024_v43, 0 }
 0x2a8   : > { %v1911_v46 = vmul.f32 %v1910_v16, %v1908_v30  ;;  %v1741_v63 = vshll.u32 %v9401_v50, %v1738_v48  ;;  %v1744_v20 = vshll.u32 %v9402_v54, %v1738_v48  ;;  %v1750_v41 = vshll.u32 %v9404_v58, %v1738_v48 }
 0x2a9   : > { %v1754_v14 = vshrl.u32 %v9406_v3, %v1739_v55  ;;  %v11217_v17 = vand.u32 3, %v1921_v11  ;;  %v11219_v62 = vsub.s32 %v5216_v34, %v5219_v10  ;;  %v1749_v22 = vor.u32 %v1748_v15, %v1747_v4  ;;  %v11240_v11 = vpop.f32.mrb[12].mxu1 }
 0x2aa   : > { %v1912_v21 = vxor.u32 2147483648, %v1911_v46  ;;  %v1743_v29 = vor.u32 %v1742_v40, %v1741_v63  ;;  %v1746_v19 = vor.u32 %v1745_v53, %v1744_v20  ;;  %v1752_v37 = vor.u32 %v1751_v61, %v1750_v41 }
 0x2ab   : > { %v1753_v38 = vshll.u32 %v9405_v60, %v1738_v48  ;;  %v5222_v32 = vsub.s32 0, %v11219_v62  ;;  %v1740_v1 = vshrl.u32 %v9401_v50, %v1739_v55  ;;  %v1772_v27 = vshll.u32 %v1732_v59, 8 }
 0x2ac   : > { %v1913_v18 = vsel %vm1830_vm9, %v1912_v21, %v1911_v46  ;;  %v5242_v5 = vsub.s32 4, %v5218_v47  ;;  %vm1759_vm15 = vcmp.lt.s32.totalorder %v1737_v25, 4  ;;  %vm11231_vm1 = vcmp.le.f32.partialorder %v5156_v35, 0.7853982 }
 0x2ad   : > { %v1916_v28 = vsel %vm11151_vm5, %v10964_v9, %v1913_v18  ;;  %v1755_v7 = vor.u32 %v1754_v14, %v1753_v38  ;;  %v8358_v42 = vmin.u32 %v5222_v32, %v11219_v62  ;;  %vm1756_vm4 = vcmp.lt.s32.totalorder %v1737_v25, 1 }
 0x2ae   : > { %9095 = vcosq.f32 %v1916_v28  ;;  %v1761_v0 = vsel %vm1759_vm15, %v1749_v22, 2102212464  ;;  %vm1757_vm2 = vcmp.lt.s32.totalorder %v1737_v25, 2  ;;  %v1764_v34 = vsel %vm1756_vm4, %v1743_v29, %v1746_v19 }
 0x2af   : > { %9097 = vsinq.f32 %v1916_v28  ;;  %v1765_v26 = vsel %vm1759_vm15, %v1752_v37, 920167782  ;;  %v5224_v12 = vclz %v8358_v42  ;;  %vm1758_vm5 = vcmp.lt.s32.totalorder %v1737_v25, 3 }
 0x2b0   : > { %v1760_v55 = vsel %vm1756_vm4, %v1740_v1, %v1743_v29  ;;  %v1768_v51 = vsel %vm1756_vm4, %v1746_v19, %v1749_v22  ;;  %v1762_v13 = vsel %vm1758_vm5, %v1746_v19, %v1761_v0  ;;  %v1766_v8 = vsel %vm1758_vm5, %v1749_v22, %v1765_v26 }
 0x2b1   : > { %v1769_v35 = vsel %vm1759_vm15, %v1755_v7, 1326507024  ;;  %v5055_v44 = vand.u32 2139095040, %v11196_v36  ;;  %v8359_v59 = vadd.s32 4294967294, %v5224_v12  ;;  %v5243_v2 = vsel %vm5158_vm0, %v5242_v5, %v5218_v47 }
 0x2b2   : > { %v1767_v30 = vsel %vm1757_vm2, %v1764_v34, %v1766_v8  ;;  %v1770_v16 = vsel %vm1758_vm5, %v1752_v37, %v1769_v35  ;;  %v1763_v10 = vsel %vm1757_vm2, %v1760_v55, %v1762_v13  ;;  %vm1923_vm6 = vcmp.lt.s32.totalorder %v11217_v17, 2 }
 0x2b3   : > { %v1771_v40 = vsel %vm1757_vm2, %v1768_v51, %v1770_v16  ;;  %v11246_v53 = vmul.u32.u64.low %v1772_v27, %v1767_v30  ;;  %v11247_v15 = vmul.u32.u64.high %v1772_v27, %v1767_v30, %v11246_v53  ;;  %v5056_v46 = vshrl.u32 %v5055_v44, 23 }
 0x2b4   : > { %vm8360_vm3 = vcmp.lt.s32.totalorder %v8359_v59, 0  ;;  %v11251_v4 = vmul.u32.u64.low %v1772_v27, %v1771_v40  ;;  %v11252_v61 = vmul.u32.u64.high %v1772_v27, %v1771_v40, %v11251_v4  ;;  %vm1924_vm7 = vcmp.eq.s32.totalorder %v11217_v17, 0 }
 0x2b5   : > { %v5227_v47 = vsel %vm8360_vm3, 0, %v8359_v59  ;;  %v8353_v63 = vadd.s32 4294967169, %v5056_v46  ;;  %v5212_v20 = vadd.s32 %v11158_v24, %v11164_v39  ;;  %v5052_v21 = vand.u32 2147483647, %v11196_v36 }
 0x2b6   : > { %v5228_v41 = vsub.s32 32, %v5227_v47  ;;  %v5232_v14 = vsub.s32 4294967266, %v5227_v47  ;;  %v5245_v25 = vsel %vm11231_vm1, 0, %v5243_v2  ;;  %v1779_v22 = vmul.u32 %v1772_v27, %v1763_v10 }
 0x2b7   : > { %v1782_v29 = vadd.s32 1, %v11247_v15  ;;  %v5062_v19 = vadd.s32 1, %v8353_v63  ;;  %v5229_v38 = vshll.u32 %v11219_v62, %v5227_v47  ;;  %vm1781_vm8 = vc.u32 %v11252_v61, %v11246_v53 }
 0x2b8   : > { %v9096_v37 = vpop.eup %9095  ;;  %v5230_v18 = vshrl.u32 %v5212_v20, %v5228_v41  ;;  %v5233_v32 = vadd.s32 127, %v5232_v14  ;;  %vm1927_vm9 = vcmp.eq.s32.totalorder %v11217_v17, 2  ;;  %v5249_v0 = vadd.s32 3, %v5245_v25 }
 0x2b9   : > { %v9098_v24 = vpop.eup %9097  ;;  %v1928_v39 = vxor.u32 2147483648, %v9096_v37  ;;  %v1783_v1 = vsel %vm1781_vm8, %v1782_v29, %v11247_v15  ;;  %vm5063_vm10 = vcmp.gt.s32.totalorder %v5062_v19, 0  ;;  %v5059_v62 = vand.u32 8388607, %v5052_v21 }
 0x2ba   : > { %v1925_v28 = vxor.u32 2147483648, %v9098_v24  ;;  %v5231_v27 = vor.u32 %v5230_v18, %v5229_v38  ;;  %v5234_v5 = vshll.u32 %v5233_v32, 23  ;;  %v1784_v7 = vadd.s32 %v1783_v1, %v1779_v22 }
 0x2bb   : > { %v1929_v42 = vsel %vm1927_vm9, %v1928_v39, %v9098_v24  ;;  %v5064_v34 = vsel %vm5063_vm10, %v5062_v19, 0  ;;  %v2039_v51 = vand.u32 2139095040, %v11201_v45  ;;  %vm1920_vm11 = vweird.f32 %v10964_v9 }
 0x2bc   : > { %v1926_v26 = vsel %vm1924_vm7, %v9096_v37, %v1925_v28  ;;  %v5235_v12 = vor.u32 4788187, %v5234_v5  ;;  %v1785_v55 = vadd.s32 536870912, %v1784_v7  ;;  %v5066_v8 = vand.u32 31, %v5064_v34 }
 0x2bd   : > { %v1930_v13 = vsel %vm1923_vm6, %v1926_v26, %v1929_v42  ;;  %v5238_v59 = vcvt.s32.f32 %v5231_v27  ;;  %v11279_v30 = vand.u32 3, %v5249_v0  ;;  %v5060_v16 = vor.u32 8388608, %v5059_v62 }
 0x2be   : > { %v1931_v35 = vsel %vm1920_vm11, nan, %v1930_v13  ;;  %v5236_v44 = vand.u32 2147483647, %v5235_v12  ;;  %v11275_v2 = vshrl.u32 %v1785_v55, 30  ;;  %v5067_v40 = vsub.s32 32, %v5066_v8 }
 0x2bf   : > { %7558 = vst.msk [vmem:[%s9945_s25 + $0x48] sm:$0xff] %vm7548_vm14, %v1931_v35  ;;  %v2036_v15 = vand.u32 2147483647, %v11201_v45  ;;  %v5069_v17 = vshll.u32 %v9401_v50, %v5066_v8  ;;  %v2040_v10 = vshrl.u32 %v2039_v51, 23  ;;  %v5072_v47 = vshll.u32 %v9402_v54, %v5066_v8 }
 0x2c0   : > { %v5239_v46 = vmul.f32 %v5238_v59, %v5236_v44  ;;  %v1787_v9 = vshll.u32 %v11275_v2, 30  ;;  %v5070_v4 = vshrl.u32 %v9402_v54, %v5067_v40  ;;  %v5073_v63 = vshrl.u32 %v9403_v56, %v5067_v40 }
 0x2c1   : > { %v5076_v20 = vshrl.u32 %v9404_v58, %v5067_v40  ;;  %v5075_v25 = vshll.u32 %v9403_v56, %v5066_v8  ;;  %v5079_v22 = vshrl.u32 %v9405_v60, %v5067_v40  ;;  %v5065_v29 = vshrl.u32 %v5064_v34, 5 }
 0x2c2   : > { %v5240_v41 = vxor.u32 2147483648, %v5239_v46  ;;  %v11288_v14 = vsub.s32 %v1784_v7, %v1787_v9  ;;  %v5071_v19 = vor.u32 %v5070_v4, %v5069_v17  ;;  %v5078_v37 = vshll.u32 %v9404_v58, %v5066_v8 }
 0x2c3   : > { %v11293_v38 = vshll.u32 %v5060_v16, 8  ;;  %v5074_v24 = vor.u32 %v5073_v63, %v5072_v47  ;;  %v5077_v39 = vor.u32 %v5076_v20, %v5075_v25  ;;  %vm1726_vm12 = vcmp.lt.s32.totalorder %v11034_v33, 0  ;;  %v11334_v25 = vpop.f32.mrb[13].mxu0 }
 0x2c4   : > { %v5241_v18 = vsel %vm5158_vm0, %v5240_v41, %v5239_v46  ;;  %v1790_v32 = vsub.s32 0, %v11288_v14  ;;  %v5080_v28 = vor.u32 %v5079_v22, %v5078_v37  ;;  %v5081_v27 = vshll.u32 %v9405_v60, %v5066_v8 }
 0x2c5   : > { %v5244_v1 = vsel %vm11231_vm1, %v11024_v43, %v5241_v18  ;;  %v5082_v5 = vshrl.u32 %v9406_v3, %v5067_v40  ;;  %v1780_v7 = vadd.s32 %v11246_v53, %v11252_v61  ;;  %v8237_v0 = vadd.s32 4294967169, %v2040_v10 }
 0x2c6   : > { %9099 = vcosq.f32 %v5244_v1  ;;  %v8226_v42 = vmin.u32 %v1790_v32, %v11288_v14  ;;  %v1810_v62 = vsub.s32 4, %v11275_v2  ;;  %v5068_v48 = vshrl.u32 %v9401_v50, %v5067_v40 }
 0x2c7   : > { %9101 = vsinq.f32 %v5244_v1  ;;  %v5083_v34 = vor.u32 %v5082_v5, %v5081_v27  ;;  %vm11311_vm13 = vcmp.le.f32.partialorder %v1724_v6, 0.7853982  ;;  %vm5084_vm0 = vcmp.lt.s32.totalorder %v5065_v29, 1 }
 0x2c8   : > { %v1792_v12 = vclz %v8226_v42  ;;  %vm5085_vm15 = vcmp.lt.s32.totalorder %v5065_v29, 2  ;;  %vm5087_vm1 = vcmp.lt.s32.totalorder %v5065_v29, 4  ;;  %vm5086_vm4 = vcmp.lt.s32.totalorder %v5065_v29, 3 }
 0x2c9   : > { %v5089_v53 = vsel %vm5087_vm1, %v5077_v39, 2102212464  ;;  %v5092_v61 = vsel %vm5084_vm0, %v5071_v19, %v5074_v24  ;;  %v5093_v55 = vsel %vm5087_vm1, %v5080_v28, 920167782  ;;  %vm5255_vm2 = vcmp.eq.s32.totalorder %v11279_v30, 2 }
 0x2ca   : > { %v8227_v51 = vadd.s32 4294967294, %v1792_v12  ;;  %v5088_v13 = vsel %vm5084_vm0, %v5068_v48, %v5071_v19  ;;  %v5094_v8 = vsel %vm5086_vm4, %v5077_v39, %v5093_v55  ;;  %v5096_v35 = vsel %vm5084_vm0, %v5074_v24, %v5077_v39 }
 0x2cb   : > { %vm5252_vm5 = vcmp.eq.s32.totalorder %v11279_v30, 0  ;;  %v5090_v6 = vsel %vm5086_vm4, %v5074_v24, %v5089_v53  ;;  %v5095_v44 = vsel %vm5085_vm15, %v5092_v61, %v5094_v8  ;;  %v5097_v59 = vsel %vm5087_vm1, %v5083_v34, 1326507024 }
 0x2cc   : > { %v2046_v16 = vadd.s32 1, %v8237_v0  ;;  %vm5251_vm3 = vcmp.lt.s32.totalorder %v11279_v30, 2  ;;  %vm8228_vm6 = vcmp.lt.s32.totalorder %v8227_v51, 0  ;;  %v5098_v40 = vsel %vm5086_vm4, %v5080_v28, %v5097_v59 }
 0x2cd   : > { %v11323_v46 = vmul.u32.u64.low %v11293_v38, %v5095_v44  ;;  %v11324_v9 = vmul.u32.u64.high %v11293_v38, %v5095_v44, %v11323_v46  ;;  %vm5248_vm7 = vweird.f32 %v11024_v43  ;;  %v1795_v17 = vsel %vm8228_vm6, 0, %v8227_v51 }
 0x2ce   : > { %v5099_v10 = vsel %vm5085_vm15, %v5096_v35, %v5098_v40  ;;  %v2043_v4 = vand.u32 8388607, %v2036_v15  ;;  %vm2047_vm8 = vcmp.gt.s32.totalorder %v2046_v16, 0  ;;  %v1796_v47 = vsub.s32 32, %v1795_v17 }
 0x2cf   : > { %v1800_v63 = vsub.s32 4294967266, %v1795_v17  ;;  %v1811_v20 = vsel %vm1726_vm12, %v1810_v62, %v11275_v2  ;;  %v2048_v41 = vsel %vm2047_vm8, %v2046_v16, 0  ;;  %v5091_v22 = vsel %vm5085_vm15, %v5088_v13, %v5090_v6 }
 0x2d0   : > { %v11338_v19 = vmul.u32.u64.low %v11293_v38, %v5099_v10  ;;  %v11339_v37 = vmul.u32.u64.high %v11293_v38, %v5099_v10, %v11338_v19  ;;  %v2050_v18 = vand.u32 31, %v2048_v41  ;;  %v9100_v32 = vpop.eup %9099  ;;  %v1797_v24 = vshll.u32 %v11288_v14, %v1795_v17 }
 0x2d1   : > { %v1798_v39 = vshrl.u32 %v1780_v7, %v1796_v47  ;;  %v1801_v1 = vadd.s32 127, %v1800_v63  ;;  %v5110_v28 = vadd.s32 1, %v11324_v9  ;;  %v9102_v27 = vpop.eup %9101  ;;  %v5256_v5 = vxor.u32 2147483648, %v9100_v32 }
 0x2d2   : > { %v1813_v2 = vsel %vm11311_vm13, 0, %v1811_v20  ;;  %v2044_v42 = vor.u32 8388608, %v2043_v4  ;;  %v2051_v29 = vsub.s32 32, %v2050_v18  ;;  %v5253_v0 = vxor.u32 2147483648, %v9102_v27 }
 0x2d3   : > { %v1799_v62 = vor.u32 %v1798_v39, %v1797_v24  ;;  %v1802_v48 = vshll.u32 %v1801_v1, 23  ;;  %v5107_v34 = vmul.u32 %v11293_v38, %v5091_v22  ;;  %v5257_v12 = vsel %vm5255_vm2, %v5256_v5, %v9102_v27 }
 0x2d4   : > { %vm5109_vm9 = vc.u32 %v11339_v37, %v11323_v46  ;;  %v11350_v14 = vshrl.u32 %v2048_v41, 5  ;;  %v2053_v7 = vshll.u32 %v9401_v50, %v2050_v18  ;;  %v5254_v53 = vsel %vm5252_vm5, %v9100_v32, %v5253_v0 }
 0x2d5   : > { %v1803_v61 = vor.u32 4788187, %v1802_v48  ;;  %v5111_v55 = vsel %vm5109_vm9, %v5110_v28, %v11324_v9  ;;  %v2056_v51 = vshll.u32 %v9402_v54, %v2050_v18  ;;  %v5258_v38 = vsel %vm5251_vm3, %v5254_v53, %v5257_v12 }
 0x2d6   : > { %v5112_v13 = vadd.s32 %v5111_v55, %v5107_v34  ;;  %v2054_v8 = vshrl.u32 %v9402_v54, %v2051_v29  ;;  %v2057_v35 = vshrl.u32 %v9403_v56, %v2051_v29  ;;  %v5259_v6 = vsel %vm5248_vm7, nan, %v5258_v38 }
 0x2d7   : > { %v1804_v44 = vand.u32 2147483647, %v1803_v61  ;;  %v1806_v59 = vcvt.s32.f32 %v1799_v62  ;;  %v2060_v16 = vshrl.u32 %v9404_v58, %v2051_v29  ;;  %7590 = vst.msk [vmem:[%s9945_s25 + $0x148] sm:$0xff] %vm7548_vm14, %v5259_v6  ;;  %v2059_v9 = vshll.u32 %v9403_v56, %v2050_v18  ;;  %v11418_v6 = vpop.f32.mrb[13].mxu1 }
 0x2d8   : > { %v5113_v40 = vadd.s32 536870912, %v5112_v13  ;;  %v2062_v30 = vshll.u32 %v9404_v58, %v2050_v18  ;;  %v2063_v17 = vshrl.u32 %v9405_v60, %v2051_v29  ;;  %v2055_v4 = vor.u32 %v2054_v8, %v2053_v7 }
 0x2d9   : > { %v1807_v10 = vmul.f32 %v1806_v59, %v1804_v44  ;;  %v2058_v47 = vor.u32 %v2057_v35, %v2056_v51  ;;  %v2066_v63 = vshrl.u32 %v9406_v3, %v2051_v29  ;;  %v1817_v22 = vadd.s32 3, %v1813_v2 }
 0x2da   : > { %v5114_v43 = vshrl.u32 %v5113_v40, 30  ;;  %v2064_v20 = vor.u32 %v2063_v17, %v2062_v30  ;;  %v2061_v19 = vor.u32 %v2060_v16, %v2059_v9  ;;  %v2065_v32 = vshll.u32 %v9405_v60, %v2050_v18 }
 0x2db   : > { %v1808_v41 = vxor.u32 2147483648, %v1807_v10  ;;  %vm2068_vm10 = vcmp.lt.s32.totalorder %v11350_v14, 1  ;;  %vm2071_vm11 = vcmp.lt.s32.totalorder %v11350_v14, 4  ;;  %v11373_v39 = vshll.u32 %v2044_v42, 8 }
 0x2dc   : > { %v5115_v24 = vshll.u32 %v5114_v43, 30  ;;  %v2067_v28 = vor.u32 %v2066_v63, %v2065_v32  ;;  %v2076_v27 = vsel %vm2068_vm10, %v2055_v4, %v2058_v47  ;;  %v2077_v5 = vsel %vm2071_vm11, %v2064_v20, 920167782 }
 0x2dd   : > { %v1809_v1 = vsel %vm1726_vm12, %v1808_v41, %v1807_v10  ;;  %v2052_v0 = vshrl.u32 %v9401_v50, %v2051_v29  ;;  %vm2070_vm0 = vcmp.lt.s32.totalorder %v11350_v14, 3  ;;  %vm2069_vm12 = vcmp.lt.s32.totalorder %v11350_v14, 2 }
 0x2de   : > { %v1812_v18 = vsel %vm11311_vm13, %v11034_v33, %v1809_v1  ;;  %v11384_v2 = vsub.s32 %v5112_v13, %v5115_v24  ;;  %v2073_v42 = vsel %vm2071_vm11, %v2061_v19, 2102212464  ;;  %v2078_v62 = vsel %vm2070_vm0, %v2061_v19, %v2077_v5 }
 0x2df   : > { %9103 = vcosq.f32 %v1812_v18  ;;  %v2079_v26 = vsel %vm2069_vm12, %v2076_v27, %v2078_v62  ;;  %v2080_v29 = vsel %vm2068_vm10, %v2058_v47, %v2061_v19  ;;  %v5138_v34 = vsub.s32 4, %v5114_v43 }
 0x2e0   : > { %9105 = vsinq.f32 %v1812_v18  ;;  %v5118_v48 = vsub.s32 0, %v11384_v2  ;;  %v2081_v12 = vsel %vm2071_vm11, %v2067_v28, 1326507024  ;;  %v1818_v61 = vand.u32 3, %v1817_v22 }
 0x2e1   : > { %v11401_v7 = vmul.u32.u64.low %v11373_v39, %v2079_v26  ;;  %v11402_v53 = vmul.u32.u64.high %v11373_v39, %v2079_v26, %v11401_v7  ;;  %v2082_v51 = vsel %vm2070_vm0, %v2064_v20, %v2081_v12  ;;  %v2072_v38 = vsel %vm2068_vm10, %v2052_v0, %v2055_v4 }
 0x2e2   : > { %v8354_v55 = vmin.u32 %v5118_v48, %v11384_v2  ;;  %v2074_v13 = vsel %vm2070_vm0, %v2058_v47, %v2073_v42  ;;  %v2083_v8 = vsel %vm2069_vm12, %v2080_v29, %v2082_v51  ;;  %v11416_v35 = vadd.f32 %v11192_v52, %v10966_v23 }
 0x2e3   : > { %vm5054_vm13 = vcmp.lt.s32.totalorder %v11196_v36, 0  ;;  %v11424_v16 = vmul.u32.u64.low %v11373_v39, %v2083_v8  ;;  %v11425_v40 = vmul.u32.u64.high %v11373_v39, %v2083_v8, %v11424_v16  ;;  %vm1816_vm15 = vweird.f32 %v11034_v33 }
 0x2e4   : > { %v5120_v44 = vclz %v8354_v55  ;;  %v5139_v59 = vsel %vm5054_vm13, %v5138_v34, %v5114_v43  ;;  %v2075_v30 = vsel %vm2069_vm12, %v2072_v38, %v2074_v13  ;;  %v5367_v23 = vand.u32 2139095040, %v11416_v35 }
 0x2e5   : > { %v11433_v17 = vadd.f32 %v11192_v52, %v11017_v31  ;;  %vm1820_vm1 = vcmp.eq.s32.totalorder %v1818_v61, 0  ;;  %vm1823_vm4 = vcmp.eq.s32.totalorder %v1818_v61, 2  ;;  %vm11437_vm2 = vcmp.le.f32.partialorder %v5052_v21, 0.7853982 }
 0x2e6   : > { %v8355_v9 = vadd.s32 4294967294, %v5120_v44  ;;  %v2094_v4 = vadd.s32 1, %v11402_v53  ;;  %v5108_v14 = vadd.s32 %v11323_v46, %v11339_v37  ;;  %v5141_v47 = vsel %vm11437_vm2, 0, %v5139_v59 }
 0x2e7   : > { %v5368_v63 = vshrl.u32 %v5367_v23, 23  ;;  %v2091_v20 = vmul.u32 %v11373_v39, %v2075_v30  ;;  %vm2093_vm3 = vc.u32 %v11425_v40, %v11401_v7  ;;  %v5364_v21 = vand.u32 2147483647, %v11416_v35 }
 0x2e8   : > { %vm8356_vm5 = vcmp.lt.s32.totalorder %v8355_v9, 0  ;;  %v1935_v46 = vand.u32 2139095040, %v11433_v17  ;;  %v2095_v1 = vsel %vm2093_vm3, %v2094_v4, %v11402_v53  ;;  %vm1819_vm6 = vcmp.lt.s32.totalorder %v1818_v61, 2 }
 0x2e9   : > { %v9104_v31 = vpop.eup %9103  ;;  %v5123_v43 = vsel %vm8356_vm5, 0, %v8355_v9  ;;  %v8365_v28 = vadd.s32 4294967169, %v5368_v63  ;;  %v2096_v18 = vadd.s32 %v2095_v1, %v2091_v20  ;;  %v5145_v42 = vadd.s32 3, %v5141_v47 }
 0x2ea   : > { %v9106_v41 = vpop.eup %9105  ;;  %v1824_v22 = vxor.u32 2147483648, %v9104_v31  ;;  %v5124_v19 = vsub.s32 32, %v5123_v43  ;;  %v5128_v32 = vsub.s32 4294967266, %v5123_v43  ;;  %v5125_v24 = vshll.u32 %v11384_v2, %v5123_v43 }
 0x2eb   : > { %v1821_v37 = vxor.u32 2147483648, %v9106_v41  ;;  %v5374_v62 = vadd.s32 1, %v8365_v28  ;;  %v2097_v34 = vadd.s32 536870912, %v2096_v18  ;;  %v5371_v12 = vand.u32 8388607, %v5364_v21 }
 0x2ec   : > { %v1825_v39 = vsel %vm1823_vm4, %v1824_v22, %v9106_v41  ;;  %v5126_v27 = vshrl.u32 %v5108_v14, %v5124_v19  ;;  %v5129_v5 = vadd.s32 127, %v5128_v32  ;;  %v1936_v61 = vshrl.u32 %v1935_v46, 23 }
 0x2ed   : > { %v1822_v0 = vsel %vm1820_vm1, %v9104_v31, %v1821_v37  ;;  %vm5375_vm7 = vcmp.gt.s32.totalorder %v5374_v62, 0  ;;  %v2098_v55 = vshrl.u32 %v2097_v34, 30  ;;  %v11461_v38 = vand.u32 3, %v5145_v42 }
 0x2ee   : > { %v1826_v48 = vsel %vm1819_vm6, %v1822_v0, %v1825_v39  ;;  %v5127_v26 = vor.u32 %v5126_v27, %v5125_v24  ;;  %v5130_v29 = vshll.u32 %v5129_v5, 23  ;;  %v5376_v51 = vsel %vm5375_vm7, %v5374_v62, 0 }
 0x2ef   : > { %v1827_v2 = vsel %vm1816_vm15, nan, %v1826_v48  ;;  %v5378_v13 = vand.u32 31, %v5376_v51  ;;  %vm2038_vm8 = vcmp.lt.s32.totalorder %v11201_v45, 0  ;;  %v2099_v59 = vshll.u32 %v2098_v55, 30 }
 0x2f0   : > { %7557 = vst.msk [vmem:[%s9945_s25 + $0x40] sm:$0xff] %vm7548_vm14, %v1827_v2  ;;  %v5131_v53 = vor.u32 4788187, %v5130_v29  ;;  %v5134_v44 = vcvt.s32.f32 %v5127_v26  ;;  %v11466_v33 = vadd.f32 %v11192_v52, %v11080_v57  ;;  %v2092_v16 = vadd.s32 %v11401_v7, %v11425_v40 }
 0x2f1   : > { %v5372_v9 = vor.u32 8388608, %v5371_v12  ;;  %v5379_v30 = vsub.s32 32, %v5378_v13  ;;  %v1932_v23 = vand.u32 2147483647, %v11433_v17  ;;  %v11471_v14 = vsub.s32 %v2096_v18, %v2099_v59 }
 0x2f2   : > { %v5132_v8 = vand.u32 2147483647, %v5131_v53  ;;  %v11473_v47 = vshrl.u32 %v5376_v51, 5  ;;  %v8233_v63 = vadd.s32 4294967169, %v1936_v61  ;;  %v2122_v31 = vsub.s32 4, %v2098_v55 }
 0x2f3   : > { %v5381_v43 = vshll.u32 %v9401_v50, %v5378_v13  ;;  %v5382_v20 = vshrl.u32 %v9402_v54, %v5379_v30  ;;  %v5385_v57 = vshrl.u32 %v9403_v56, %v5379_v30  ;;  %v2102_v7 = vsub.s32 0, %v11471_v14 }
 0x2f4   : > { %v5135_v4 = vmul.f32 %v5134_v44, %v5132_v8  ;;  %v5384_v40 = vshll.u32 %v9402_v54, %v5378_v13  ;;  %v5388_v22 = vshrl.u32 %v9404_v58, %v5379_v30  ;;  %v5387_v32 = vshll.u32 %v9403_v56, %v5378_v13 }
 0x2f5   : > { %v5383_v19 = vor.u32 %v5382_v20, %v5381_v43  ;;  %v5390_v46 = vshll.u32 %v9404_v58, %v5378_v13  ;;  %v5391_v37 = vshrl.u32 %v9405_v60, %v5379_v30  ;;  %v8238_v1 = vmin.u32 %v2102_v7, %v11471_v14 }
 0x2f6   : > { %v5136_v41 = vxor.u32 2147483648, %v5135_v4  ;;  %v5386_v28 = vor.u32 %v5385_v57, %v5384_v40  ;;  %v5393_v39 = vshll.u32 %v9405_v60, %v5378_v13  ;;  %v5389_v5 = vor.u32 %v5388_v22, %v5387_v32  ;;  %v11529_v22 = vpop.f32.mrb[14].mxu0 }
 0x2f7   : > { %v5392_v18 = vor.u32 %v5391_v37, %v5390_v46  ;;  %v5394_v0 = vshrl.u32 %v9406_v3, %v5379_v30  ;;  %v2104_v42 = vclz %v8238_v1  ;;  %v11492_v62 = vshll.u32 %v5372_v9, 8 }
 0x2f8   : > { %v5137_v24 = vsel %vm5054_vm13, %v5136_v41, %v5135_v4  ;;  %v1942_v48 = vadd.s32 1, %v8233_v63  ;;  %vm11496_vm9 = vcmp.le.f32.partialorder %v2036_v15, 0.7853982  ;;  %v2123_v10 = vsel %vm2038_vm8, %v2122_v31, %v2098_v55 }
 0x2f9   : > { %v5140_v27 = vsel %vm11437_vm2, %v11196_v36, %v5137_v24  ;;  %v5380_v29 = vshrl.u32 %v9401_v50, %v5379_v30  ;;  %v5395_v34 = vor.u32 %v5394_v0, %v5393_v39  ;;  %v8239_v2 = vadd.s32 4294967294, %v2104_v42 }
 0x2fa   : > { %9107 = vcosq.f32 %v5140_v27  ;;  %vm5396_vm10 = vcmp.lt.s32.totalorder %v11473_v47, 1  ;;  %vm5398_vm11 = vcmp.lt.s32.totalorder %v11473_v47, 3  ;;  %vm5399_vm0 = vcmp.lt.s32.totalorder %v11473_v47, 4 }
 0x2fb   : > { %9109 = vsinq.f32 %v5140_v27  ;;  %v5401_v12 = vsel %vm5399_vm0, %v5389_v5, 2102212464  ;;  %v5404_v53 = vsel %vm5396_vm10, %v5383_v19, %v5386_v28  ;;  %v5405_v51 = vsel %vm5399_vm0, %v5392_v18, 920167782 }
 0x2fc   : > { %v5408_v15 = vsel %vm5396_vm10, %v5386_v28, %v5389_v5  ;;  %vm8240_vm12 = vcmp.lt.s32.totalorder %v8239_v2, 0  ;;  %vm5397_vm13 = vcmp.lt.s32.totalorder %v11473_v47, 2  ;;  %v5406_v55 = vsel %vm5398_vm11, %v5389_v5, %v5405_v51 }
 0x2fd   : > { %v5409_v61 = vsel %vm5399_vm0, %v5395_v34, 1326507024  ;;  %v2107_v13 = vsel %vm8240_vm12, 0, %v8239_v2  ;;  %v5400_v8 = vsel %vm5396_vm10, %v5380_v29, %v5383_v19  ;;  %v5407_v44 = vsel %vm5397_vm13, %v5404_v53, %v5406_v55 }
 0x2fe   : > { %v5410_v59 = vsel %vm5398_vm11, %v5392_v18, %v5409_v61  ;;  %vm5147_vm15 = vcmp.lt.s32.totalorder %v11461_v38, 2  ;;  %v2108_v9 = vsub.s32 32, %v2107_v13  ;;  %v2112_v30 = vsub.s32 4294967266, %v2107_v13 }
 0x2ff   : > { %v5402_v4 = vsel %vm5398_vm11, %v5386_v28, %v5401_v12  ;;  %v5411_v63 = vsel %vm5397_vm13, %v5408_v15, %v5410_v59  ;;  %vm5144_vm1 = vweird.f32 %v11196_v36  ;;  %v2109_v41 = vshll.u32 %v11471_v14, %v2107_v13 }
 0x300   : > { %v11520_v31 = vmul.u32.u64.low %v11492_v62, %v5411_v63  ;;  %v11521_v43 = vmul.u32.u64.high %v11492_v62, %v5411_v63, %v11520_v31  ;;  %v11524_v20 = vmul.u32.u64.low %v11492_v62, %v5407_v44  ;;  %v11525_v57 = vmul.u32.u64.high %v11492_v62, %v5407_v44, %v11524_v20 }
 0x301   : > { %v2110_v7 = vshrl.u32 %v2092_v16, %v2108_v9  ;;  %v2113_v40 = vadd.s32 127, %v2112_v30  ;;  %vm1943_vm4 = vcmp.gt.s32.totalorder %v1942_v48, 0  ;;  %vm5148_vm2 = vcmp.eq.s32.totalorder %v11461_v38, 0 }
 0x302   : > { %v5403_v19 = vsel %vm5397_vm13, %v5400_v8, %v5402_v4  ;;  %v1939_v32 = vand.u32 8388607, %v1932_v23  ;;  %v1944_v46 = vsel %vm1943_vm4, %v1942_v48, 0  ;;  %v2125_v14 = vsel %vm11496_vm9, 0, %v2123_v10 }
 0x303   : > { %v2111_v24 = vor.u32 %v2110_v7, %v2109_v41  ;;  %v2114_v1 = vshll.u32 %v2113_v40, 23  ;;  %v1946_v16 = vand.u32 31, %v1944_v46  ;;  %vm5151_vm5 = vcmp.eq.s32.totalorder %v11461_v38, 2 }
 0x304   : > { %v9108_v37 = vpop.eup %9107  ;;  %vm5421_vm3 = vc.u32 %v11521_v43, %v11524_v20  ;;  %v5422_v47 = vadd.s32 1, %v11525_v57  ;;  %v5419_v18 = vmul.u32 %v11492_v62, %v5403_v19  ;;  %v2129_v48 = vadd.s32 3, %v2125_v14 }
 0x305   : > { %v9110_v28 = vpop.eup %9109  ;;  %v5152_v39 = vxor.u32 2147483648, %v9108_v37  ;;  %v2115_v5 = vor.u32 4788187, %v2114_v1  ;;  %v1947_v0 = vsub.s32 32, %v1946_v16  ;;  %v1940_v29 = vor.u32 8388608, %v1939_v32 }
 0x306   : > { %v5149_v27 = vxor.u32 2147483648, %v9110_v28  ;;  %v5423_v10 = vsel %vm5421_vm3, %v5422_v47, %v11525_v57  ;;  %v2118_v12 = vcvt.s32.f32 %v2111_v24  ;;  %v1949_v15 = vshll.u32 %v9401_v50, %v1946_v16 }
 0x307   : > { %v5153_v42 = vsel %vm5151_vm5, %v5152_v39, %v9110_v28  ;;  %v2116_v2 = vand.u32 2147483647, %v2115_v5  ;;  %v5424_v53 = vadd.s32 %v5423_v10, %v5419_v18  ;;  %v1950_v62 = vshrl.u32 %v9402_v54, %v1947_v0 }
 0x308   : > { %v5150_v34 = vsel %vm5148_vm2, %v9108_v37, %v5149_v27  ;;  %v1953_v55 = vshrl.u32 %v9403_v56, %v1947_v0  ;;  %v1956_v44 = vshrl.u32 %v9404_v58, %v1947_v0  ;;  %v1945_v59 = vshrl.u32 %v1944_v46, 5 }
 0x309   : > { %v5154_v51 = vsel %vm5147_vm15, %v5150_v34, %v5153_v42  ;;  %v2119_v13 = vmul.f32 %v2118_v12, %v2116_v2  ;;  %v5425_v8 = vadd.s32 536870912, %v5424_v53  ;;  %v1952_v9 = vshll.u32 %v9402_v54, %v1946_v16 }
 0x30a   : > { %v5155_v61 = vsel %vm5144_vm1, nan, %v5154_v51  ;;  %v1955_v38 = vshll.u32 %v9403_v56, %v1946_v16  ;;  %v1959_v30 = vshrl.u32 %v9405_v60, %v1947_v0  ;;  %v1951_v31 = vor.u32 %v1950_v62, %v1949_v15 }
 0x30b   : > { %7589 = vst.msk [vmem:[%s9945_s25 + $0x140] sm:$0xff] %vm7548_vm14, %v5155_v61  ;;  %v2120_v4 = vxor.u32 2147483648, %v2119_v13  ;;  %v5426_v63 = vshrl.u32 %v5425_v8, 30  ;;  %v1958_v57 = vshll.u32 %v9404_v58, %v1946_v16  ;;  %vm5366_vm6 = vcmp.lt.s32.totalorder %v11416_v35, 0 }
 0x30c   : > { %v1954_v36 = vor.u32 %v1953_v55, %v1952_v9  ;;  %v1957_v41 = vor.u32 %v1956_v44, %v1955_v38  ;;  %v1961_v7 = vshll.u32 %v9405_v60, %v1946_v16  ;;  %v1962_v40 = vshrl.u32 %v9406_v3, %v1947_v0 }
 0x30d   : > { %v2121_v19 = vsel %vm2038_vm8, %v2120_v4, %v2119_v13  ;;  %v11565_v32 = vand.u32 3, %v2129_v48  ;;  %v5427_v46 = vshll.u32 %v5426_v63, 30  ;;  %v1960_v37 = vor.u32 %v1959_v30, %v1958_v57 }
 0x30e   : > { %v2124_v24 = vsel %vm11496_vm9, %v11201_v45, %v2121_v19  ;;  %v1948_v1 = vshrl.u32 %v9401_v50, %v1947_v0  ;;  %v1963_v14 = vor.u32 %v1962_v40, %v1961_v7  ;;  %v11571_v28 = vshll.u32 %v1940_v29, 8 }
 0x30f   : > { %9111 = vcosq.f32 %v2124_v24  ;;  %v11573_v16 = vsub.s32 %v5424_v53, %v5427_v46  ;;  %vm1964_vm7 = vcmp.lt.s32.totalorder %v1945_v59, 1  ;;  %vm1967_vm10 = vcmp.lt.s32.totalorder %v1945_v59, 4 }
 0x310   : > { %9113 = vsinq.f32 %v2124_v24  ;;  %vm1965_vm8 = vcmp.lt.s32.totalorder %v1945_v59, 2  ;;  %v1969_v39 = vsel %vm1967_vm10, %v1957_v41, 2102212464  ;;  %v1972_v47 = vsel %vm1964_vm7, %v1951_v31, %v1954_v36 }
 0x311   : > { %v5430_v27 = vsub.s32 0, %v11573_v16  ;;  %v5450_v5 = vsub.s32 4, %v5426_v63  ;;  %vm1966_vm11 = vcmp.lt.s32.totalorder %v1945_v59, 3  ;;  %v1973_v26 = vsel %vm1967_vm10, %v1960_v37, 920167782  ;;  %v11603_v59 = vpop.f32.mrb[14].mxu1 }
 0x312   : > { %v1968_v18 = vsel %vm1964_vm7, %v1948_v1, %v1951_v31  ;;  %v1974_v42 = vsel %vm1966_vm11, %v1957_v41, %v1973_v26  ;;  %v1976_v0 = vsel %vm1964_vm7, %v1954_v36, %v1957_v41  ;;  %v1977_v48 = vsel %vm1967_vm10, %v1963_v14, 1326507024 }
 0x313   : > { %v8366_v10 = vmin.u32 %v5430_v27, %v11573_v16  ;;  %v1970_v29 = vsel %vm1966_vm11, %v1954_v36, %v1969_v39  ;;  %v1975_v34 = vsel %vm1965_vm8, %v1972_v47, %v1974_v42  ;;  %v1978_v2 = vsel %vm1966_vm11, %v1960_v37, %v1977_v48 }
 0x314   : > { %v1979_v12 = vsel %vm1965_vm8, %v1976_v0, %v1978_v2  ;;  %v11580_v53 = vmul.u32.u64.low %v11571_v28, %v1975_v34  ;;  %v11581_v51 = vmul.u32.u64.high %v11571_v28, %v1975_v34, %v11580_v53  ;;  %v5263_v15 = vand.u32 2139095040, %v11466_v33 }
 0x315   : > { %v5432_v62 = vclz %v8366_v10  ;;  %v5451_v55 = vsel %vm5366_vm6, %v5450_v5, %v5426_v63  ;;  %v5260_v61 = vand.u32 2147483647, %v11466_v33  ;;  %v1971_v13 = vsel %vm1965_vm8, %v1968_v18, %v1970_v29 }
 0x316   : > { %v11589_v8 = vmul.u32.u64.low %v11571_v28, %v1979_v12  ;;  %v11590_v44 = vmul.u32.u64.high %v11571_v28, %v1979_v12, %v11589_v8  ;;  %v5264_v9 = vshrl.u32 %v5263_v15, 23  ;;  %vm2131_vm9 = vcmp.lt.s32.totalorder %v11565_v32, 2 }
 0x317   : > { %vm11595_vm0 = vcmp.le.f32.partialorder %v5364_v21, 0.7853982  ;;  %v8367_v30 = vadd.s32 4294967294, %v5432_v62  ;;  %v11601_v4 = vadd.f32 %v11192_v52, %v11184_v49  ;;  %vm2132_vm12 = vcmp.eq.s32.totalorder %v11565_v32, 0 }
 0x318   : > { %vm2135_vm13 = vcmp.eq.s32.totalorder %v11565_v32, 2  ;;  %v1990_v63 = vadd.s32 1, %v11581_v51  ;;  %v8361_v31 = vadd.s32 4294967169, %v5264_v9  ;;  %v5420_v21 = vadd.s32 %v11524_v20, %v11521_v43 }
 0x319   : > { %v9112_v57 = vpop.eup %9111  ;;  %vm8368_vm15 = vcmp.lt.s32.totalorder %v8367_v30, 0  ;;  %v5453_v36 = vsel %vm11595_vm0, 0, %v5451_v55  ;;  %v1987_v49 = vmul.u32 %v11571_v28, %v1971_v13  ;;  %vm1989_vm1 = vc.u32 %v11590_v44, %v11580_v53 }
 0x31a   : > { %v9114_v52 = vpop.eup %9113  ;;  %v2136_v41 = vxor.u32 2147483648, %v9112_v57  ;;  %v5435_v7 = vsel %vm8368_vm15, 0, %v8367_v30  ;;  %v5267_v40 = vand.u32 8388607, %v5260_v61  ;;  %v2247_v24 = vand.u32 2139095040, %v11601_v4 }
 0x31b   : > { %v2133_v19 = vxor.u32 2147483648, %v9114_v52  ;;  %v5436_v46 = vsub.s32 32, %v5435_v7  ;;  %v5440_v37 = vsub.s32 4294967266, %v5435_v7  ;;  %v5437_v20 = vshll.u32 %v11573_v16, %v5435_v7 }
 0x31c   : > { %v2137_v43 = vsel %vm2135_vm13, %v2136_v41, %v9114_v52  ;;  %v1991_v1 = vsel %vm1989_vm1, %v1990_v63, %v11581_v51  ;;  %v5270_v14 = vadd.s32 1, %v8361_v31  ;;  %vm2128_vm4 = vweird.f32 %v11201_v45 }
 0x31d   : > { %v2134_v28 = vsel %vm2132_vm12, %v9112_v57, %v2133_v19  ;;  %v5438_v39 = vshrl.u32 %v5420_v21, %v5436_v46  ;;  %v5441_v47 = vadd.s32 127, %v5440_v37  ;;  %v1992_v27 = vadd.s32 %v1991_v1, %v1987_v49 }
 0x31e   : > { %v2138_v5 = vsel %vm2131_vm9, %v2134_v28, %v2137_v43  ;;  %v5457_v26 = vadd.s32 3, %v5453_v36  ;;  %vm5271_vm2 = vcmp.gt.s32.totalorder %v5270_v14, 0  ;;  %v5268_v48 = vor.u32 8388608, %v5267_v40 }
 0x31f   : > { %v2139_v18 = vsel %vm2128_vm4, nan, %v2138_v5  ;;  %v5439_v42 = vor.u32 %v5438_v39, %v5437_v20  ;;  %v5442_v0 = vshll.u32 %v5441_v47, 23  ;;  %v1993_v16 = vadd.s32 536870912, %v1992_v27 }
 0x320   : > { %7560 = vst.msk [vmem:[%s9945_s25 + $0x58] sm:$0xff] %vm7548_vm14, %v2139_v18  ;;  %v5272_v10 = vsel %vm5271_vm2, %v5270_v14, 0  ;;  %v2248_v2 = vshrl.u32 %v2247_v24, 23  ;;  %v11628_v45 = vand.u32 3, %v5457_v26  ;;  %vm1934_vm5 = vcmp.lt.s32.totalorder %v11433_v17, 0 }
 0x321   : > { %v5443_v29 = vor.u32 4788187, %v5442_v0  ;;  %v1994_v34 = vshrl.u32 %v1993_v16, 30  ;;  %v5274_v12 = vand.u32 31, %v5272_v10  ;;  %v5446_v15 = vcvt.s32.f32 %v5439_v42 }
 0x322   : > { %v11632_v62 = vadd.s32 %v11580_v53, %v11590_v44  ;;  %v11634_v13 = vshll.u32 %v5268_v48, 8  ;;  %v2244_v8 = vand.u32 2147483647, %v11601_v4  ;;  %v11639_v63 = vshrl.u32 %v5272_v10, 5 }
 0x323   : > { %v5444_v51 = vand.u32 2147483647, %v5443_v29  ;;  %v1995_v32 = vshll.u32 %v1994_v34, 30  ;;  %v5275_v55 = vsub.s32 32, %v5274_v12  ;;  %v8245_v31 = vadd.s32 4294967169, %v2248_v2 }
 0x324   : > { %v2018_v57 = vsub.s32 4, %v1994_v34  ;;  %v5277_v21 = vshll.u32 %v9401_v50, %v5274_v12  ;;  %vm11646_vm3 = vcmp.le.f32.partialorder %v1932_v23, 0.7853982  ;;  %v5280_v41 = vshll.u32 %v9402_v54, %v5274_v12 }
 0x325   : > { %v5447_v9 = vmul.f32 %v5446_v15, %v5444_v51  ;;  %v11637_v30 = vsub.s32 %v1992_v27, %v1995_v32  ;;  %v5278_v36 = vshrl.u32 %v9402_v54, %v5275_v55  ;;  %v5281_v49 = vshrl.u32 %v9403_v56, %v5275_v55  ;;  %v11686_v32 = vpop.f32.mrb[15].mxu0 }
 0x326   : > { %v5284_v7 = vshrl.u32 %v9404_v58, %v5275_v55  ;;  %v5283_v19 = vshll.u32 %v9403_v56, %v5274_v12  ;;  %v5286_v46 = vshll.u32 %v9404_v58, %v5274_v12  ;;  %v5287_v37 = vshrl.u32 %v9405_v60, %v5275_v55 }
 0x327   : > { %v5448_v53 = vxor.u32 2147483648, %v5447_v9  ;;  %v1998_v52 = vsub.s32 0, %v11637_v30  ;;  %v5279_v40 = vor.u32 %v5278_v36, %v5277_v21  ;;  %v5282_v43 = vor.u32 %v5281_v49, %v5280_v41 }
 0x328   : > { %v5289_v20 = vshll.u32 %v9405_v60, %v5274_v12  ;;  %v5285_v14 = vor.u32 %v5284_v7, %v5283_v19  ;;  %v5288_v28 = vor.u32 %v5287_v37, %v5286_v46  ;;  %v5290_v39 = vshrl.u32 %v9406_v3, %v5275_v55 }
 0x329   : > { %v5449_v24 = vsel %vm5366_vm6, %v5448_v53, %v5447_v9  ;;  %v8234_v23 = vmin.u32 %v1998_v52, %v11637_v30  ;;  %vm5292_vm7 = vcmp.lt.s32.totalorder %v11639_v63, 1  ;;  %v2254_v27 = vadd.s32 1, %v8245_v31 }
 0x32a   : > { %v5452_v1 = vsel %vm11595_vm0, %v11416_v35, %v5449_v24  ;;  %v2019_v5 = vsel %vm1934_vm5, %v2018_v57, %v1994_v34  ;;  %v5276_v26 = vshrl.u32 %v9401_v50, %v5275_v55  ;;  %v5291_v18 = vor.u32 %v5290_v39, %v5289_v20 }
 0x32b   : > { %9115 = vcosq.f32 %v5452_v1  ;;  %v2000_v47 = vclz %v8234_v23  ;;  %vm5294_vm6 = vcmp.lt.s32.totalorder %v11639_v63, 3  ;;  %vm5295_vm10 = vcmp.lt.s32.totalorder %v11639_v63, 4 }
 0x32c   : > { %9117 = vsinq.f32 %v5452_v1  ;;  %v5300_v38 = vsel %vm5292_vm7, %v5279_v40, %v5282_v43  ;;  %v5297_v0 = vsel %vm5295_vm10, %v5285_v14, 2102212464  ;;  %v5301_v16 = vsel %vm5295_vm10, %v5288_v28, 920167782 }
 0x32d   : > { %v8235_v42 = vadd.s32 4294967294, %v2000_v47  ;;  %v5304_v48 = vsel %vm5292_vm7, %v5282_v43, %v5285_v14  ;;  %v5305_v10 = vsel %vm5295_vm10, %v5291_v18, 1326507024  ;;  %vm5293_vm11 = vcmp.lt.s32.totalorder %v11639_v63, 2  ;;  %v11716_v63 = vld [vmem:[%s15263_s2] ss:$0 sm:$0xff] }
 0x32e   : > { %v5302_v29 = vsel %vm5294_vm6, %v5285_v14, %v5301_v16  ;;  %v5306_v34 = vsel %vm5294_vm6, %v5288_v28, %v5305_v10  ;;  %vm5460_vm9 = vcmp.eq.s32.totalorder %v11628_v45, 0  ;;  %v2021_v12 = vsel %vm11646_vm3, 0, %v2019_v5 }
 0x32f   : > { %vm8236_vm8 = vcmp.lt.s32.totalorder %v8235_v42, 0  ;;  %v5303_v51 = vsel %vm5293_vm11, %v5300_v38, %v5302_v29  ;;  %v5307_v15 = vsel %vm5293_vm11, %v5304_v48, %v5306_v34  ;;  %vm5459_vm0 = vcmp.lt.s32.totalorder %v11628_v45, 2 }
 0x330   : > { %v2003_v2 = vsel %vm8236_vm8, 0, %v8235_v42  ;;  %v5296_v31 = vsel %vm5292_vm7, %v5276_v26, %v5279_v40  ;;  %v5298_v57 = vsel %vm5294_vm6, %v5282_v43, %v5297_v0  ;;  %vm5456_vm12 = vweird.f32 %v11416_v35 }
 0x331   : > { %v2004_v55 = vsub.s32 32, %v2003_v2  ;;  %v2008_v9 = vsub.s32 4294967266, %v2003_v2  ;;  %v11695_v21 = vmul.u32.u64.low %v11634_v13, %v5307_v15  ;;  %v11696_v36 = vmul.u32.u64.high %v11634_v13, %v5307_v15, %v11695_v21 }
 0x332   : > { %v11699_v49 = vmul.u32.u64.low %v11634_v13, %v5303_v51  ;;  %v11700_v53 = vmul.u32.u64.high %v11634_v13, %v5303_v51, %v11699_v49  ;;  %v2005_v52 = vshll.u32 %v11637_v30, %v2003_v2  ;;  %vm2255_vm13 = vcmp.gt.s32.totalorder %v2254_v27, 0 }
 0x333   : > { %v2006_v41 = vshrl.u32 %v11632_v62, %v2004_v55  ;;  %v2009_v7 = vadd.s32 127, %v2008_v9  ;;  %v2025_v40 = vadd.s32 3, %v2021_v12  ;;  %v5299_v19 = vsel %vm5293_vm11, %v5296_v31, %v5298_v57 }
 0x334   : > { %v2251_v46 = vand.u32 8388607, %v2244_v8  ;;  %v2256_v37 = vsel %vm2255_vm13, %v2254_v27, 0  ;;  %vm5463_vm15 = vcmp.eq.s32.totalorder %v11628_v45, 2  ;;  %vm5317_vm1 = vc.u32 %v11696_v36, %v11699_v49 }
 0x335   : > { %v9116_v24 = vpop.eup %9115  ;;  %v2007_v23 = vor.u32 %v2006_v41, %v2005_v52  ;;  %v2010_v43 = vshll.u32 %v2009_v7, 23  ;;  %v2258_v20 = vand.u32 31, %v2256_v37  ;;  %v5318_v62 = vadd.s32 1, %v11700_v53 }
 0x336   : > { %v9118_v1 = vpop.eup %9117  ;;  %v5464_v30 = vxor.u32 2147483648, %v9116_v24  ;;  %v11720_v14 = vadd.f32 %v11716_v63, %v11240_v11  ;;  %v5315_v47 = vmul.u32 %v11634_v13, %v5299_v19  ;;  %v11723_v26 = vand.u32 3, %v2025_v40 }
 0x337   : > { %v5461_v28 = vxor.u32 2147483648, %v9118_v1  ;;  %v2011_v39 = vor.u32 4788187, %v2010_v43  ;;  %v2259_v27 = vsub.s32 32, %v2258_v20  ;;  %v5319_v18 = vsel %vm5317_vm1, %v5318_v62, %v11700_v53 }
 0x338   : > { %v5465_v5 = vsel %vm5463_vm15, %v5464_v30, %v9118_v1  ;;  %v2252_v42 = vor.u32 8388608, %v2251_v46  ;;  %v2014_v16 = vcvt.s32.f32 %v2007_v23  ;;  %v5320_v48 = vadd.s32 %v5319_v18, %v5315_v47 }
 0x339   : > { %v5462_v38 = vsel %vm5460_vm9, %v9116_v24, %v5461_v28  ;;  %v2012_v0 = vand.u32 2147483647, %v2011_v39  ;;  %v2261_v10 = vshll.u32 %v9401_v50, %v2258_v20  ;;  %v2262_v13 = vshrl.u32 %v9402_v54, %v2259_v27 }
 0x33a   : > { %v5466_v11 = vsel %vm5459_vm0, %v5462_v38, %v5465_v5  ;;  %v2265_v29 = vshrl.u32 %v9403_v56, %v2259_v27  ;;  %v5321_v12 = vadd.s32 536870912, %v5320_v48  ;;  %v2268_v51 = vshrl.u32 %v9404_v58, %v2259_v27 }
 0x33b   : > { %v5467_v34 = vsel %vm5456_vm12, nan, %v5466_v11  ;;  %v2015_v2 = vmul.f32 %v2014_v16, %v2012_v0  ;;  %v2257_v15 = vshrl.u32 %v2256_v37, 5  ;;  %v2264_v55 = vshll.u32 %v9402_v54, %v2258_v20 }
 0x33c   : > { %7592 = vst.msk [vmem:[%s9945_s25 + $0x158] sm:$0xff] %vm7548_vm14, %v5467_v34  ;;  %v2267_v45 = vshll.u32 %v9403_v56, %v2258_v20  ;;  %v2271_v9 = vshrl.u32 %v9405_v60, %v2259_v27  ;;  %v5322_v57 = vshrl.u32 %v5321_v12, 30  ;;  %v2263_v21 = vor.u32 %v2262_v13, %v2261_v10 }
 0x33d   : > { %v2016_v31 = vxor.u32 2147483648, %v2015_v2  ;;  %v2270_v53 = vshll.u32 %v9404_v58, %v2258_v20  ;;  %v2266_v35 = vor.u32 %v2265_v29, %v2264_v55  ;;  %v2273_v41 = vshll.u32 %v9405_v60, %v2258_v20  ;;  %v11763_v29 = vpop.f32.mrb[15].mxu1 }
 0x33e   : > { %v2269_v52 = vor.u32 %v2268_v51, %v2267_v45  ;;  %v2274_v7 = vshrl.u32 %v9406_v3, %v2259_v27  ;;  %v5323_v19 = vshll.u32 %v5322_v57, 30  ;;  %v11746_v37 = vshll.u32 %v2252_v42, 8 }
 0x33f   : > { %v2017_v40 = vsel %vm1934_vm5, %v2016_v31, %v2015_v2  ;;  %v2272_v46 = vor.u32 %v2271_v9, %v2270_v53  ;;  %v2260_v23 = vshrl.u32 %v9401_v50, %v2259_v27  ;;  %v5575_v1 = vand.u32 2139095040, %v11720_v14 }
 0x340   : > { %v2020_v24 = vsel %vm11646_vm3, %v11433_v17, %v2017_v40  ;;  %v2275_v43 = vor.u32 %v2274_v7, %v2273_v41  ;;  %v11753_v20 = vsub.s32 %v5320_v48, %v5323_v19  ;;  %vm2276_vm4 = vcmp.lt.s32.totalorder %v2257_v15, 1 }
 0x341   : > { %9119 = vcosq.f32 %v2020_v24  ;;  %vm2279_vm2 = vcmp.lt.s32.totalorder %v2257_v15, 4  ;;  %vm2277_vm5 = vcmp.lt.s32.totalorder %v2257_v15, 2  ;;  %v2284_v62 = vsel %vm2276_vm4, %v2263_v21, %v2266_v35 }
 0x342   : > { %9121 = vsinq.f32 %v2020_v24  ;;  %v2281_v30 = vsel %vm2279_vm2, %v2269_v52, 2102212464  ;;  %v5326_v28 = vsub.s32 0, %v11753_v20  ;;  %v5346_v39 = vsub.s32 4, %v5322_v57 }
 0x343   : > { %vm2278_vm7 = vcmp.lt.s32.totalorder %v2257_v15, 3  ;;  %v2285_v44 = vsel %vm2279_vm2, %v2272_v46, 920167782  ;;  %v2280_v47 = vsel %vm2276_vm4, %v2260_v23, %v2263_v21  ;;  %v2288_v27 = vsel %vm2276_vm4, %v2266_v35, %v2269_v52 }
 0x344   : > { %v2286_v5 = vsel %vm2278_vm7, %v2269_v52, %v2285_v44  ;;  %v2289_v18 = vsel %vm2279_vm2, %v2275_v43, 1326507024  ;;  %v8362_v42 = vmin.u32 %v5326_v28, %v11753_v20  ;;  %v2282_v38 = vsel %vm2278_vm7, %v2266_v35, %v2281_v30 }
 0x345   : > { %v2287_v0 = vsel %vm2277_vm5, %v2284_v62, %v2286_v5  ;;  %v2290_v16 = vsel %vm2278_vm7, %v2272_v46, %v2289_v18  ;;  %v5576_v13 = vshrl.u32 %v5575_v1, 23  ;;  %vm11767_vm3 = vcmp.le.f32.partialorder %v5260_v61, 0.7853982 }
 0x346   : > { %v2291_v48 = vsel %vm2277_vm5, %v2288_v27, %v2290_v16  ;;  %v11760_v11 = vmul.u32.u64.low %v11746_v37, %v2287_v0  ;;  %v11761_v10 = vmul.u32.u64.high %v11746_v37, %v2287_v0, %v11760_v11  ;;  %vm5262_vm6 = vcmp.lt.s32.totalorder %v11466_v33, 0 }
 0x347   : > { %v5328_v2 = vclz %v8362_v42  ;;  %vm2024_vm10 = vweird.f32 %v11433_v17  ;;  %v5347_v12 = vsel %vm5262_vm6, %v5346_v39, %v5322_v57  ;;  %v8373_v45 = vadd.s32 4294967169, %v5576_v13 }
 0x348   : > { %v11776_v51 = vmul.u32.u64.low %v11746_v37, %v2291_v48  ;;  %v11777_v55 = vmul.u32.u64.high %v11746_v37, %v2291_v48, %v11776_v51  ;;  %v2283_v31 = vsel %vm2277_vm5, %v2280_v47, %v2282_v38  ;;  %v5572_v61 = vand.u32 2147483647, %v11720_v14 }
 0x349   : > { %v8363_v9 = vadd.s32 4294967294, %v5328_v2  ;;  %v11783_v21 = vadd.f32 %v11716_v63, %v11334_v25  ;;  %vm2027_vm8 = vcmp.lt.s32.totalorder %v11723_v26, 2  ;;  %vm2028_vm11 = vcmp.eq.s32.totalorder %v11723_v26, 0 }
 0x34a   : > { %v2302_v57 = vadd.s32 1, %v11761_v10  ;;  %v5582_v53 = vadd.s32 1, %v8373_v45  ;;  %vm2031_vm9 = vcmp.eq.s32.totalorder %v11723_v26, 2  ;;  %v5316_v15 = vadd.s32 %v11699_v49, %v11696_v36 }
 0x34b   : > { %v9120_v35 = vpop.eup %9119  ;;  %vm8364_vm0 = vcmp.lt.s32.totalorder %v8363_v9, 0  ;;  %v5349_v52 = vsel %vm11767_vm3, 0, %v5347_v12  ;;  %v2299_v40 = vmul.u32 %v11746_v37, %v2283_v31  ;;  %vm2301_vm12 = vc.u32 %v11777_v55, %v11760_v11 }
 0x34c   : > { %v9122_v41 = vpop.eup %9121  ;;  %v2032_v25 = vxor.u32 2147483648, %v9120_v35  ;;  %v5331_v7 = vsel %vm8364_vm0, 0, %v8363_v9  ;;  %v5579_v23 = vand.u32 8388607, %v5572_v61  ;;  %v2303_v49 = vsel %vm2301_vm12, %v2302_v57, %v11761_v10 }
 0x34d   : > { %v2029_v19 = vxor.u32 2147483648, %v9122_v41  ;;  %v5332_v46 = vsub.s32 32, %v5331_v7  ;;  %v5336_v24 = vsub.s32 4294967266, %v5331_v7  ;;  %v5333_v36 = vshll.u32 %v11753_v20, %v5331_v7 }
 0x34e   : > { %v2033_v43 = vsel %vm2031_vm9, %v2032_v25, %v9122_v41  ;;  %vm5583_vm13 = vcmp.gt.s32.totalorder %v5582_v53, 0  ;;  %v2304_v62 = vadd.s32 %v2303_v49, %v2299_v40  ;;  %v5353_v39 = vadd.s32 3, %v5349_v52 }
 0x34f   : > { %v2030_v1 = vsel %vm2028_vm11, %v9120_v35, %v2029_v19  ;;  %v5334_v30 = vshrl.u32 %v5316_v15, %v5332_v46  ;;  %v5337_v37 = vadd.s32 127, %v5336_v24  ;;  %v5584_v44 = vsel %vm5583_vm13, %v5582_v53, 0 }
 0x350   : > { %v2034_v28 = vsel %vm2027_vm8, %v2030_v1, %v2033_v43  ;;  %v2140_v47 = vand.u32 2147483647, %v11783_v21  ;;  %v2305_v18 = vadd.s32 536870912, %v2304_v62  ;;  %v5580_v42 = vor.u32 8388608, %v5579_v23 }
 0x351   : > { %v2035_v5 = vsel %vm2024_vm10, nan, %v2034_v28  ;;  %v5335_v20 = vor.u32 %v5334_v30, %v5333_v36  ;;  %v5338_v27 = vshll.u32 %v5337_v37, 23  ;;  %v5586_v38 = vand.u32 31, %v5584_v44 }
 0x352   : > { %7559 = vst.msk [vmem:[%s9945_s25 + $0x50] sm:$0xff] %vm7548_vm14, %v2035_v5  ;;  %v11808_v16 = vshrl.u32 %v2305_v18, 30  ;;  %v11810_v48 = vand.u32 3, %v5353_v39  ;;  %v2143_v10 = vand.u32 2139095040, %v11783_v21  ;;  %v11815_v13 = vand.u32 8388607, %v2140_v47 }
 0x353   : > { %v5339_v0 = vor.u32 4788187, %v5338_v27  ;;  %v5587_v26 = vsub.s32 32, %v5586_v38  ;;  %v5342_v2 = vcvt.s32.f32 %v5335_v20  ;;  %v11818_v12 = vadd.s32 %v11760_v11, %v11777_v55 }
 0x354   : > { %v2307_v51 = vshll.u32 %v11808_v16, 30  ;;  %v11824_v57 = vshll.u32 %v5580_v42, 8  ;;  %v5589_v15 = vshll.u32 %v9401_v50, %v5586_v38  ;;  %v5585_v41 = vshrl.u32 %v5584_v44, 5 }
 0x355   : > { %v5340_v17 = vand.u32 2147483647, %v5339_v0  ;;  %v5590_v45 = vshrl.u32 %v9402_v54, %v5587_v26  ;;  %v5593_v9 = vshrl.u32 %v9403_v56, %v5587_v26  ;;  %v5596_v31 = vshrl.u32 %v9404_v58, %v5587_v26 }
 0x356   : > { %v11826_v35 = vsub.s32 %v2304_v62, %v2307_v51  ;;  %v5599_v52 = vshrl.u32 %v9405_v60, %v5587_v26  ;;  %v5592_v11 = vshll.u32 %v9402_v54, %v5586_v38  ;;  %v5595_v55 = vshll.u32 %v9403_v56, %v5586_v38 }
 0x357   : > { %v5343_v53 = vmul.f32 %v5342_v2, %v5340_v17  ;;  %v2144_v25 = vshrl.u32 %v2143_v10, 23  ;;  %v5591_v19 = vor.u32 %v5590_v45, %v5589_v15  ;;  %v5598_v46 = vshll.u32 %v9404_v58, %v5586_v38 }
 0x358   : > { %v2310_v40 = vsub.s32 0, %v11826_v35  ;;  %v5594_v24 = vor.u32 %v5593_v9, %v5592_v11  ;;  %v5597_v23 = vor.u32 %v5596_v31, %v5595_v55  ;;  %v5601_v43 = vshll.u32 %v9405_v60, %v5586_v38 }
 0x359   : > { %v5344_v7 = vxor.u32 2147483648, %v5343_v53  ;;  %v5602_v36 = vshrl.u32 %v9406_v3, %v5587_v26  ;;  %v5600_v30 = vor.u32 %v5599_v52, %v5598_v46  ;;  %v2148_v37 = vor.u32 8388608, %v11815_v13 }
 0x35a   : > { %v8246_v1 = vmin.u32 %v2310_v40, %v11826_v35  ;;  %v5588_v28 = vshrl.u32 %v9401_v50, %v5587_v26  ;;  %v8241_v44 = vadd.s32 4294967169, %v2144_v25  ;;  %vm5604_vm15 = vcmp.lt.s32.totalorder %v5585_v41, 1  ;;  %v11859_v40 = vpop.f32.mrb[16].mxu0 }
 0x35b   : > { %v5345_v49 = vsel %vm5262_vm6, %v5344_v7, %v5343_v53  ;;  %v5603_v39 = vor.u32 %v5602_v36, %v5601_v43  ;;  %vm5607_vm1 = vcmp.lt.s32.totalorder %v5585_v41, 4  ;;  %vm2246_vm4 = vcmp.lt.s32.totalorder %v11601_v4, 0 }
 0x35c   : > { %v5348_v62 = vsel %vm11767_vm3, %v11466_v33, %v5345_v49  ;;  %v2312_v5 = vclz %v8246_v1  ;;  %vm5605_vm2 = vcmp.lt.s32.totalorder %v5585_v41, 2  ;;  %v5609_v20 = vsel %vm5607_vm1, %v5597_v23, 2102212464 }
 0x35d   : > { %9123 = vcosq.f32 %v5348_v62  ;;  %v5612_v27 = vsel %vm5604_vm15, %v5591_v19, %v5594_v24  ;;  %vm5606_vm5 = vcmp.lt.s32.totalorder %v5585_v41, 3  ;;  %v5613_v42 = vsel %vm5607_vm1, %v5600_v30, 920167782 }
 0x35e   : > { %9125 = vsinq.f32 %v5348_v62  ;;  %v8247_v18 = vadd.s32 4294967294, %v2312_v5  ;;  %v5616_v38 = vsel %vm5604_vm15, %v5594_v24, %v5597_v23  ;;  %v5608_v34 = vsel %vm5604_vm15, %v5588_v28, %v5591_v19 }
 0x35f   : > { %v5614_v0 = vsel %vm5606_vm5, %v5597_v23, %v5613_v42  ;;  %v5617_v10 = vsel %vm5607_vm1, %v5603_v39, 1326507024  ;;  %v2150_v26 = vadd.s32 1, %v8241_v44  ;;  %v5610_v13 = vsel %vm5606_vm5, %v5594_v24, %v5609_v20 }
 0x360   : > { %vm8248_vm7 = vcmp.lt.s32.totalorder %v8247_v18, 0  ;;  %v5615_v17 = vsel %vm5605_vm2, %v5612_v27, %v5614_v0  ;;  %v5618_v2 = vsel %vm5606_vm5, %v5600_v30, %v5617_v10  ;;  %v2330_v52 = vsub.s32 4, %v11808_v16 }
 0x361   : > { %v2315_v51 = vsel %vm8248_vm7, 0, %v8247_v18  ;;  %v5619_v45 = vsel %vm5605_vm2, %v5616_v38, %v5618_v2  ;;  %v11848_v9 = vmul.u32.u64.low %v11824_v57, %v5615_v17  ;;  %v11849_v31 = vmul.u32.u64.high %v11824_v57, %v5615_v17, %v11848_v9 }
 0x362   : > { %v2316_v53 = vsub.s32 32, %v2315_v51  ;;  %v2320_v15 = vsub.s32 4294967266, %v2315_v51  ;;  %vm2151_vm3 = vcmp.gt.s32.totalorder %v2150_v26, 0  ;;  %vm5352_vm6 = vweird.f32 %v11466_v33 }
 0x363   : > { %v5611_v11 = vsel %vm5605_vm2, %v5608_v34, %v5610_v13  ;;  %v11856_v55 = vmul.u32.u64.low %v11824_v57, %v5619_v45  ;;  %v11857_v25 = vmul.u32.u64.high %v11824_v57, %v5619_v45, %v11856_v55  ;;  %v2152_v7 = vsel %vm2151_vm3, %v2150_v26, 0 }
 0x364   : > { %v2317_v19 = vshll.u32 %v11826_v35, %v2315_v51  ;;  %v2318_v46 = vshrl.u32 %v11818_v12, %v2316_v53  ;;  %v2321_v24 = vadd.s32 127, %v2320_v15  ;;  %v2154_v23 = vand.u32 31, %v2152_v7 }
 0x365   : > { %vm5355_vm10 = vcmp.lt.s32.totalorder %v11810_v48, 2  ;;  %vm5356_vm8 = vcmp.eq.s32.totalorder %v11810_v48, 0  ;;  %vm11867_vm11 = vcmp.le.f32.partialorder %v2244_v8, 0.7853982  ;;  %v5630_v43 = vadd.s32 1, %v11849_v31 }
 0x366   : > { %vm5359_vm9 = vcmp.eq.s32.totalorder %v11810_v48, 2  ;;  %v2319_v35 = vor.u32 %v2318_v46, %v2317_v19  ;;  %v2322_v49 = vshll.u32 %v2321_v24, 23  ;;  %v2331_v12 = vsel %vm2246_vm4, %v2330_v52, %v11808_v16 }
 0x367   : > { %v9124_v36 = vpop.eup %9123  ;;  %v5627_v62 = vmul.u32 %v11824_v57, %v5611_v11  ;;  %vm5629_vm0 = vc.u32 %v11857_v25, %v11848_v9  ;;  %v2155_v8 = vsub.s32 32, %v2154_v23  ;;  %v11880_v5 = vshll.u32 %v2148_v37, 8 }
 0x368   : > { %v9126_v1 = vpop.eup %9125  ;;  %v5360_v30 = vxor.u32 2147483648, %v9124_v36  ;;  %v2323_v39 = vor.u32 4788187, %v2322_v49  ;;  %v5631_v44 = vsel %vm5629_vm0, %v5630_v43, %v11849_v31  ;;  %v2333_v27 = vsel %vm11867_vm11, 0, %v2331_v12 }
 0x369   : > { %v5357_v28 = vxor.u32 2147483648, %v9126_v1  ;;  %v5632_v16 = vadd.s32 %v5631_v44, %v5627_v62  ;;  %v11886_v18 = vadd.f32 %v11716_v63, %v11418_v6  ;;  %v2326_v38 = vcvt.s32.f32 %v2319_v35 }
 0x36a   : > { %v5361_v20 = vsel %vm5359_vm9, %v5360_v30, %v9126_v1  ;;  %v2324_v42 = vand.u32 2147483647, %v2323_v39  ;;  %v11890_v34 = vshrl.u32 %v2152_v7, 5  ;;  %v2158_v10 = vshrl.u32 %v9402_v54, %v2155_v8 }
 0x36b   : > { %v5358_v57 = vsel %vm5356_vm8, %v9124_v36, %v5357_v28  ;;  %v5633_v0 = vadd.s32 536870912, %v5632_v16  ;;  %v2161_v26 = vshrl.u32 %v9403_v56, %v2155_v8  ;;  %v2157_v17 = vshll.u32 %v9401_v50, %v2154_v23 }
 0x36c   : > { %v5362_v37 = vsel %vm5355_vm10, %v5358_v57, %v5361_v20  ;;  %v2327_v6 = vmul.f32 %v2326_v38, %v2324_v42  ;;  %v2164_v2 = vshrl.u32 %v9404_v58, %v2155_v8  ;;  %v2160_v45 = vshll.u32 %v9402_v54, %v2154_v23 }
 0x36d   : > { %v5363_v13 = vsel %vm5352_vm6, nan, %v5362_v37  ;;  %v5634_v51 = vshrl.u32 %v5633_v0, 30  ;;  %v2163_v48 = vshll.u32 %v9403_v56, %v2154_v23  ;;  %v2167_v31 = vshrl.u32 %v9405_v60, %v2155_v8 }
 0x36e   : > { %7591 = vst.msk [vmem:[%s9945_s25 + $0x150] sm:$0xff] %vm7548_vm14, %v5363_v13  ;;  %v2328_v53 = vxor.u32 2147483648, %v2327_v6  ;;  %v2166_v15 = vshll.u32 %v9404_v58, %v2154_v23  ;;  %v2169_v33 = vshll.u32 %v9405_v60, %v2154_v23  ;;  %v2170_v52 = vshrl.u32 %v9406_v3, %v2155_v8 }
 0x36f   : > { %v2337_v11 = vadd.s32 3, %v2333_v27  ;;  %v5635_v55 = vshll.u32 %v5634_v51, 30  ;;  %v2159_v7 = vor.u32 %v2158_v10, %v2157_v17  ;;  %v2162_v19 = vor.u32 %v2161_v26, %v2160_v45 }
 0x370   : > { %v2329_v46 = vsel %vm2246_vm4, %v2328_v53, %v2327_v6  ;;  %v2165_v24 = vor.u32 %v2164_v2, %v2163_v48  ;;  %v2168_v43 = vor.u32 %v2167_v31, %v2166_v15  ;;  %v2171_v36 = vor.u32 %v2170_v52, %v2169_v33 }
 0x371   : > { %v2332_v35 = vsel %vm11867_vm11, %v11601_v4, %v2329_v46  ;;  %v11913_v49 = vsub.s32 %v5632_v16, %v5635_v55  ;;  %v2156_v23 = vshrl.u32 %v9401_v50, %v2155_v8  ;;  %v5471_v12 = vand.u32 2139095040, %v11886_v18 }
 0x372   : > { %9127 = vcosq.f32 %v2332_v35  ;;  %vm2172_vm12 = vcmp.lt.s32.totalorder %v11890_v34, 1  ;;  %vm2173_vm13 = vcmp.lt.s32.totalorder %v11890_v34, 2  ;;  %vm2174_vm15 = vcmp.lt.s32.totalorder %v11890_v34, 3 }
 0x373   : > { %9129 = vsinq.f32 %v2332_v35  ;;  %v5638_v1 = vsub.s32 0, %v11913_v49  ;;  %vm2175_vm1 = vcmp.lt.s32.totalorder %v11890_v34, 4  ;;  %v2180_v41 = vsel %vm2172_vm12, %v2159_v7, %v2162_v19 }
 0x374   : > { %v2177_v30 = vsel %vm2175_vm1, %v2165_v24, 2102212464  ;;  %v2181_v62 = vsel %vm2175_vm1, %v2168_v43, 920167782  ;;  %v2184_v8 = vsel %vm2172_vm12, %v2162_v19, %v2165_v24  ;;  %v2185_v28 = vsel %vm2175_vm1, %v2171_v36, 1326507024 }
 0x375   : > { %v8374_v39 = vmin.u32 %v5638_v1, %v11913_v49  ;;  %v5658_v44 = vsub.s32 4, %v5634_v51  ;;  %v2182_v20 = vsel %vm2174_vm15, %v2165_v24, %v2181_v62  ;;  %v2186_v27 = vsel %vm2174_vm15, %v2168_v43, %v2185_v28 }
 0x376   : > { %v2338_v16 = vand.u32 3, %v2337_v11  ;;  %v2183_v57 = vsel %vm2173_vm13, %v2180_v41, %v2182_v20  ;;  %v2187_v42 = vsel %vm2173_vm13, %v2184_v8, %v2186_v27  ;;  %v5472_v38 = vshrl.u32 %v5471_v12, 23 }
 0x377   : > { %vm5574_vm4 = vcmp.lt.s32.totalorder %v11720_v14, 0  ;;  %v5640_v37 = vclz %v8374_v39  ;;  %v2176_v0 = vsel %vm2172_vm12, %v2156_v23, %v2159_v7  ;;  %v2178_v10 = vsel %vm2174_vm15, %v2162_v19, %v2177_v30 }
 0x378   : > { %v11941_v26 = vmul.u32.u64.low %v11880_v5, %v2187_v42  ;;  %v11942_v13 = vmul.u32.u64.high %v11880_v5, %v2187_v42, %v11941_v26  ;;  %v11945_v6 = vmul.u32.u64.low %v11880_v5, %v2183_v57  ;;  %v11946_v17 = vmul.u32.u64.high %v11880_v5, %v2183_v57, %v11945_v6 }
 0x379   : > { %vm2336_vm2 = vweird.f32 %v11601_v4  ;;  %vm11952_vm5 = vcmp.le.f32.partialorder %v5572_v61, 0.7853982  ;;  %v8375_v45 = vadd.s32 4294967294, %v5640_v37  ;;  %v5659_v48 = vsel %vm5574_vm4, %v5658_v44, %v5634_v51 }
 0x37a   : > { %v8369_v31 = vadd.s32 4294967169, %v5472_v38  ;;  %vm2339_vm7 = vcmp.lt.s32.totalorder %v2338_v16, 2  ;;  %vm2340_vm3 = vcmp.eq.s32.totalorder %v2338_v16, 0  ;;  %vm2343_vm6 = vcmp.eq.s32.totalorder %v2338_v16, 2 }
 0x37b   : > { %v2179_v53 = vsel %vm2173_vm13, %v2176_v0, %v2178_v10  ;;  %v5628_v15 = vadd.s32 %v11848_v9, %v11857_v25  ;;  %vm8376_vm10 = vcmp.lt.s32.totalorder %v8375_v45, 0  ;;  %v5468_v61 = vand.u32 2147483647, %v11886_v18 }
 0x37c   : > { %v5478_v33 = vadd.s32 1, %v8369_v31  ;;  %v9128_v52 = vpop.eup %9127  ;;  %v5643_v11 = vsel %vm8376_vm10, 0, %v8375_v45  ;;  %v5661_v55 = vsel %vm11952_vm5, 0, %v5659_v48  ;;  %vm2197_vm8 = vc.u32 %v11942_v13, %v11945_v6  ;;  %v11992_v45 = vpop.f32.mrb[16].mxu1 }
 0x37d   : > { %v2198_v51 = vadd.s32 1, %v11946_v17  ;;  %v9130_v7 = vpop.eup %9129  ;;  %v2344_v34 = vxor.u32 2147483648, %v9128_v52  ;;  %v5644_v19 = vsub.s32 32, %v5643_v11  ;;  %v5648_v46 = vsub.s32 4294967266, %v5643_v11 }
 0x37e   : > { %v2195_v9 = vmul.u32 %v11880_v5, %v2179_v53  ;;  %v2341_v25 = vxor.u32 2147483648, %v9130_v7  ;;  %v5645_v24 = vshll.u32 %v11913_v49, %v5643_v11  ;;  %vm5479_vm11 = vcmp.gt.s32.totalorder %v5478_v33, 0 }
 0x37f   : > { %v2199_v43 = vsel %vm2197_vm8, %v2198_v51, %v11946_v17  ;;  %v2345_v36 = vsel %vm2343_vm6, %v2344_v34, %v9130_v7  ;;  %v5646_v35 = vshrl.u32 %v5628_v15, %v5644_v19  ;;  %v5649_v23 = vadd.s32 127, %v5648_v46 }
 0x380   : > { %v2200_v12 = vadd.s32 %v2199_v43, %v2195_v9  ;;  %v2342_v1 = vsel %vm2340_vm3, %v9128_v52, %v2341_v25  ;;  %v5665_v41 = vadd.s32 3, %v5661_v55  ;;  %v5475_v30 = vand.u32 8388607, %v5468_v61 }
 0x381   : > { %v5480_v62 = vsel %vm5479_vm11, %v5478_v33, 0  ;;  %v2346_v5 = vsel %vm2339_vm7, %v2342_v1, %v2345_v36  ;;  %v5647_v8 = vor.u32 %v5646_v35, %v5645_v24  ;;  %v5650_v49 = vshll.u32 %v5649_v23, 23 }
 0x382   : > { %v2201_v28 = vadd.s32 536870912, %v2200_v12  ;;  %v2347_v39 = vsel %vm2336_vm2, nan, %v2346_v5  ;;  %v5482_v44 = vand.u32 31, %v5480_v62  ;;  %v5476_v57 = vor.u32 8388608, %v5475_v30 }
 0x383   : > { %7562 = vst.msk [vmem:[%s9945_s25 + $0x68] sm:$0xff] %vm7548_vm14, %v2347_v39  ;;  %v5651_v20 = vor.u32 4788187, %v5650_v49  ;;  %v5654_v37 = vcvt.s32.f32 %v5647_v8  ;;  %v11982_v0 = vand.u32 3, %v5665_v41  ;;  %v11990_v17 = vadd.f32 %v11716_v63, %v11529_v22 }
 0x384   : > { %v11980_v27 = vshrl.u32 %v2201_v28, 30  ;;  %v5483_v42 = vsub.s32 32, %v5482_v44  ;;  %v5485_v53 = vshll.u32 %v9401_v50, %v5482_v44  ;;  %v5481_v33 = vshrl.u32 %v5480_v62, 5 }
 0x385   : > { %v5652_v38 = vand.u32 2147483647, %v5651_v20  ;;  %v5488_v52 = vshll.u32 %v9402_v54, %v5482_v44  ;;  %v5491_v11 = vshll.u32 %v9403_v56, %v5482_v44  ;;  %v12000_v55 = vshll.u32 %v5476_v57, 8 }
 0x386   : > { %v2203_v16 = vshll.u32 %v11980_v27, 30  ;;  %v5486_v10 = vshrl.u32 %v9402_v54, %v5483_v42  ;;  %v5489_v26 = vshrl.u32 %v9403_v56, %v5483_v42  ;;  %v5492_v4 = vshrl.u32 %v9404_v58, %v5483_v42 }
 0x387   : > { %v5655_v48 = vmul.f32 %v5654_v37, %v5652_v38  ;;  %v5495_v15 = vshrl.u32 %v9405_v60, %v5483_v42  ;;  %v5494_v34 = vshll.u32 %v9404_v58, %v5482_v44  ;;  %v5497_v9 = vshll.u32 %v9405_v60, %v5482_v44 }
 0x388   : > { %v11994_v31 = vsub.s32 %v2200_v12, %v2203_v16  ;;  %v5487_v7 = vor.u32 %v5486_v10, %v5485_v53  ;;  %v5490_v19 = vor.u32 %v5489_v26, %v5488_v52  ;;  %v5493_v46 = vor.u32 %v5492_v4, %v5491_v11 }
 0x389   : > { %v5656_v51 = vxor.u32 2147483648, %v5655_v48  ;;  %v5498_v25 = vshrl.u32 %v9406_v3, %v5483_v42  ;;  %vm2142_vm9 = vcmp.lt.s32.totalorder %v11783_v21, 0  ;;  %v5496_v36 = vor.u32 %v5495_v15, %v5494_v34 }
 0x38a   : > { %v2206_v22 = vsub.s32 0, %v11994_v31  ;;  %v2455_v35 = vand.u32 2139095040, %v11990_v17  ;;  %v2226_v12 = vsub.s32 4, %v11980_v27  ;;  %v5484_v1 = vshrl.u32 %v9401_v50, %v5483_v42 }
 0x38b   : > { %v5657_v24 = vsel %vm5574_vm4, %v5656_v51, %v5655_v48  ;;  %v5499_v41 = vor.u32 %v5498_v25, %v5497_v9  ;;  %vm5500_vm0 = vcmp.lt.s32.totalorder %v5481_v33, 1  ;;  %vm5503_vm12 = vcmp.lt.s32.totalorder %v5481_v33, 4 }
 0x38c   : > { %v8242_v43 = vmin.u32 %v2206_v22, %v11994_v31  ;;  %v5660_v23 = vsel %vm11952_vm5, %v11720_v14, %v5657_v24  ;;  %vm12018_vm13 = vcmp.le.f32.partialorder %v2140_v47, 0.7853982  ;;  %vm5501_vm15 = vcmp.lt.s32.totalorder %v5481_v33, 2 }
 0x38d   : > { %9131 = vcosq.f32 %v5660_v23  ;;  %v5505_v5 = vsel %vm5503_vm12, %v5493_v46, 2102212464  ;;  %v5508_v2 = vsel %vm5500_vm0, %v5487_v7, %v5490_v19  ;;  %vm5502_vm1 = vcmp.lt.s32.totalorder %v5481_v33, 3 }
 0x38e   : > { %v2208_v30 = vclz %v8242_v43  ;;  %9133 = vsinq.f32 %v5660_v23  ;;  %v5509_v49 = vsel %vm5503_vm12, %v5496_v36, 920167782  ;;  %v5512_v28 = vsel %vm5500_vm0, %v5490_v19, %v5493_v46 }
 0x38f   : > { %v5504_v39 = vsel %vm5500_vm0, %v5484_v1, %v5487_v7  ;;  %v5510_v44 = vsel %vm5502_vm1, %v5493_v46, %v5509_v49  ;;  %v5513_v20 = vsel %vm5503_vm12, %v5499_v41, 1326507024  ;;  %v2456_v57 = vshrl.u32 %v2455_v35, 23 }
 0x390   : > { %v8243_v8 = vadd.s32 4294967294, %v2208_v30  ;;  %v5506_v42 = vsel %vm5502_vm1, %v5490_v19, %v5505_v5  ;;  %v5511_v38 = vsel %vm5501_vm15, %v5508_v2, %v5510_v44  ;;  %v5514_v37 = vsel %vm5502_vm1, %v5496_v36, %v5513_v20 }
 0x391   : > { %vm5668_vm2 = vcmp.eq.s32.totalorder %v11982_v0, 0  ;;  %v5515_v16 = vsel %vm5501_vm15, %v5512_v28, %v5514_v37  ;;  %v12026_v10 = vmul.u32.u64.low %v12000_v55, %v5511_v38  ;;  %v12027_v26 = vmul.u32.u64.high %v12000_v55, %v5511_v38, %v12026_v10 }
 0x392   : > { %vm8244_vm4 = vcmp.lt.s32.totalorder %v8243_v8, 0  ;;  %vm5667_vm5 = vcmp.lt.s32.totalorder %v11982_v0, 2  ;;  %v2196_v4 = vadd.s32 %v11945_v6, %v11942_v13  ;;  %v8253_v15 = vadd.s32 4294967169, %v2456_v57  ;;  %v12043_v6 = vpop.f32.mrb[17].mxu0 }
 0x393   : > { %v2211_v47 = vsel %vm8244_vm4, 0, %v8243_v8  ;;  %vm5664_vm7 = vweird.f32 %v11720_v14  ;;  %v2227_v52 = vsel %vm2142_vm9, %v2226_v12, %v11980_v27  ;;  %v5507_v11 = vsel %vm5501_vm15, %v5504_v39, %v5506_v42 }
 0x394   : > { %v2212_v48 = vsub.s32 32, %v2211_v47  ;;  %v2216_v53 = vsub.s32 4294967266, %v2211_v47  ;;  %v12039_v51 = vmul.u32.u64.low %v12000_v55, %v5515_v16  ;;  %v12040_v22 = vmul.u32.u64.high %v12000_v55, %v5515_v16, %v12039_v51 }
 0x395   : > { %v2213_v7 = vshll.u32 %v11994_v31, %v2211_v47  ;;  %v2462_v13 = vadd.s32 1, %v8253_v15  ;;  %vm5671_vm3 = vcmp.eq.s32.totalorder %v11982_v0, 2  ;;  %v5526_v46 = vadd.s32 1, %v12027_v26 }
 0x396   : > { %v2214_v34 = vshrl.u32 %v2196_v4, %v2212_v48  ;;  %v2217_v19 = vadd.s32 127, %v2216_v53  ;;  %v2452_v9 = vand.u32 2147483647, %v11990_v17  ;;  %v12050_v27 = vadd.f32 %v11716_v63, %v11603_v59 }
 0x397   : > { %v9132_v33 = vpop.eup %9131  ;;  %v2229_v31 = vsel %vm12018_vm13, 0, %v2227_v52  ;;  %vm2463_vm6 = vcmp.gt.s32.totalorder %v2462_v13, 0  ;;  %v5523_v35 = vmul.u32 %v12000_v55, %v5507_v11  ;;  %vm5525_vm10 = vc.u32 %v12040_v22, %v12026_v10 }
 0x398   : > { %v2215_v25 = vor.u32 %v2214_v34, %v2213_v7  ;;  %v2218_v24 = vshll.u32 %v2217_v19, 23  ;;  %v9134_v43 = vpop.eup %9133  ;;  %v5672_v36 = vxor.u32 2147483648, %v9132_v33  ;;  %v2464_v23 = vsel %vm2463_vm6, %v2462_v13, 0 }
 0x399   : > { %v5669_v12 = vxor.u32 2147483648, %v9134_v43  ;;  %v5527_v59 = vsel %vm5525_vm10, %v5526_v46, %v12027_v26  ;;  %v12060_v41 = vadd.f32 %v11716_v63, %v11686_v32  ;;  %v2459_v55 = vand.u32 8388607, %v2452_v9 }
 0x39a   : > { %v2219_v1 = vor.u32 4788187, %v2218_v24  ;;  %v5673_v30 = vsel %vm5671_vm3, %v5672_v36, %v9134_v43  ;;  %v5528_v5 = vadd.s32 %v5527_v59, %v5523_v35  ;;  %v2466_v2 = vand.u32 31, %v2464_v23 }
 0x39b   : > { %v5670_v8 = vsel %vm5668_vm2, %v9132_v33, %v5669_v12  ;;  %v2222_v28 = vcvt.s32.f32 %v2215_v25  ;;  %v2233_v39 = vadd.s32 3, %v2229_v31  ;;  %v5783_v20 = vand.u32 2139095040, %v12050_v27 }
 0x39c   : > { %v2220_v49 = vand.u32 2147483647, %v2219_v1  ;;  %v5674_v44 = vsel %vm5667_vm5, %v5670_v8, %v5673_v30  ;;  %v5529_v32 = vadd.s32 536870912, %v5528_v5  ;;  %v2467_v63 = vsub.s32 32, %v2466_v2 }
 0x39d   : > { %v5675_v57 = vsel %vm5664_vm7, nan, %v5674_v44  ;;  %v2469_v38 = vshll.u32 %v9401_v50, %v2466_v2  ;;  %v2472_v37 = vshll.u32 %v9402_v54, %v2466_v2  ;;  %v2475_v26 = vshll.u32 %v9403_v56, %v2466_v2 }
 0x39e   : > { %v2223_v42 = vmul.f32 %v2222_v28, %v2220_v49  ;;  %7594 = vst.msk [vmem:[%s9945_s25 + $0x168] sm:$0xff] %vm7548_vm14, %v5675_v57  ;;  %v5530_v47 = vshrl.u32 %v5529_v32, 30  ;;  %v2470_v16 = vshrl.u32 %v9402_v54, %v2467_v63  ;;  %v2473_v0 = vshrl.u32 %v9403_v56, %v2467_v63  ;;  %v12106_v28 = vpop.f32.mrb[17].mxu1 }
 0x39f   : > { %v2476_v48 = vshrl.u32 %v9404_v58, %v2467_v63  ;;  %v2478_v14 = vshll.u32 %v9404_v58, %v2466_v2  ;;  %v2479_v53 = vshrl.u32 %v9405_v60, %v2467_v63  ;;  %v12083_v15 = vand.u32 3, %v2233_v39 }
 0x3a0   : > { %v2224_v4 = vxor.u32 2147483648, %v2223_v42  ;;  %vm5470_vm8 = vcmp.lt.s32.totalorder %v11886_v18, 0  ;;  %v5531_v52 = vshll.u32 %v5530_v47, 30  ;;  %v2465_v11 = vshrl.u32 %v2464_v23, 5 }
 0x3a1   : > { %v2471_v51 = vor.u32 %v2470_v16, %v2469_v38  ;;  %v2474_v34 = vor.u32 %v2473_v0, %v2472_v37  ;;  %v2477_v19 = vor.u32 %v2476_v48, %v2475_v26  ;;  %v2480_v13 = vor.u32 %v2479_v53, %v2478_v14 }
 0x3a2   : > { %v2225_v7 = vsel %vm2142_vm9, %v2224_v4, %v2223_v42  ;;  %v12091_v33 = vsub.s32 %v5528_v5, %v5531_v52  ;;  %v2481_v25 = vshll.u32 %v9405_v60, %v2466_v2  ;;  %v2482_v24 = vshrl.u32 %v9406_v3, %v2467_v63 }
 0x3a3   : > { %v2228_v46 = vsel %vm12018_vm13, %v11783_v21, %v2225_v7  ;;  %v2460_v31 = vor.u32 8388608, %v2459_v55  ;;  %v5780_v43 = vand.u32 2147483647, %v12050_v27  ;;  %v5784_v36 = vshrl.u32 %v5783_v20, 23 }
 0x3a4   : > { %9135 = vcosq.f32 %v2228_v46  ;;  %vm12098_vm11 = vcmp.le.f32.partialorder %v5468_v61, 0.7853982  ;;  %v5534_v62 = vsub.s32 0, %v12091_v33  ;;  %v2468_v23 = vshrl.u32 %v9401_v50, %v2467_v63 }
 0x3a5   : > { %9137 = vsinq.f32 %v2228_v46  ;;  %v2483_v12 = vor.u32 %v2482_v24, %v2481_v25  ;;  %v5554_v1 = vsub.s32 4, %v5530_v47  ;;  %vm2484_vm9 = vcmp.lt.s32.totalorder %v2465_v11, 1 }
 0x3a6   : > { %vm2486_vm0 = vcmp.lt.s32.totalorder %v2465_v11, 3  ;;  %vm2487_vm12 = vcmp.lt.s32.totalorder %v2465_v11, 4  ;;  %v8370_v59 = vmin.u32 %v5534_v62, %v12091_v33  ;;  %v2492_v5 = vsel %vm2484_vm9, %v2471_v51, %v2474_v34 }
 0x3a7   : > { %v2489_v30 = vsel %vm2487_vm12, %v2477_v19, 2102212464  ;;  %v2493_v55 = vsel %vm2487_vm12, %v2480_v13, 920167782  ;;  %v2496_v61 = vsel %vm2484_vm9, %v2474_v34, %v2477_v19  ;;  %v2497_v8 = vsel %vm2487_vm12, %v2483_v12, 1326507024 }
 0x3a8   : > { %v2494_v2 = vsel %vm2486_vm0, %v2477_v19, %v2493_v55  ;;  %v2500_v49 = vshll.u32 %v2460_v31, 8  ;;  %v5536_v39 = vclz %v8370_v59  ;;  %vm2485_vm13 = vcmp.lt.s32.totalorder %v2465_v11, 2 }
 0x3a9   : > { %v2488_v44 = vsel %vm2484_vm9, %v2468_v23, %v2471_v51  ;;  %v2490_v32 = vsel %vm2486_vm0, %v2474_v34, %v2489_v30  ;;  %v5555_v63 = vsel %vm5470_vm8, %v5554_v1, %v5530_v47  ;;  %v2495_v20 = vsel %vm2485_vm13, %v2492_v5, %v2494_v2 }
 0x3aa   : > { %v2498_v57 = vsel %vm2486_vm0, %v2480_v13, %v2497_v8  ;;  %v8381_v42 = vadd.s32 4294967169, %v5784_v36  ;;  %vm2232_vm15 = vweird.f32 %v11783_v21  ;;  %v8371_v38 = vadd.s32 4294967294, %v5536_v39 }
 0x3ab   : > { %v2499_v37 = vsel %vm2485_vm13, %v2496_v61, %v2498_v57  ;;  %v12113_v16 = vmul.u32.u64.low %v2500_v49, %v2495_v20  ;;  %v12114_v0 = vmul.u32.u64.high %v2500_v49, %v2495_v20, %v12113_v16  ;;  %vm2235_vm1 = vcmp.lt.s32.totalorder %v12083_v15, 2 }
 0x3ac   : > { %v2491_v26 = vsel %vm2485_vm13, %v2488_v44, %v2490_v32  ;;  %v12118_v4 = vmul.u32.u64.low %v2500_v49, %v2499_v37  ;;  %v12119_v48 = vmul.u32.u64.high %v2500_v49, %v2499_v37, %v12118_v4  ;;  %vm2236_vm4 = vcmp.eq.s32.totalorder %v12083_v15, 0 }
 0x3ad   : > { %vm2239_vm2 = vcmp.eq.s32.totalorder %v12083_v15, 2  ;;  %vm8372_vm5 = vcmp.lt.s32.totalorder %v8371_v38, 0  ;;  %v5790_v47 = vadd.s32 1, %v8381_v42  ;;  %v5524_v53 = vadd.s32 %v12026_v10, %v12040_v22 }
 0x3ae   : > { %v9136_v14 = vpop.eup %9135  ;;  %v5539_v52 = vsel %vm8372_vm5, 0, %v8371_v38  ;;  %v5557_v11 = vsel %vm12098_vm11, 0, %v5555_v63  ;;  %v5787_v51 = vand.u32 8388607, %v5780_v43  ;;  %v2507_v46 = vmul.u32 %v2500_v49, %v2491_v26 }
 0x3af   : > { %v9138_v7 = vpop.eup %9137  ;;  %v2240_v34 = vxor.u32 2147483648, %v9136_v14  ;;  %v5540_v19 = vsub.s32 32, %v5539_v52  ;;  %v5544_v13 = vsub.s32 4294967266, %v5539_v52  ;;  %v5541_v24 = vshll.u32 %v12091_v33, %v5539_v52 }
 0x3b0   : > { %v2237_v25 = vxor.u32 2147483648, %v9138_v7  ;;  %vm2509_vm7 = vc.u32 %v12119_v48, %v12113_v16  ;;  %v2510_v10 = vadd.s32 1, %v12114_v0  ;;  %vm5791_vm3 = vcmp.gt.s32.totalorder %v5790_v47, 0 }
 0x3b1   : > { %v2241_v22 = vsel %vm2239_vm2, %v2240_v34, %v9138_v7  ;;  %v5542_v31 = vshrl.u32 %v5524_v53, %v5540_v19  ;;  %v5545_v36 = vadd.s32 127, %v5544_v13  ;;  %v5561_v23 = vadd.s32 3, %v5557_v11 }
 0x3b2   : > { %v2238_v62 = vsel %vm2236_vm4, %v9136_v14, %v2237_v25  ;;  %v2511_v12 = vsel %vm2509_vm7, %v2510_v10, %v12114_v0  ;;  %v5792_v1 = vsel %vm5791_vm3, %v5790_v47, 0  ;;  %v5788_v39 = vor.u32 8388608, %v5787_v51 }
 0x3b3   : > { %v2242_v33 = vsel %vm2235_vm1, %v2238_v62, %v2241_v22  ;;  %v5543_v59 = vor.u32 %v5542_v31, %v5541_v24  ;;  %v5546_v30 = vshll.u32 %v5545_v36, 23  ;;  %v2512_v5 = vadd.s32 %v2511_v12, %v2507_v46 }
 0x3b4   : > { %v2243_v55 = vsel %vm2232_vm15, nan, %v2242_v33  ;;  %v5794_v2 = vand.u32 31, %v5792_v1  ;;  %v12144_v49 = vand.u32 3, %v5561_v23  ;;  %v2351_v15 = vand.u32 2139095040, %v12060_v41 }
 0x3b5   : > { %7561 = vst.msk [vmem:[%s9945_s25 + $0x60] sm:$0xff] %vm7548_vm14, %v2243_v55  ;;  %v5547_v61 = vor.u32 4788187, %v5546_v30  ;;  %v2513_v8 = vadd.s32 536870912, %v2512_v5  ;;  %v5550_v63 = vcvt.s32.f32 %v5543_v59  ;;  %v5793_v57 = vshrl.u32 %v5792_v1, 5 }
 0x3b6   : > { %v5795_v44 = vsub.s32 32, %v5794_v2  ;;  %v5803_v26 = vshll.u32 %v9403_v56, %v5794_v2  ;;  %v5797_v47 = vshll.u32 %v9401_v50, %v5794_v2  ;;  %v5800_v14 = vshll.u32 %v9402_v54, %v5794_v2 }
 0x3b7   : > { %v5548_v32 = vand.u32 2147483647, %v5547_v61  ;;  %v12146_v20 = vshrl.u32 %v2513_v8, 30  ;;  %v5806_v53 = vshll.u32 %v9404_v58, %v5794_v2  ;;  %v2348_v34 = vand.u32 2147483647, %v12060_v41 }
 0x3b8   : > { %v5798_v42 = vshrl.u32 %v9402_v54, %v5795_v44  ;;  %v5801_v21 = vshrl.u32 %v9403_v56, %v5795_v44  ;;  %v5804_v38 = vshrl.u32 %v9404_v58, %v5795_v44  ;;  %v5807_v4 = vshrl.u32 %v9405_v60, %v5795_v44 }
 0x3b9   : > { %v5551_v37 = vmul.f32 %v5550_v63, %v5548_v32  ;;  %v2515_v0 = vshll.u32 %v12146_v20, 30  ;;  %v5810_v52 = vshrl.u32 %v9406_v3, %v5795_v44  ;;  %v5809_v25 = vshll.u32 %v9405_v60, %v5794_v2 }
 0x3ba   : > { %v5805_v7 = vor.u32 %v5804_v38, %v5803_v26  ;;  %v5799_v19 = vor.u32 %v5798_v42, %v5797_v47  ;;  %v5802_v13 = vor.u32 %v5801_v21, %v5800_v14  ;;  %v5808_v46 = vor.u32 %v5807_v4, %v5806_v53 }
 0x3bb   : > { %v5552_v11 = vxor.u32 2147483648, %v5551_v37  ;;  %v12159_v51 = vsub.s32 %v2512_v5, %v2515_v0  ;;  %v12166_v22 = vshll.u32 %v5788_v39, 8  ;;  %v2352_v31 = vshrl.u32 %v2351_v15, 23 }
 0x3bc   : > { %v5796_v62 = vshrl.u32 %v9401_v50, %v5795_v44  ;;  %v5811_v23 = vor.u32 %v5810_v52, %v5809_v25  ;;  %vm5815_vm6 = vcmp.lt.s32.totalorder %v5793_v57, 4  ;;  %vm5812_vm10 = vcmp.lt.s32.totalorder %v5793_v57, 1 }
 0x3bd   : > { %v5553_v24 = vsel %vm5470_vm8, %v5552_v11, %v5551_v37  ;;  %v2518_v10 = vsub.s32 0, %v12159_v51  ;;  %v5817_v1 = vsel %vm5815_vm6, %v5805_v7, 2102212464  ;;  %vm5814_vm8 = vcmp.lt.s32.totalorder %v5793_v57, 3 }
 0x3be   : > { %v5556_v36 = vsel %vm12098_vm11, %v11886_v18, %v5553_v24  ;;  %v5820_v33 = vsel %vm5812_vm10, %v5799_v19, %v5802_v13  ;;  %v5821_v59 = vsel %vm5815_vm6, %v5808_v46, 920167782  ;;  %vm12177_vm9 = vcmp.le.f32.partialorder %v2452_v9, 0.7853982 }
 0x3bf   : > { %9139 = vcosq.f32 %v5556_v36  ;;  %v8254_v12 = vmin.u32 %v2518_v10, %v12159_v51  ;;  %v5816_v5 = vsel %vm5812_vm10, %v5796_v62, %v5799_v19  ;;  %v5818_v55 = vsel %vm5814_vm8, %v5802_v13, %v5817_v1 }
 0x3c0   : > { %9141 = vsinq.f32 %v5556_v36  ;;  %v5824_v2 = vsel %vm5812_vm10, %v5802_v13, %v5805_v7  ;;  %vm5813_vm11 = vcmp.lt.s32.totalorder %v5793_v57, 2  ;;  %v5822_v61 = vsel %vm5814_vm8, %v5805_v7, %v5821_v59 }
 0x3c1   : > { %v2520_v30 = vclz %v8254_v12  ;;  %v5825_v8 = vsel %vm5815_vm6, %v5811_v23, 1326507024  ;;  %v8249_v39 = vadd.s32 4294967169, %v2352_v31  ;;  %v2538_v32 = vsub.s32 4, %v12146_v20  ;;  %v12210_v31 = vpop.f32.mrb[18].mxu0 }
 0x3c2   : > { %v5823_v63 = vsel %vm5813_vm11, %v5820_v33, %v5822_v61  ;;  %v5826_v15 = vsel %vm5814_vm8, %v5808_v46, %v5825_v8  ;;  %v5819_v42 = vsel %vm5813_vm11, %v5816_v5, %v5818_v55  ;;  %vm5560_vm12 = vweird.f32 %v11886_v18  ;;  %v12218_v33 = vld [vmem:[%s15263_s2] ss:$0 sm:$0xff] }
 0x3c3   : > { %v8255_v44 = vadd.s32 4294967294, %v2520_v30  ;;  %v5827_v21 = vsel %vm5813_vm11, %v5824_v2, %v5826_v15  ;;  %v12184_v9 = vmul.u32.u64.low %v12166_v22, %v5823_v63  ;;  %v12185_v38 = vmul.u32.u64.high %v12166_v22, %v5823_v63, %v12184_v9 }
 0x3c4   : > { %v12189_v37 = vmul.u32.u64.low %v12166_v22, %v5827_v21  ;;  %v12190_v0 = vmul.u32.u64.high %v12166_v22, %v5827_v21, %v12189_v37  ;;  %v2358_v57 = vadd.s32 1, %v8249_v39  ;;  %vm5567_vm13 = vcmp.eq.s32.totalorder %v12144_v49, 2 }
 0x3c5   : > { %vm8256_vm0 = vcmp.lt.s32.totalorder %v8255_v44, 0  ;;  %vm2454_vm15 = vcmp.lt.s32.totalorder %v11990_v17, 0  ;;  %v2508_v26 = vadd.s32 %v12113_v16, %v12119_v48  ;;  %v5835_v52 = vmul.u32 %v12166_v22, %v5819_v42 }
 0x3c6   : > { %v2523_v4 = vsel %vm8256_vm0, 0, %v8255_v44  ;;  %v2539_v53 = vsel %vm2454_vm15, %v2538_v32, %v12146_v20  ;;  %vm2359_vm1 = vcmp.gt.s32.totalorder %v2358_v57, 0  ;;  %v5838_v11 = vadd.s32 1, %v12185_v38 }
 0x3c7   : > { %v2524_v47 = vsub.s32 32, %v2523_v4  ;;  %v2528_v14 = vsub.s32 4294967266, %v2523_v4  ;;  %v2355_v7 = vand.u32 8388607, %v2348_v34  ;;  %v2360_v19 = vsel %vm2359_vm1, %v2358_v57, 0 }
 0x3c8   : > { %v2525_v46 = vshll.u32 %v12159_v51, %v2523_v4  ;;  %vm5837_vm4 = vc.u32 %v12190_v0, %v12184_v9  ;;  %v2541_v20 = vsel %vm12177_vm9, 0, %v2539_v53  ;;  %v2362_v22 = vand.u32 31, %v2360_v19 }
 0x3c9   : > { %v9140_v13 = vpop.eup %9139  ;;  %v2526_v16 = vshrl.u32 %v2508_v26, %v2524_v47  ;;  %v2529_v48 = vadd.s32 127, %v2528_v14  ;;  %v5839_v10 = vsel %vm5837_vm4, %v5838_v11, %v12185_v38  ;;  %vm5564_vm2 = vcmp.eq.s32.totalorder %v12144_v49, 0 }
 0x3ca   : > { %v9142_v25 = vpop.eup %9141  ;;  %v5568_v24 = vxor.u32 2147483648, %v9140_v13  ;;  %v5840_v12 = vadd.s32 %v5839_v10, %v5835_v52  ;;  %v2363_v1 = vsub.s32 32, %v2362_v22  ;;  %v12222_v59 = vadd.f32 %v12218_v33, %v11763_v29 }
 0x3cb   : > { %v5565_v36 = vxor.u32 2147483648, %v9142_v25  ;;  %v2527_v62 = vor.u32 %v2526_v16, %v2525_v46  ;;  %v2530_v23 = vshll.u32 %v2529_v48, 23  ;;  %vm5563_vm5 = vcmp.lt.s32.totalorder %v12144_v49, 2 }
 0x3cc   : > { %v5569_v51 = vsel %vm5567_vm13, %v5568_v24, %v9142_v25  ;;  %v5841_v55 = vadd.s32 536870912, %v5840_v12  ;;  %v2545_v61 = vadd.s32 3, %v2541_v20  ;;  %v2356_v8 = vor.u32 8388608, %v2355_v7 }
 0x3cd   : > { %v5566_v30 = vsel %vm5564_vm2, %v9140_v13, %v5565_v36  ;;  %v2531_v5 = vor.u32 4788187, %v2530_v23  ;;  %v12227_v39 = vadd.f32 %v12218_v33, %v11859_v40  ;;  %v2534_v63 = vcvt.s32.f32 %v2527_v62 }
 0x3ce   : > { %v5570_v2 = vsel %vm5563_vm5, %v5566_v30, %v5569_v51  ;;  %v5842_v15 = vshrl.u32 %v5841_v55, 30  ;;  %v2361_v29 = vshrl.u32 %v2360_v19, 5  ;;  %v2366_v49 = vshrl.u32 %v9402_v54, %v2363_v1 }
 0x3cf   : > { %v5571_v44 = vsel %vm5560_vm12, nan, %v5570_v2  ;;  %v2532_v32 = vand.u32 2147483647, %v2531_v5  ;;  %v2369_v42 = vshrl.u32 %v9403_v56, %v2363_v1  ;;  %v2372_v21 = vshrl.u32 %v9404_v58, %v2363_v1 }
 0x3d0   : > { %7593 = vst.msk [vmem:[%s9945_s25 + $0x160] sm:$0xff] %vm7548_vm14, %v5571_v44  ;;  %v5843_v37 = vshll.u32 %v5842_v15, 30  ;;  %v2371_v40 = vshll.u32 %v9403_v56, %v2362_v22  ;;  %v2375_v57 = vshrl.u32 %v9405_v60, %v2363_v1  ;;  %vm5782_vm7 = vcmp.lt.s32.totalorder %v12050_v27, 0 }
 0x3d1   : > { %v2535_v38 = vmul.f32 %v2534_v63, %v2532_v32  ;;  %v2365_v18 = vshll.u32 %v9401_v50, %v2362_v22  ;;  %v2368_v26 = vshll.u32 %v9402_v54, %v2362_v22  ;;  %v2374_v4 = vshll.u32 %v9404_v58, %v2362_v22 }
 0x3d2   : > { %v2378_v47 = vshrl.u32 %v9406_v3, %v2363_v1  ;;  %v12243_v53 = vand.u32 3, %v2545_v61  ;;  %v12245_v52 = vsub.s32 %v5840_v12, %v5843_v37  ;;  %v2373_v11 = vor.u32 %v2372_v21, %v2371_v40  ;;  %v12266_v61 = vpop.f32.mrb[18].mxu1 }
 0x3d3   : > { %v2536_v14 = vxor.u32 2147483648, %v2535_v38  ;;  %v2367_v7 = vor.u32 %v2366_v49, %v2365_v18  ;;  %v2370_v19 = vor.u32 %v2369_v42, %v2368_v26  ;;  %v2376_v13 = vor.u32 %v2375_v57, %v2374_v4 }
 0x3d4   : > { %v2377_v46 = vshll.u32 %v9405_v60, %v2362_v22  ;;  %v5846_v48 = vsub.s32 0, %v12245_v52  ;;  %v2364_v25 = vshrl.u32 %v9401_v50, %v2363_v1  ;;  %v2396_v24 = vshll.u32 %v2356_v8, 8 }
 0x3d5   : > { %v2537_v16 = vsel %vm2454_vm15, %v2536_v14, %v2535_v38  ;;  %v5866_v10 = vsub.s32 4, %v5842_v15  ;;  %vm2383_vm3 = vcmp.lt.s32.totalorder %v2361_v29, 4  ;;  %vm12257_vm6 = vcmp.le.f32.partialorder %v5780_v43, 0.7853982 }
 0x3d6   : > { %v2540_v20 = vsel %vm12177_vm9, %v11990_v17, %v2537_v16  ;;  %v2379_v36 = vor.u32 %v2378_v47, %v2377_v46  ;;  %v8382_v62 = vmin.u32 %v5846_v48, %v12245_v52  ;;  %vm2380_vm10 = vcmp.lt.s32.totalorder %v2361_v29, 1 }
 0x3d7   : > { %9143 = vcosq.f32 %v2540_v20  ;;  %v2385_v23 = vsel %vm2383_vm3, %v2373_v11, 2102212464  ;;  %vm2381_vm8 = vcmp.lt.s32.totalorder %v2361_v29, 2  ;;  %v2388_v12 = vsel %vm2380_vm10, %v2367_v7, %v2370_v19 }
 0x3d8   : > { %9145 = vsinq.f32 %v2540_v20  ;;  %v2389_v35 = vsel %vm2383_vm3, %v2376_v13, 920167782  ;;  %v5848_v51 = vclz %v8382_v62  ;;  %vm2382_vm9 = vcmp.lt.s32.totalorder %v2361_v29, 3 }
 0x3d9   : > { %v2384_v1 = vsel %vm2380_vm10, %v2364_v25, %v2367_v7  ;;  %v2392_v30 = vsel %vm2380_vm10, %v2370_v19, %v2373_v11  ;;  %v2386_v5 = vsel %vm2382_vm9, %v2370_v19, %v2385_v23  ;;  %v2390_v55 = vsel %vm2382_vm9, %v2373_v11, %v2389_v35 }
 0x3da   : > { %v2393_v43 = vsel %vm2383_vm3, %v2379_v36, 1326507024  ;;  %v5679_v2 = vand.u32 2139095040, %v12222_v59  ;;  %v8383_v8 = vadd.s32 4294967294, %v5848_v51  ;;  %v5867_v44 = vsel %vm5782_vm7, %v5866_v10, %v5842_v15 }
 0x3db   : > { %v2391_v32 = vsel %vm2381_vm8, %v2388_v12, %v2390_v55  ;;  %v2394_v63 = vsel %vm2382_vm9, %v2376_v13, %v2393_v43  ;;  %v2387_v37 = vsel %vm2381_vm8, %v2384_v1, %v2386_v5  ;;  %vm2547_vm0 = vcmp.lt.s32.totalorder %v12243_v53, 2 }
 0x3dc   : > { %v2395_v49 = vsel %vm2381_vm8, %v2392_v30, %v2394_v63  ;;  %v12272_v42 = vmul.u32.u64.low %v2396_v24, %v2391_v32  ;;  %v12273_v21 = vmul.u32.u64.high %v2396_v24, %v2391_v32, %v12272_v42  ;;  %v5680_v38 = vshrl.u32 %v5679_v2, 23 }
 0x3dd   : > { %vm8384_vm11 = vcmp.lt.s32.totalorder %v8383_v8, 0  ;;  %v12277_v40 = vmul.u32.u64.low %v2396_v24, %v2395_v49  ;;  %v12278_v57 = vmul.u32.u64.high %v2396_v24, %v2395_v49, %v12277_v40  ;;  %vm2548_vm12 = vcmp.eq.s32.totalorder %v12243_v53, 0 }
 0x3de   : > { %v5851_v15 = vsel %vm8384_vm11, 0, %v8383_v8  ;;  %v8377_v18 = vadd.s32 4294967169, %v5680_v38  ;;  %v5836_v26 = vadd.s32 %v12184_v9, %v12190_v0  ;;  %v5676_v14 = vand.u32 2147483647, %v12222_v59 }
 0x3df   : > { %v5852_v4 = vsub.s32 32, %v5851_v15  ;;  %v5856_v47 = vsub.s32 4294967266, %v5851_v15  ;;  %v5869_v29 = vsel %vm12257_vm6, 0, %v5867_v44  ;;  %v2403_v11 = vmul.u32 %v2396_v24, %v2387_v37 }
 0x3e0   : > { %v2406_v7 = vadd.s32 1, %v12273_v21  ;;  %v5686_v19 = vadd.s32 1, %v8377_v18  ;;  %v5853_v46 = vshll.u32 %v12245_v52, %v5851_v15  ;;  %vm2405_vm13 = vc.u32 %v12278_v57, %v12272_v42 }
 0x3e1   : > { %v9144_v13 = vpop.eup %9143  ;;  %v5854_v16 = vshrl.u32 %v5836_v26, %v5852_v4  ;;  %v5857_v48 = vadd.s32 127, %v5856_v47  ;;  %vm2551_vm15 = vcmp.eq.s32.totalorder %v12243_v53, 2  ;;  %v5873_v23 = vadd.s32 3, %v5869_v29 }
 0x3e2   : > { %v9146_v9 = vpop.eup %9145  ;;  %v2552_v0 = vxor.u32 2147483648, %v9144_v13  ;;  %v2407_v25 = vsel %vm2405_vm13, %v2406_v7, %v12273_v21  ;;  %vm5687_vm1 = vcmp.gt.s32.totalorder %v5686_v19, 0  ;;  %v5683_v52 = vand.u32 8388607, %v5676_v14 }
 0x3e3   : > { %v2549_v20 = vxor.u32 2147483648, %v9146_v9  ;;  %v5855_v24 = vor.u32 %v5854_v16, %v5853_v46  ;;  %v5858_v10 = vshll.u32 %v5857_v48, 23  ;;  %v2408_v36 = vadd.s32 %v2407_v25, %v2403_v11 }
 0x3e4   : > { %v2553_v62 = vsel %vm2551_vm15, %v2552_v0, %v9146_v9  ;;  %v5688_v12 = vsel %vm5687_vm1, %v5686_v19, 0  ;;  %v2663_v30 = vand.u32 2139095040, %v12227_v39  ;;  %vm2544_vm4 = vweird.f32 %v11990_v17 }
 0x3e5   : > { %v2550_v35 = vsel %vm2548_vm12, %v9144_v13, %v2549_v20  ;;  %v5859_v51 = vor.u32 4788187, %v5858_v10  ;;  %v2409_v1 = vadd.s32 536870912, %v2408_v36  ;;  %v5690_v55 = vand.u32 31, %v5688_v12 }
 0x3e6   : > { %v2554_v5 = vsel %vm2547_vm0, %v2550_v35, %v2553_v62  ;;  %v5862_v8 = vcvt.s32.f32 %v5855_v24  ;;  %v12305_v32 = vand.u32 3, %v5873_v23  ;;  %v5684_v63 = vor.u32 8388608, %v5683_v52 }
 0x3e7   : > { %v2555_v43 = vsel %vm2544_vm4, nan, %v2554_v5  ;;  %v5860_v2 = vand.u32 2147483647, %v5859_v51  ;;  %v12301_v44 = vshrl.u32 %v2409_v1, 30  ;;  %v5691_v49 = vsub.s32 32, %v5690_v55 }
 0x3e8   : > { %7564 = vst.msk [vmem:[%s9945_s25 + $0x78] sm:$0xff] %vm7548_vm14, %v2555_v43  ;;  %v2660_v21 = vand.u32 2147483647, %v12227_v39  ;;  %v5693_v53 = vshll.u32 %v9401_v50, %v5690_v55  ;;  %v2664_v37 = vshrl.u32 %v2663_v30, 23  ;;  %v5696_v15 = vshll.u32 %v9402_v54, %v5690_v55 }
 0x3e9   : > { %v5863_v38 = vmul.f32 %v5862_v8, %v5860_v2  ;;  %v2411_v17 = vshll.u32 %v12301_v44, 30  ;;  %v5694_v40 = vshrl.u32 %v9402_v54, %v5691_v49  ;;  %v5697_v18 = vshrl.u32 %v9403_v56, %v5691_v49 }
 0x3ea   : > { %v5700_v26 = vshrl.u32 %v9404_v58, %v5691_v49  ;;  %v5699_v29 = vshll.u32 %v9403_v56, %v5690_v55  ;;  %v5703_v11 = vshrl.u32 %v9405_v60, %v5691_v49  ;;  %v5689_v7 = vshrl.u32 %v5688_v12, 5 }
 0x3eb   : > { %v5864_v4 = vxor.u32 2147483648, %v5863_v38  ;;  %v12314_v47 = vsub.s32 %v2408_v36, %v2411_v17  ;;  %v5695_v19 = vor.u32 %v5694_v40, %v5693_v53  ;;  %v5702_v13 = vshll.u32 %v9404_v58, %v5690_v55 }
 0x3ec   : > { %v12319_v46 = vshll.u32 %v5684_v63, 8  ;;  %v5698_v9 = vor.u32 %v5697_v18, %v5696_v15  ;;  %v5701_v0 = vor.u32 %v5700_v26, %v5699_v29  ;;  %vm2350_vm2 = vcmp.lt.s32.totalorder %v12060_v41, 0  ;;  %v12360_v29 = vpop.f32.mrb[19].mxu0 }
 0x3ed   : > { %v5865_v16 = vsel %vm5782_vm7, %v5864_v4, %v5863_v38  ;;  %v2414_v48 = vsub.s32 0, %v12314_v47  ;;  %v5704_v20 = vor.u32 %v5703_v11, %v5702_v13  ;;  %v5705_v24 = vshll.u32 %v9405_v60, %v5690_v55 }
 0x3ee   : > { %v5868_v25 = vsel %vm12257_vm6, %v12050_v27, %v5865_v16  ;;  %v5706_v10 = vshrl.u32 %v9406_v3, %v5691_v49  ;;  %v2404_v36 = vadd.s32 %v12272_v42, %v12278_v57  ;;  %v8261_v23 = vadd.s32 4294967169, %v2664_v37 }
 0x3ef   : > { %9147 = vcosq.f32 %v5868_v25  ;;  %v8250_v62 = vmin.u32 %v2414_v48, %v12314_v47  ;;  %v2434_v52 = vsub.s32 4, %v12301_v44  ;;  %v5692_v22 = vshrl.u32 %v9401_v50, %v5691_v49 }
 0x3f0   : > { %9149 = vsinq.f32 %v5868_v25  ;;  %v5707_v12 = vor.u32 %v5706_v10, %v5705_v24  ;;  %vm12337_vm5 = vcmp.le.f32.partialorder %v2348_v34, 0.7853982  ;;  %vm5708_vm7 = vcmp.lt.s32.totalorder %v5689_v7, 1 }
 0x3f1   : > { %v2416_v51 = vclz %v8250_v62  ;;  %vm5709_vm3 = vcmp.lt.s32.totalorder %v5689_v7, 2  ;;  %vm5711_vm6 = vcmp.lt.s32.totalorder %v5689_v7, 4  ;;  %vm5710_vm10 = vcmp.lt.s32.totalorder %v5689_v7, 3 }
 0x3f2   : > { %v5713_v42 = vsel %vm5711_vm6, %v5701_v0, 2102212464  ;;  %v5716_v57 = vsel %vm5708_vm7, %v5695_v19, %v5698_v9  ;;  %v5717_v1 = vsel %vm5711_vm6, %v5704_v20, 920167782  ;;  %vm5879_vm8 = vcmp.eq.s32.totalorder %v12305_v32, 2 }
 0x3f3   : > { %v8251_v30 = vadd.s32 4294967294, %v2416_v51  ;;  %v5712_v5 = vsel %vm5708_vm7, %v5692_v22, %v5695_v19  ;;  %v5718_v55 = vsel %vm5710_vm10, %v5701_v0, %v5717_v1  ;;  %v5720_v43 = vsel %vm5708_vm7, %v5698_v9, %v5701_v0 }
 0x3f4   : > { %vm5876_vm9 = vcmp.eq.s32.totalorder %v12305_v32, 0  ;;  %v5714_v34 = vsel %vm5710_vm10, %v5698_v9, %v5713_v42  ;;  %v5719_v2 = vsel %vm5709_vm3, %v5716_v57, %v5718_v55  ;;  %v5721_v8 = vsel %vm5711_vm6, %v5707_v12, 1326507024 }
 0x3f5   : > { %v2670_v63 = vadd.s32 1, %v8261_v23  ;;  %vm5875_vm11 = vcmp.lt.s32.totalorder %v12305_v32, 2  ;;  %vm8252_vm0 = vcmp.lt.s32.totalorder %v8251_v30, 0  ;;  %v5722_v49 = vsel %vm5710_vm10, %v5704_v20, %v5721_v8 }
 0x3f6   : > { %v12349_v38 = vmul.u32.u64.low %v12319_v46, %v5719_v2  ;;  %v12350_v17 = vmul.u32.u64.high %v12319_v46, %v5719_v2, %v12349_v38  ;;  %vm5872_vm12 = vweird.f32 %v12050_v27  ;;  %v2419_v53 = vsel %vm8252_vm0, 0, %v8251_v30 }
 0x3f7   : > { %v5723_v37 = vsel %vm5709_vm3, %v5720_v43, %v5722_v49  ;;  %v2667_v40 = vand.u32 8388607, %v2660_v21  ;;  %vm2671_vm13 = vcmp.gt.s32.totalorder %v2670_v63, 0  ;;  %v2420_v15 = vsub.s32 32, %v2419_v53 }
 0x3f8   : > { %v2424_v18 = vsub.s32 4294967266, %v2419_v53  ;;  %v2435_v26 = vsel %vm2350_vm2, %v2434_v52, %v12301_v44  ;;  %v2672_v4 = vsel %vm2671_vm13, %v2670_v63, 0  ;;  %v5715_v11 = vsel %vm5709_vm3, %v5712_v5, %v5714_v34 }
 0x3f9   : > { %v12364_v19 = vmul.u32.u64.low %v12319_v46, %v5723_v37  ;;  %v12365_v13 = vmul.u32.u64.high %v12319_v46, %v5723_v37, %v12364_v19  ;;  %v2674_v16 = vand.u32 31, %v2672_v4  ;;  %v9148_v48 = vpop.eup %9147  ;;  %v2421_v9 = vshll.u32 %v12314_v47, %v2419_v53 }
 0x3fa   : > { %v2422_v0 = vshrl.u32 %v2404_v36, %v2420_v15  ;;  %v2425_v25 = vadd.s32 127, %v2424_v18  ;;  %v5734_v20 = vadd.s32 1, %v12350_v17  ;;  %v9150_v24 = vpop.eup %9149  ;;  %v5880_v10 = vxor.u32 2147483648, %v9148_v48 }
 0x3fb   : > { %v2437_v44 = vsel %vm12337_vm5, 0, %v2435_v26  ;;  %v2668_v62 = vor.u32 8388608, %v2667_v40  ;;  %v2675_v7 = vsub.s32 32, %v2674_v16  ;;  %v5877_v23 = vxor.u32 2147483648, %v9150_v24 }
 0x3fc   : > { %v2423_v52 = vor.u32 %v2422_v0, %v2421_v9  ;;  %v2426_v22 = vshll.u32 %v2425_v25, 23  ;;  %v5731_v12 = vmul.u32 %v12319_v46, %v5715_v11  ;;  %v5881_v51 = vsel %vm5879_vm8, %v5880_v10, %v9150_v24 }
 0x3fd   : > { %vm5733_vm15 = vc.u32 %v12365_v13, %v12349_v38  ;;  %v12376_v47 = vshrl.u32 %v2672_v4, 5  ;;  %v2677_v36 = vshll.u32 %v9401_v50, %v2674_v16  ;;  %v5878_v42 = vsel %vm5876_vm9, %v9148_v48, %v5877_v23 }
 0x3fe   : > { %v2427_v57 = vor.u32 4788187, %v2426_v22  ;;  %v5735_v1 = vsel %vm5733_vm15, %v5734_v20, %v12350_v17  ;;  %v2680_v30 = vshll.u32 %v9402_v54, %v2674_v16  ;;  %v5882_v46 = vsel %vm5875_vm11, %v5878_v42, %v5881_v51 }
 0x3ff   : > { %v5736_v5 = vadd.s32 %v5735_v1, %v5731_v12  ;;  %v2678_v55 = vshrl.u32 %v9402_v54, %v2675_v7  ;;  %v2681_v43 = vshrl.u32 %v9403_v56, %v2675_v7  ;;  %v5883_v34 = vsel %vm5872_vm12, nan, %v5882_v46 }
 0x400   : > { %v2428_v2 = vand.u32 2147483647, %v2427_v57  ;;  %v2430_v8 = vcvt.s32.f32 %v2423_v52  ;;  %v2684_v63 = vshrl.u32 %v9404_v58, %v2675_v7  ;;  %7596 = vst.msk [vmem:[%s9945_s25 + $0x178] sm:$0xff] %vm7548_vm14, %v5883_v34  ;;  %v2683_v17 = vshll.u32 %v9403_v56, %v2674_v16  ;;  %v12444_v34 = vpop.f32.mrb[19].mxu1 }
 0x401   : > { %v5737_v49 = vadd.s32 536870912, %v5736_v5  ;;  %v2686_v32 = vshll.u32 %v9404_v58, %v2674_v16  ;;  %v2687_v53 = vshrl.u32 %v9405_v60, %v2675_v7  ;;  %v2679_v40 = vor.u32 %v2678_v55, %v2677_v36 }
 0x402   : > { %v2431_v37 = vmul.f32 %v2430_v8, %v2428_v2  ;;  %v2682_v15 = vor.u32 %v2681_v43, %v2680_v30  ;;  %v2690_v18 = vshrl.u32 %v9406_v3, %v2675_v7  ;;  %v2441_v11 = vadd.s32 3, %v2437_v44 }
 0x403   : > { %v5738_v27 = vshrl.u32 %v5737_v49, 30  ;;  %v2688_v26 = vor.u32 %v2687_v53, %v2686_v32  ;;  %v2685_v19 = vor.u32 %v2684_v63, %v2683_v17  ;;  %v2689_v48 = vshll.u32 %v9405_v60, %v2674_v16 }
 0x404   : > { %v2432_v4 = vxor.u32 2147483648, %v2431_v37  ;;  %vm2692_vm1 = vcmp.lt.s32.totalorder %v12376_v47, 1  ;;  %vm2695_vm4 = vcmp.lt.s32.totalorder %v12376_v47, 4  ;;  %v12399_v0 = vshll.u32 %v2668_v62, 8 }
 0x405   : > { %v5739_v9 = vshll.u32 %v5738_v27, 30  ;;  %v2691_v20 = vor.u32 %v2690_v18, %v2689_v48  ;;  %v2700_v24 = vsel %vm2692_vm1, %v2679_v40, %v2682_v15  ;;  %v2701_v10 = vsel %vm2695_vm4, %v2688_v26, 920167782 }
 0x406   : > { %v2433_v25 = vsel %vm2350_vm2, %v2432_v4, %v2431_v37  ;;  %v2676_v23 = vshrl.u32 %v9401_v50, %v2675_v7  ;;  %vm2694_vm7 = vcmp.lt.s32.totalorder %v12376_v47, 3  ;;  %vm2693_vm2 = vcmp.lt.s32.totalorder %v12376_v47, 2 }
 0x407   : > { %v2436_v16 = vsel %vm12337_vm5, %v12060_v41, %v2433_v25  ;;  %v12410_v44 = vsub.s32 %v5736_v5, %v5739_v9  ;;  %v2697_v62 = vsel %vm2695_vm4, %v2685_v19, 2102212464  ;;  %v2702_v52 = vsel %vm2694_vm7, %v2685_v19, %v2701_v10 }
 0x408   : > { %9151 = vcosq.f32 %v2436_v16  ;;  %v2703_v35 = vsel %vm2693_vm2, %v2700_v24, %v2702_v52  ;;  %v2704_v7 = vsel %vm2692_vm1, %v2682_v15, %v2685_v19  ;;  %v5762_v12 = vsub.s32 4, %v5738_v27 }
 0x409   : > { %9153 = vsinq.f32 %v2436_v16  ;;  %v5742_v22 = vsub.s32 0, %v12410_v44  ;;  %v2705_v51 = vsel %vm2695_vm4, %v2691_v20, 1326507024  ;;  %v2442_v57 = vand.u32 3, %v2441_v11 }
 0x40a   : > { %v12427_v36 = vmul.u32.u64.low %v12399_v0, %v2703_v35  ;;  %v12428_v42 = vmul.u32.u64.high %v12399_v0, %v2703_v35, %v12427_v36  ;;  %v2706_v30 = vsel %vm2694_vm7, %v2688_v26, %v2705_v51  ;;  %v2696_v46 = vsel %vm2692_vm1, %v2676_v23, %v2679_v40 }
 0x40b   : > { %v8378_v1 = vmin.u32 %v5742_v22, %v12410_v44  ;;  %v2698_v5 = vsel %vm2694_vm7, %v2682_v15, %v2697_v62  ;;  %v2707_v55 = vsel %vm2693_vm2, %v2704_v7, %v2706_v30  ;;  %v12442_v43 = vadd.f32 %v12218_v33, %v11992_v45 }
 0x40c   : > { %vm5678_vm5 = vcmp.lt.s32.totalorder %v12222_v59, 0  ;;  %v12450_v63 = vmul.u32.u64.low %v12399_v0, %v2707_v55  ;;  %v12451_v49 = vmul.u32.u64.high %v12399_v0, %v2707_v55, %v12450_v63  ;;  %vm2440_vm3 = vweird.f32 %v12060_v41 }
 0x40d   : > { %v5744_v2 = vclz %v8378_v1  ;;  %v5763_v8 = vsel %vm5678_vm5, %v5762_v12, %v5738_v27  ;;  %v2699_v32 = vsel %vm2693_vm2, %v2696_v46, %v2698_v5  ;;  %v5991_v45 = vand.u32 2139095040, %v12442_v43 }
 0x40e   : > { %v12459_v53 = vadd.f32 %v12218_v33, %v12043_v6  ;;  %vm2444_vm6 = vcmp.eq.s32.totalorder %v2442_v57, 0  ;;  %vm2447_vm10 = vcmp.eq.s32.totalorder %v2442_v57, 2  ;;  %vm12463_vm8 = vcmp.le.f32.partialorder %v5676_v14, 0.7853982 }
 0x40f   : > { %v8379_v17 = vadd.s32 4294967294, %v5744_v2  ;;  %v2718_v40 = vadd.s32 1, %v12428_v42  ;;  %v5732_v47 = vadd.s32 %v12349_v38, %v12365_v13  ;;  %v5765_v15 = vsel %vm12463_vm8, 0, %v5763_v8 }
 0x410   : > { %v5992_v18 = vshrl.u32 %v5991_v45, 23  ;;  %v2715_v26 = vmul.u32 %v12399_v0, %v2699_v32  ;;  %vm2717_vm11 = vc.u32 %v12451_v49, %v12427_v36  ;;  %v5988_v14 = vand.u32 2147483647, %v12442_v43 }
 0x411   : > { %vm8380_vm9 = vcmp.lt.s32.totalorder %v8379_v17, 0  ;;  %v2559_v38 = vand.u32 2139095040, %v12459_v53  ;;  %v2719_v25 = vsel %vm2717_vm11, %v2718_v40, %v12428_v42  ;;  %vm2443_vm0 = vcmp.lt.s32.totalorder %v2442_v57, 2 }
 0x412   : > { %v9152_v6 = vpop.eup %9151  ;;  %v5747_v27 = vsel %vm8380_vm9, 0, %v8379_v17  ;;  %v8389_v20 = vadd.s32 4294967169, %v5992_v18  ;;  %v2720_v16 = vadd.s32 %v2719_v25, %v2715_v26  ;;  %v5769_v62 = vadd.s32 3, %v5765_v15 }
 0x413   : > { %v9154_v4 = vpop.eup %9153  ;;  %v2448_v11 = vxor.u32 2147483648, %v9152_v6  ;;  %v5748_v19 = vsub.s32 32, %v5747_v27  ;;  %v5752_v48 = vsub.s32 4294967266, %v5747_v27  ;;  %v5749_v9 = vshll.u32 %v12410_v44, %v5747_v27 }
 0x414   : > { %v2445_v13 = vxor.u32 2147483648, %v9154_v4  ;;  %v5998_v52 = vadd.s32 1, %v8389_v20  ;;  %v2721_v12 = vadd.s32 536870912, %v2720_v16  ;;  %v5995_v51 = vand.u32 8388607, %v5988_v14 }
 0x415   : > { %v2449_v0 = vsel %vm2447_vm10, %v2448_v11, %v9154_v4  ;;  %v5750_v24 = vshrl.u32 %v5732_v47, %v5748_v19  ;;  %v5753_v10 = vadd.s32 127, %v5752_v48  ;;  %v2560_v57 = vshrl.u32 %v2559_v38, 23 }
 0x416   : > { %v2446_v23 = vsel %vm2444_vm6, %v9152_v6, %v2445_v13  ;;  %vm5999_vm12 = vcmp.gt.s32.totalorder %v5998_v52, 0  ;;  %v2722_v1 = vshrl.u32 %v2721_v12, 30  ;;  %v12487_v46 = vand.u32 3, %v5769_v62 }
 0x417   : > { %v2450_v22 = vsel %vm2443_vm0, %v2446_v23, %v2449_v0  ;;  %v5751_v35 = vor.u32 %v5750_v24, %v5749_v9  ;;  %v5754_v7 = vshll.u32 %v5753_v10, 23  ;;  %v6000_v30 = vsel %vm5999_vm12, %v5998_v52, 0 }
 0x418   : > { %v2451_v44 = vsel %vm2440_vm3, nan, %v2450_v22  ;;  %v6002_v5 = vand.u32 31, %v6000_v30  ;;  %vm2662_vm13 = vcmp.lt.s32.totalorder %v12227_v39, 0  ;;  %v2723_v8 = vshll.u32 %v2722_v1, 30 }
 0x419   : > { %7563 = vst.msk [vmem:[%s9945_s25 + $0x70] sm:$0xff] %vm7548_vm14, %v2451_v44  ;;  %v5755_v42 = vor.u32 4788187, %v5754_v7  ;;  %v5758_v2 = vcvt.s32.f32 %v5751_v35  ;;  %v12492_v41 = vadd.f32 %v12218_v33, %v12106_v28  ;;  %v2716_v63 = vadd.s32 %v12427_v36, %v12451_v49 }
 0x41a   : > { %v5996_v17 = vor.u32 8388608, %v5995_v51  ;;  %v6003_v32 = vsub.s32 32, %v6002_v5  ;;  %v2556_v45 = vand.u32 2147483647, %v12459_v53  ;;  %v12497_v47 = vsub.s32 %v2720_v16, %v2723_v8 }
 0x41b   : > { %v5756_v55 = vand.u32 2147483647, %v5755_v42  ;;  %v12499_v15 = vshrl.u32 %v6000_v30, 5  ;;  %v8257_v18 = vadd.s32 4294967169, %v2560_v57  ;;  %v2746_v6 = vsub.s32 4, %v2722_v1 }
 0x41c   : > { %v6005_v27 = vshll.u32 %v9401_v50, %v6002_v5  ;;  %v6006_v26 = vshrl.u32 %v9402_v54, %v6003_v32  ;;  %v6009_v28 = vshrl.u32 %v9403_v56, %v6003_v32  ;;  %v2726_v36 = vsub.s32 0, %v12497_v47 }
 0x41d   : > { %v5759_v40 = vmul.f32 %v5758_v2, %v5756_v55  ;;  %v6008_v49 = vshll.u32 %v9402_v54, %v6002_v5  ;;  %v6012_v11 = vshrl.u32 %v9404_v58, %v6003_v32  ;;  %v6011_v48 = vshll.u32 %v9403_v56, %v6002_v5 }
 0x41e   : > { %v6007_v19 = vor.u32 %v6006_v26, %v6005_v27  ;;  %v6014_v38 = vshll.u32 %v9404_v58, %v6002_v5  ;;  %v6015_v13 = vshrl.u32 %v9405_v60, %v6003_v32  ;;  %v8262_v25 = vmin.u32 %v2726_v36, %v12497_v47 }
 0x41f   : > { %v5760_v4 = vxor.u32 2147483648, %v5759_v40  ;;  %v6010_v20 = vor.u32 %v6009_v28, %v6008_v49  ;;  %v6017_v0 = vshll.u32 %v9405_v60, %v6002_v5  ;;  %v6013_v10 = vor.u32 %v6012_v11, %v6011_v48  ;;  %v12555_v11 = vpop.f32.mrb[20].mxu0 }
 0x420   : > { %v6016_v16 = vor.u32 %v6015_v13, %v6014_v38  ;;  %v6018_v23 = vshrl.u32 %v9406_v3, %v6003_v32  ;;  %v2728_v62 = vclz %v8262_v25  ;;  %v12518_v52 = vshll.u32 %v5996_v17, 8 }
 0x421   : > { %v5761_v9 = vsel %vm5678_vm5, %v5760_v4, %v5759_v40  ;;  %v2566_v22 = vadd.s32 1, %v8257_v18  ;;  %vm12522_vm15 = vcmp.le.f32.partialorder %v2660_v21, 0.7853982  ;;  %v2747_v37 = vsel %vm2662_vm13, %v2746_v6, %v2722_v1 }
 0x422   : > { %v5764_v24 = vsel %vm12463_vm8, %v12222_v59, %v5761_v9  ;;  %v6004_v7 = vshrl.u32 %v9401_v50, %v6003_v32  ;;  %v6019_v12 = vor.u32 %v6018_v23, %v6017_v0  ;;  %v8263_v44 = vadd.s32 4294967294, %v2728_v62 }
 0x423   : > { %9155 = vcosq.f32 %v5764_v24  ;;  %vm6020_vm1 = vcmp.lt.s32.totalorder %v12499_v15, 1  ;;  %vm6022_vm4 = vcmp.lt.s32.totalorder %v12499_v15, 3  ;;  %vm6023_vm7 = vcmp.lt.s32.totalorder %v12499_v15, 4 }
 0x424   : > { %9157 = vsinq.f32 %v5764_v24  ;;  %v6025_v51 = vsel %vm6023_vm7, %v6013_v10, 2102212464  ;;  %v6028_v42 = vsel %vm6020_vm1, %v6007_v19, %v6010_v20  ;;  %v6029_v30 = vsel %vm6023_vm7, %v6016_v16, 920167782 }
 0x425   : > { %v6032_v21 = vsel %vm6020_vm1, %v6010_v20, %v6013_v10  ;;  %vm8264_vm2 = vcmp.lt.s32.totalorder %v8263_v44, 0  ;;  %vm6021_vm5 = vcmp.lt.s32.totalorder %v12499_v15, 2  ;;  %v6030_v1 = vsel %vm6022_vm4, %v6013_v10, %v6029_v30 }
 0x426   : > { %v6033_v57 = vsel %vm6023_vm7, %v6019_v12, 1326507024  ;;  %v2731_v5 = vsel %vm8264_vm2, 0, %v8263_v44  ;;  %v6024_v55 = vsel %vm6020_vm1, %v6004_v7, %v6007_v19  ;;  %v6031_v2 = vsel %vm6021_vm5, %v6028_v42, %v6030_v1 }
 0x427   : > { %v6034_v8 = vsel %vm6022_vm4, %v6016_v16, %v6033_v57  ;;  %vm5771_vm3 = vcmp.lt.s32.totalorder %v12487_v46, 2  ;;  %v2732_v17 = vsub.s32 32, %v2731_v5  ;;  %v2736_v32 = vsub.s32 4294967266, %v2731_v5 }
 0x428   : > { %v6026_v40 = vsel %vm6022_vm4, %v6010_v20, %v6025_v51  ;;  %v6035_v18 = vsel %vm6021_vm5, %v6032_v21, %v6034_v8  ;;  %vm5768_vm6 = vweird.f32 %v12222_v59  ;;  %v2733_v4 = vshll.u32 %v12497_v47, %v2731_v5 }
 0x429   : > { %v12546_v6 = vmul.u32.u64.low %v12518_v52, %v6035_v18  ;;  %v12547_v27 = vmul.u32.u64.high %v12518_v52, %v6035_v18, %v12546_v6  ;;  %v12550_v26 = vmul.u32.u64.low %v12518_v52, %v6031_v2  ;;  %v12551_v28 = vmul.u32.u64.high %v12518_v52, %v6031_v2, %v12550_v26 }
 0x42a   : > { %v2734_v36 = vshrl.u32 %v2716_v63, %v2732_v17  ;;  %v2737_v49 = vadd.s32 127, %v2736_v32  ;;  %vm2567_vm10 = vcmp.gt.s32.totalorder %v2566_v22, 0  ;;  %vm5772_vm8 = vcmp.eq.s32.totalorder %v12487_v46, 0 }
 0x42b   : > { %v6027_v19 = vsel %vm6021_vm5, %v6024_v55, %v6026_v40  ;;  %v2563_v48 = vand.u32 8388607, %v2556_v45  ;;  %v2568_v38 = vsel %vm2567_vm10, %v2566_v22, 0  ;;  %v2749_v47 = vsel %vm12522_vm15, 0, %v2747_v37 }
 0x42c   : > { %v2735_v9 = vor.u32 %v2734_v36, %v2733_v4  ;;  %v2738_v25 = vshll.u32 %v2737_v49, 23  ;;  %v2570_v63 = vand.u32 31, %v2568_v38  ;;  %vm5775_vm9 = vcmp.eq.s32.totalorder %v12487_v46, 2 }
 0x42d   : > { %v9156_v13 = vpop.eup %9155  ;;  %vm6045_vm11 = vc.u32 %v12547_v27, %v12550_v26  ;;  %v6046_v15 = vadd.s32 1, %v12551_v28  ;;  %v6043_v16 = vmul.u32 %v12518_v52, %v6027_v19  ;;  %v2753_v22 = vadd.s32 3, %v2749_v47 }
 0x42e   : > { %v9158_v20 = vpop.eup %9157  ;;  %v5776_v0 = vxor.u32 2147483648, %v9156_v13  ;;  %v2739_v10 = vor.u32 4788187, %v2738_v25  ;;  %v2571_v23 = vsub.s32 32, %v2570_v63  ;;  %v2564_v7 = vor.u32 8388608, %v2563_v48 }
 0x42f   : > { %v5773_v24 = vxor.u32 2147483648, %v9158_v20  ;;  %v6047_v37 = vsel %vm6045_vm11, %v6046_v15, %v12551_v28  ;;  %v2742_v51 = vcvt.s32.f32 %v2735_v9  ;;  %v2573_v21 = vshll.u32 %v9401_v50, %v2570_v63 }
 0x430   : > { %v5777_v62 = vsel %vm5775_vm9, %v5776_v0, %v9158_v20  ;;  %v2740_v44 = vand.u32 2147483647, %v2739_v10  ;;  %v6048_v42 = vadd.s32 %v6047_v37, %v6043_v16  ;;  %v2574_v52 = vshrl.u32 %v9402_v54, %v2571_v23 }
 0x431   : > { %v5774_v12 = vsel %vm5772_vm8, %v9156_v13, %v5773_v24  ;;  %v2577_v1 = vshrl.u32 %v9403_v56, %v2571_v23  ;;  %v2580_v2 = vshrl.u32 %v9404_v58, %v2571_v23  ;;  %v2569_v8 = vshrl.u32 %v2568_v38, 5 }
 0x432   : > { %v5778_v30 = vsel %vm5771_vm3, %v5774_v12, %v5777_v62  ;;  %v2743_v5 = vmul.f32 %v2742_v51, %v2740_v44  ;;  %v6049_v55 = vadd.s32 536870912, %v6048_v42  ;;  %v2576_v17 = vshll.u32 %v9402_v54, %v2570_v63 }
 0x433   : > { %v5779_v57 = vsel %vm5768_vm6, nan, %v5778_v30  ;;  %v2579_v46 = vshll.u32 %v9403_v56, %v2570_v63  ;;  %v2583_v32 = vshrl.u32 %v9405_v60, %v2571_v23  ;;  %v2575_v6 = vor.u32 %v2574_v52, %v2573_v21 }
 0x434   : > { %7595 = vst.msk [vmem:[%s9945_s25 + $0x170] sm:$0xff] %vm7548_vm14, %v5779_v57  ;;  %v2744_v40 = vxor.u32 2147483648, %v2743_v5  ;;  %v6050_v18 = vshrl.u32 %v6049_v55, 30  ;;  %v2582_v28 = vshll.u32 %v9404_v58, %v2570_v63  ;;  %vm5990_vm0 = vcmp.lt.s32.totalorder %v12442_v43, 0 }
 0x435   : > { %v2578_v59 = vor.u32 %v2577_v1, %v2576_v17  ;;  %v2581_v4 = vor.u32 %v2580_v2, %v2579_v46  ;;  %v2585_v36 = vshll.u32 %v9405_v60, %v2570_v63  ;;  %v2586_v49 = vshrl.u32 %v9406_v3, %v2571_v23 }
 0x436   : > { %v2745_v19 = vsel %vm2662_vm13, %v2744_v40, %v2743_v5  ;;  %v12591_v48 = vand.u32 3, %v2753_v22  ;;  %v6051_v38 = vshll.u32 %v6050_v18, 30  ;;  %v2584_v13 = vor.u32 %v2583_v32, %v2582_v28 }
 0x437   : > { %v2748_v9 = vsel %vm12522_vm15, %v12227_v39, %v2745_v19  ;;  %v2572_v25 = vshrl.u32 %v9401_v50, %v2571_v23  ;;  %v2587_v47 = vor.u32 %v2586_v49, %v2585_v36  ;;  %v12597_v20 = vshll.u32 %v2564_v7, 8 }
 0x438   : > { %9159 = vcosq.f32 %v2748_v9  ;;  %v12599_v63 = vsub.s32 %v6048_v42, %v6051_v38  ;;  %vm2588_vm12 = vcmp.lt.s32.totalorder %v2569_v8, 1  ;;  %vm2591_vm1 = vcmp.lt.s32.totalorder %v2569_v8, 4 }
 0x439   : > { %9161 = vsinq.f32 %v2748_v9  ;;  %vm2589_vm13 = vcmp.lt.s32.totalorder %v2569_v8, 2  ;;  %v2593_v0 = vsel %vm2591_vm1, %v2581_v4, 2102212464  ;;  %v2596_v15 = vsel %vm2588_vm12, %v2575_v6, %v2578_v59 }
 0x43a   : > { %v6054_v24 = vsub.s32 0, %v12599_v63  ;;  %v6074_v10 = vsub.s32 4, %v6050_v18  ;;  %vm2590_vm4 = vcmp.lt.s32.totalorder %v2569_v8, 3  ;;  %v2597_v35 = vsel %vm2591_vm1, %v2584_v13, 920167782  ;;  %v12629_v8 = vpop.f32.mrb[20].mxu1 }
 0x43b   : > { %v2592_v16 = vsel %vm2588_vm12, %v2572_v25, %v2575_v6  ;;  %v2598_v62 = vsel %vm2590_vm4, %v2581_v4, %v2597_v35  ;;  %v2600_v23 = vsel %vm2588_vm12, %v2578_v59, %v2581_v4  ;;  %v2601_v22 = vsel %vm2591_vm1, %v2587_v47, 1326507024 }
 0x43c   : > { %v8390_v37 = vmin.u32 %v6054_v24, %v12599_v63  ;;  %v2594_v7 = vsel %vm2590_vm4, %v2578_v59, %v2593_v0  ;;  %v2599_v12 = vsel %vm2589_vm13, %v2596_v15, %v2598_v62  ;;  %v2602_v44 = vsel %vm2590_vm4, %v2584_v13, %v2601_v22 }
 0x43d   : > { %v2603_v51 = vsel %vm2589_vm13, %v2600_v23, %v2602_v44  ;;  %v12606_v42 = vmul.u32.u64.low %v12597_v20, %v2599_v12  ;;  %v12607_v30 = vmul.u32.u64.high %v12597_v20, %v2599_v12, %v12606_v42  ;;  %v5887_v21 = vand.u32 2139095040, %v12492_v41 }
 0x43e   : > { %v6056_v52 = vclz %v8390_v37  ;;  %v6075_v1 = vsel %vm5990_vm0, %v6074_v10, %v6050_v18  ;;  %v5884_v57 = vand.u32 2147483647, %v12492_v41  ;;  %v2595_v5 = vsel %vm2589_vm13, %v2592_v16, %v2594_v7 }
 0x43f   : > { %v12615_v55 = vmul.u32.u64.low %v12597_v20, %v2603_v51  ;;  %v12616_v2 = vmul.u32.u64.high %v12597_v20, %v2603_v51, %v12615_v55  ;;  %v5888_v17 = vshrl.u32 %v5887_v21, 23  ;;  %vm2755_vm15 = vcmp.lt.s32.totalorder %v12591_v48, 2 }
 0x440   : > { %vm12621_vm7 = vcmp.le.f32.partialorder %v5988_v14, 0.7853982  ;;  %v8391_v32 = vadd.s32 4294967294, %v6056_v52  ;;  %v12627_v40 = vadd.f32 %v12218_v33, %v12210_v31  ;;  %vm2756_vm2 = vcmp.eq.s32.totalorder %v12591_v48, 0 }
 0x441   : > { %vm2759_vm5 = vcmp.eq.s32.totalorder %v12591_v48, 2  ;;  %v2614_v18 = vadd.s32 1, %v12607_v30  ;;  %v8385_v6 = vadd.s32 4294967169, %v5888_v17  ;;  %v6044_v14 = vadd.s32 %v12550_v26, %v12547_v27 }
 0x442   : > { %v9160_v28 = vpop.eup %9159  ;;  %vm8392_vm3 = vcmp.lt.s32.totalorder %v8391_v32, 0  ;;  %v6077_v59 = vsel %vm12621_vm7, 0, %v6075_v1  ;;  %v2611_v31 = vmul.u32 %v12597_v20, %v2595_v5  ;;  %vm2613_vm6 = vc.u32 %v12616_v2, %v12606_v42 }
 0x443   : > { %v9162_v33 = vpop.eup %9161  ;;  %v2760_v4 = vxor.u32 2147483648, %v9160_v28  ;;  %v6059_v36 = vsel %vm8392_vm3, 0, %v8391_v32  ;;  %v5891_v49 = vand.u32 8388607, %v5884_v57  ;;  %v2871_v9 = vand.u32 2139095040, %v12627_v40 }
 0x444   : > { %v2757_v19 = vxor.u32 2147483648, %v9162_v33  ;;  %v6060_v38 = vsub.s32 32, %v6059_v36  ;;  %v6064_v13 = vsub.s32 4294967266, %v6059_v36  ;;  %v6061_v26 = vshll.u32 %v12599_v63, %v6059_v36 }
 0x445   : > { %v2761_v27 = vsel %vm2759_vm5, %v2760_v4, %v9162_v33  ;;  %v2615_v25 = vsel %vm2613_vm6, %v2614_v18, %v12607_v30  ;;  %v5894_v47 = vadd.s32 1, %v8385_v6  ;;  %vm2752_vm10 = vweird.f32 %v12227_v39 }
 0x446   : > { %v2758_v20 = vsel %vm2756_vm2, %v9160_v28, %v2757_v19  ;;  %v6062_v0 = vshrl.u32 %v6044_v14, %v6060_v38  ;;  %v6065_v15 = vadd.s32 127, %v6064_v13  ;;  %v2616_v24 = vadd.s32 %v2615_v25, %v2611_v31 }
 0x447   : > { %v2762_v10 = vsel %vm2755_vm15, %v2758_v20, %v2761_v27  ;;  %v6081_v35 = vadd.s32 3, %v6077_v59  ;;  %vm5895_vm8 = vcmp.gt.s32.totalorder %v5894_v47, 0  ;;  %v5892_v22 = vor.u32 8388608, %v5891_v49 }
 0x448   : > { %v2763_v16 = vsel %vm2752_vm10, nan, %v2762_v10  ;;  %v6063_v62 = vor.u32 %v6062_v0, %v6061_v26  ;;  %v6066_v23 = vshll.u32 %v6065_v15, 23  ;;  %v2617_v63 = vadd.s32 536870912, %v2616_v24 }
 0x449   : > { %7566 = vst.msk [vmem:[%s9945_s25 + $0x88] sm:$0xff] %vm7548_vm14, %v2763_v16  ;;  %v5896_v37 = vsel %vm5895_vm8, %v5894_v47, 0  ;;  %v2872_v44 = vshrl.u32 %v2871_v9, 23  ;;  %v12654_v39 = vand.u32 3, %v6081_v35  ;;  %vm2558_vm9 = vcmp.lt.s32.totalorder %v12459_v53, 0 }
 0x44a   : > { %v6067_v7 = vor.u32 4788187, %v6066_v23  ;;  %v2618_v12 = vshrl.u32 %v2617_v63, 30  ;;  %v5898_v51 = vand.u32 31, %v5896_v37  ;;  %v6070_v21 = vcvt.s32.f32 %v6063_v62 }
 0x44b   : > { %v12658_v52 = vadd.s32 %v12606_v42, %v12616_v2  ;;  %v12660_v5 = vshll.u32 %v5892_v22, 8  ;;  %v2868_v55 = vand.u32 2147483647, %v12627_v40  ;;  %v12665_v18 = vshrl.u32 %v5896_v37, 5 }
 0x44c   : > { %v6068_v30 = vand.u32 2147483647, %v6067_v7  ;;  %v2619_v48 = vshll.u32 %v2618_v12, 30  ;;  %v5899_v1 = vsub.s32 32, %v5898_v51  ;;  %v8269_v6 = vadd.s32 4294967169, %v2872_v44 }
 0x44d   : > { %v2642_v28 = vsub.s32 4, %v2618_v12  ;;  %v5901_v14 = vshll.u32 %v9401_v50, %v5898_v51  ;;  %vm12672_vm11 = vcmp.le.f32.partialorder %v2556_v45, 0.7853982  ;;  %v5904_v4 = vshll.u32 %v9402_v54, %v5898_v51 }
 0x44e   : > { %v6071_v17 = vmul.f32 %v6070_v21, %v6068_v30  ;;  %v12663_v32 = vsub.s32 %v2616_v24, %v2619_v48  ;;  %v5902_v59 = vshrl.u32 %v9402_v54, %v5899_v1  ;;  %v5905_v31 = vshrl.u32 %v9403_v56, %v5899_v1  ;;  %v12712_v48 = vpop.f32.mrb[21].mxu0 }
 0x44f   : > { %v5908_v36 = vshrl.u32 %v9404_v58, %v5899_v1  ;;  %v5907_v19 = vshll.u32 %v9403_v56, %v5898_v51  ;;  %v5910_v38 = vshll.u32 %v9404_v58, %v5898_v51  ;;  %v5911_v13 = vshrl.u32 %v9405_v60, %v5899_v1 }
 0x450   : > { %v6072_v42 = vxor.u32 2147483648, %v6071_v17  ;;  %v2622_v33 = vsub.s32 0, %v12663_v32  ;;  %v5903_v49 = vor.u32 %v5902_v59, %v5901_v14  ;;  %v5906_v27 = vor.u32 %v5905_v31, %v5904_v4 }
 0x451   : > { %v5913_v26 = vshll.u32 %v9405_v60, %v5898_v51  ;;  %v5909_v47 = vor.u32 %v5908_v36, %v5907_v19  ;;  %v5912_v20 = vor.u32 %v5911_v13, %v5910_v38  ;;  %v5914_v0 = vshrl.u32 %v9406_v3, %v5899_v1 }
 0x452   : > { %v6073_v9 = vsel %vm5990_vm0, %v6072_v42, %v6071_v17  ;;  %v8258_v45 = vmin.u32 %v2622_v33, %v12663_v32  ;;  %vm5916_vm12 = vcmp.lt.s32.totalorder %v12665_v18, 1  ;;  %v2878_v24 = vadd.s32 1, %v8269_v6 }
 0x453   : > { %v6076_v25 = vsel %vm12621_vm7, %v12442_v43, %v6073_v9  ;;  %v2643_v10 = vsel %vm2558_vm9, %v2642_v28, %v2618_v12  ;;  %v5900_v35 = vshrl.u32 %v9401_v50, %v5899_v1  ;;  %v5915_v16 = vor.u32 %v5914_v0, %v5913_v26 }
 0x454   : > { %9163 = vcosq.f32 %v6076_v25  ;;  %v2624_v15 = vclz %v8258_v45  ;;  %vm5918_vm0 = vcmp.lt.s32.totalorder %v12665_v18, 3  ;;  %vm5919_vm1 = vcmp.lt.s32.totalorder %v12665_v18, 4 }
 0x455   : > { %9165 = vsinq.f32 %v6076_v25  ;;  %v5924_v46 = vsel %vm5916_vm12, %v5903_v49, %v5906_v27  ;;  %v5921_v23 = vsel %vm5919_vm1, %v5909_v47, 2102212464  ;;  %v5925_v63 = vsel %vm5919_vm1, %v5912_v20, 920167782 }
 0x456   : > { %v8259_v62 = vadd.s32 4294967294, %v2624_v15  ;;  %v5928_v22 = vsel %vm5916_vm12, %v5906_v27, %v5909_v47  ;;  %v5929_v37 = vsel %vm5919_vm1, %v5915_v16, 1326507024  ;;  %vm5917_vm4 = vcmp.lt.s32.totalorder %v12665_v18, 2  ;;  %v12742_v18 = vld [vmem:[%s15263_s2] ss:$0 sm:$0xff] }
 0x457   : > { %v5926_v7 = vsel %vm5918_vm0, %v5909_v47, %v5925_v63  ;;  %v5930_v12 = vsel %vm5918_vm0, %v5912_v20, %v5929_v37  ;;  %vm6084_vm15 = vcmp.eq.s32.totalorder %v12654_v39, 0  ;;  %v2645_v51 = vsel %vm12672_vm11, 0, %v2643_v10 }
 0x458   : > { %vm8260_vm13 = vcmp.lt.s32.totalorder %v8259_v62, 0  ;;  %v5927_v30 = vsel %vm5917_vm4, %v5924_v46, %v5926_v7  ;;  %v5931_v21 = vsel %vm5917_vm4, %v5928_v22, %v5930_v12  ;;  %vm6083_vm7 = vcmp.lt.s32.totalorder %v12654_v39, 2 }
 0x459   : > { %v2627_v44 = vsel %vm8260_vm13, 0, %v8259_v62  ;;  %v5920_v6 = vsel %vm5916_vm12, %v5900_v35, %v5903_v49  ;;  %v5922_v28 = vsel %vm5918_vm0, %v5906_v27, %v5921_v23  ;;  %vm6080_vm2 = vweird.f32 %v12442_v43 }
 0x45a   : > { %v2628_v1 = vsub.s32 32, %v2627_v44  ;;  %v2632_v17 = vsub.s32 4294967266, %v2627_v44  ;;  %v12721_v14 = vmul.u32.u64.low %v12660_v5, %v5931_v21  ;;  %v12722_v59 = vmul.u32.u64.high %v12660_v5, %v5931_v21, %v12721_v14 }
 0x45b   : > { %v12725_v31 = vmul.u32.u64.low %v12660_v5, %v5927_v30  ;;  %v12726_v42 = vmul.u32.u64.high %v12660_v5, %v5927_v30, %v12725_v31  ;;  %v2629_v33 = vshll.u32 %v12663_v32, %v2627_v44  ;;  %vm2879_vm5 = vcmp.gt.s32.totalorder %v2878_v24, 0 }
 0x45c   : > { %v2630_v4 = vshrl.u32 %v12658_v52, %v2628_v1  ;;  %v2633_v36 = vadd.s32 127, %v2632_v17  ;;  %v2649_v49 = vadd.s32 3, %v2645_v51  ;;  %v5923_v19 = vsel %vm5917_vm4, %v5920_v6, %v5922_v28 }
 0x45d   : > { %v2875_v38 = vand.u32 8388607, %v2868_v55  ;;  %v2880_v13 = vsel %vm2879_vm5, %v2878_v24, 0  ;;  %vm6087_vm3 = vcmp.eq.s32.totalorder %v12654_v39, 2  ;;  %vm5941_vm6 = vc.u32 %v12722_v59, %v12725_v31 }
 0x45e   : > { %v9164_v9 = vpop.eup %9163  ;;  %v2631_v45 = vor.u32 %v2630_v4, %v2629_v33  ;;  %v2634_v27 = vshll.u32 %v2633_v36, 23  ;;  %v2882_v26 = vand.u32 31, %v2880_v13  ;;  %v5942_v52 = vadd.s32 1, %v12726_v42 }
 0x45f   : > { %v9166_v25 = vpop.eup %9165  ;;  %v6088_v32 = vxor.u32 2147483648, %v9164_v9  ;;  %v12746_v47 = vadd.f32 %v12742_v18, %v12266_v61  ;;  %v5939_v15 = vmul.u32 %v12660_v5, %v5923_v19  ;;  %v12749_v35 = vand.u32 3, %v2649_v49 }
 0x460   : > { %v6085_v20 = vxor.u32 2147483648, %v9166_v25  ;;  %v2635_v0 = vor.u32 4788187, %v2634_v27  ;;  %v2883_v24 = vsub.s32 32, %v2882_v26  ;;  %v5943_v16 = vsel %vm5941_vm6, %v5942_v52, %v12726_v42 }
 0x461   : > { %v6089_v10 = vsel %vm6087_vm3, %v6088_v32, %v9166_v25  ;;  %v2876_v62 = vor.u32 8388608, %v2875_v38  ;;  %v2638_v63 = vcvt.s32.f32 %v2631_v45  ;;  %v5944_v22 = vadd.s32 %v5943_v16, %v5939_v15 }
 0x462   : > { %v6086_v46 = vsel %vm6084_vm15, %v9164_v9, %v6085_v20  ;;  %v2636_v23 = vand.u32 2147483647, %v2635_v0  ;;  %v2885_v37 = vshll.u32 %v9401_v50, %v2882_v26  ;;  %v2886_v5 = vshrl.u32 %v9402_v54, %v2883_v24 }
 0x463   : > { %v6090_v61 = vsel %vm6083_vm7, %v6086_v46, %v6089_v10  ;;  %v2889_v7 = vshrl.u32 %v9403_v56, %v2883_v24  ;;  %v5945_v51 = vadd.s32 536870912, %v5944_v22  ;;  %v2892_v30 = vshrl.u32 %v9404_v58, %v2883_v24 }
 0x464   : > { %v6091_v12 = vsel %vm6080_vm2, nan, %v6090_v61  ;;  %v2639_v44 = vmul.f32 %v2638_v63, %v2636_v23  ;;  %v2881_v21 = vshrl.u32 %v2880_v13, 5  ;;  %v2888_v1 = vshll.u32 %v9402_v54, %v2882_v26 }
 0x465   : > { %7598 = vst.msk [vmem:[%s9945_s25 + $0x188] sm:$0xff] %vm7548_vm14, %v6091_v12  ;;  %v2891_v39 = vshll.u32 %v9403_v56, %v2882_v26  ;;  %v2895_v17 = vshrl.u32 %v9405_v60, %v2883_v24  ;;  %v5946_v28 = vshrl.u32 %v5945_v51, 30  ;;  %v2887_v14 = vor.u32 %v2886_v5, %v2885_v37 }
 0x466   : > { %v2640_v6 = vxor.u32 2147483648, %v2639_v44  ;;  %v2894_v42 = vshll.u32 %v9404_v58, %v2882_v26  ;;  %v2890_v43 = vor.u32 %v2889_v7, %v2888_v1  ;;  %v2897_v4 = vshll.u32 %v9405_v60, %v2882_v26  ;;  %v12789_v7 = vpop.f32.mrb[21].mxu1 }
 0x467   : > { %v2893_v33 = vor.u32 %v2892_v30, %v2891_v39  ;;  %v2898_v36 = vshrl.u32 %v9406_v3, %v2883_v24  ;;  %v5947_v19 = vshll.u32 %v5946_v28, 30  ;;  %v12772_v13 = vshll.u32 %v2876_v62, 8 }
 0x468   : > { %v2641_v49 = vsel %vm2558_vm9, %v2640_v6, %v2639_v44  ;;  %v2896_v38 = vor.u32 %v2895_v17, %v2894_v42  ;;  %v2884_v45 = vshrl.u32 %v9401_v50, %v2883_v24  ;;  %v6199_v25 = vand.u32 2139095040, %v12746_v47 }
 0x469   : > { %v2644_v9 = vsel %vm12672_vm11, %v12459_v53, %v2641_v49  ;;  %v2899_v27 = vor.u32 %v2898_v36, %v2897_v4  ;;  %v12779_v26 = vsub.s32 %v5944_v22, %v5947_v19  ;;  %vm2900_vm10 = vcmp.lt.s32.totalorder %v2881_v21, 1 }
 0x46a   : > { %9167 = vcosq.f32 %v2644_v9  ;;  %vm2903_vm8 = vcmp.lt.s32.totalorder %v2881_v21, 4  ;;  %vm2901_vm9 = vcmp.lt.s32.totalorder %v2881_v21, 2  ;;  %v2908_v52 = vsel %vm2900_vm10, %v2887_v14, %v2890_v43 }
 0x46b   : > { %9169 = vsinq.f32 %v2644_v9  ;;  %v2905_v32 = vsel %vm2903_vm8, %v2893_v33, 2102212464  ;;  %v5950_v20 = vsub.s32 0, %v12779_v26  ;;  %v5970_v0 = vsub.s32 4, %v5946_v28 }
 0x46c   : > { %vm2902_vm12 = vcmp.lt.s32.totalorder %v2881_v21, 3  ;;  %v2909_v2 = vsel %vm2903_vm8, %v2896_v38, 920167782  ;;  %v2904_v15 = vsel %vm2900_vm10, %v2884_v45, %v2887_v14  ;;  %v2912_v24 = vsel %vm2900_vm10, %v2890_v43, %v2893_v33 }
 0x46d   : > { %v2910_v10 = vsel %vm2902_vm12, %v2893_v33, %v2909_v2  ;;  %v2913_v16 = vsel %vm2903_vm8, %v2899_v27, 1326507024  ;;  %v8386_v62 = vmin.u32 %v5950_v20, %v12779_v26  ;;  %v2906_v46 = vsel %vm2902_vm12, %v2890_v43, %v2905_v32 }
 0x46e   : > { %v2911_v23 = vsel %vm2901_vm9, %v2908_v52, %v2910_v10  ;;  %v2914_v63 = vsel %vm2902_vm12, %v2896_v38, %v2913_v16  ;;  %v6200_v5 = vshrl.u32 %v6199_v25, 23  ;;  %vm12793_vm11 = vcmp.le.f32.partialorder %v5884_v57, 0.7853982 }
 0x46f   : > { %v2915_v22 = vsel %vm2901_vm9, %v2912_v24, %v2914_v63  ;;  %v12786_v61 = vmul.u32.u64.low %v12772_v13, %v2911_v23  ;;  %v12787_v37 = vmul.u32.u64.high %v12772_v13, %v2911_v23, %v12786_v61  ;;  %vm5886_vm0 = vcmp.lt.s32.totalorder %v12492_v41, 0 }
 0x470   : > { %v5952_v44 = vclz %v8386_v62  ;;  %vm2648_vm1 = vweird.f32 %v12459_v53  ;;  %v5971_v51 = vsel %vm5886_vm0, %v5970_v0, %v5946_v28  ;;  %v8397_v39 = vadd.s32 4294967169, %v6200_v5 }
 0x471   : > { %v12802_v30 = vmul.u32.u64.low %v12772_v13, %v2915_v22  ;;  %v12803_v1 = vmul.u32.u64.high %v12772_v13, %v2915_v22, %v12802_v30  ;;  %v2907_v6 = vsel %vm2901_vm9, %v2904_v15, %v2906_v46  ;;  %v6196_v57 = vand.u32 2147483647, %v12746_v47 }
 0x472   : > { %v8387_v17 = vadd.s32 4294967294, %v5952_v44  ;;  %v12809_v14 = vadd.f32 %v12742_v18, %v12360_v29  ;;  %vm2651_vm13 = vcmp.lt.s32.totalorder %v12749_v35, 2  ;;  %vm2652_vm4 = vcmp.eq.s32.totalorder %v12749_v35, 0 }
 0x473   : > { %v2926_v28 = vadd.s32 1, %v12787_v37  ;;  %v6206_v42 = vadd.s32 1, %v8397_v39  ;;  %vm2655_vm15 = vcmp.eq.s32.totalorder %v12749_v35, 2  ;;  %v5940_v21 = vadd.s32 %v12725_v31, %v12722_v59 }
 0x474   : > { %v9168_v43 = vpop.eup %9167  ;;  %vm8388_vm7 = vcmp.lt.s32.totalorder %v8387_v17, 0  ;;  %v5973_v33 = vsel %vm12793_vm11, 0, %v5971_v51  ;;  %v2923_v49 = vmul.u32 %v12772_v13, %v2907_v6  ;;  %vm2925_vm2 = vc.u32 %v12803_v1, %v12786_v61 }
 0x475   : > { %v9170_v4 = vpop.eup %9169  ;;  %v2656_v29 = vxor.u32 2147483648, %v9168_v43  ;;  %v5955_v36 = vsel %vm8388_vm7, 0, %v8387_v17  ;;  %v6203_v45 = vand.u32 8388607, %v6196_v57  ;;  %v2927_v31 = vsel %vm2925_vm2, %v2926_v28, %v12787_v37 }
 0x476   : > { %v2653_v19 = vxor.u32 2147483648, %v9170_v4  ;;  %v5956_v38 = vsub.s32 32, %v5955_v36  ;;  %v5960_v9 = vsub.s32 4294967266, %v5955_v36  ;;  %v5957_v59 = vshll.u32 %v12779_v26, %v5955_v36 }
 0x477   : > { %v2657_v27 = vsel %vm2655_vm15, %v2656_v29, %v9170_v4  ;;  %vm6207_vm5 = vcmp.gt.s32.totalorder %v6206_v42, 0  ;;  %v2928_v52 = vadd.s32 %v2927_v31, %v2923_v49  ;;  %v5977_v0 = vadd.s32 3, %v5973_v33 }
 0x478   : > { %v2654_v25 = vsel %vm2652_vm4, %v9168_v43, %v2653_v19  ;;  %v5958_v32 = vshrl.u32 %v5940_v21, %v5956_v38  ;;  %v5961_v13 = vadd.s32 127, %v5960_v9  ;;  %v6208_v2 = vsel %vm6207_vm5, %v6206_v42, 0 }
 0x479   : > { %v2658_v20 = vsel %vm2651_vm13, %v2654_v25, %v2657_v27  ;;  %v2764_v15 = vand.u32 2147483647, %v12809_v14  ;;  %v2929_v16 = vadd.s32 536870912, %v2928_v52  ;;  %v6204_v62 = vor.u32 8388608, %v6203_v45 }
 0x47a   : > { %v2659_v10 = vsel %vm2648_vm1, nan, %v2658_v20  ;;  %v5959_v26 = vor.u32 %v5958_v32, %v5957_v59  ;;  %v5962_v24 = vshll.u32 %v5961_v13, 23  ;;  %v6210_v46 = vand.u32 31, %v6208_v2 }
 0x47b   : > { %7565 = vst.msk [vmem:[%s9945_s25 + $0x80] sm:$0xff] %vm7548_vm14, %v2659_v10  ;;  %v12834_v63 = vshrl.u32 %v2929_v16, 30  ;;  %v12836_v22 = vand.u32 3, %v5977_v0  ;;  %v2767_v37 = vand.u32 2139095040, %v12809_v14  ;;  %v12841_v5 = vand.u32 8388607, %v2764_v15 }
 0x47c   : > { %v5963_v23 = vor.u32 4788187, %v5962_v24  ;;  %v6211_v35 = vsub.s32 32, %v6210_v46  ;;  %v5966_v44 = vcvt.s32.f32 %v5959_v26  ;;  %v12844_v51 = vadd.s32 %v12786_v61, %v12803_v1 }
 0x47d   : > { %v2931_v30 = vshll.u32 %v12834_v63, 30  ;;  %v12850_v28 = vshll.u32 %v6204_v62, 8  ;;  %v6213_v21 = vshll.u32 %v9401_v50, %v6210_v46  ;;  %v6209_v4 = vshrl.u32 %v6208_v2, 5 }
 0x47e   : > { %v5964_v53 = vand.u32 2147483647, %v5963_v23  ;;  %v6214_v39 = vshrl.u32 %v9402_v54, %v6211_v35  ;;  %v6217_v17 = vshrl.u32 %v9403_v56, %v6211_v35  ;;  %v6220_v6 = vshrl.u32 %v9404_v58, %v6211_v35 }
 0x47f   : > { %v12852_v43 = vsub.s32 %v2928_v52, %v2931_v30  ;;  %v6223_v33 = vshrl.u32 %v9405_v60, %v6211_v35  ;;  %v6216_v61 = vshll.u32 %v9402_v54, %v6210_v46  ;;  %v6219_v1 = vshll.u32 %v9403_v56, %v6210_v46 }
 0x480   : > { %v5967_v42 = vmul.f32 %v5966_v44, %v5964_v53  ;;  %v2768_v29 = vshrl.u32 %v2767_v37, 23  ;;  %v6215_v19 = vor.u32 %v6214_v39, %v6213_v21  ;;  %v6222_v38 = vshll.u32 %v9404_v58, %v6210_v46 }
 0x481   : > { %v2934_v49 = vsub.s32 0, %v12852_v43  ;;  %v6218_v9 = vor.u32 %v6217_v17, %v6216_v61  ;;  %v6221_v45 = vor.u32 %v6220_v6, %v6219_v1  ;;  %v6225_v27 = vshll.u32 %v9405_v60, %v6210_v46 }
 0x482   : > { %v5968_v36 = vxor.u32 2147483648, %v5967_v42  ;;  %v6226_v59 = vshrl.u32 %v9406_v3, %v6211_v35  ;;  %v6224_v32 = vor.u32 %v6223_v33, %v6222_v38  ;;  %v2772_v13 = vor.u32 8388608, %v12841_v5 }
 0x483   : > { %v8270_v25 = vmin.u32 %v2934_v49, %v12852_v43  ;;  %v6212_v20 = vshrl.u32 %v9401_v50, %v6211_v35  ;;  %v8265_v2 = vadd.s32 4294967169, %v2768_v29  ;;  %vm6228_vm3 = vcmp.lt.s32.totalorder %v6209_v4, 1  ;;  %v12885_v49 = vpop.f32.mrb[22].mxu0 }
 0x484   : > { %v5969_v31 = vsel %vm5886_vm0, %v5968_v36, %v5967_v42  ;;  %v6227_v0 = vor.u32 %v6226_v59, %v6225_v27  ;;  %vm6231_vm6 = vcmp.lt.s32.totalorder %v6209_v4, 4  ;;  %vm2870_vm10 = vcmp.lt.s32.totalorder %v12627_v40, 0 }
 0x485   : > { %v5972_v52 = vsel %vm12793_vm11, %v12492_v41, %v5969_v31  ;;  %v2936_v10 = vclz %v8270_v25  ;;  %vm6229_vm8 = vcmp.lt.s32.totalorder %v6209_v4, 2  ;;  %v6233_v26 = vsel %vm6231_vm6, %v6221_v45, 2102212464 }
 0x486   : > { %9171 = vcosq.f32 %v5972_v52  ;;  %v6236_v24 = vsel %vm6228_vm3, %v6215_v19, %v6218_v9  ;;  %vm6230_vm9 = vcmp.lt.s32.totalorder %v6209_v4, 3  ;;  %v6237_v62 = vsel %vm6231_vm6, %v6224_v32, 920167782 }
 0x487   : > { %9173 = vsinq.f32 %v5972_v52  ;;  %v8271_v16 = vadd.s32 4294967294, %v2936_v10  ;;  %v6240_v46 = vsel %vm6228_vm3, %v6218_v9, %v6221_v45  ;;  %v6232_v12 = vsel %vm6228_vm3, %v6212_v20, %v6215_v19 }
 0x488   : > { %v6238_v23 = vsel %vm6230_vm9, %v6221_v45, %v6237_v62  ;;  %v6241_v37 = vsel %vm6231_vm6, %v6227_v0, 1326507024  ;;  %v2774_v35 = vadd.s32 1, %v8265_v2  ;;  %v6234_v5 = vsel %vm6230_vm9, %v6218_v9, %v6233_v26 }
 0x489   : > { %vm8272_vm12 = vcmp.lt.s32.totalorder %v8271_v16, 0  ;;  %v6239_v53 = vsel %vm6229_vm8, %v6236_v24, %v6238_v23  ;;  %v6242_v44 = vsel %vm6230_vm9, %v6224_v32, %v6241_v37  ;;  %v2954_v33 = vsub.s32 4, %v12834_v63 }
 0x48a   : > { %v2939_v30 = vsel %vm8272_vm12, 0, %v8271_v16  ;;  %v6243_v39 = vsel %vm6229_vm8, %v6240_v46, %v6242_v44  ;;  %v12874_v17 = vmul.u32.u64.low %v12850_v28, %v6239_v53  ;;  %v12875_v6 = vmul.u32.u64.high %v12850_v28, %v6239_v53, %v12874_v17 }
 0x48b   : > { %v2940_v42 = vsub.s32 32, %v2939_v30  ;;  %v2944_v21 = vsub.s32 4294967266, %v2939_v30  ;;  %vm2775_vm11 = vcmp.gt.s32.totalorder %v2774_v35, 0  ;;  %vm5976_vm0 = vweird.f32 %v12492_v41 }
 0x48c   : > { %v6235_v61 = vsel %vm6229_vm8, %v6232_v12, %v6234_v5  ;;  %v12882_v1 = vmul.u32.u64.low %v12850_v28, %v6243_v39  ;;  %v12883_v29 = vmul.u32.u64.high %v12850_v28, %v6243_v39, %v12882_v1  ;;  %v2776_v36 = vsel %vm2775_vm11, %v2774_v35, 0 }
 0x48d   : > { %v2941_v19 = vshll.u32 %v12852_v43, %v2939_v30  ;;  %v2942_v38 = vshrl.u32 %v12844_v51, %v2940_v42  ;;  %v2945_v9 = vadd.s32 127, %v2944_v21  ;;  %v2778_v45 = vand.u32 31, %v2776_v36 }
 0x48e   : > { %vm5979_vm1 = vcmp.lt.s32.totalorder %v12836_v22, 2  ;;  %vm5980_vm13 = vcmp.eq.s32.totalorder %v12836_v22, 0  ;;  %vm12893_vm4 = vcmp.le.f32.partialorder %v2868_v55, 0.7853982  ;;  %v6254_v27 = vadd.s32 1, %v12875_v6 }
 0x48f   : > { %vm5983_vm15 = vcmp.eq.s32.totalorder %v12836_v22, 2  ;;  %v2943_v43 = vor.u32 %v2942_v38, %v2941_v19  ;;  %v2946_v31 = vshll.u32 %v2945_v9, 23  ;;  %v2955_v51 = vsel %vm2870_vm10, %v2954_v33, %v12834_v63 }
 0x490   : > { %v9172_v59 = vpop.eup %9171  ;;  %v6251_v52 = vmul.u32 %v12850_v28, %v6235_v61  ;;  %vm6253_vm7 = vc.u32 %v12883_v29, %v12874_v17  ;;  %v2779_v55 = vsub.s32 32, %v2778_v45  ;;  %v12906_v10 = vshll.u32 %v2772_v13, 8 }
 0x491   : > { %v9174_v25 = vpop.eup %9173  ;;  %v5984_v32 = vxor.u32 2147483648, %v9172_v59  ;;  %v2947_v0 = vor.u32 4788187, %v2946_v31  ;;  %v6255_v2 = vsel %vm6253_vm7, %v6254_v27, %v12875_v6  ;;  %v2957_v24 = vsel %vm12893_vm4, 0, %v2955_v51 }
 0x492   : > { %v5981_v20 = vxor.u32 2147483648, %v9174_v25  ;;  %v6256_v63 = vadd.s32 %v6255_v2, %v6251_v52  ;;  %v12912_v16 = vadd.f32 %v12742_v18, %v12444_v34  ;;  %v2950_v46 = vcvt.s32.f32 %v2943_v43 }
 0x493   : > { %v5985_v26 = vsel %vm5983_vm15, %v5984_v32, %v9174_v25  ;;  %v2948_v62 = vand.u32 2147483647, %v2947_v0  ;;  %v12916_v12 = vshrl.u32 %v2776_v36, 5  ;;  %v2782_v37 = vshrl.u32 %v9402_v54, %v2779_v55 }
 0x494   : > { %v5982_v28 = vsel %vm5980_vm13, %v9172_v59, %v5981_v20  ;;  %v6257_v23 = vadd.s32 536870912, %v6256_v63  ;;  %v2785_v35 = vshrl.u32 %v9403_v56, %v2779_v55  ;;  %v2781_v53 = vshll.u32 %v9401_v50, %v2778_v45 }
 0x495   : > { %v5986_v13 = vsel %vm5979_vm1, %v5982_v28, %v5985_v26  ;;  %v2951_v34 = vmul.f32 %v2950_v46, %v2948_v62  ;;  %v2788_v44 = vshrl.u32 %v9404_v58, %v2779_v55  ;;  %v2784_v39 = vshll.u32 %v9402_v54, %v2778_v45 }
 0x496   : > { %v5987_v5 = vsel %vm5976_vm0, nan, %v5986_v13  ;;  %v6258_v30 = vshrl.u32 %v6257_v23, 30  ;;  %v2787_v22 = vshll.u32 %v9403_v56, %v2778_v45  ;;  %v2791_v6 = vshrl.u32 %v9405_v60, %v2779_v55 }
 0x497   : > { %7597 = vst.msk [vmem:[%s9945_s25 + $0x180] sm:$0xff] %vm7548_vm14, %v5987_v5  ;;  %v2952_v42 = vxor.u32 2147483648, %v2951_v34  ;;  %v2790_v21 = vshll.u32 %v9404_v58, %v2778_v45  ;;  %v2793_v41 = vshll.u32 %v9405_v60, %v2778_v45  ;;  %v2794_v33 = vshrl.u32 %v9406_v3, %v2779_v55 }
 0x498   : > { %v2961_v61 = vadd.s32 3, %v2957_v24  ;;  %v6259_v1 = vshll.u32 %v6258_v30, 30  ;;  %v2783_v36 = vor.u32 %v2782_v37, %v2781_v53  ;;  %v2786_v19 = vor.u32 %v2785_v35, %v2784_v39 }
 0x499   : > { %v2953_v38 = vsel %vm2870_vm10, %v2952_v42, %v2951_v34  ;;  %v2789_v9 = vor.u32 %v2788_v44, %v2787_v22  ;;  %v2792_v27 = vor.u32 %v2791_v6, %v2790_v21  ;;  %v2795_v59 = vor.u32 %v2794_v33, %v2793_v41 }
 0x49a   : > { %v2956_v43 = vsel %vm12893_vm4, %v12627_v40, %v2953_v38  ;;  %v12939_v31 = vsub.s32 %v6256_v63, %v6259_v1  ;;  %v2780_v45 = vshrl.u32 %v9401_v50, %v2779_v55  ;;  %v6095_v51 = vand.u32 2139095040, %v12912_v16 }
 0x49b   : > { %9175 = vcosq.f32 %v2956_v43  ;;  %vm2796_vm2 = vcmp.lt.s32.totalorder %v12916_v12, 1  ;;  %vm2797_vm5 = vcmp.lt.s32.totalorder %v12916_v12, 2  ;;  %vm2798_vm3 = vcmp.lt.s32.totalorder %v12916_v12, 3 }
 0x49c   : > { %9177 = vsinq.f32 %v2956_v43  ;;  %v6262_v25 = vsub.s32 0, %v12939_v31  ;;  %vm2799_vm6 = vcmp.lt.s32.totalorder %v12916_v12, 4  ;;  %v2804_v4 = vsel %vm2796_vm2, %v2783_v36, %v2786_v19 }
 0x49d   : > { %v2801_v32 = vsel %vm2799_vm6, %v2789_v9, 2102212464  ;;  %v2805_v52 = vsel %vm2799_vm6, %v2792_v27, 920167782  ;;  %v2808_v55 = vsel %vm2796_vm2, %v2786_v19, %v2789_v9  ;;  %v2809_v20 = vsel %vm2799_vm6, %v2795_v59, 1326507024 }
 0x49e   : > { %v8398_v0 = vmin.u32 %v6262_v25, %v12939_v31  ;;  %v6282_v2 = vsub.s32 4, %v6258_v30  ;;  %v2806_v26 = vsel %vm2798_vm3, %v2789_v9, %v2805_v52  ;;  %v2810_v24 = vsel %vm2798_vm3, %v2792_v27, %v2809_v20 }
 0x49f   : > { %v2962_v63 = vand.u32 3, %v2961_v61  ;;  %v2807_v28 = vsel %vm2797_vm5, %v2804_v4, %v2806_v26  ;;  %v2811_v62 = vsel %vm2797_vm5, %v2808_v55, %v2810_v24  ;;  %v6096_v46 = vshrl.u32 %v6095_v51, 23 }
 0x4a0   : > { %vm6198_vm10 = vcmp.lt.s32.totalorder %v12746_v47, 0  ;;  %v6264_v13 = vclz %v8398_v0  ;;  %v2800_v23 = vsel %vm2796_vm2, %v2780_v45, %v2783_v36  ;;  %v2802_v37 = vsel %vm2798_vm3, %v2786_v19, %v2801_v32 }
 0x4a1   : > { %v12967_v35 = vmul.u32.u64.low %v12906_v10, %v2811_v62  ;;  %v12968_v5 = vmul.u32.u64.high %v12906_v10, %v2811_v62, %v12967_v35  ;;  %v12971_v34 = vmul.u32.u64.low %v12906_v10, %v2807_v28  ;;  %v12972_v53 = vmul.u32.u64.high %v12906_v10, %v2807_v28, %v12971_v34 }
 0x4a2   : > { %vm2960_vm8 = vweird.f32 %v12627_v40  ;;  %vm12978_vm9 = vcmp.le.f32.partialorder %v6196_v57, 0.7853982  ;;  %v8399_v39 = vadd.s32 4294967294, %v6264_v13  ;;  %v6283_v22 = vsel %vm6198_vm10, %v6282_v2, %v6258_v30 }
 0x4a3   : > { %v8393_v6 = vadd.s32 4294967169, %v6096_v46  ;;  %vm2963_vm12 = vcmp.lt.s32.totalorder %v2962_v63, 2  ;;  %vm2964_vm11 = vcmp.eq.s32.totalorder %v2962_v63, 0  ;;  %vm2967_vm0 = vcmp.eq.s32.totalorder %v2962_v63, 2 }
 0x4a4   : > { %v2803_v42 = vsel %vm2797_vm5, %v2800_v23, %v2802_v37  ;;  %v6252_v21 = vadd.s32 %v12874_v17, %v12883_v29  ;;  %vm8400_vm1 = vcmp.lt.s32.totalorder %v8399_v39, 0  ;;  %v6092_v57 = vand.u32 2147483647, %v12912_v16 }
 0x4a5   : > { %v6102_v41 = vadd.s32 1, %v8393_v6  ;;  %v9176_v33 = vpop.eup %9175  ;;  %v6267_v61 = vsel %vm8400_vm1, 0, %v8399_v39  ;;  %v6285_v1 = vsel %vm12978_vm9, 0, %v6283_v22  ;;  %vm2821_vm13 = vc.u32 %v12968_v5, %v12971_v34  ;;  %v13018_v39 = vpop.f32.mrb[22].mxu1 }
 0x4a6   : > { %v2822_v30 = vadd.s32 1, %v12972_v53  ;;  %v9178_v36 = vpop.eup %9177  ;;  %v2968_v12 = vxor.u32 2147483648, %v9176_v33  ;;  %v6268_v19 = vsub.s32 32, %v6267_v61  ;;  %v6272_v38 = vsub.s32 4294967266, %v6267_v61 }
 0x4a7   : > { %v2819_v17 = vmul.u32 %v12906_v10, %v2803_v42  ;;  %v2965_v29 = vxor.u32 2147483648, %v9178_v36  ;;  %v6269_v9 = vshll.u32 %v12939_v31, %v6267_v61  ;;  %vm6103_vm4 = vcmp.gt.s32.totalorder %v6102_v41, 0 }
 0x4a8   : > { %v2823_v27 = vsel %vm2821_vm13, %v2822_v30, %v12972_v53  ;;  %v2969_v59 = vsel %vm2967_vm0, %v2968_v12, %v9178_v36  ;;  %v6270_v43 = vshrl.u32 %v6252_v21, %v6268_v19  ;;  %v6273_v45 = vadd.s32 127, %v6272_v38 }
 0x4a9   : > { %v2824_v51 = vadd.s32 %v2823_v27, %v2819_v17  ;;  %v2966_v25 = vsel %vm2964_vm11, %v9176_v33, %v2965_v29  ;;  %v6289_v4 = vadd.s32 3, %v6285_v1  ;;  %v6099_v32 = vand.u32 8388607, %v6092_v57 }
 0x4aa   : > { %v6104_v52 = vsel %vm6103_vm4, %v6102_v41, 0  ;;  %v2970_v10 = vsel %vm2963_vm12, %v2966_v25, %v2969_v59  ;;  %v6271_v55 = vor.u32 %v6270_v43, %v6269_v9  ;;  %v6274_v31 = vshll.u32 %v6273_v45, 23 }
 0x4ab   : > { %v2825_v20 = vadd.s32 536870912, %v2824_v51  ;;  %v2971_v0 = vsel %vm2960_vm8, nan, %v2970_v10  ;;  %v6106_v2 = vand.u32 31, %v6104_v52  ;;  %v6100_v28 = vor.u32 8388608, %v6099_v32 }
 0x4ac   : > { %7568 = vst.msk [vmem:[%s9945_s25 + $0x98] sm:$0xff] %vm7548_vm14, %v2971_v0  ;;  %v6275_v26 = vor.u32 4788187, %v6274_v31  ;;  %v6278_v13 = vcvt.s32.f32 %v6271_v55  ;;  %v13008_v23 = vand.u32 3, %v6289_v4  ;;  %v13016_v53 = vadd.f32 %v12742_v18, %v12555_v11 }
 0x4ad   : > { %v13006_v24 = vshrl.u32 %v2825_v20, 30  ;;  %v6107_v62 = vsub.s32 32, %v6106_v2  ;;  %v6109_v42 = vshll.u32 %v9401_v50, %v6106_v2  ;;  %v6105_v41 = vshrl.u32 %v6104_v52, 5 }
 0x4ae   : > { %v6276_v46 = vand.u32 2147483647, %v6275_v26  ;;  %v6112_v33 = vshll.u32 %v9402_v54, %v6106_v2  ;;  %v6115_v61 = vshll.u32 %v9403_v56, %v6106_v2  ;;  %v13026_v1 = vshll.u32 %v6100_v28, 8 }
 0x4af   : > { %v2827_v63 = vshll.u32 %v13006_v24, 30  ;;  %v6110_v37 = vshrl.u32 %v9402_v54, %v6107_v62  ;;  %v6113_v35 = vshrl.u32 %v9403_v56, %v6107_v62  ;;  %v6116_v40 = vshrl.u32 %v9404_v58, %v6107_v62 }
 0x4b0   : > { %v6279_v22 = vmul.f32 %v6278_v13, %v6276_v46  ;;  %v6119_v21 = vshrl.u32 %v9405_v60, %v6107_v62  ;;  %v6118_v12 = vshll.u32 %v9404_v58, %v6106_v2  ;;  %v6121_v17 = vshll.u32 %v9405_v60, %v6106_v2 }
 0x4b1   : > { %v13020_v6 = vsub.s32 %v2824_v51, %v2827_v63  ;;  %v6111_v36 = vor.u32 %v6110_v37, %v6109_v42  ;;  %v6114_v19 = vor.u32 %v6113_v35, %v6112_v33  ;;  %v6117_v38 = vor.u32 %v6116_v40, %v6115_v61 }
 0x4b2   : > { %v6280_v30 = vxor.u32 2147483648, %v6279_v22  ;;  %v6122_v29 = vshrl.u32 %v9406_v3, %v6107_v62  ;;  %vm2766_vm15 = vcmp.lt.s32.totalorder %v12809_v14, 0  ;;  %v6120_v59 = vor.u32 %v6119_v21, %v6118_v12 }
 0x4b3   : > { %v2830_v11 = vsub.s32 0, %v13020_v6  ;;  %v3079_v43 = vand.u32 2139095040, %v13016_v53  ;;  %v2850_v51 = vsub.s32 4, %v13006_v24  ;;  %v6108_v25 = vshrl.u32 %v9401_v50, %v6107_v62 }
 0x4b4   : > { %v6281_v9 = vsel %vm6198_vm10, %v6280_v30, %v6279_v22  ;;  %v6123_v4 = vor.u32 %v6122_v29, %v6121_v17  ;;  %vm6124_vm7 = vcmp.lt.s32.totalorder %v6105_v41, 1  ;;  %vm6127_vm2 = vcmp.lt.s32.totalorder %v6105_v41, 4 }
 0x4b5   : > { %v8266_v27 = vmin.u32 %v2830_v11, %v13020_v6  ;;  %v6284_v45 = vsel %vm12978_vm9, %v12746_v47, %v6281_v9  ;;  %vm13044_vm5 = vcmp.le.f32.partialorder %v2764_v15, 0.7853982  ;;  %vm6125_vm3 = vcmp.lt.s32.totalorder %v6105_v41, 2 }
 0x4b6   : > { %9179 = vcosq.f32 %v6284_v45  ;;  %v6129_v10 = vsel %vm6127_vm2, %v6117_v38, 2102212464  ;;  %v6132_v44 = vsel %vm6124_vm7, %v6111_v36, %v6114_v19  ;;  %vm6126_vm6 = vcmp.lt.s32.totalorder %v6105_v41, 3 }
 0x4b7   : > { %v2832_v32 = vclz %v8266_v27  ;;  %9181 = vsinq.f32 %v6284_v45  ;;  %v6133_v31 = vsel %vm6127_vm2, %v6120_v59, 920167782  ;;  %v6136_v20 = vsel %vm6124_vm7, %v6114_v19, %v6117_v38 }
 0x4b8   : > { %v6128_v0 = vsel %vm6124_vm7, %v6108_v25, %v6111_v36  ;;  %v6134_v2 = vsel %vm6126_vm6, %v6117_v38, %v6133_v31  ;;  %v6137_v26 = vsel %vm6127_vm2, %v6123_v4, 1326507024  ;;  %v3080_v28 = vshrl.u32 %v3079_v43, 23 }
 0x4b9   : > { %v8267_v55 = vadd.s32 4294967294, %v2832_v32  ;;  %v6130_v62 = vsel %vm6126_vm6, %v6114_v19, %v6129_v10  ;;  %v6135_v46 = vsel %vm6125_vm3, %v6132_v44, %v6134_v2  ;;  %v6138_v13 = vsel %vm6126_vm6, %v6120_v59, %v6137_v26 }
 0x4ba   : > { %vm6292_vm8 = vcmp.eq.s32.totalorder %v13008_v23, 0  ;;  %v6139_v63 = vsel %vm6125_vm3, %v6136_v20, %v6138_v13  ;;  %v13052_v37 = vmul.u32.u64.low %v13026_v1, %v6135_v46  ;;  %v13053_v35 = vmul.u32.u64.high %v13026_v1, %v6135_v46, %v13052_v37 }
 0x4bb   : > { %vm8268_vm10 = vcmp.lt.s32.totalorder %v8267_v55, 0  ;;  %vm6291_vm9 = vcmp.lt.s32.totalorder %v13008_v23, 2  ;;  %v2820_v40 = vadd.s32 %v12971_v34, %v12968_v5  ;;  %v8277_v21 = vadd.s32 4294967169, %v3080_v28  ;;  %v13069_v34 = vpop.f32.mrb[23].mxu0 }
 0x4bc   : > { %v2835_v15 = vsel %vm8268_vm10, 0, %v8267_v55  ;;  %vm6288_vm12 = vweird.f32 %v12746_v47  ;;  %v2851_v33 = vsel %vm2766_vm15, %v2850_v51, %v13006_v24  ;;  %v6131_v61 = vsel %vm6125_vm3, %v6128_v0, %v6130_v62 }
 0x4bd   : > { %v2836_v22 = vsub.s32 32, %v2835_v15  ;;  %v2840_v42 = vsub.s32 4294967266, %v2835_v15  ;;  %v13065_v30 = vmul.u32.u64.low %v13026_v1, %v6139_v63  ;;  %v13066_v11 = vmul.u32.u64.high %v13026_v1, %v6139_v63, %v13065_v30 }
 0x4be   : > { %v2837_v36 = vshll.u32 %v13020_v6, %v2835_v15  ;;  %v3086_v5 = vadd.s32 1, %v8277_v21  ;;  %vm6295_vm11 = vcmp.eq.s32.totalorder %v13008_v23, 2  ;;  %v6150_v38 = vadd.s32 1, %v13053_v35 }
 0x4bf   : > { %v2838_v12 = vshrl.u32 %v2820_v40, %v2836_v22  ;;  %v2841_v19 = vadd.s32 127, %v2840_v42  ;;  %v3076_v17 = vand.u32 2147483647, %v13016_v53  ;;  %v13076_v24 = vadd.f32 %v12742_v18, %v12629_v8 }
 0x4c0   : > { %v9180_v41 = vpop.eup %9179  ;;  %v2853_v6 = vsel %vm13044_vm5, 0, %v2851_v33  ;;  %vm3087_vm0 = vcmp.gt.s32.totalorder %v3086_v5, 0  ;;  %v6147_v43 = vmul.u32 %v13026_v1, %v6131_v61  ;;  %vm6149_vm1 = vc.u32 %v13066_v11, %v13052_v37 }
 0x4c1   : > { %v2839_v29 = vor.u32 %v2838_v12, %v2837_v36  ;;  %v2842_v9 = vshll.u32 %v2841_v19, 23  ;;  %v9182_v27 = vpop.eup %9181  ;;  %v6296_v59 = vxor.u32 2147483648, %v9180_v41  ;;  %v3088_v45 = vsel %vm3087_vm0, %v3086_v5, 0 }
 0x4c2   : > { %v6293_v51 = vxor.u32 2147483648, %v9182_v27  ;;  %v6151_v8 = vsel %vm6149_vm1, %v6150_v38, %v13053_v35  ;;  %v13086_v4 = vadd.f32 %v12742_v18, %v12712_v48  ;;  %v3083_v1 = vand.u32 8388607, %v3076_v17 }
 0x4c3   : > { %v2843_v25 = vor.u32 4788187, %v2842_v9  ;;  %v6297_v32 = vsel %vm6295_vm11, %v6296_v59, %v9182_v27  ;;  %v6152_v10 = vadd.s32 %v6151_v8, %v6147_v43  ;;  %v3090_v44 = vand.u32 31, %v3088_v45 }
 0x4c4   : > { %v6294_v55 = vsel %vm6292_vm8, %v9180_v41, %v6293_v51  ;;  %v2846_v20 = vcvt.s32.f32 %v2839_v29  ;;  %v2857_v0 = vadd.s32 3, %v2853_v6  ;;  %v6407_v26 = vand.u32 2139095040, %v13076_v24 }
 0x4c5   : > { %v2844_v31 = vand.u32 2147483647, %v2843_v25  ;;  %v6298_v2 = vsel %vm6291_vm9, %v6294_v55, %v6297_v32  ;;  %v6153_v48 = vadd.s32 536870912, %v6152_v10  ;;  %v3091_v18 = vsub.s32 32, %v3090_v44 }
 0x4c6   : > { %v6299_v28 = vsel %vm6288_vm12, nan, %v6298_v2  ;;  %v3093_v46 = vshll.u32 %v9401_v50, %v3090_v44  ;;  %v3096_v13 = vshll.u32 %v9402_v54, %v3090_v44  ;;  %v3099_v35 = vshll.u32 %v9403_v56, %v3090_v44 }
 0x4c7   : > { %v2847_v62 = vmul.f32 %v2846_v20, %v2844_v31  ;;  %7600 = vst.msk [vmem:[%s9945_s25 + $0x198] sm:$0xff] %vm7548_vm14, %v6299_v28  ;;  %v6154_v15 = vshrl.u32 %v6153_v48, 30  ;;  %v3094_v63 = vshrl.u32 %v9402_v54, %v3091_v18  ;;  %v3097_v23 = vshrl.u32 %v9403_v56, %v3091_v18  ;;  %v13132_v20 = vpop.f32.mrb[23].mxu1 }
 0x4c8   : > { %v3100_v22 = vshrl.u32 %v9404_v58, %v3091_v18  ;;  %v3102_v47 = vshll.u32 %v9404_v58, %v3090_v44  ;;  %v3103_v42 = vshrl.u32 %v9405_v60, %v3091_v18  ;;  %v13109_v21 = vand.u32 3, %v2857_v0 }
 0x4c9   : > { %v2848_v40 = vxor.u32 2147483648, %v2847_v62  ;;  %vm6094_vm13 = vcmp.lt.s32.totalorder %v12912_v16, 0  ;;  %v6155_v33 = vshll.u32 %v6154_v15, 30  ;;  %v3089_v61 = vshrl.u32 %v3088_v45, 5 }
 0x4ca   : > { %v3095_v30 = vor.u32 %v3094_v63, %v3093_v46  ;;  %v3098_v12 = vor.u32 %v3097_v23, %v3096_v13  ;;  %v3101_v19 = vor.u32 %v3100_v22, %v3099_v35  ;;  %v3104_v5 = vor.u32 %v3103_v42, %v3102_v47 }
 0x4cb   : > { %v2849_v36 = vsel %vm2766_vm15, %v2848_v40, %v2847_v62  ;;  %v13117_v41 = vsub.s32 %v6152_v10, %v6155_v33  ;;  %v3105_v29 = vshll.u32 %v9405_v60, %v3090_v44  ;;  %v3106_v9 = vshrl.u32 %v9406_v3, %v3091_v18 }
 0x4cc   : > { %v2852_v38 = vsel %vm13044_vm5, %v12809_v14, %v2849_v36  ;;  %v3084_v6 = vor.u32 8388608, %v3083_v1  ;;  %v6404_v27 = vand.u32 2147483647, %v13076_v24  ;;  %v6408_v59 = vshrl.u32 %v6407_v26, 23 }
 0x4cd   : > { %9183 = vcosq.f32 %v2852_v38  ;;  %vm13124_vm4 = vcmp.le.f32.partialorder %v6092_v57, 0.7853982  ;;  %v6158_v52 = vsub.s32 0, %v13117_v41  ;;  %v3092_v45 = vshrl.u32 %v9401_v50, %v3091_v18 }
 0x4ce   : > { %9185 = vsinq.f32 %v2852_v38  ;;  %v3107_v51 = vor.u32 %v3106_v9, %v3105_v29  ;;  %v6178_v25 = vsub.s32 4, %v6154_v15  ;;  %vm3108_vm15 = vcmp.lt.s32.totalorder %v3089_v61, 1 }
 0x4cf   : > { %vm3110_vm7 = vcmp.lt.s32.totalorder %v3089_v61, 3  ;;  %vm3111_vm2 = vcmp.lt.s32.totalorder %v3089_v61, 4  ;;  %v8394_v8 = vmin.u32 %v6158_v52, %v13117_v41  ;;  %v3116_v10 = vsel %vm3108_vm15, %v3095_v30, %v3098_v12 }
 0x4d0   : > { %v3113_v32 = vsel %vm3111_vm2, %v3101_v19, 2102212464  ;;  %v3117_v1 = vsel %vm3111_vm2, %v3104_v5, 920167782  ;;  %v3120_v57 = vsel %vm3108_vm15, %v3098_v12, %v3101_v19  ;;  %v3121_v55 = vsel %vm3111_vm2, %v3107_v51, 1326507024 }
 0x4d1   : > { %v3118_v44 = vsel %vm3110_vm7, %v3101_v19, %v3117_v1  ;;  %v3124_v31 = vshll.u32 %v3084_v6, 8  ;;  %v6160_v0 = vclz %v8394_v8  ;;  %vm3109_vm5 = vcmp.lt.s32.totalorder %v3089_v61, 2 }
 0x4d2   : > { %v3112_v2 = vsel %vm3108_vm15, %v3092_v45, %v3095_v30  ;;  %v3114_v48 = vsel %vm3110_vm7, %v3098_v12, %v3113_v32  ;;  %v6179_v18 = vsel %vm6094_vm13, %v6178_v25, %v6154_v15  ;;  %v3119_v26 = vsel %vm3109_vm5, %v3116_v10, %v3118_v44 }
 0x4d3   : > { %v3122_v28 = vsel %vm3110_vm7, %v3104_v5, %v3121_v55  ;;  %v8405_v62 = vadd.s32 4294967169, %v6408_v59  ;;  %vm2856_vm3 = vweird.f32 %v12809_v14  ;;  %v8395_v46 = vadd.s32 4294967294, %v6160_v0 }
 0x4d4   : > { %v3123_v13 = vsel %vm3109_vm5, %v3120_v57, %v3122_v28  ;;  %v13139_v63 = vmul.u32.u64.low %v3124_v31, %v3119_v26  ;;  %v13140_v23 = vmul.u32.u64.high %v3124_v31, %v3119_v26, %v13139_v63  ;;  %vm2859_vm6 = vcmp.lt.s32.totalorder %v13109_v21, 2 }
 0x4d5   : > { %v3115_v35 = vsel %vm3109_vm5, %v3112_v2, %v3114_v48  ;;  %v13144_v40 = vmul.u32.u64.low %v3124_v31, %v3123_v13  ;;  %v13145_v22 = vmul.u32.u64.high %v3124_v31, %v3123_v13, %v13144_v40  ;;  %vm2860_vm10 = vcmp.eq.s32.totalorder %v13109_v21, 0 }
 0x4d6   : > { %vm2863_vm8 = vcmp.eq.s32.totalorder %v13109_v21, 2  ;;  %vm8396_vm9 = vcmp.lt.s32.totalorder %v8395_v46, 0  ;;  %v6414_v15 = vadd.s32 1, %v8405_v62  ;;  %v6148_v42 = vadd.s32 %v13052_v37, %v13066_v11 }
 0x4d7   : > { %v9184_v47 = vpop.eup %9183  ;;  %v6163_v33 = vsel %vm8396_vm9, 0, %v8395_v46  ;;  %v6181_v61 = vsel %vm13124_vm4, 0, %v6179_v18  ;;  %v6411_v30 = vand.u32 8388607, %v6404_v27  ;;  %v3131_v38 = vmul.u32 %v3124_v31, %v3115_v35 }
 0x4d8   : > { %v9186_v36 = vpop.eup %9185  ;;  %v2864_v12 = vxor.u32 2147483648, %v9184_v47  ;;  %v6164_v19 = vsub.s32 32, %v6163_v33  ;;  %v6168_v5 = vsub.s32 4294967266, %v6163_v33  ;;  %v6165_v9 = vshll.u32 %v13117_v41, %v6163_v33 }
 0x4d9   : > { %v2861_v29 = vxor.u32 2147483648, %v9186_v36  ;;  %vm3133_vm12 = vc.u32 %v13145_v22, %v13139_v63  ;;  %v3134_v37 = vadd.s32 1, %v13140_v23  ;;  %vm6415_vm11 = vcmp.gt.s32.totalorder %v6414_v15, 0 }
 0x4da   : > { %v2865_v11 = vsel %vm2863_vm8, %v2864_v12, %v9186_v36  ;;  %v6166_v6 = vshrl.u32 %v6148_v42, %v6164_v19  ;;  %v6169_v59 = vadd.s32 127, %v6168_v5  ;;  %v6185_v45 = vadd.s32 3, %v6181_v61 }
 0x4db   : > { %v2862_v52 = vsel %vm2860_vm10, %v9184_v47, %v2861_v29  ;;  %v3135_v51 = vsel %vm3133_vm12, %v3134_v37, %v13140_v23  ;;  %v6416_v25 = vsel %vm6415_vm11, %v6414_v15, 0  ;;  %v6412_v0 = vor.u32 8388608, %v6411_v30 }
 0x4dc   : > { %v2866_v41 = vsel %vm2859_vm6, %v2862_v52, %v2865_v11  ;;  %v6167_v8 = vor.u32 %v6166_v6, %v6165_v9  ;;  %v6170_v32 = vshll.u32 %v6169_v59, 23  ;;  %v3136_v10 = vadd.s32 %v3135_v51, %v3131_v38 }
 0x4dd   : > { %v2867_v1 = vsel %vm2856_vm3, nan, %v2866_v41  ;;  %v6418_v44 = vand.u32 31, %v6416_v25  ;;  %v13170_v31 = vand.u32 3, %v6185_v45  ;;  %v2975_v21 = vand.u32 2139095040, %v13086_v4 }
 0x4de   : > { %7567 = vst.msk [vmem:[%s9945_s25 + $0x90] sm:$0xff] %vm7548_vm14, %v2867_v1  ;;  %v6171_v57 = vor.u32 4788187, %v6170_v32  ;;  %v3137_v55 = vadd.s32 536870912, %v3136_v10  ;;  %v6174_v18 = vcvt.s32.f32 %v6167_v8  ;;  %v6417_v28 = vshrl.u32 %v6416_v25, 5 }
 0x4df   : > { %v6419_v2 = vsub.s32 32, %v6418_v44  ;;  %v6427_v35 = vshll.u32 %v9403_v56, %v6418_v44  ;;  %v6421_v15 = vshll.u32 %v9401_v50, %v6418_v44  ;;  %v6424_v47 = vshll.u32 %v9402_v54, %v6418_v44 }
 0x4e0   : > { %v6172_v48 = vand.u32 2147483647, %v6171_v57  ;;  %v13172_v26 = vshrl.u32 %v3137_v55, 30  ;;  %v6430_v42 = vshll.u32 %v9404_v58, %v6418_v44  ;;  %v2972_v12 = vand.u32 2147483647, %v13086_v4 }
 0x4e1   : > { %v6422_v62 = vshrl.u32 %v9402_v54, %v6419_v2  ;;  %v6425_v14 = vshrl.u32 %v9403_v56, %v6419_v2  ;;  %v6428_v46 = vshrl.u32 %v9404_v58, %v6419_v2  ;;  %v6431_v40 = vshrl.u32 %v9405_v60, %v6419_v2 }
 0x4e2   : > { %v6175_v13 = vmul.f32 %v6174_v18, %v6172_v48  ;;  %v3139_v23 = vshll.u32 %v13172_v26, 30  ;;  %v6434_v33 = vshrl.u32 %v9406_v3, %v6419_v2  ;;  %v6433_v29 = vshll.u32 %v9405_v60, %v6418_v44 }
 0x4e3   : > { %v6429_v36 = vor.u32 %v6428_v46, %v6427_v35  ;;  %v6423_v19 = vor.u32 %v6422_v62, %v6421_v15  ;;  %v6426_v5 = vor.u32 %v6425_v14, %v6424_v47  ;;  %v6432_v38 = vor.u32 %v6431_v40, %v6430_v42 }
 0x4e4   : > { %v6176_v61 = vxor.u32 2147483648, %v6175_v13  ;;  %v13185_v30 = vsub.s32 %v3136_v10, %v3139_v23  ;;  %v13192_v11 = vshll.u32 %v6412_v0, 8  ;;  %v2976_v6 = vshrl.u32 %v2975_v21, 23 }
 0x4e5   : > { %v6420_v52 = vshrl.u32 %v9401_v50, %v6419_v2  ;;  %v6435_v45 = vor.u32 %v6434_v33, %v6433_v29  ;;  %vm6439_vm0 = vcmp.lt.s32.totalorder %v6417_v28, 4  ;;  %vm6436_vm1 = vcmp.lt.s32.totalorder %v6417_v28, 1 }
 0x4e6   : > { %v6177_v9 = vsel %vm6094_vm13, %v6176_v61, %v6175_v13  ;;  %v3142_v37 = vsub.s32 0, %v13185_v30  ;;  %v6441_v25 = vsel %vm6439_vm0, %v6429_v36, 2102212464  ;;  %vm6438_vm13 = vcmp.lt.s32.totalorder %v6417_v28, 3 }
 0x4e7   : > { %v6180_v59 = vsel %vm13124_vm4, %v12912_v16, %v6177_v9  ;;  %v6444_v41 = vsel %vm6436_vm1, %v6423_v19, %v6426_v5  ;;  %v6445_v8 = vsel %vm6439_vm0, %v6432_v38, 920167782  ;;  %vm13203_vm15 = vcmp.le.f32.partialorder %v3076_v17, 0.7853982 }
 0x4e8   : > { %9187 = vcosq.f32 %v6180_v59  ;;  %v8278_v51 = vmin.u32 %v3142_v37, %v13185_v30  ;;  %v6440_v10 = vsel %vm6436_vm1, %v6420_v52, %v6423_v19  ;;  %v6442_v1 = vsel %vm6438_vm13, %v6426_v5, %v6441_v25 }
 0x4e9   : > { %9189 = vsinq.f32 %v6180_v59  ;;  %v6448_v44 = vsel %vm6436_vm1, %v6426_v5, %v6429_v36  ;;  %vm6437_vm4 = vcmp.lt.s32.totalorder %v6417_v28, 2  ;;  %v6446_v57 = vsel %vm6438_vm13, %v6429_v36, %v6445_v8 }
 0x4ea   : > { %v3144_v32 = vclz %v8278_v51  ;;  %v6449_v55 = vsel %vm6439_vm0, %v6435_v45, 1326507024  ;;  %v8273_v0 = vadd.s32 4294967169, %v2976_v6  ;;  %v3162_v48 = vsub.s32 4, %v13172_v26  ;;  %v13236_v6 = vpop.f32.mrb[24].mxu0 }
 0x4eb   : > { %v6447_v18 = vsel %vm6437_vm4, %v6444_v41, %v6446_v57  ;;  %v6450_v21 = vsel %vm6438_vm13, %v6432_v38, %v6449_v55  ;;  %v6443_v62 = vsel %vm6437_vm4, %v6440_v10, %v6442_v1  ;;  %vm6184_vm2 = vweird.f32 %v12912_v16  ;;  %v13244_v41 = vld [vmem:[%s15263_s2] ss:$0 sm:$0xff] }
 0x4ec   : > { %v8279_v2 = vadd.s32 4294967294, %v3144_v32  ;;  %v6451_v14 = vsel %vm6437_vm4, %v6448_v44, %v6450_v21  ;;  %v13210_v17 = vmul.u32.u64.low %v13192_v11, %v6447_v18  ;;  %v13211_v46 = vmul.u32.u64.high %v13192_v11, %v6447_v18, %v13210_v17 }
 0x4ed   : > { %v13215_v13 = vmul.u32.u64.low %v13192_v11, %v6451_v14  ;;  %v13216_v23 = vmul.u32.u64.high %v13192_v11, %v6451_v14, %v13215_v13  ;;  %v2982_v28 = vadd.s32 1, %v8273_v0  ;;  %vm6191_vm5 = vcmp.eq.s32.totalorder %v13170_v31, 2 }
 0x4ee   : > { %vm8280_vm7 = vcmp.lt.s32.totalorder %v8279_v2, 0  ;;  %vm3078_vm3 = vcmp.lt.s32.totalorder %v13016_v53, 0  ;;  %v3132_v35 = vadd.s32 %v13139_v63, %v13145_v22  ;;  %v6459_v33 = vmul.u32 %v13192_v11, %v6443_v62 }
 0x4ef   : > { %v3147_v40 = vsel %vm8280_vm7, 0, %v8279_v2  ;;  %v3163_v42 = vsel %vm3078_vm3, %v3162_v48, %v13172_v26  ;;  %vm2983_vm6 = vcmp.gt.s32.totalorder %v2982_v28, 0  ;;  %v6462_v61 = vadd.s32 1, %v13211_v46 }
 0x4f0   : > { %v3148_v15 = vsub.s32 32, %v3147_v40  ;;  %v3152_v47 = vsub.s32 4294967266, %v3147_v40  ;;  %v2979_v36 = vand.u32 8388607, %v2972_v12  ;;  %v2984_v19 = vsel %vm2983_vm6, %v2982_v28, 0 }
 0x4f1   : > { %v3149_v38 = vshll.u32 %v13185_v30, %v3147_v40  ;;  %vm6461_vm10 = vc.u32 %v13216_v23, %v13210_v17  ;;  %v3165_v26 = vsel %vm13203_vm15, 0, %v3163_v42  ;;  %v2986_v11 = vand.u32 31, %v2984_v19 }
 0x4f2   : > { %v9188_v5 = vpop.eup %9187  ;;  %v3150_v63 = vshrl.u32 %v3132_v35, %v3148_v15  ;;  %v3153_v22 = vadd.s32 127, %v3152_v47  ;;  %v6463_v37 = vsel %vm6461_vm10, %v6462_v61, %v13211_v46  ;;  %vm6188_vm8 = vcmp.eq.s32.totalorder %v13170_v31, 0 }
 0x4f3   : > { %v9190_v29 = vpop.eup %9189  ;;  %v6192_v9 = vxor.u32 2147483648, %v9188_v5  ;;  %v6464_v51 = vadd.s32 %v6463_v37, %v6459_v33  ;;  %v2987_v25 = vsub.s32 32, %v2986_v11  ;;  %v13248_v8 = vadd.f32 %v13244_v41, %v12789_v7 }
 0x4f4   : > { %v6189_v59 = vxor.u32 2147483648, %v9190_v29  ;;  %v3151_v52 = vor.u32 %v3150_v63, %v3149_v38  ;;  %v3154_v45 = vshll.u32 %v3153_v22, 23  ;;  %vm6187_vm9 = vcmp.lt.s32.totalorder %v13170_v31, 2 }
 0x4f5   : > { %v6193_v30 = vsel %vm6191_vm5, %v6192_v9, %v9190_v29  ;;  %v6465_v1 = vadd.s32 536870912, %v6464_v51  ;;  %v3169_v57 = vadd.s32 3, %v3165_v26  ;;  %v2980_v55 = vor.u32 8388608, %v2979_v36 }
 0x4f6   : > { %v6190_v32 = vsel %vm6188_vm8, %v9188_v5, %v6189_v59  ;;  %v3155_v10 = vor.u32 4788187, %v3154_v45  ;;  %v13253_v0 = vadd.f32 %v13244_v41, %v12885_v49  ;;  %v3158_v18 = vcvt.s32.f32 %v3151_v52 }
 0x4f7   : > { %v6194_v44 = vsel %vm6187_vm9, %v6190_v32, %v6193_v30  ;;  %v6466_v21 = vshrl.u32 %v6465_v1, 30  ;;  %v2985_v7 = vshrl.u32 %v2984_v19, 5  ;;  %v2990_v31 = vshrl.u32 %v9402_v54, %v2987_v25 }
 0x4f8   : > { %v6195_v2 = vsel %vm6184_vm2, nan, %v6194_v44  ;;  %v3156_v48 = vand.u32 2147483647, %v3155_v10  ;;  %v2993_v62 = vshrl.u32 %v9403_v56, %v2987_v25  ;;  %v2996_v14 = vshrl.u32 %v9404_v58, %v2987_v25 }
 0x4f9   : > { %7599 = vst.msk [vmem:[%s9945_s25 + $0x190] sm:$0xff] %vm7548_vm14, %v6195_v2  ;;  %v6467_v13 = vshll.u32 %v6466_v21, 30  ;;  %v2995_v49 = vshll.u32 %v9403_v56, %v2986_v11  ;;  %v2999_v28 = vshrl.u32 %v9405_v60, %v2987_v25  ;;  %vm6406_vm12 = vcmp.lt.s32.totalorder %v13076_v24, 0 }
 0x4fa   : > { %v3159_v46 = vmul.f32 %v3158_v18, %v3156_v48  ;;  %v2989_v16 = vshll.u32 %v9401_v50, %v2986_v11  ;;  %v2992_v35 = vshll.u32 %v9402_v54, %v2986_v11  ;;  %v2998_v40 = vshll.u32 %v9404_v58, %v2986_v11 }
 0x4fb   : > { %v3002_v15 = vshrl.u32 %v9406_v3, %v2987_v25  ;;  %v13269_v42 = vand.u32 3, %v3169_v57  ;;  %v13271_v33 = vsub.s32 %v6464_v51, %v6467_v13  ;;  %v2997_v61 = vor.u32 %v2996_v14, %v2995_v49  ;;  %v13292_v57 = vpop.f32.mrb[24].mxu1 }
 0x4fc   : > { %v3160_v47 = vxor.u32 2147483648, %v3159_v46  ;;  %v2991_v36 = vor.u32 %v2990_v31, %v2989_v16  ;;  %v2994_v19 = vor.u32 %v2993_v62, %v2992_v35  ;;  %v3000_v5 = vor.u32 %v2999_v28, %v2998_v40 }
 0x4fd   : > { %v3001_v38 = vshll.u32 %v9405_v60, %v2986_v11  ;;  %v6470_v22 = vsub.s32 0, %v13271_v33  ;;  %v2988_v29 = vshrl.u32 %v9401_v50, %v2987_v25  ;;  %v3020_v9 = vshll.u32 %v2980_v55, 8 }
 0x4fe   : > { %v3161_v63 = vsel %vm3078_vm3, %v3160_v47, %v3159_v46  ;;  %v6490_v37 = vsub.s32 4, %v6466_v21  ;;  %vm3007_vm11 = vcmp.lt.s32.totalorder %v2985_v7, 4  ;;  %vm13283_vm0 = vcmp.le.f32.partialorder %v6404_v27, 0.7853982 }
 0x4ff   : > { %v3164_v26 = vsel %vm13203_vm15, %v13016_v53, %v3161_v63  ;;  %v3003_v59 = vor.u32 %v3002_v15, %v3001_v38  ;;  %v8406_v52 = vmin.u32 %v6470_v22, %v13271_v33  ;;  %vm3004_vm1 = vcmp.lt.s32.totalorder %v2985_v7, 1 }
 0x500   : > { %9191 = vcosq.f32 %v3164_v26  ;;  %v3009_v45 = vsel %vm3007_vm11, %v2997_v61, 2102212464  ;;  %vm3005_vm13 = vcmp.lt.s32.totalorder %v2985_v7, 2  ;;  %v3012_v51 = vsel %vm3004_vm1, %v2991_v36, %v2994_v19 }
 0x501   : > { %9193 = vsinq.f32 %v3164_v26  ;;  %v3013_v43 = vsel %vm3007_vm11, %v3000_v5, 920167782  ;;  %v6472_v30 = vclz %v8406_v52  ;;  %vm3006_vm15 = vcmp.lt.s32.totalorder %v2985_v7, 3 }
 0x502   : > { %v3008_v25 = vsel %vm3004_vm1, %v2988_v29, %v2991_v36  ;;  %v3016_v32 = vsel %vm3004_vm1, %v2994_v19, %v2997_v61  ;;  %v3010_v10 = vsel %vm3006_vm15, %v2994_v19, %v3009_v45  ;;  %v3014_v1 = vsel %vm3006_vm15, %v2997_v61, %v3013_v43 }
 0x503   : > { %v3017_v27 = vsel %vm3007_vm11, %v3003_v59, 1326507024  ;;  %v6303_v44 = vand.u32 2139095040, %v13248_v8  ;;  %v8407_v55 = vadd.s32 4294967294, %v6472_v30  ;;  %v6491_v2 = vsel %vm6406_vm12, %v6490_v37, %v6466_v21 }
 0x504   : > { %v3015_v48 = vsel %vm3005_vm13, %v3012_v51, %v3014_v1  ;;  %v3018_v18 = vsel %vm3006_vm15, %v3000_v5, %v3017_v27  ;;  %v3011_v13 = vsel %vm3005_vm13, %v3008_v25, %v3010_v10  ;;  %vm3171_vm7 = vcmp.lt.s32.totalorder %v13269_v42, 2 }
 0x505   : > { %v3019_v31 = vsel %vm3005_vm13, %v3016_v32, %v3018_v18  ;;  %v13298_v62 = vmul.u32.u64.low %v3020_v9, %v3015_v48  ;;  %v13299_v14 = vmul.u32.u64.high %v3020_v9, %v3015_v48, %v13298_v62  ;;  %v6304_v46 = vshrl.u32 %v6303_v44, 23 }
 0x506   : > { %vm8408_vm4 = vcmp.lt.s32.totalorder %v8407_v55, 0  ;;  %v13303_v49 = vmul.u32.u64.low %v3020_v9, %v3019_v31  ;;  %v13304_v28 = vmul.u32.u64.high %v3020_v9, %v3019_v31, %v13303_v49  ;;  %vm3172_vm2 = vcmp.eq.s32.totalorder %v13269_v42, 0 }
 0x507   : > { %v6475_v21 = vsel %vm8408_vm4, 0, %v8407_v55  ;;  %v8401_v16 = vadd.s32 4294967169, %v6304_v46  ;;  %v6460_v35 = vadd.s32 %v13210_v17, %v13216_v23  ;;  %v6300_v47 = vand.u32 2147483647, %v13248_v8 }
 0x508   : > { %v6476_v40 = vsub.s32 32, %v6475_v21  ;;  %v6480_v15 = vsub.s32 4294967266, %v6475_v21  ;;  %v6493_v7 = vsel %vm13283_vm0, 0, %v6491_v2  ;;  %v3027_v61 = vmul.u32 %v3020_v9, %v3011_v13 }
 0x509   : > { %v3030_v36 = vadd.s32 1, %v13299_v14  ;;  %v6310_v19 = vadd.s32 1, %v8401_v16  ;;  %v6477_v38 = vshll.u32 %v13271_v33, %v6475_v21  ;;  %vm3029_vm5 = vc.u32 %v13304_v28, %v13298_v62 }
 0x50a   : > { %v9192_v5 = vpop.eup %9191  ;;  %v6478_v63 = vshrl.u32 %v6460_v35, %v6476_v40  ;;  %v6481_v22 = vadd.s32 127, %v6480_v15  ;;  %vm3175_vm3 = vcmp.eq.s32.totalorder %v13269_v42, 2  ;;  %v6497_v45 = vadd.s32 3, %v6493_v7 }
 0x50b   : > { %v9194_v17 = vpop.eup %9193  ;;  %v3176_v23 = vxor.u32 2147483648, %v9192_v5  ;;  %v3031_v29 = vsel %vm3029_vm5, %v3030_v36, %v13299_v14  ;;  %vm6311_vm6 = vcmp.gt.s32.totalorder %v6310_v19, 0  ;;  %v6307_v33 = vand.u32 8388607, %v6300_v47 }
 0x50c   : > { %v3173_v26 = vxor.u32 2147483648, %v9194_v17  ;;  %v6479_v9 = vor.u32 %v6478_v63, %v6477_v38  ;;  %v6482_v37 = vshll.u32 %v6481_v22, 23  ;;  %v3032_v59 = vadd.s32 %v3031_v29, %v3027_v61 }
 0x50d   : > { %v3177_v52 = vsel %vm3175_vm3, %v3176_v23, %v9194_v17  ;;  %v6312_v51 = vsel %vm6311_vm6, %v6310_v19, 0  ;;  %v3287_v32 = vand.u32 2139095040, %v13253_v0  ;;  %vm3168_vm10 = vweird.f32 %v13016_v53 }
 0x50e   : > { %v3174_v43 = vsel %vm3172_vm2, %v9192_v5, %v3173_v26  ;;  %v6483_v30 = vor.u32 4788187, %v6482_v37  ;;  %v3033_v25 = vadd.s32 536870912, %v3032_v59  ;;  %v6314_v1 = vand.u32 31, %v6312_v51 }
 0x50f   : > { %v3178_v10 = vsel %vm3171_vm7, %v3174_v43, %v3177_v52  ;;  %v6486_v55 = vcvt.s32.f32 %v6479_v9  ;;  %v13331_v48 = vand.u32 3, %v6497_v45  ;;  %v6308_v18 = vor.u32 8388608, %v6307_v33 }
 0x510   : > { %v3179_v27 = vsel %vm3168_vm10, nan, %v3178_v10  ;;  %v6484_v44 = vand.u32 2147483647, %v6483_v30  ;;  %v13327_v2 = vshrl.u32 %v3033_v25, 30  ;;  %v6315_v31 = vsub.s32 32, %v6314_v1 }
 0x511   : > { %7570 = vst.msk [vmem:[%s9945_s25 + $0xa8] sm:$0xff] %vm7548_vm14, %v3179_v27  ;;  %v3284_v14 = vand.u32 2147483647, %v13253_v0  ;;  %v6317_v42 = vshll.u32 %v9401_v50, %v6314_v1  ;;  %v3288_v13 = vshrl.u32 %v3287_v32, 23  ;;  %v6320_v21 = vshll.u32 %v9402_v54, %v6314_v1 }
 0x512   : > { %v6487_v46 = vmul.f32 %v6486_v55, %v6484_v44  ;;  %v3035_v53 = vshll.u32 %v13327_v2, 30  ;;  %v6318_v49 = vshrl.u32 %v9402_v54, %v6315_v31  ;;  %v6321_v16 = vshrl.u32 %v9403_v56, %v6315_v31 }
 0x513   : > { %v6324_v35 = vshrl.u32 %v9404_v58, %v6315_v31  ;;  %v6323_v7 = vshll.u32 %v9403_v56, %v6314_v1  ;;  %v6327_v61 = vshrl.u32 %v9405_v60, %v6315_v31  ;;  %v6313_v36 = vshrl.u32 %v6312_v51, 5 }
 0x514   : > { %v6488_v40 = vxor.u32 2147483648, %v6487_v46  ;;  %v13340_v15 = vsub.s32 %v3032_v59, %v3035_v53  ;;  %v6319_v19 = vor.u32 %v6318_v49, %v6317_v42  ;;  %v6326_v5 = vshll.u32 %v9404_v58, %v6314_v1 }
 0x515   : > { %v13345_v38 = vshll.u32 %v6308_v18, 8  ;;  %v6322_v17 = vor.u32 %v6321_v16, %v6320_v21  ;;  %v6325_v23 = vor.u32 %v6324_v35, %v6323_v7  ;;  %vm2974_vm8 = vcmp.lt.s32.totalorder %v13086_v4, 0  ;;  %v13386_v7 = vpop.f32.mrb[25].mxu0 }
 0x516   : > { %v6489_v63 = vsel %vm6406_vm12, %v6488_v40, %v6487_v46  ;;  %v3038_v22 = vsub.s32 0, %v13340_v15  ;;  %v6328_v26 = vor.u32 %v6327_v61, %v6326_v5  ;;  %v6329_v9 = vshll.u32 %v9405_v60, %v6314_v1 }
 0x517   : > { %v6492_v29 = vsel %vm13283_vm0, %v13076_v24, %v6489_v63  ;;  %v6330_v37 = vshrl.u32 %v9406_v3, %v6315_v31  ;;  %v3028_v59 = vadd.s32 %v13298_v62, %v13304_v28  ;;  %v8285_v45 = vadd.s32 4294967169, %v3288_v13 }
 0x518   : > { %9195 = vcosq.f32 %v6492_v29  ;;  %v8274_v52 = vmin.u32 %v3038_v22, %v13340_v15  ;;  %v3058_v33 = vsub.s32 4, %v13327_v2  ;;  %v6316_v11 = vshrl.u32 %v9401_v50, %v6315_v31 }
 0x519   : > { %9197 = vsinq.f32 %v6492_v29  ;;  %v6331_v51 = vor.u32 %v6330_v37, %v6329_v9  ;;  %vm13363_vm9 = vcmp.le.f32.partialorder %v2972_v12, 0.7853982  ;;  %vm6332_vm12 = vcmp.lt.s32.totalorder %v6313_v36, 1 }
 0x51a   : > { %v3040_v30 = vclz %v8274_v52  ;;  %vm6333_vm11 = vcmp.lt.s32.totalorder %v6313_v36, 2  ;;  %vm6335_vm0 = vcmp.lt.s32.totalorder %v6313_v36, 4  ;;  %vm6334_vm1 = vcmp.lt.s32.totalorder %v6313_v36, 3 }
 0x51b   : > { %v6337_v62 = vsel %vm6335_vm0, %v6325_v23, 2102212464  ;;  %v6340_v28 = vsel %vm6332_vm12, %v6319_v19, %v6322_v17  ;;  %v6341_v25 = vsel %vm6335_vm0, %v6328_v26, 920167782  ;;  %vm6503_vm13 = vcmp.eq.s32.totalorder %v13331_v48, 2 }
 0x51c   : > { %v8275_v32 = vadd.s32 4294967294, %v3040_v30  ;;  %v6336_v10 = vsel %vm6332_vm12, %v6316_v11, %v6319_v19  ;;  %v6342_v1 = vsel %vm6334_vm1, %v6325_v23, %v6341_v25  ;;  %v6344_v27 = vsel %vm6332_vm12, %v6322_v17, %v6325_v23 }
 0x51d   : > { %vm6500_vm15 = vcmp.eq.s32.totalorder %v13331_v48, 0  ;;  %v6338_v12 = vsel %vm6334_vm1, %v6322_v17, %v6337_v62  ;;  %v6343_v44 = vsel %vm6333_vm11, %v6340_v28, %v6342_v1  ;;  %v6345_v55 = vsel %vm6335_vm0, %v6331_v51, 1326507024 }
 0x51e   : > { %v3294_v18 = vadd.s32 1, %v8285_v45  ;;  %vm6499_vm4 = vcmp.lt.s32.totalorder %v13331_v48, 2  ;;  %vm8276_vm7 = vcmp.lt.s32.totalorder %v8275_v32, 0  ;;  %v6346_v31 = vsel %vm6334_vm1, %v6328_v26, %v6345_v55 }
 0x51f   : > { %v13375_v46 = vmul.u32.u64.low %v13345_v38, %v6343_v44  ;;  %v13376_v53 = vmul.u32.u64.high %v13345_v38, %v6343_v44, %v13375_v46  ;;  %vm6496_vm2 = vweird.f32 %v13076_v24  ;;  %v3043_v42 = vsel %vm8276_vm7, 0, %v8275_v32 }
 0x520   : > { %v6347_v13 = vsel %vm6333_vm11, %v6344_v27, %v6346_v31  ;;  %v3291_v49 = vand.u32 8388607, %v3284_v14  ;;  %vm3295_vm5 = vcmp.gt.s32.totalorder %v3294_v18, 0  ;;  %v3044_v21 = vsub.s32 32, %v3043_v42 }
 0x521   : > { %v3048_v16 = vsub.s32 4294967266, %v3043_v42  ;;  %v3059_v35 = vsel %vm2974_vm8, %v3058_v33, %v13327_v2  ;;  %v3296_v40 = vsel %vm3295_vm5, %v3294_v18, 0  ;;  %v6339_v61 = vsel %vm6333_vm11, %v6336_v10, %v6338_v12 }
 0x522   : > { %v13390_v19 = vmul.u32.u64.low %v13345_v38, %v6347_v13  ;;  %v13391_v5 = vmul.u32.u64.high %v13345_v38, %v6347_v13, %v13390_v19  ;;  %v3298_v63 = vand.u32 31, %v3296_v40  ;;  %v9196_v22 = vpop.eup %9195  ;;  %v3045_v17 = vshll.u32 %v13340_v15, %v3043_v42 }
 0x523   : > { %v3046_v23 = vshrl.u32 %v3028_v59, %v3044_v21  ;;  %v3049_v29 = vadd.s32 127, %v3048_v16  ;;  %v6358_v26 = vadd.s32 1, %v13376_v53  ;;  %v9198_v9 = vpop.eup %9197  ;;  %v6504_v37 = vxor.u32 2147483648, %v9196_v22 }
 0x524   : > { %v3061_v2 = vsel %vm13363_vm9, 0, %v3059_v35  ;;  %v3292_v52 = vor.u32 8388608, %v3291_v49  ;;  %v3299_v36 = vsub.s32 32, %v3298_v63  ;;  %v6501_v45 = vxor.u32 2147483648, %v9198_v9 }
 0x525   : > { %v3047_v33 = vor.u32 %v3046_v23, %v3045_v17  ;;  %v3050_v11 = vshll.u32 %v3049_v29, 23  ;;  %v6355_v51 = vmul.u32 %v13345_v38, %v6339_v61  ;;  %v6505_v30 = vsel %vm6503_vm13, %v6504_v37, %v9198_v9 }
 0x526   : > { %vm6357_vm3 = vc.u32 %v13391_v5, %v13375_v46  ;;  %v13402_v15 = vshrl.u32 %v3296_v40, 5  ;;  %v3301_v59 = vshll.u32 %v9401_v50, %v3298_v63  ;;  %v6502_v62 = vsel %vm6500_vm15, %v9196_v22, %v6501_v45 }
 0x527   : > { %v3051_v28 = vor.u32 4788187, %v3050_v11  ;;  %v6359_v25 = vsel %vm6357_vm3, %v6358_v26, %v13376_v53  ;;  %v3304_v32 = vshll.u32 %v9402_v54, %v3298_v63  ;;  %v6506_v38 = vsel %vm6499_vm4, %v6502_v62, %v6505_v30 }
 0x528   : > { %v6360_v10 = vadd.s32 %v6359_v25, %v6355_v51  ;;  %v3302_v1 = vshrl.u32 %v9402_v54, %v3299_v36  ;;  %v3305_v27 = vshrl.u32 %v9403_v56, %v3299_v36  ;;  %v6507_v12 = vsel %vm6496_vm2, nan, %v6506_v38 }
 0x529   : > { %v3052_v44 = vand.u32 2147483647, %v3051_v28  ;;  %v3054_v55 = vcvt.s32.f32 %v3047_v33  ;;  %v3308_v18 = vshrl.u32 %v9404_v58, %v3299_v36  ;;  %7602 = vst.msk [vmem:[%s9945_s25 + $0x1a8] sm:$0xff] %vm7548_vm14, %v6507_v12  ;;  %v3307_v53 = vshll.u32 %v9403_v56, %v3298_v63  ;;  %v13470_v12 = vpop.f32.mrb[25].mxu1 }
 0x52a   : > { %v6361_v31 = vadd.s32 536870912, %v6360_v10  ;;  %v3310_v48 = vshll.u32 %v9404_v58, %v3298_v63  ;;  %v3311_v42 = vshrl.u32 %v9405_v60, %v3299_v36  ;;  %v3303_v49 = vor.u32 %v3302_v1, %v3301_v59 }
 0x52b   : > { %v3055_v13 = vmul.f32 %v3054_v55, %v3052_v44  ;;  %v3306_v21 = vor.u32 %v3305_v27, %v3304_v32  ;;  %v3314_v16 = vshrl.u32 %v9406_v3, %v3299_v36  ;;  %v3065_v61 = vadd.s32 3, %v3061_v2 }
 0x52c   : > { %v6362_v24 = vshrl.u32 %v6361_v31, 30  ;;  %v3312_v35 = vor.u32 %v3311_v42, %v3310_v48  ;;  %v3309_v19 = vor.u32 %v3308_v18, %v3307_v53  ;;  %v3313_v22 = vshll.u32 %v9405_v60, %v3298_v63 }
 0x52d   : > { %v3056_v40 = vxor.u32 2147483648, %v3055_v13  ;;  %vm3316_vm6 = vcmp.lt.s32.totalorder %v13402_v15, 1  ;;  %vm3319_vm10 = vcmp.lt.s32.totalorder %v13402_v15, 4  ;;  %v13425_v23 = vshll.u32 %v3292_v52, 8 }
 0x52e   : > { %v6363_v17 = vshll.u32 %v6362_v24, 30  ;;  %v3315_v26 = vor.u32 %v3314_v16, %v3313_v22  ;;  %v3324_v9 = vsel %vm3316_vm6, %v3303_v49, %v3306_v21  ;;  %v3325_v37 = vsel %vm3319_vm10, %v3312_v35, 920167782 }
 0x52f   : > { %v3057_v29 = vsel %vm2974_vm8, %v3056_v40, %v3055_v13  ;;  %v3300_v45 = vshrl.u32 %v9401_v50, %v3299_v36  ;;  %vm3318_vm12 = vcmp.lt.s32.totalorder %v13402_v15, 3  ;;  %vm3317_vm8 = vcmp.lt.s32.totalorder %v13402_v15, 2 }
 0x530   : > { %v3060_v63 = vsel %vm13363_vm9, %v13086_v4, %v3057_v29  ;;  %v13436_v2 = vsub.s32 %v6360_v10, %v6363_v17  ;;  %v3321_v52 = vsel %vm3319_vm10, %v3309_v19, 2102212464  ;;  %v3326_v33 = vsel %vm3318_vm12, %v3309_v19, %v3325_v37 }
 0x531   : > { %9199 = vcosq.f32 %v3060_v63  ;;  %v3327_v43 = vsel %vm3317_vm8, %v3324_v9, %v3326_v33  ;;  %v3328_v36 = vsel %vm3316_vm6, %v3306_v21, %v3309_v19  ;;  %v6386_v51 = vsub.s32 4, %v6362_v24 }
 0x532   : > { %9201 = vsinq.f32 %v3060_v63  ;;  %v6366_v11 = vsub.s32 0, %v13436_v2  ;;  %v3329_v30 = vsel %vm3319_vm10, %v3315_v26, 1326507024  ;;  %v3066_v28 = vand.u32 3, %v3065_v61 }
 0x533   : > { %v13453_v59 = vmul.u32.u64.low %v13425_v23, %v3327_v43  ;;  %v13454_v62 = vmul.u32.u64.high %v13425_v23, %v3327_v43, %v13453_v59  ;;  %v3330_v32 = vsel %vm3318_vm12, %v3312_v35, %v3329_v30  ;;  %v3320_v38 = vsel %vm3316_vm6, %v3300_v45, %v3303_v49 }
 0x534   : > { %v8402_v25 = vmin.u32 %v6366_v11, %v13436_v2  ;;  %v3322_v10 = vsel %vm3318_vm12, %v3306_v21, %v3321_v52  ;;  %v3331_v1 = vsel %vm3317_vm8, %v3328_v36, %v3330_v32  ;;  %v13468_v27 = vadd.f32 %v13244_v41, %v13018_v39 }
 0x535   : > { %vm6302_vm9 = vcmp.lt.s32.totalorder %v13248_v8, 0  ;;  %v13476_v18 = vmul.u32.u64.low %v13425_v23, %v3331_v1  ;;  %v13477_v31 = vmul.u32.u64.high %v13425_v23, %v3331_v1, %v13476_v18  ;;  %vm3064_vm11 = vweird.f32 %v13086_v4 }
 0x536   : > { %v6368_v44 = vclz %v8402_v25  ;;  %v6387_v55 = vsel %vm6302_vm9, %v6386_v51, %v6362_v24  ;;  %v3323_v48 = vsel %vm3317_vm8, %v3320_v38, %v3322_v10  ;;  %v6615_v39 = vand.u32 2139095040, %v13468_v27 }
 0x537   : > { %v13485_v42 = vadd.f32 %v13244_v41, %v13069_v34  ;;  %vm3068_vm0 = vcmp.eq.s32.totalorder %v3066_v28, 0  ;;  %vm3071_vm1 = vcmp.eq.s32.totalorder %v3066_v28, 2  ;;  %vm13489_vm13 = vcmp.le.f32.partialorder %v6300_v47, 0.7853982 }
 0x538   : > { %v8403_v53 = vadd.s32 4294967294, %v6368_v44  ;;  %v3342_v49 = vadd.s32 1, %v13454_v62  ;;  %v6356_v15 = vadd.s32 %v13375_v46, %v13391_v5  ;;  %v6389_v21 = vsel %vm13489_vm13, 0, %v6387_v55 }
 0x539   : > { %v6616_v16 = vshrl.u32 %v6615_v39, 23  ;;  %v3339_v35 = vmul.u32 %v13425_v23, %v3323_v48  ;;  %vm3341_vm4 = vc.u32 %v13477_v31, %v13453_v59  ;;  %v6612_v47 = vand.u32 2147483647, %v13468_v27 }
 0x53a   : > { %vm8404_vm15 = vcmp.lt.s32.totalorder %v8403_v53, 0  ;;  %v3183_v46 = vand.u32 2139095040, %v13485_v42  ;;  %v3343_v29 = vsel %vm3341_vm4, %v3342_v49, %v13454_v62  ;;  %vm3067_vm7 = vcmp.lt.s32.totalorder %v3066_v28, 2 }
 0x53b   : > { %v9200_v34 = vpop.eup %9199  ;;  %v6371_v24 = vsel %vm8404_vm15, 0, %v8403_v53  ;;  %v8413_v26 = vadd.s32 4294967169, %v6616_v16  ;;  %v3344_v63 = vadd.s32 %v3343_v29, %v3339_v35  ;;  %v6393_v52 = vadd.s32 3, %v6389_v21 }
 0x53c   : > { %v9202_v40 = vpop.eup %9201  ;;  %v3072_v61 = vxor.u32 2147483648, %v9200_v34  ;;  %v6372_v19 = vsub.s32 32, %v6371_v24  ;;  %v6376_v22 = vsub.s32 4294967266, %v6371_v24  ;;  %v6373_v17 = vshll.u32 %v13436_v2, %v6371_v24 }
 0x53d   : > { %v3069_v5 = vxor.u32 2147483648, %v9202_v40  ;;  %v6622_v33 = vadd.s32 1, %v8413_v26  ;;  %v3345_v51 = vadd.s32 536870912, %v3344_v63  ;;  %v6619_v30 = vand.u32 8388607, %v6612_v47 }
 0x53e   : > { %v3073_v23 = vsel %vm3071_vm1, %v3072_v61, %v9202_v40  ;;  %v6374_v9 = vshrl.u32 %v6356_v15, %v6372_v19  ;;  %v6377_v37 = vadd.s32 127, %v6376_v22  ;;  %v3184_v28 = vshrl.u32 %v3183_v46, 23 }
 0x53f   : > { %v3070_v45 = vsel %vm3068_vm0, %v9200_v34, %v3069_v5  ;;  %vm6623_vm2 = vcmp.gt.s32.totalorder %v6622_v33, 0  ;;  %v3346_v25 = vshrl.u32 %v3345_v51, 30  ;;  %v13513_v38 = vand.u32 3, %v6393_v52 }
 0x540   : > { %v3074_v11 = vsel %vm3067_vm7, %v3070_v45, %v3073_v23  ;;  %v6375_v43 = vor.u32 %v6374_v9, %v6373_v17  ;;  %v6378_v36 = vshll.u32 %v6377_v37, 23  ;;  %v6624_v32 = vsel %vm6623_vm2, %v6622_v33, 0 }
 0x541   : > { %v3075_v2 = vsel %vm3064_vm11, nan, %v3074_v11  ;;  %v6626_v10 = vand.u32 31, %v6624_v32  ;;  %vm3286_vm5 = vcmp.lt.s32.totalorder %v13253_v0, 0  ;;  %v3347_v55 = vshll.u32 %v3346_v25, 30 }
 0x542   : > { %7569 = vst.msk [vmem:[%s9945_s25 + $0xa0] sm:$0xff] %vm7548_vm14, %v3075_v2  ;;  %v6379_v62 = vor.u32 4788187, %v6378_v36  ;;  %v6382_v44 = vcvt.s32.f32 %v6375_v43  ;;  %v13518_v4 = vadd.f32 %v13244_v41, %v13132_v20  ;;  %v3340_v18 = vadd.s32 %v13453_v59, %v13477_v31 }
 0x543   : > { %v6620_v53 = vor.u32 8388608, %v6619_v30  ;;  %v6627_v48 = vsub.s32 32, %v6626_v10  ;;  %v3180_v39 = vand.u32 2147483647, %v13485_v42  ;;  %v13523_v15 = vsub.s32 %v3344_v63, %v3347_v55 }
 0x544   : > { %v6380_v1 = vand.u32 2147483647, %v6379_v62  ;;  %v13525_v21 = vshrl.u32 %v6624_v32, 5  ;;  %v8281_v16 = vadd.s32 4294967169, %v3184_v28  ;;  %v3370_v34 = vsub.s32 4, %v3346_v25 }
 0x545   : > { %v6629_v24 = vshll.u32 %v9401_v50, %v6626_v10  ;;  %v6630_v35 = vshrl.u32 %v9402_v54, %v6627_v48  ;;  %v6633_v20 = vshrl.u32 %v9403_v56, %v6627_v48  ;;  %v3350_v59 = vsub.s32 0, %v13523_v15 }
 0x546   : > { %v6383_v49 = vmul.f32 %v6382_v44, %v6380_v1  ;;  %v6632_v31 = vshll.u32 %v9402_v54, %v6626_v10  ;;  %v6636_v61 = vshrl.u32 %v9404_v58, %v6627_v48  ;;  %v6635_v22 = vshll.u32 %v9403_v56, %v6626_v10 }
 0x547   : > { %v6631_v19 = vor.u32 %v6630_v35, %v6629_v24  ;;  %v6638_v46 = vshll.u32 %v9404_v58, %v6626_v10  ;;  %v6639_v5 = vshrl.u32 %v9405_v60, %v6627_v48  ;;  %v8286_v29 = vmin.u32 %v3350_v59, %v13523_v15 }
 0x548   : > { %v6384_v40 = vxor.u32 2147483648, %v6383_v49  ;;  %v6634_v26 = vor.u32 %v6633_v20, %v6632_v31  ;;  %v6641_v23 = vshll.u32 %v9405_v60, %v6626_v10  ;;  %v6637_v37 = vor.u32 %v6636_v61, %v6635_v22  ;;  %v13581_v61 = vpop.f32.mrb[26].mxu0 }
 0x549   : > { %v6640_v63 = vor.u32 %v6639_v5, %v6638_v46  ;;  %v6642_v45 = vshrl.u32 %v9406_v3, %v6627_v48  ;;  %v3352_v52 = vclz %v8286_v29  ;;  %v13544_v33 = vshll.u32 %v6620_v53, 8 }
 0x54a   : > { %v6385_v17 = vsel %vm6302_vm9, %v6384_v40, %v6383_v49  ;;  %v3190_v11 = vadd.s32 1, %v8281_v16  ;;  %vm13548_vm3 = vcmp.le.f32.partialorder %v3284_v14, 0.7853982  ;;  %v3371_v13 = vsel %vm3286_vm5, %v3370_v34, %v3346_v25 }
 0x54b   : > { %v6388_v9 = vsel %vm13489_vm13, %v13248_v8, %v6385_v17  ;;  %v6628_v36 = vshrl.u32 %v9401_v50, %v6627_v48  ;;  %v6643_v51 = vor.u32 %v6642_v45, %v6641_v23  ;;  %v8287_v2 = vadd.s32 4294967294, %v3352_v52 }
 0x54c   : > { %9203 = vcosq.f32 %v6388_v9  ;;  %vm6644_vm6 = vcmp.lt.s32.totalorder %v13525_v21, 1  ;;  %vm6646_vm10 = vcmp.lt.s32.totalorder %v13525_v21, 3  ;;  %vm6647_vm12 = vcmp.lt.s32.totalorder %v13525_v21, 4 }
 0x54d   : > { %9205 = vsinq.f32 %v6388_v9  ;;  %v6649_v30 = vsel %vm6647_vm12, %v6637_v37, 2102212464  ;;  %v6652_v62 = vsel %vm6644_vm6, %v6631_v19, %v6634_v26  ;;  %v6653_v32 = vsel %vm6647_vm12, %v6640_v63, 920167782 }
 0x54e   : > { %v6656_v14 = vsel %vm6644_vm6, %v6634_v26, %v6637_v37  ;;  %vm8288_vm8 = vcmp.lt.s32.totalorder %v8287_v2, 0  ;;  %vm6645_vm9 = vcmp.lt.s32.totalorder %v13525_v21, 2  ;;  %v6654_v25 = vsel %vm6646_vm10, %v6637_v37, %v6653_v32 }
 0x54f   : > { %v6657_v28 = vsel %vm6647_vm12, %v6643_v51, 1326507024  ;;  %v3355_v10 = vsel %vm8288_vm8, 0, %v8287_v2  ;;  %v6648_v1 = vsel %vm6644_vm6, %v6628_v36, %v6631_v19  ;;  %v6655_v44 = vsel %vm6645_vm9, %v6652_v62, %v6654_v25 }
 0x550   : > { %v6658_v55 = vsel %vm6646_vm10, %v6640_v63, %v6657_v28  ;;  %vm6395_vm11 = vcmp.lt.s32.totalorder %v13513_v38, 2  ;;  %v3356_v53 = vsub.s32 32, %v3355_v10  ;;  %v3360_v48 = vsub.s32 4294967266, %v3355_v10 }
 0x551   : > { %v6650_v49 = vsel %vm6646_vm10, %v6634_v26, %v6649_v30  ;;  %v6659_v16 = vsel %vm6645_vm9, %v6656_v14, %v6658_v55  ;;  %vm6392_vm0 = vweird.f32 %v13248_v8  ;;  %v3357_v40 = vshll.u32 %v13523_v15, %v3355_v10 }
 0x552   : > { %v13572_v34 = vmul.u32.u64.low %v13544_v33, %v6659_v16  ;;  %v13573_v24 = vmul.u32.u64.high %v13544_v33, %v6659_v16, %v13572_v34  ;;  %v13576_v35 = vmul.u32.u64.low %v13544_v33, %v6655_v44  ;;  %v13577_v20 = vmul.u32.u64.high %v13544_v33, %v6655_v44, %v13576_v35 }
 0x553   : > { %v3358_v59 = vshrl.u32 %v3340_v18, %v3356_v53  ;;  %v3361_v31 = vadd.s32 127, %v3360_v48  ;;  %vm3191_vm1 = vcmp.gt.s32.totalorder %v3190_v11, 0  ;;  %vm6396_vm13 = vcmp.eq.s32.totalorder %v13513_v38, 0 }
 0x554   : > { %v6651_v19 = vsel %vm6645_vm9, %v6648_v1, %v6650_v49  ;;  %v3187_v22 = vand.u32 8388607, %v3180_v39  ;;  %v3192_v46 = vsel %vm3191_vm1, %v3190_v11, 0  ;;  %v3373_v15 = vsel %vm13548_vm3, 0, %v3371_v13 }
 0x555   : > { %v3359_v17 = vor.u32 %v3358_v59, %v3357_v40  ;;  %v3362_v29 = vshll.u32 %v3361_v31, 23  ;;  %v3194_v18 = vand.u32 31, %v3192_v46  ;;  %vm6399_vm15 = vcmp.eq.s32.totalorder %v13513_v38, 2 }
 0x556   : > { %v9204_v5 = vpop.eup %9203  ;;  %vm6669_vm4 = vc.u32 %v13573_v24, %v13576_v35  ;;  %v6670_v21 = vadd.s32 1, %v13577_v20  ;;  %v6667_v63 = vmul.u32 %v13544_v33, %v6651_v19  ;;  %v3377_v11 = vadd.s32 3, %v3373_v15 }
 0x557   : > { %v9206_v26 = vpop.eup %9205  ;;  %v6400_v23 = vxor.u32 2147483648, %v9204_v5  ;;  %v3363_v37 = vor.u32 4788187, %v3362_v29  ;;  %v3195_v45 = vsub.s32 32, %v3194_v18  ;;  %v3188_v36 = vor.u32 8388608, %v3187_v22 }
 0x558   : > { %v6397_v9 = vxor.u32 2147483648, %v9206_v26  ;;  %v6671_v13 = vsel %vm6669_vm4, %v6670_v21, %v13577_v20  ;;  %v3366_v30 = vcvt.s32.f32 %v3359_v17  ;;  %v3197_v14 = vshll.u32 %v9401_v50, %v3194_v18 }
 0x559   : > { %v6401_v52 = vsel %vm6399_vm15, %v6400_v23, %v9206_v26  ;;  %v3364_v2 = vand.u32 2147483647, %v3363_v37  ;;  %v6672_v62 = vadd.s32 %v6671_v13, %v6667_v63  ;;  %v3198_v33 = vshrl.u32 %v9402_v54, %v3195_v45 }
 0x55a   : > { %v6398_v51 = vsel %vm6396_vm13, %v9204_v5, %v6397_v9  ;;  %v3201_v25 = vshrl.u32 %v9403_v56, %v3195_v45  ;;  %v3204_v44 = vshrl.u32 %v9404_v58, %v3195_v45  ;;  %v3193_v55 = vshrl.u32 %v3192_v46, 5 }
 0x55b   : > { %v6402_v32 = vsel %vm6395_vm11, %v6398_v51, %v6401_v52  ;;  %v3367_v10 = vmul.f32 %v3366_v30, %v3364_v2  ;;  %v6673_v1 = vadd.s32 536870912, %v6672_v62  ;;  %v3200_v53 = vshll.u32 %v9402_v54, %v3194_v18 }
 0x55c   : > { %v6403_v28 = vsel %vm6392_vm0, nan, %v6402_v32  ;;  %v3203_v38 = vshll.u32 %v9403_v56, %v3194_v18  ;;  %v3207_v48 = vshrl.u32 %v9405_v60, %v3195_v45  ;;  %v3199_v34 = vor.u32 %v3198_v33, %v3197_v14 }
 0x55d   : > { %7601 = vst.msk [vmem:[%s9945_s25 + $0x1a0] sm:$0xff] %vm7548_vm14, %v6403_v28  ;;  %v3368_v49 = vxor.u32 2147483648, %v3367_v10  ;;  %v6674_v16 = vshrl.u32 %v6673_v1, 30  ;;  %v3206_v20 = vshll.u32 %v9404_v58, %v3194_v18  ;;  %vm6614_vm7 = vcmp.lt.s32.totalorder %v13468_v27, 0 }
 0x55e   : > { %v3202_v8 = vor.u32 %v3201_v25, %v3200_v53  ;;  %v3205_v40 = vor.u32 %v3204_v44, %v3203_v38  ;;  %v3209_v59 = vshll.u32 %v9405_v60, %v3194_v18  ;;  %v3210_v31 = vshrl.u32 %v9406_v3, %v3195_v45 }
 0x55f   : > { %v3369_v19 = vsel %vm3286_vm5, %v3368_v49, %v3367_v10  ;;  %v13617_v22 = vand.u32 3, %v3377_v11  ;;  %v6675_v46 = vshll.u32 %v6674_v16, 30  ;;  %v3208_v5 = vor.u32 %v3207_v48, %v3206_v20 }
 0x560   : > { %v3372_v17 = vsel %vm13548_vm3, %v13253_v0, %v3369_v19  ;;  %v3196_v29 = vshrl.u32 %v9401_v50, %v3195_v45  ;;  %v3211_v15 = vor.u32 %v3210_v31, %v3209_v59  ;;  %v13623_v26 = vshll.u32 %v3188_v36, 8 }
 0x561   : > { %9207 = vcosq.f32 %v3372_v17  ;;  %v13625_v18 = vsub.s32 %v6672_v62, %v6675_v46  ;;  %vm3212_vm2 = vcmp.lt.s32.totalorder %v3193_v55, 1  ;;  %vm3215_vm6 = vcmp.lt.s32.totalorder %v3193_v55, 4 }
 0x562   : > { %9209 = vsinq.f32 %v3372_v17  ;;  %vm3213_vm5 = vcmp.lt.s32.totalorder %v3193_v55, 2  ;;  %v3217_v23 = vsel %vm3215_vm6, %v3205_v40, 2102212464  ;;  %v3220_v21 = vsel %vm3212_vm2, %v3199_v34, %v3202_v8 }
 0x563   : > { %v6678_v9 = vsub.s32 0, %v13625_v18  ;;  %v6698_v37 = vsub.s32 4, %v6674_v16  ;;  %vm3214_vm10 = vcmp.lt.s32.totalorder %v3193_v55, 3  ;;  %v3221_v43 = vsel %vm3215_vm6, %v3208_v5, 920167782  ;;  %v13655_v55 = vpop.f32.mrb[26].mxu1 }
 0x564   : > { %v3216_v63 = vsel %vm3212_vm2, %v3196_v29, %v3199_v34  ;;  %v3222_v52 = vsel %vm3214_vm10, %v3205_v40, %v3221_v43  ;;  %v3224_v45 = vsel %vm3212_vm2, %v3202_v8, %v3205_v40  ;;  %v3225_v11 = vsel %vm3215_vm6, %v3211_v15, 1326507024 }
 0x565   : > { %v8414_v13 = vmin.u32 %v6678_v9, %v13625_v18  ;;  %v3218_v36 = vsel %vm3214_vm10, %v3202_v8, %v3217_v23  ;;  %v3223_v51 = vsel %vm3213_vm5, %v3220_v21, %v3222_v52  ;;  %v3226_v2 = vsel %vm3214_vm10, %v3208_v5, %v3225_v11 }
 0x566   : > { %v3227_v30 = vsel %vm3213_vm5, %v3224_v45, %v3226_v2  ;;  %v13632_v62 = vmul.u32.u64.low %v13623_v26, %v3223_v51  ;;  %v13633_v32 = vmul.u32.u64.high %v13623_v26, %v3223_v51, %v13632_v62  ;;  %v6511_v14 = vand.u32 2139095040, %v13518_v4 }
 0x567   : > { %v6680_v33 = vclz %v8414_v13  ;;  %v6699_v25 = vsel %vm6614_vm7, %v6698_v37, %v6674_v16  ;;  %v6508_v28 = vand.u32 2147483647, %v13518_v4  ;;  %v3219_v10 = vsel %vm3213_vm5, %v3216_v63, %v3218_v36 }
 0x568   : > { %v13641_v1 = vmul.u32.u64.low %v13623_v26, %v3227_v30  ;;  %v13642_v44 = vmul.u32.u64.high %v13623_v26, %v3227_v30, %v13641_v1  ;;  %v6512_v53 = vshrl.u32 %v6511_v14, 23  ;;  %vm3379_vm3 = vcmp.lt.s32.totalorder %v13617_v22, 2 }
 0x569   : > { %vm13647_vm12 = vcmp.le.f32.partialorder %v6612_v47, 0.7853982  ;;  %v8415_v48 = vadd.s32 4294967294, %v6680_v33  ;;  %v13653_v49 = vadd.f32 %v13244_v41, %v13236_v6  ;;  %vm3380_vm8 = vcmp.eq.s32.totalorder %v13617_v22, 0 }
 0x56a   : > { %vm3383_vm9 = vcmp.eq.s32.totalorder %v13617_v22, 2  ;;  %v3238_v16 = vadd.s32 1, %v13633_v32  ;;  %v8409_v34 = vadd.s32 4294967169, %v6512_v53  ;;  %v6668_v47 = vadd.s32 %v13576_v35, %v13573_v24 }
 0x56b   : > { %v9208_v20 = vpop.eup %9207  ;;  %vm8416_vm11 = vcmp.lt.s32.totalorder %v8415_v48, 0  ;;  %v6701_v8 = vsel %vm13647_vm12, 0, %v6699_v25  ;;  %v3235_v6 = vmul.u32 %v13623_v26, %v3219_v10  ;;  %vm3237_vm0 = vc.u32 %v13642_v44, %v13632_v62 }
 0x56c   : > { %v9210_v41 = vpop.eup %9209  ;;  %v3384_v40 = vxor.u32 2147483648, %v9208_v20  ;;  %v6683_v59 = vsel %vm8416_vm11, 0, %v8415_v48  ;;  %v6515_v31 = vand.u32 8388607, %v6508_v28  ;;  %v3495_v17 = vand.u32 2139095040, %v13653_v49 }
 0x56d   : > { %v3381_v19 = vxor.u32 2147483648, %v9210_v41  ;;  %v6684_v46 = vsub.s32 32, %v6683_v59  ;;  %v6688_v5 = vsub.s32 4294967266, %v6683_v59  ;;  %v6685_v35 = vshll.u32 %v13625_v18, %v6683_v59 }
 0x56e   : > { %v3385_v24 = vsel %vm3383_vm9, %v3384_v40, %v9210_v41  ;;  %v3239_v29 = vsel %vm3237_vm0, %v3238_v16, %v13633_v32  ;;  %v6518_v15 = vadd.s32 1, %v8409_v34  ;;  %vm3376_vm1 = vweird.f32 %v13253_v0 }
 0x56f   : > { %v3382_v26 = vsel %vm3380_vm8, %v9208_v20, %v3381_v19  ;;  %v6686_v23 = vshrl.u32 %v6668_v47, %v6684_v46  ;;  %v6689_v21 = vadd.s32 127, %v6688_v5  ;;  %v3240_v9 = vadd.s32 %v3239_v29, %v3235_v6 }
 0x570   : > { %v3386_v37 = vsel %vm3379_vm3, %v3382_v26, %v3385_v24  ;;  %v6705_v43 = vadd.s32 3, %v6701_v8  ;;  %vm6519_vm13 = vcmp.gt.s32.totalorder %v6518_v15, 0  ;;  %v6516_v11 = vor.u32 8388608, %v6515_v31 }
 0x571   : > { %v3387_v63 = vsel %vm3376_vm1, nan, %v3386_v37  ;;  %v6687_v52 = vor.u32 %v6686_v23, %v6685_v35  ;;  %v6690_v45 = vshll.u32 %v6689_v21, 23  ;;  %v3241_v18 = vadd.s32 536870912, %v3240_v9 }
 0x572   : > { %7572 = vst.msk [vmem:[%s9945_s25 + $0xb8] sm:$0xff] %vm7548_vm14, %v3387_v63  ;;  %v6520_v13 = vsel %vm6519_vm13, %v6518_v15, 0  ;;  %v3496_v2 = vshrl.u32 %v3495_v17, 23  ;;  %v13680_v0 = vand.u32 3, %v6705_v43  ;;  %vm3182_vm15 = vcmp.lt.s32.totalorder %v13485_v42, 0 }
 0x573   : > { %v6691_v36 = vor.u32 4788187, %v6690_v45  ;;  %v3242_v51 = vshrl.u32 %v3241_v18, 30  ;;  %v6522_v30 = vand.u32 31, %v6520_v13  ;;  %v6694_v14 = vcvt.s32.f32 %v6687_v52 }
 0x574   : > { %v13684_v33 = vadd.s32 %v13632_v62, %v13642_v44  ;;  %v13686_v10 = vshll.u32 %v6516_v11, 8  ;;  %v3492_v1 = vand.u32 2147483647, %v13653_v49  ;;  %v13691_v16 = vshrl.u32 %v6520_v13, 5 }
 0x575   : > { %v6692_v32 = vand.u32 2147483647, %v6691_v36  ;;  %v3243_v22 = vshll.u32 %v3242_v51, 30  ;;  %v6523_v25 = vsub.s32 32, %v6522_v30  ;;  %v8293_v34 = vadd.s32 4294967169, %v3496_v2 }
 0x576   : > { %v3266_v20 = vsub.s32 4, %v3242_v51  ;;  %v6525_v47 = vshll.u32 %v9401_v50, %v6522_v30  ;;  %vm13698_vm4 = vcmp.le.f32.partialorder %v3180_v39, 0.7853982  ;;  %v6528_v40 = vshll.u32 %v9402_v54, %v6522_v30 }
 0x577   : > { %v6695_v53 = vmul.f32 %v6694_v14, %v6692_v32  ;;  %v13689_v48 = vsub.s32 %v3240_v9, %v3243_v22  ;;  %v6526_v8 = vshrl.u32 %v9402_v54, %v6523_v25  ;;  %v6529_v6 = vshrl.u32 %v9403_v56, %v6523_v25  ;;  %v13738_v22 = vpop.f32.mrb[27].mxu0 }
 0x578   : > { %v6532_v59 = vshrl.u32 %v9404_v58, %v6523_v25  ;;  %v6531_v19 = vshll.u32 %v9403_v56, %v6522_v30  ;;  %v6534_v46 = vshll.u32 %v9404_v58, %v6522_v30  ;;  %v6535_v5 = vshrl.u32 %v9405_v60, %v6523_v25 }
 0x579   : > { %v6696_v62 = vxor.u32 2147483648, %v6695_v53  ;;  %v3246_v41 = vsub.s32 0, %v13689_v48  ;;  %v6527_v31 = vor.u32 %v6526_v8, %v6525_v47  ;;  %v6530_v24 = vor.u32 %v6529_v6, %v6528_v40 }
 0x57a   : > { %v6537_v35 = vshll.u32 %v9405_v60, %v6522_v30  ;;  %v6533_v15 = vor.u32 %v6532_v59, %v6531_v19  ;;  %v6536_v26 = vor.u32 %v6535_v5, %v6534_v46  ;;  %v6538_v23 = vshrl.u32 %v9406_v3, %v6523_v25 }
 0x57b   : > { %v6697_v17 = vsel %vm6614_vm7, %v6696_v62, %v6695_v53  ;;  %v8282_v39 = vmin.u32 %v3246_v41, %v13689_v48  ;;  %vm6540_vm2 = vcmp.lt.s32.totalorder %v13691_v16, 1  ;;  %v3502_v9 = vadd.s32 1, %v8293_v34 }
 0x57c   : > { %v6700_v29 = vsel %vm13647_vm12, %v13468_v27, %v6697_v17  ;;  %v3267_v37 = vsel %vm3182_vm15, %v3266_v20, %v3242_v51  ;;  %v6524_v43 = vshrl.u32 %v9401_v50, %v6523_v25  ;;  %v6539_v63 = vor.u32 %v6538_v23, %v6537_v35 }
 0x57d   : > { %9211 = vcosq.f32 %v6700_v29  ;;  %v3248_v21 = vclz %v8282_v39  ;;  %vm6542_vm7 = vcmp.lt.s32.totalorder %v13691_v16, 3  ;;  %vm6543_vm6 = vcmp.lt.s32.totalorder %v13691_v16, 4 }
 0x57e   : > { %9213 = vsinq.f32 %v6700_v29  ;;  %v6548_v38 = vsel %vm6540_vm2, %v6527_v31, %v6530_v24  ;;  %v6545_v45 = vsel %vm6543_vm6, %v6533_v15, 2102212464  ;;  %v6549_v18 = vsel %vm6543_vm6, %v6536_v26, 920167782 }
 0x57f   : > { %v8283_v52 = vadd.s32 4294967294, %v3248_v21  ;;  %v6552_v11 = vsel %vm6540_vm2, %v6530_v24, %v6533_v15  ;;  %v6553_v13 = vsel %vm6543_vm6, %v6539_v63, 1326507024  ;;  %vm6541_vm10 = vcmp.lt.s32.totalorder %v13691_v16, 2  ;;  %v13768_v16 = vld [vmem:[%s15263_s2] ss:$0 sm:$0xff] }
 0x580   : > { %v6550_v36 = vsel %vm6542_vm7, %v6533_v15, %v6549_v18  ;;  %v6554_v51 = vsel %vm6542_vm7, %v6536_v26, %v6553_v13  ;;  %vm6708_vm3 = vcmp.eq.s32.totalorder %v13680_v0, 0  ;;  %v3269_v30 = vsel %vm13698_vm4, 0, %v3267_v37 }
 0x581   : > { %vm8284_vm5 = vcmp.lt.s32.totalorder %v8283_v52, 0  ;;  %v6551_v32 = vsel %vm6541_vm10, %v6548_v38, %v6550_v36  ;;  %v6555_v14 = vsel %vm6541_vm10, %v6552_v11, %v6554_v51  ;;  %vm6707_vm12 = vcmp.lt.s32.totalorder %v13680_v0, 2 }
 0x582   : > { %v3251_v2 = vsel %vm8284_vm5, 0, %v8283_v52  ;;  %v6544_v34 = vsel %vm6540_vm2, %v6524_v43, %v6527_v31  ;;  %v6546_v20 = vsel %vm6542_vm7, %v6530_v24, %v6545_v45  ;;  %vm6704_vm8 = vweird.f32 %v13468_v27 }
 0x583   : > { %v3252_v25 = vsub.s32 32, %v3251_v2  ;;  %v3256_v53 = vsub.s32 4294967266, %v3251_v2  ;;  %v13747_v47 = vmul.u32.u64.low %v13686_v10, %v6555_v14  ;;  %v13748_v8 = vmul.u32.u64.high %v13686_v10, %v6555_v14, %v13747_v47 }
 0x584   : > { %v13751_v6 = vmul.u32.u64.low %v13686_v10, %v6551_v32  ;;  %v13752_v62 = vmul.u32.u64.high %v13686_v10, %v6551_v32, %v13751_v6  ;;  %v3253_v41 = vshll.u32 %v13689_v48, %v3251_v2  ;;  %vm3503_vm9 = vcmp.gt.s32.totalorder %v3502_v9, 0 }
 0x585   : > { %v3254_v40 = vshrl.u32 %v13684_v33, %v3252_v25  ;;  %v3257_v59 = vadd.s32 127, %v3256_v53  ;;  %v3273_v31 = vadd.s32 3, %v3269_v30  ;;  %v6547_v19 = vsel %vm6541_vm10, %v6544_v34, %v6546_v20 }
 0x586   : > { %v3499_v46 = vand.u32 8388607, %v3492_v1  ;;  %v3504_v5 = vsel %vm3503_vm9, %v3502_v9, 0  ;;  %vm6711_vm11 = vcmp.eq.s32.totalorder %v13680_v0, 2  ;;  %vm6565_vm0 = vc.u32 %v13748_v8, %v13751_v6 }
 0x587   : > { %v9212_v17 = vpop.eup %9211  ;;  %v3255_v39 = vor.u32 %v3254_v40, %v3253_v41  ;;  %v3258_v24 = vshll.u32 %v3257_v59, 23  ;;  %v3506_v35 = vand.u32 31, %v3504_v5  ;;  %v6566_v33 = vadd.s32 1, %v13752_v62 }
 0x588   : > { %v9214_v29 = vpop.eup %9213  ;;  %v6712_v48 = vxor.u32 2147483648, %v9212_v17  ;;  %v13772_v15 = vadd.f32 %v13768_v16, %v13292_v57  ;;  %v6563_v21 = vmul.u32 %v13686_v10, %v6547_v19  ;;  %v13775_v43 = vand.u32 3, %v3273_v31 }
 0x589   : > { %v6709_v26 = vxor.u32 2147483648, %v9214_v29  ;;  %v3259_v23 = vor.u32 4788187, %v3258_v24  ;;  %v3507_v9 = vsub.s32 32, %v3506_v35  ;;  %v6567_v63 = vsel %vm6565_vm0, %v6566_v33, %v13752_v62 }
 0x58a   : > { %v6713_v37 = vsel %vm6711_vm11, %v6712_v48, %v9214_v29  ;;  %v3500_v52 = vor.u32 8388608, %v3499_v46  ;;  %v3262_v18 = vcvt.s32.f32 %v3255_v39  ;;  %v6568_v11 = vadd.s32 %v6567_v63, %v6563_v21 }
 0x58b   : > { %v6710_v38 = vsel %vm6708_vm3, %v9212_v17, %v6709_v26  ;;  %v3260_v45 = vand.u32 2147483647, %v3259_v23  ;;  %v3509_v13 = vshll.u32 %v9401_v50, %v3506_v35  ;;  %v3510_v10 = vshrl.u32 %v9402_v54, %v3507_v9 }
 0x58c   : > { %v6714_v57 = vsel %vm6707_vm12, %v6710_v38, %v6713_v37  ;;  %v3513_v36 = vshrl.u32 %v9403_v56, %v3507_v9  ;;  %v6569_v30 = vadd.s32 536870912, %v6568_v11  ;;  %v3516_v32 = vshrl.u32 %v9404_v58, %v3507_v9 }
 0x58d   : > { %v6715_v51 = vsel %vm6704_vm8, nan, %v6714_v57  ;;  %v3263_v2 = vmul.f32 %v3262_v18, %v3260_v45  ;;  %v3505_v14 = vshrl.u32 %v3504_v5, 5  ;;  %v3512_v25 = vshll.u32 %v9402_v54, %v3506_v35 }
 0x58e   : > { %7604 = vst.msk [vmem:[%s9945_s25 + $0x1b8] sm:$0xff] %vm7548_vm14, %v6715_v51  ;;  %v3515_v0 = vshll.u32 %v9403_v56, %v3506_v35  ;;  %v3519_v53 = vshrl.u32 %v9405_v60, %v3507_v9  ;;  %v6570_v20 = vshrl.u32 %v6569_v30, 30  ;;  %v3511_v47 = vor.u32 %v3510_v10, %v3509_v13 }
 0x58f   : > { %v3264_v34 = vxor.u32 2147483648, %v3263_v2  ;;  %v3518_v62 = vshll.u32 %v9404_v58, %v3506_v35  ;;  %v3514_v27 = vor.u32 %v3513_v36, %v3512_v25  ;;  %v3521_v40 = vshll.u32 %v9405_v60, %v3506_v35  ;;  %v13815_v36 = vpop.f32.mrb[27].mxu1 }
 0x590   : > { %v3517_v41 = vor.u32 %v3516_v32, %v3515_v0  ;;  %v3522_v59 = vshrl.u32 %v9406_v3, %v3507_v9  ;;  %v6571_v19 = vshll.u32 %v6570_v20, 30  ;;  %v13798_v5 = vshll.u32 %v3500_v52, 8 }
 0x591   : > { %v3265_v31 = vsel %vm3182_vm15, %v3264_v34, %v3263_v2  ;;  %v3520_v46 = vor.u32 %v3519_v53, %v3518_v62  ;;  %v3508_v39 = vshrl.u32 %v9401_v50, %v3507_v9  ;;  %v6823_v29 = vand.u32 2139095040, %v13772_v15 }
 0x592   : > { %v3268_v17 = vsel %vm13698_vm4, %v13485_v42, %v3265_v31  ;;  %v3523_v24 = vor.u32 %v3522_v59, %v3521_v40  ;;  %v13805_v35 = vsub.s32 %v6568_v11, %v6571_v19  ;;  %vm3524_vm1 = vcmp.lt.s32.totalorder %v3505_v14, 1 }
 0x593   : > { %9215 = vcosq.f32 %v3268_v17  ;;  %vm3527_vm13 = vcmp.lt.s32.totalorder %v3505_v14, 4  ;;  %vm3525_vm15 = vcmp.lt.s32.totalorder %v3505_v14, 2  ;;  %v3532_v33 = vsel %vm3524_vm1, %v3511_v47, %v3514_v27 }
 0x594   : > { %9217 = vsinq.f32 %v3268_v17  ;;  %v3529_v48 = vsel %vm3527_vm13, %v3517_v41, 2102212464  ;;  %v6574_v26 = vsub.s32 0, %v13805_v35  ;;  %v6594_v23 = vsub.s32 4, %v6570_v20 }
 0x595   : > { %vm3526_vm2 = vcmp.lt.s32.totalorder %v3505_v14, 3  ;;  %v3533_v44 = vsel %vm3527_vm13, %v3520_v46, 920167782  ;;  %v3528_v21 = vsel %vm3524_vm1, %v3508_v39, %v3511_v47  ;;  %v3536_v9 = vsel %vm3524_vm1, %v3514_v27, %v3517_v41 }
 0x596   : > { %v3534_v37 = vsel %vm3526_vm2, %v3517_v41, %v3533_v44  ;;  %v3537_v63 = vsel %vm3527_vm13, %v3523_v24, 1326507024  ;;  %v8410_v52 = vmin.u32 %v6574_v26, %v13805_v35  ;;  %v3530_v38 = vsel %vm3526_vm2, %v3514_v27, %v3529_v48 }
 0x597   : > { %v3535_v45 = vsel %vm3525_vm15, %v3532_v33, %v3534_v37  ;;  %v3538_v18 = vsel %vm3526_vm2, %v3520_v46, %v3537_v63  ;;  %v6824_v10 = vshrl.u32 %v6823_v29, 23  ;;  %vm13819_vm4 = vcmp.le.f32.partialorder %v6508_v28, 0.7853982 }
 0x598   : > { %v3539_v11 = vsel %vm3525_vm15, %v3536_v9, %v3538_v18  ;;  %v13812_v57 = vmul.u32.u64.low %v13798_v5, %v3535_v45  ;;  %v13813_v13 = vmul.u32.u64.high %v13798_v5, %v3535_v45, %v13812_v57  ;;  %vm6510_vm7 = vcmp.lt.s32.totalorder %v13518_v4, 0 }
 0x599   : > { %v6576_v2 = vclz %v8410_v52  ;;  %vm3272_vm6 = vweird.f32 %v13485_v42  ;;  %v6595_v30 = vsel %vm6510_vm7, %v6594_v23, %v6570_v20  ;;  %v8421_v0 = vadd.s32 4294967169, %v6824_v10 }
 0x59a   : > { %v13828_v32 = vmul.u32.u64.low %v13798_v5, %v3539_v11  ;;  %v13829_v25 = vmul.u32.u64.high %v13798_v5, %v3539_v11, %v13828_v32  ;;  %v3531_v34 = vsel %vm3525_vm15, %v3528_v21, %v3530_v38  ;;  %v6820_v28 = vand.u32 2147483647, %v13772_v15 }
 0x59b   : > { %v8411_v53 = vadd.s32 4294967294, %v6576_v2  ;;  %v13835_v47 = vadd.f32 %v13768_v16, %v13386_v7  ;;  %vm3275_vm5 = vcmp.lt.s32.totalorder %v13775_v43, 2  ;;  %vm3276_vm10 = vcmp.eq.s32.totalorder %v13775_v43, 0 }
 0x59c   : > { %v3550_v20 = vadd.s32 1, %v13813_v13  ;;  %v6830_v62 = vadd.s32 1, %v8421_v0  ;;  %vm3279_vm3 = vcmp.eq.s32.totalorder %v13775_v43, 2  ;;  %v6564_v14 = vadd.s32 %v13751_v6, %v13748_v8 }
 0x59d   : > { %v9216_v27 = vpop.eup %9215  ;;  %vm8412_vm12 = vcmp.lt.s32.totalorder %v8411_v53, 0  ;;  %v6597_v41 = vsel %vm13819_vm4, 0, %v6595_v30  ;;  %v3547_v31 = vmul.u32 %v13798_v5, %v3531_v34  ;;  %vm3549_vm8 = vc.u32 %v13829_v25, %v13812_v57 }
 0x59e   : > { %v9218_v40 = vpop.eup %9217  ;;  %v3280_v7 = vxor.u32 2147483648, %v9216_v27  ;;  %v6579_v59 = vsel %vm8412_vm12, 0, %v8411_v53  ;;  %v6827_v39 = vand.u32 8388607, %v6820_v28  ;;  %v3551_v6 = vsel %vm3549_vm8, %v3550_v20, %v13813_v13 }
 0x59f   : > { %v3277_v19 = vxor.u32 2147483648, %v9218_v40  ;;  %v6580_v46 = vsub.s32 32, %v6579_v59  ;;  %v6584_v17 = vsub.s32 4294967266, %v6579_v59  ;;  %v6581_v8 = vshll.u32 %v13805_v35, %v6579_v59 }
 0x5a0   : > { %v3281_v24 = vsel %vm3279_vm3, %v3280_v7, %v9218_v40  ;;  %vm6831_vm9 = vcmp.gt.s32.totalorder %v6830_v62, 0  ;;  %v3552_v33 = vadd.s32 %v3551_v6, %v3547_v31  ;;  %v6601_v23 = vadd.s32 3, %v6597_v41 }
 0x5a1   : > { %v3278_v29 = vsel %vm3276_vm10, %v9216_v27, %v3277_v19  ;;  %v6582_v48 = vshrl.u32 %v6564_v14, %v6580_v46  ;;  %v6585_v5 = vadd.s32 127, %v6584_v17  ;;  %v6832_v44 = vsel %vm6831_vm9, %v6830_v62, 0 }
 0x5a2   : > { %v3282_v26 = vsel %vm3275_vm5, %v3278_v29, %v3281_v24  ;;  %v3388_v21 = vand.u32 2147483647, %v13835_v47  ;;  %v3553_v63 = vadd.s32 536870912, %v3552_v33  ;;  %v6828_v52 = vor.u32 8388608, %v6827_v39 }
 0x5a3   : > { %v3283_v37 = vsel %vm3272_vm6, nan, %v3282_v26  ;;  %v6583_v35 = vor.u32 %v6582_v48, %v6581_v8  ;;  %v6586_v9 = vshll.u32 %v6585_v5, 23  ;;  %v6834_v38 = vand.u32 31, %v6832_v44 }
 0x5a4   : > { %7571 = vst.msk [vmem:[%s9945_s25 + $0xb0] sm:$0xff] %vm7548_vm14, %v3283_v37  ;;  %v13860_v18 = vshrl.u32 %v3553_v63, 30  ;;  %v13862_v11 = vand.u32 3, %v6601_v23  ;;  %v3391_v13 = vand.u32 2139095040, %v13835_v47  ;;  %v13867_v10 = vand.u32 8388607, %v3388_v21 }
 0x5a5   : > { %v6587_v45 = vor.u32 4788187, %v6586_v9  ;;  %v6835_v43 = vsub.s32 32, %v6834_v38  ;;  %v6590_v2 = vcvt.s32.f32 %v6583_v35  ;;  %v13870_v30 = vadd.s32 %v13812_v57, %v13829_v25 }
 0x5a6   : > { %v3555_v32 = vshll.u32 %v13860_v18, 30  ;;  %v13876_v20 = vshll.u32 %v6828_v52, 8  ;;  %v6837_v14 = vshll.u32 %v9401_v50, %v6834_v38  ;;  %v6833_v40 = vshrl.u32 %v6832_v44, 5 }
 0x5a7   : > { %v6588_v42 = vand.u32 2147483647, %v6587_v45  ;;  %v6838_v0 = vshrl.u32 %v9402_v54, %v6835_v43  ;;  %v6841_v53 = vshrl.u32 %v9403_v56, %v6835_v43  ;;  %v6844_v34 = vshrl.u32 %v9404_v58, %v6835_v43 }
 0x5a8   : > { %v13878_v27 = vsub.s32 %v3552_v33, %v3555_v32  ;;  %v6847_v41 = vshrl.u32 %v9405_v60, %v6835_v43  ;;  %v6840_v57 = vshll.u32 %v9402_v54, %v6834_v38  ;;  %v6843_v25 = vshll.u32 %v9403_v56, %v6834_v38 }
 0x5a9   : > { %v6591_v62 = vmul.f32 %v6590_v2, %v6588_v42  ;;  %v3392_v7 = vshrl.u32 %v3391_v13, 23  ;;  %v6839_v19 = vor.u32 %v6838_v0, %v6837_v14  ;;  %v6846_v46 = vshll.u32 %v9404_v58, %v6834_v38 }
 0x5aa   : > { %v3558_v31 = vsub.s32 0, %v13878_v27  ;;  %v6842_v17 = vor.u32 %v6841_v53, %v6840_v57  ;;  %v6845_v39 = vor.u32 %v6844_v34, %v6843_v25  ;;  %v6849_v24 = vshll.u32 %v9405_v60, %v6834_v38 }
 0x5ab   : > { %v6592_v59 = vxor.u32 2147483648, %v6591_v62  ;;  %v6850_v8 = vshrl.u32 %v9406_v3, %v6835_v43  ;;  %v6848_v48 = vor.u32 %v6847_v41, %v6846_v46  ;;  %v3396_v5 = vor.u32 8388608, %v13867_v10 }
 0x5ac   : > { %v8294_v29 = vmin.u32 %v3558_v31, %v13878_v27  ;;  %v6836_v26 = vshrl.u32 %v9401_v50, %v6835_v43  ;;  %v8289_v44 = vadd.s32 4294967169, %v3392_v7  ;;  %vm6852_vm11 = vcmp.lt.s32.totalorder %v6833_v40, 1  ;;  %v13911_v31 = vpop.f32.mrb[28].mxu0 }
 0x5ad   : > { %v6593_v6 = vsel %vm6510_vm7, %v6592_v59, %v6591_v62  ;;  %v6851_v23 = vor.u32 %v6850_v8, %v6849_v24  ;;  %vm6855_vm0 = vcmp.lt.s32.totalorder %v6833_v40, 4  ;;  %vm3494_vm1 = vcmp.lt.s32.totalorder %v13653_v49, 0 }
 0x5ae   : > { %v6596_v33 = vsel %vm13819_vm4, %v13518_v4, %v6593_v6  ;;  %v3560_v37 = vclz %v8294_v29  ;;  %vm6853_vm13 = vcmp.lt.s32.totalorder %v6833_v40, 2  ;;  %v6857_v35 = vsel %vm6855_vm0, %v6845_v39, 2102212464 }
 0x5af   : > { %9219 = vcosq.f32 %v6596_v33  ;;  %v6860_v9 = vsel %vm6852_vm11, %v6839_v19, %v6842_v17  ;;  %vm6854_vm15 = vcmp.lt.s32.totalorder %v6833_v40, 3  ;;  %v6861_v52 = vsel %vm6855_vm0, %v6848_v48, 920167782 }
 0x5b0   : > { %9221 = vsinq.f32 %v6596_v33  ;;  %v8295_v63 = vadd.s32 4294967294, %v3560_v37  ;;  %v6864_v38 = vsel %vm6852_vm11, %v6842_v17, %v6845_v39  ;;  %v6856_v51 = vsel %vm6852_vm11, %v6836_v26, %v6839_v19 }
 0x5b1   : > { %v6862_v45 = vsel %vm6854_vm15, %v6845_v39, %v6861_v52  ;;  %v6865_v13 = vsel %vm6855_vm0, %v6851_v23, 1326507024  ;;  %v3398_v43 = vadd.s32 1, %v8289_v44  ;;  %v6858_v10 = vsel %vm6854_vm15, %v6842_v17, %v6857_v35 }
 0x5b2   : > { %vm8296_vm2 = vcmp.lt.s32.totalorder %v8295_v63, 0  ;;  %v6863_v42 = vsel %vm6853_vm13, %v6860_v9, %v6862_v45  ;;  %v6866_v2 = vsel %vm6854_vm15, %v6848_v48, %v6865_v13  ;;  %v3578_v41 = vsub.s32 4, %v13860_v18 }
 0x5b3   : > { %v3563_v32 = vsel %vm8296_vm2, 0, %v8295_v63  ;;  %v6867_v0 = vsel %vm6853_vm13, %v6864_v38, %v6866_v2  ;;  %v13900_v53 = vmul.u32.u64.low %v13876_v20, %v6863_v42  ;;  %v13901_v34 = vmul.u32.u64.high %v13876_v20, %v6863_v42, %v13900_v53 }
 0x5b4   : > { %v3564_v62 = vsub.s32 32, %v3563_v32  ;;  %v3568_v14 = vsub.s32 4294967266, %v3563_v32  ;;  %vm3399_vm4 = vcmp.gt.s32.totalorder %v3398_v43, 0  ;;  %vm6600_vm7 = vweird.f32 %v13518_v4 }
 0x5b5   : > { %v6859_v57 = vsel %vm6853_vm13, %v6856_v51, %v6858_v10  ;;  %v13908_v25 = vmul.u32.u64.low %v13876_v20, %v6867_v0  ;;  %v13909_v7 = vmul.u32.u64.high %v13876_v20, %v6867_v0, %v13908_v25  ;;  %v3400_v59 = vsel %vm3399_vm4, %v3398_v43, 0 }
 0x5b6   : > { %v3565_v19 = vshll.u32 %v13878_v27, %v3563_v32  ;;  %v3566_v46 = vshrl.u32 %v13870_v30, %v3564_v62  ;;  %v3569_v17 = vadd.s32 127, %v3568_v14  ;;  %v3402_v39 = vand.u32 31, %v3400_v59 }
 0x5b7   : > { %vm6603_vm6 = vcmp.lt.s32.totalorder %v13862_v11, 2  ;;  %vm6604_vm5 = vcmp.eq.s32.totalorder %v13862_v11, 0  ;;  %vm13919_vm10 = vcmp.le.f32.partialorder %v3492_v1, 0.7853982  ;;  %v6878_v24 = vadd.s32 1, %v13901_v34 }
 0x5b8   : > { %vm6607_vm3 = vcmp.eq.s32.totalorder %v13862_v11, 2  ;;  %v3567_v27 = vor.u32 %v3566_v46, %v3565_v19  ;;  %v3570_v6 = vshll.u32 %v3569_v17, 23  ;;  %v3579_v30 = vsel %vm3494_vm1, %v3578_v41, %v13860_v18 }
 0x5b9   : > { %v9220_v8 = vpop.eup %9219  ;;  %v6875_v33 = vmul.u32 %v13876_v20, %v6859_v57  ;;  %vm6877_vm12 = vc.u32 %v13909_v7, %v13900_v53  ;;  %v3403_v1 = vsub.s32 32, %v3402_v39  ;;  %v13932_v37 = vshll.u32 %v3396_v5, 8 }
 0x5ba   : > { %v9222_v29 = vpop.eup %9221  ;;  %v6608_v48 = vxor.u32 2147483648, %v9220_v8  ;;  %v3571_v23 = vor.u32 4788187, %v3570_v6  ;;  %v6879_v44 = vsel %vm6877_vm12, %v6878_v24, %v13901_v34  ;;  %v3581_v9 = vsel %vm13919_vm10, 0, %v3579_v30 }
 0x5bb   : > { %v6605_v26 = vxor.u32 2147483648, %v9222_v29  ;;  %v6880_v18 = vadd.s32 %v6879_v44, %v6875_v33  ;;  %v13938_v63 = vadd.f32 %v13768_v16, %v13470_v12  ;;  %v3574_v38 = vcvt.s32.f32 %v3567_v27 }
 0x5bc   : > { %v6609_v35 = vsel %vm6607_vm3, %v6608_v48, %v9222_v29  ;;  %v3572_v52 = vand.u32 2147483647, %v3571_v23  ;;  %v13942_v51 = vshrl.u32 %v3400_v59, 5  ;;  %v3406_v13 = vshrl.u32 %v9402_v54, %v3403_v1 }
 0x5bd   : > { %v6606_v20 = vsel %vm6604_vm5, %v9220_v8, %v6605_v26  ;;  %v6881_v45 = vadd.s32 536870912, %v6880_v18  ;;  %v3409_v43 = vshrl.u32 %v9403_v56, %v3403_v1  ;;  %v3405_v42 = vshll.u32 %v9401_v50, %v3402_v39 }
 0x5be   : > { %v6610_v5 = vsel %vm6603_vm6, %v6606_v20, %v6609_v35  ;;  %v3575_v12 = vmul.f32 %v3574_v38, %v3572_v52  ;;  %v3412_v2 = vshrl.u32 %v9404_v58, %v3403_v1  ;;  %v3408_v0 = vshll.u32 %v9402_v54, %v3402_v39 }
 0x5bf   : > { %v6611_v10 = vsel %vm6600_vm7, nan, %v6610_v5  ;;  %v6882_v32 = vshrl.u32 %v6881_v45, 30  ;;  %v3411_v11 = vshll.u32 %v9403_v56, %v3402_v39  ;;  %v3415_v34 = vshrl.u32 %v9405_v60, %v3403_v1 }
 0x5c0   : > { %7603 = vst.msk [vmem:[%s9945_s25 + $0x1b0] sm:$0xff] %vm7548_vm14, %v6611_v10  ;;  %v3576_v62 = vxor.u32 2147483648, %v3575_v12  ;;  %v3414_v14 = vshll.u32 %v9404_v58, %v3402_v39  ;;  %v3417_v4 = vshll.u32 %v9405_v60, %v3402_v39  ;;  %v3418_v41 = vshrl.u32 %v9406_v3, %v3403_v1 }
 0x5c1   : > { %v3585_v57 = vadd.s32 3, %v3581_v9  ;;  %v6883_v25 = vshll.u32 %v6882_v32, 30  ;;  %v3407_v59 = vor.u32 %v3406_v13, %v3405_v42  ;;  %v3410_v19 = vor.u32 %v3409_v43, %v3408_v0 }
 0x5c2   : > { %v3577_v46 = vsel %vm3494_vm1, %v3576_v62, %v3575_v12  ;;  %v3413_v17 = vor.u32 %v3412_v2, %v3411_v11  ;;  %v3416_v24 = vor.u32 %v3415_v34, %v3414_v14  ;;  %v3419_v8 = vor.u32 %v3418_v41, %v3417_v4 }
 0x5c3   : > { %v3580_v27 = vsel %vm13919_vm10, %v13653_v49, %v3577_v46  ;;  %v13965_v6 = vsub.s32 %v6880_v18, %v6883_v25  ;;  %v3404_v39 = vshrl.u32 %v9401_v50, %v3403_v1  ;;  %v6719_v30 = vand.u32 2139095040, %v13938_v63 }
 0x5c4   : > { %9223 = vcosq.f32 %v3580_v27  ;;  %vm3420_vm8 = vcmp.lt.s32.totalorder %v13942_v51, 1  ;;  %vm3421_vm9 = vcmp.lt.s32.totalorder %v13942_v51, 2  ;;  %vm3422_vm11 = vcmp.lt.s32.totalorder %v13942_v51, 3 }
 0x5c5   : > { %9225 = vsinq.f32 %v3580_v27  ;;  %v6886_v29 = vsub.s32 0, %v13965_v6  ;;  %vm3423_vm0 = vcmp.lt.s32.totalorder %v13942_v51, 4  ;;  %v3428_v40 = vsel %vm3420_vm8, %v3407_v59, %v3410_v19 }
 0x5c6   : > { %v3425_v48 = vsel %vm3423_vm0, %v3413_v17, 2102212464  ;;  %v3429_v33 = vsel %vm3423_vm0, %v3416_v24, 920167782  ;;  %v3432_v1 = vsel %vm3420_vm8, %v3410_v19, %v3413_v17  ;;  %v3433_v26 = vsel %vm3423_vm0, %v3419_v8, 1326507024 }
 0x5c7   : > { %v8422_v23 = vmin.u32 %v6886_v29, %v13965_v6  ;;  %v6906_v44 = vsub.s32 4, %v6882_v32  ;;  %v3430_v35 = vsel %vm3422_vm11, %v3413_v17, %v3429_v33  ;;  %v3434_v9 = vsel %vm3422_vm11, %v3416_v24, %v3433_v26 }
 0x5c8   : > { %v3586_v18 = vand.u32 3, %v3585_v57  ;;  %v3431_v20 = vsel %vm3421_vm9, %v3428_v40, %v3430_v35  ;;  %v3435_v52 = vsel %vm3421_vm9, %v3432_v1, %v3434_v9  ;;  %v6720_v38 = vshrl.u32 %v6719_v30, 23 }
 0x5c9   : > { %vm6822_vm1 = vcmp.lt.s32.totalorder %v13772_v15, 0  ;;  %v6888_v5 = vclz %v8422_v23  ;;  %v3424_v45 = vsel %vm3420_vm8, %v3404_v39, %v3407_v59  ;;  %v3426_v13 = vsel %vm3422_vm11, %v3410_v19, %v3425_v48 }
 0x5ca   : > { %v13993_v43 = vmul.u32.u64.low %v13932_v37, %v3435_v52  ;;  %v13994_v10 = vmul.u32.u64.high %v13932_v37, %v3435_v52, %v13993_v43  ;;  %v13997_v12 = vmul.u32.u64.low %v13932_v37, %v3431_v20  ;;  %v13998_v42 = vmul.u32.u64.high %v13932_v37, %v3431_v20, %v13997_v12 }
 0x5cb   : > { %vm3584_vm13 = vweird.f32 %v13653_v49  ;;  %vm14004_vm15 = vcmp.le.f32.partialorder %v6820_v28, 0.7853982  ;;  %v8423_v0 = vadd.s32 4294967294, %v6888_v5  ;;  %v6907_v11 = vsel %vm6822_vm1, %v6906_v44, %v6882_v32 }
 0x5cc   : > { %v8417_v34 = vadd.s32 4294967169, %v6720_v38  ;;  %vm3587_vm2 = vcmp.lt.s32.totalorder %v3586_v18, 2  ;;  %vm3588_vm4 = vcmp.eq.s32.totalorder %v3586_v18, 0  ;;  %vm3591_vm7 = vcmp.eq.s32.totalorder %v3586_v18, 2 }
 0x5cd   : > { %v3427_v62 = vsel %vm3421_vm9, %v3424_v45, %v3426_v13  ;;  %v6876_v14 = vadd.s32 %v13900_v53, %v13909_v7  ;;  %vm8424_vm6 = vcmp.lt.s32.totalorder %v8423_v0, 0  ;;  %v6716_v28 = vand.u32 2147483647, %v13938_v63 }
 0x5ce   : > { %v6726_v4 = vadd.s32 1, %v8417_v34  ;;  %v9224_v41 = vpop.eup %9223  ;;  %v6891_v57 = vsel %vm8424_vm6, 0, %v8423_v0  ;;  %v6909_v25 = vsel %vm14004_vm15, 0, %v6907_v11  ;;  %vm3445_vm5 = vc.u32 %v13994_v10, %v13997_v12  ;;  %v14044_v0 = vpop.f32.mrb[28].mxu1 }
 0x5cf   : > { %v3446_v32 = vadd.s32 1, %v13998_v42  ;;  %v9226_v59 = vpop.eup %9225  ;;  %v3592_v51 = vxor.u32 2147483648, %v9224_v41  ;;  %v6892_v19 = vsub.s32 32, %v6891_v57  ;;  %v6896_v46 = vsub.s32 4294967266, %v6891_v57 }
 0x5d0   : > { %v3443_v53 = vmul.u32 %v13932_v37, %v3427_v62  ;;  %v3589_v7 = vxor.u32 2147483648, %v9226_v59  ;;  %v6893_v17 = vshll.u32 %v13965_v6, %v6891_v57  ;;  %vm6727_vm10 = vcmp.gt.s32.totalorder %v6726_v4, 0 }
 0x5d1   : > { %v3447_v24 = vsel %vm3445_vm5, %v3446_v32, %v13998_v42  ;;  %v3593_v8 = vsel %vm3591_vm7, %v3592_v51, %v9226_v59  ;;  %v6894_v27 = vshrl.u32 %v6876_v14, %v6892_v19  ;;  %v6897_v39 = vadd.s32 127, %v6896_v46 }
 0x5d2   : > { %v3448_v30 = vadd.s32 %v3447_v24, %v3443_v53  ;;  %v3590_v29 = vsel %vm3588_vm4, %v9224_v41, %v3589_v7  ;;  %v6913_v40 = vadd.s32 3, %v6909_v25  ;;  %v6723_v48 = vand.u32 8388607, %v6716_v28 }
 0x5d3   : > { %v6728_v33 = vsel %vm6727_vm10, %v6726_v4, 0  ;;  %v3594_v37 = vsel %vm3587_vm2, %v3590_v29, %v3593_v8  ;;  %v6895_v1 = vor.u32 %v6894_v27, %v6893_v17  ;;  %v6898_v6 = vshll.u32 %v6897_v39, 23 }
 0x5d4   : > { %v3449_v26 = vadd.s32 536870912, %v3448_v30  ;;  %v3595_v23 = vsel %vm3584_vm13, nan, %v3594_v37  ;;  %v6730_v44 = vand.u32 31, %v6728_v33  ;;  %v6724_v20 = vor.u32 8388608, %v6723_v48 }
 0x5d5   : > { %7574 = vst.msk [vmem:[%s9945_s25 + $0xc8] sm:$0xff] %vm7548_vm14, %v3595_v23  ;;  %v6899_v35 = vor.u32 4788187, %v6898_v6  ;;  %v6902_v5 = vcvt.s32.f32 %v6895_v1  ;;  %v14034_v45 = vand.u32 3, %v6913_v40  ;;  %v14042_v42 = vadd.f32 %v13768_v16, %v13581_v61 }
 0x5d6   : > { %v14032_v9 = vshrl.u32 %v3449_v26, 30  ;;  %v6731_v52 = vsub.s32 32, %v6730_v44  ;;  %v6733_v62 = vshll.u32 %v9401_v50, %v6730_v44  ;;  %v6729_v4 = vshrl.u32 %v6728_v33, 5 }
 0x5d7   : > { %v6900_v38 = vand.u32 2147483647, %v6899_v35  ;;  %v6736_v41 = vshll.u32 %v9402_v54, %v6730_v44  ;;  %v6739_v57 = vshll.u32 %v9403_v56, %v6730_v44  ;;  %v14052_v25 = vshll.u32 %v6724_v20, 8 }
 0x5d8   : > { %v3451_v18 = vshll.u32 %v14032_v9, 30  ;;  %v6734_v13 = vshrl.u32 %v9402_v54, %v6731_v52  ;;  %v6737_v43 = vshrl.u32 %v9403_v56, %v6731_v52  ;;  %v6740_v49 = vshrl.u32 %v9404_v58, %v6731_v52 }
 0x5d9   : > { %v6903_v11 = vmul.f32 %v6902_v5, %v6900_v38  ;;  %v6743_v14 = vshrl.u32 %v9405_v60, %v6731_v52  ;;  %v6742_v51 = vshll.u32 %v9404_v58, %v6730_v44  ;;  %v6745_v53 = vshll.u32 %v9405_v60, %v6730_v44 }
 0x5da   : > { %v14046_v34 = vsub.s32 %v3448_v30, %v3451_v18  ;;  %v6735_v59 = vor.u32 %v6734_v13, %v6733_v62  ;;  %v6738_v19 = vor.u32 %v6737_v43, %v6736_v41  ;;  %v6741_v46 = vor.u32 %v6740_v49, %v6739_v57 }
 0x5db   : > { %v6904_v32 = vxor.u32 2147483648, %v6903_v11  ;;  %v6746_v7 = vshrl.u32 %v9406_v3, %v6731_v52  ;;  %vm3390_vm3 = vcmp.lt.s32.totalorder %v13835_v47, 0  ;;  %v6744_v8 = vor.u32 %v6743_v14, %v6742_v51 }
 0x5dc   : > { %v3454_v61 = vsub.s32 0, %v14046_v34  ;;  %v3703_v27 = vand.u32 2139095040, %v14042_v42  ;;  %v3474_v30 = vsub.s32 4, %v14032_v9  ;;  %v6732_v29 = vshrl.u32 %v9401_v50, %v6731_v52 }
 0x5dd   : > { %v6905_v17 = vsel %vm6822_vm1, %v6904_v32, %v6903_v11  ;;  %v6747_v40 = vor.u32 %v6746_v7, %v6745_v53  ;;  %vm6748_vm12 = vcmp.lt.s32.totalorder %v6729_v4, 1  ;;  %vm6751_vm8 = vcmp.lt.s32.totalorder %v6729_v4, 4 }
 0x5de   : > { %v8290_v24 = vmin.u32 %v3454_v61, %v14046_v34  ;;  %v6908_v39 = vsel %vm14004_vm15, %v13772_v15, %v6905_v17  ;;  %vm14070_vm9 = vcmp.le.f32.partialorder %v3388_v21, 0.7853982  ;;  %vm6749_vm11 = vcmp.lt.s32.totalorder %v6729_v4, 2 }
 0x5df   : > { %9227 = vcosq.f32 %v6908_v39  ;;  %v6753_v37 = vsel %vm6751_vm8, %v6741_v46, 2102212464  ;;  %v6756_v2 = vsel %vm6748_vm12, %v6735_v59, %v6738_v19  ;;  %vm6750_vm0 = vcmp.lt.s32.totalorder %v6729_v4, 3 }
 0x5e0   : > { %v3456_v48 = vclz %v8290_v24  ;;  %9229 = vsinq.f32 %v6908_v39  ;;  %v6757_v6 = vsel %vm6751_vm8, %v6744_v8, 920167782  ;;  %v6760_v26 = vsel %vm6748_vm12, %v6738_v19, %v6741_v46 }
 0x5e1   : > { %v6752_v23 = vsel %vm6748_vm12, %v6732_v29, %v6735_v59  ;;  %v6758_v44 = vsel %vm6750_vm0, %v6741_v46, %v6757_v6  ;;  %v6761_v35 = vsel %vm6751_vm8, %v6747_v40, 1326507024  ;;  %v3704_v20 = vshrl.u32 %v3703_v27, 23 }
 0x5e2   : > { %v8291_v1 = vadd.s32 4294967294, %v3456_v48  ;;  %v6754_v52 = vsel %vm6750_vm0, %v6738_v19, %v6753_v37  ;;  %v6759_v38 = vsel %vm6749_vm11, %v6756_v2, %v6758_v44  ;;  %v6762_v5 = vsel %vm6750_vm0, %v6744_v8, %v6761_v35 }
 0x5e3   : > { %vm6916_vm13 = vcmp.eq.s32.totalorder %v14034_v45, 0  ;;  %v6763_v18 = vsel %vm6749_vm11, %v6760_v26, %v6762_v5  ;;  %v14078_v13 = vmul.u32.u64.low %v14052_v25, %v6759_v38  ;;  %v14079_v43 = vmul.u32.u64.high %v14052_v25, %v6759_v38, %v14078_v13 }
 0x5e4   : > { %vm8292_vm1 = vcmp.lt.s32.totalorder %v8291_v1, 0  ;;  %vm6915_vm15 = vcmp.lt.s32.totalorder %v14034_v45, 2  ;;  %v3444_v49 = vadd.s32 %v13997_v12, %v13994_v10  ;;  %v8301_v14 = vadd.s32 4294967169, %v3704_v20  ;;  %v14095_v12 = vpop.f32.mrb[29].mxu0 }
 0x5e5   : > { %v3459_v21 = vsel %vm8292_vm1, 0, %v8291_v1  ;;  %vm6912_vm2 = vweird.f32 %v13772_v15  ;;  %v3475_v41 = vsel %vm3390_vm3, %v3474_v30, %v14032_v9  ;;  %v6755_v57 = vsel %vm6749_vm11, %v6752_v23, %v6754_v52 }
 0x5e6   : > { %v3460_v11 = vsub.s32 32, %v3459_v21  ;;  %v3464_v62 = vsub.s32 4294967266, %v3459_v21  ;;  %v14091_v32 = vmul.u32.u64.low %v14052_v25, %v6763_v18  ;;  %v14092_v61 = vmul.u32.u64.high %v14052_v25, %v6763_v18, %v14091_v32 }
 0x5e7   : > { %v3461_v59 = vshll.u32 %v14046_v34, %v3459_v21  ;;  %v3710_v10 = vadd.s32 1, %v8301_v14  ;;  %vm6919_vm4 = vcmp.eq.s32.totalorder %v14034_v45, 2  ;;  %v6774_v46 = vadd.s32 1, %v14079_v43 }
 0x5e8   : > { %v3462_v51 = vshrl.u32 %v3444_v49, %v3460_v11  ;;  %v3465_v19 = vadd.s32 127, %v3464_v62  ;;  %v3700_v53 = vand.u32 2147483647, %v14042_v42  ;;  %v14102_v9 = vadd.f32 %v13768_v16, %v13655_v55 }
 0x5e9   : > { %v9228_v4 = vpop.eup %9227  ;;  %v3477_v34 = vsel %vm14070_vm9, 0, %v3475_v41  ;;  %vm3711_vm7 = vcmp.gt.s32.totalorder %v3710_v10, 0  ;;  %v6771_v27 = vmul.u32 %v14052_v25, %v6755_v57  ;;  %vm6773_vm6 = vc.u32 %v14092_v61, %v14078_v13 }
 0x5ea   : > { %v3463_v7 = vor.u32 %v3462_v51, %v3461_v59  ;;  %v3466_v17 = vshll.u32 %v3465_v19, 23  ;;  %v9230_v24 = vpop.eup %9229  ;;  %v6920_v8 = vxor.u32 2147483648, %v9228_v4  ;;  %v3712_v39 = vsel %vm3711_vm7, %v3710_v10, 0 }
 0x5eb   : > { %v6917_v30 = vxor.u32 2147483648, %v9230_v24  ;;  %v6775_v55 = vsel %vm6773_vm6, %v6774_v46, %v14079_v43  ;;  %v14112_v40 = vadd.f32 %v13768_v16, %v13738_v22  ;;  %v3707_v25 = vand.u32 8388607, %v3700_v53 }
 0x5ec   : > { %v3467_v29 = vor.u32 4788187, %v3466_v17  ;;  %v6921_v48 = vsel %vm6919_vm4, %v6920_v8, %v9230_v24  ;;  %v6776_v37 = vadd.s32 %v6775_v55, %v6771_v27  ;;  %v3714_v2 = vand.u32 31, %v3712_v39 }
 0x5ed   : > { %v6918_v1 = vsel %vm6916_vm13, %v9228_v4, %v6917_v30  ;;  %v3470_v26 = vcvt.s32.f32 %v3463_v7  ;;  %v3481_v23 = vadd.s32 3, %v3477_v34  ;;  %v7031_v35 = vand.u32 2139095040, %v14102_v9 }
 0x5ee   : > { %v3468_v6 = vand.u32 2147483647, %v3467_v29  ;;  %v6922_v44 = vsel %vm6915_vm15, %v6918_v1, %v6921_v48  ;;  %v6777_v22 = vadd.s32 536870912, %v6776_v37  ;;  %v3715_v16 = vsub.s32 32, %v3714_v2 }
 0x5ef   : > { %v6923_v20 = vsel %vm6912_vm2, nan, %v6922_v44  ;;  %v3717_v38 = vshll.u32 %v9401_v50, %v3714_v2  ;;  %v3720_v5 = vshll.u32 %v9402_v54, %v3714_v2  ;;  %v3723_v43 = vshll.u32 %v9403_v56, %v3714_v2 }
 0x5f0   : > { %v3471_v52 = vmul.f32 %v3470_v26, %v3468_v6  ;;  %7606 = vst.msk [vmem:[%s9945_s25 + $0x1c8] sm:$0xff] %vm7548_vm14, %v6923_v20  ;;  %v6778_v21 = vshrl.u32 %v6777_v22, 30  ;;  %v3718_v18 = vshrl.u32 %v9402_v54, %v3715_v16  ;;  %v3721_v45 = vshrl.u32 %v9403_v56, %v3715_v16  ;;  %v14158_v26 = vpop.f32.mrb[29].mxu1 }
 0x5f1   : > { %v3724_v11 = vshrl.u32 %v9404_v58, %v3715_v16  ;;  %v3726_v15 = vshll.u32 %v9404_v58, %v3714_v2  ;;  %v3727_v62 = vshrl.u32 %v9405_v60, %v3715_v16  ;;  %v14135_v14 = vand.u32 3, %v3481_v23 }
 0x5f2   : > { %v3472_v49 = vxor.u32 2147483648, %v3471_v52  ;;  %vm6718_vm5 = vcmp.lt.s32.totalorder %v13938_v63, 0  ;;  %v6779_v41 = vshll.u32 %v6778_v21, 30  ;;  %v3713_v57 = vshrl.u32 %v3712_v39, 5 }
 0x5f3   : > { %v3719_v32 = vor.u32 %v3718_v18, %v3717_v38  ;;  %v3722_v51 = vor.u32 %v3721_v45, %v3720_v5  ;;  %v3725_v19 = vor.u32 %v3724_v11, %v3723_v43  ;;  %v3728_v10 = vor.u32 %v3727_v62, %v3726_v15 }
 0x5f4   : > { %v3473_v59 = vsel %vm3390_vm3, %v3472_v49, %v3471_v52  ;;  %v14143_v4 = vsub.s32 %v6776_v37, %v6779_v41  ;;  %v3729_v7 = vshll.u32 %v9405_v60, %v3714_v2  ;;  %v3730_v17 = vshrl.u32 %v9406_v3, %v3715_v16 }
 0x5f5   : > { %v3476_v46 = vsel %vm14070_vm9, %v13835_v47, %v3473_v59  ;;  %v3708_v34 = vor.u32 8388608, %v3707_v25  ;;  %v7028_v24 = vand.u32 2147483647, %v14102_v9  ;;  %v7032_v8 = vshrl.u32 %v7031_v35, 23 }
 0x5f6   : > { %9231 = vcosq.f32 %v3476_v46  ;;  %vm14150_vm10 = vcmp.le.f32.partialorder %v6716_v28, 0.7853982  ;;  %v6782_v33 = vsub.s32 0, %v14143_v4  ;;  %v3716_v39 = vshrl.u32 %v9401_v50, %v3715_v16 }
 0x5f7   : > { %9233 = vsinq.f32 %v3476_v46  ;;  %v3731_v30 = vor.u32 %v3730_v17, %v3729_v7  ;;  %v6802_v29 = vsub.s32 4, %v6778_v21  ;;  %vm3732_vm3 = vcmp.lt.s32.totalorder %v3713_v57, 1 }
 0x5f8   : > { %vm3734_vm12 = vcmp.lt.s32.totalorder %v3713_v57, 3  ;;  %vm3735_vm8 = vcmp.lt.s32.totalorder %v3713_v57, 4  ;;  %v8418_v55 = vmin.u32 %v6782_v33, %v14143_v4  ;;  %v3740_v37 = vsel %vm3732_vm3, %v3719_v32, %v3722_v51 }
 0x5f9   : > { %v3737_v48 = vsel %vm3735_vm8, %v3725_v19, 2102212464  ;;  %v3741_v25 = vsel %vm3735_vm8, %v3728_v10, 920167782  ;;  %v3744_v28 = vsel %vm3732_vm3, %v3722_v51, %v3725_v19  ;;  %v3745_v1 = vsel %vm3735_vm8, %v3731_v30, 1326507024 }
 0x5fa   : > { %v3742_v2 = vsel %vm3734_vm12, %v3725_v19, %v3741_v25  ;;  %v3748_v6 = vshll.u32 %v3708_v34, 8  ;;  %v6784_v23 = vclz %v8418_v55  ;;  %vm3733_vm9 = vcmp.lt.s32.totalorder %v3713_v57, 2 }
 0x5fb   : > { %v3736_v44 = vsel %vm3732_vm3, %v3716_v39, %v3719_v32  ;;  %v3738_v22 = vsel %vm3734_vm12, %v3722_v51, %v3737_v48  ;;  %v6803_v16 = vsel %vm6718_vm5, %v6802_v29, %v6778_v21  ;;  %v3743_v35 = vsel %vm3733_vm9, %v3740_v37, %v3742_v2 }
 0x5fc   : > { %v3746_v20 = vsel %vm3734_vm12, %v3728_v10, %v3745_v1  ;;  %v8429_v52 = vadd.s32 4294967169, %v7032_v8  ;;  %vm3480_vm11 = vweird.f32 %v13835_v47  ;;  %v8419_v38 = vadd.s32 4294967294, %v6784_v23 }
 0x5fd   : > { %v3747_v5 = vsel %vm3733_vm9, %v3744_v28, %v3746_v20  ;;  %v14165_v18 = vmul.u32.u64.low %v3748_v6, %v3743_v35  ;;  %v14166_v45 = vmul.u32.u64.high %v3748_v6, %v3743_v35, %v14165_v18  ;;  %vm3483_vm0 = vcmp.lt.s32.totalorder %v14135_v14, 2 }
 0x5fe   : > { %v3739_v43 = vsel %vm3733_vm9, %v3736_v44, %v3738_v22  ;;  %v14170_v49 = vmul.u32.u64.low %v3748_v6, %v3747_v5  ;;  %v14171_v11 = vmul.u32.u64.high %v3748_v6, %v3747_v5, %v14170_v49  ;;  %vm3484_vm1 = vcmp.eq.s32.totalorder %v14135_v14, 0 }
 0x5ff   : > { %vm3487_vm13 = vcmp.eq.s32.totalorder %v14135_v14, 2  ;;  %vm8420_vm15 = vcmp.lt.s32.totalorder %v8419_v38, 0  ;;  %v7038_v21 = vadd.s32 1, %v8429_v52  ;;  %v6772_v62 = vadd.s32 %v14078_v13, %v14092_v61 }
 0x600   : > { %v9232_v15 = vpop.eup %9231  ;;  %v6787_v41 = vsel %vm8420_vm15, 0, %v8419_v38  ;;  %v6805_v57 = vsel %vm14150_vm10, 0, %v6803_v16  ;;  %v7035_v32 = vand.u32 8388607, %v7028_v24  ;;  %v3755_v46 = vmul.u32 %v3748_v6, %v3739_v43 }
 0x601   : > { %v9234_v59 = vpop.eup %9233  ;;  %v3488_v51 = vxor.u32 2147483648, %v9232_v15  ;;  %v6788_v19 = vsub.s32 32, %v6787_v41  ;;  %v6792_v10 = vsub.s32 4294967266, %v6787_v41  ;;  %v6789_v17 = vshll.u32 %v14143_v4, %v6787_v41 }
 0x602   : > { %v3485_v7 = vxor.u32 2147483648, %v9234_v59  ;;  %vm3757_vm2 = vc.u32 %v14171_v11, %v14165_v18  ;;  %v3758_v13 = vadd.s32 1, %v14166_v45  ;;  %vm7039_vm4 = vcmp.gt.s32.totalorder %v7038_v21, 0 }
 0x603   : > { %v3489_v61 = vsel %vm3487_vm13, %v3488_v51, %v9234_v59  ;;  %v6790_v34 = vshrl.u32 %v6772_v62, %v6788_v19  ;;  %v6793_v8 = vadd.s32 127, %v6792_v10  ;;  %v6809_v39 = vadd.s32 3, %v6805_v57 }
 0x604   : > { %v3486_v33 = vsel %vm3484_vm1, %v9232_v15, %v3485_v7  ;;  %v3759_v30 = vsel %vm3757_vm2, %v3758_v13, %v14166_v45  ;;  %v7040_v29 = vsel %vm7039_vm4, %v7038_v21, 0  ;;  %v7036_v23 = vor.u32 8388608, %v7035_v32 }
 0x605   : > { %v3490_v4 = vsel %vm3483_vm0, %v3486_v33, %v3489_v61  ;;  %v6791_v55 = vor.u32 %v6790_v34, %v6789_v17  ;;  %v6794_v48 = vshll.u32 %v6793_v8, 23  ;;  %v3760_v37 = vadd.s32 %v3759_v30, %v3755_v46 }
 0x606   : > { %v3491_v25 = vsel %vm3480_vm11, nan, %v3490_v4  ;;  %v7042_v2 = vand.u32 31, %v7040_v29  ;;  %v14196_v6 = vand.u32 3, %v6809_v39  ;;  %v3599_v14 = vand.u32 2139095040, %v14112_v40 }
 0x607   : > { %7573 = vst.msk [vmem:[%s9945_s25 + $0xc0] sm:$0xff] %vm7548_vm14, %v3491_v25  ;;  %v6795_v28 = vor.u32 4788187, %v6794_v48  ;;  %v3761_v1 = vadd.s32 536870912, %v3760_v37  ;;  %v6798_v16 = vcvt.s32.f32 %v6791_v55  ;;  %v7041_v20 = vshrl.u32 %v7040_v29, 5 }
 0x608   : > { %v7043_v44 = vsub.s32 32, %v7042_v2  ;;  %v7051_v43 = vshll.u32 %v9403_v56, %v7042_v2  ;;  %v7045_v21 = vshll.u32 %v9401_v50, %v7042_v2  ;;  %v7048_v15 = vshll.u32 %v9402_v54, %v7042_v2 }
 0x609   : > { %v6796_v22 = vand.u32 2147483647, %v6795_v28  ;;  %v14198_v35 = vshrl.u32 %v3761_v1, 30  ;;  %v7054_v62 = vshll.u32 %v9404_v58, %v7042_v2  ;;  %v3596_v51 = vand.u32 2147483647, %v14112_v40 }
 0x60a   : > { %v7046_v52 = vshrl.u32 %v9402_v54, %v7043_v44  ;;  %v7049_v47 = vshrl.u32 %v9403_v56, %v7043_v44  ;;  %v7052_v38 = vshrl.u32 %v9404_v58, %v7043_v44  ;;  %v7055_v49 = vshrl.u32 %v9405_v60, %v7043_v44 }
 0x60b   : > { %v6799_v5 = vmul.f32 %v6798_v16, %v6796_v22  ;;  %v3763_v45 = vshll.u32 %v14198_v35, 30  ;;  %v7058_v41 = vshrl.u32 %v9406_v3, %v7043_v44  ;;  %v7057_v7 = vshll.u32 %v9405_v60, %v7042_v2 }
 0x60c   : > { %v7053_v59 = vor.u32 %v7052_v38, %v7051_v43  ;;  %v7047_v19 = vor.u32 %v7046_v52, %v7045_v21  ;;  %v7050_v10 = vor.u32 %v7049_v47, %v7048_v15  ;;  %v7056_v46 = vor.u32 %v7055_v49, %v7054_v62 }
 0x60d   : > { %v6800_v57 = vxor.u32 2147483648, %v6799_v5  ;;  %v14211_v32 = vsub.s32 %v3760_v37, %v3763_v45  ;;  %v14218_v61 = vshll.u32 %v7036_v23, 8  ;;  %v3600_v34 = vshrl.u32 %v3599_v14, 23 }
 0x60e   : > { %v7044_v33 = vshrl.u32 %v9401_v50, %v7043_v44  ;;  %v7059_v39 = vor.u32 %v7058_v41, %v7057_v7  ;;  %vm7063_vm7 = vcmp.lt.s32.totalorder %v7041_v20, 4  ;;  %vm7060_vm6 = vcmp.lt.s32.totalorder %v7041_v20, 1 }
 0x60f   : > { %v6801_v17 = vsel %vm6718_vm5, %v6800_v57, %v6799_v5  ;;  %v3766_v13 = vsub.s32 0, %v14211_v32  ;;  %v7065_v29 = vsel %vm7063_vm7, %v7053_v59, 2102212464  ;;  %vm7062_vm5 = vcmp.lt.s32.totalorder %v7041_v20, 3 }
 0x610   : > { %v6804_v8 = vsel %vm14150_vm10, %v13938_v63, %v6801_v17  ;;  %v7068_v4 = vsel %vm7060_vm6, %v7047_v19, %v7050_v10  ;;  %v7069_v55 = vsel %vm7063_vm7, %v7056_v46, 920167782  ;;  %vm14229_vm3 = vcmp.le.f32.partialorder %v3700_v53, 0.7853982 }
 0x611   : > { %9235 = vcosq.f32 %v6804_v8  ;;  %v8302_v30 = vmin.u32 %v3766_v13, %v14211_v32  ;;  %v7064_v37 = vsel %vm7060_vm6, %v7044_v33, %v7047_v19  ;;  %v7066_v25 = vsel %vm7062_vm5, %v7050_v10, %v7065_v29 }
 0x612   : > { %9237 = vsinq.f32 %v6804_v8  ;;  %v7072_v2 = vsel %vm7060_vm6, %v7050_v10, %v7053_v59  ;;  %vm7061_vm10 = vcmp.lt.s32.totalorder %v7041_v20, 2  ;;  %v7070_v28 = vsel %vm7062_vm5, %v7053_v59, %v7069_v55 }
 0x613   : > { %v3768_v48 = vclz %v8302_v30  ;;  %v7073_v1 = vsel %vm7063_vm7, %v7059_v39, 1326507024  ;;  %v8297_v23 = vadd.s32 4294967169, %v3600_v34  ;;  %v3786_v22 = vsub.s32 4, %v14198_v35  ;;  %v14262_v34 = vpop.f32.mrb[30].mxu0 }
 0x614   : > { %v7071_v16 = vsel %vm7061_vm10, %v7068_v4, %v7070_v28  ;;  %v7074_v14 = vsel %vm7062_vm5, %v7056_v46, %v7073_v1  ;;  %v7067_v52 = vsel %vm7061_vm10, %v7064_v37, %v7066_v25  ;;  %vm6808_vm8 = vweird.f32 %v13938_v63  ;;  %v14270_v4 = vld [vmem:[%s15263_s2] ss:$0 sm:$0xff] }
 0x615   : > { %v8303_v44 = vadd.s32 4294967294, %v3768_v48  ;;  %v7075_v47 = vsel %vm7061_vm10, %v7072_v2, %v7074_v14  ;;  %v14236_v53 = vmul.u32.u64.low %v14218_v61, %v7071_v16  ;;  %v14237_v38 = vmul.u32.u64.high %v14218_v61, %v7071_v16, %v14236_v53 }
 0x616   : > { %v14241_v5 = vmul.u32.u64.low %v14218_v61, %v7075_v47  ;;  %v14242_v45 = vmul.u32.u64.high %v14218_v61, %v7075_v47, %v14241_v5  ;;  %v3606_v20 = vadd.s32 1, %v8297_v23  ;;  %vm6815_vm9 = vcmp.eq.s32.totalorder %v14196_v6, 2 }
 0x617   : > { %vm8304_vm12 = vcmp.lt.s32.totalorder %v8303_v44, 0  ;;  %vm3702_vm11 = vcmp.lt.s32.totalorder %v14042_v42, 0  ;;  %v3756_v43 = vadd.s32 %v14165_v18, %v14171_v11  ;;  %v7083_v41 = vmul.u32 %v14218_v61, %v7067_v52 }
 0x618   : > { %v3771_v49 = vsel %vm8304_vm12, 0, %v8303_v44  ;;  %v3787_v62 = vsel %vm3702_vm11, %v3786_v22, %v14198_v35  ;;  %vm3607_vm0 = vcmp.gt.s32.totalorder %v3606_v20, 0  ;;  %v7086_v57 = vadd.s32 1, %v14237_v38 }
 0x619   : > { %v3772_v21 = vsub.s32 32, %v3771_v49  ;;  %v3776_v15 = vsub.s32 4294967266, %v3771_v49  ;;  %v3603_v59 = vand.u32 8388607, %v3596_v51  ;;  %v3608_v19 = vsel %vm3607_vm0, %v3606_v20, 0 }
 0x61a   : > { %v3773_v46 = vshll.u32 %v14211_v32, %v3771_v49  ;;  %vm7085_vm1 = vc.u32 %v14242_v45, %v14236_v53  ;;  %v3789_v35 = vsel %vm14229_vm3, 0, %v3787_v62  ;;  %v3610_v61 = vand.u32 31, %v3608_v19 }
 0x61b   : > { %v9236_v10 = vpop.eup %9235  ;;  %v3774_v18 = vshrl.u32 %v3756_v43, %v3772_v21  ;;  %v3777_v11 = vadd.s32 127, %v3776_v15  ;;  %v7087_v13 = vsel %vm7085_vm1, %v7086_v57, %v14237_v38  ;;  %vm6812_vm13 = vcmp.eq.s32.totalorder %v14196_v6, 0 }
 0x61c   : > { %v9238_v7 = vpop.eup %9237  ;;  %v6816_v17 = vxor.u32 2147483648, %v9236_v10  ;;  %v7088_v30 = vadd.s32 %v7087_v13, %v7083_v41  ;;  %v3611_v29 = vsub.s32 32, %v3610_v61  ;;  %v14274_v55 = vadd.f32 %v14270_v4, %v13815_v36 }
 0x61d   : > { %v6813_v8 = vxor.u32 2147483648, %v9238_v7  ;;  %v3775_v33 = vor.u32 %v3774_v18, %v3773_v46  ;;  %v3778_v39 = vshll.u32 %v3777_v11, 23  ;;  %vm6811_vm15 = vcmp.lt.s32.totalorder %v14196_v6, 2 }
 0x61e   : > { %v6817_v32 = vsel %vm6815_vm9, %v6816_v17, %v9238_v7  ;;  %v7089_v25 = vadd.s32 536870912, %v7088_v30  ;;  %v3793_v28 = vadd.s32 3, %v3789_v35  ;;  %v3604_v1 = vor.u32 8388608, %v3603_v59 }
 0x61f   : > { %v6814_v48 = vsel %vm6812_vm13, %v9236_v10, %v6813_v8  ;;  %v3779_v37 = vor.u32 4788187, %v3778_v39  ;;  %v14279_v23 = vadd.f32 %v14270_v4, %v13911_v31  ;;  %v3782_v16 = vcvt.s32.f32 %v3775_v33 }
 0x620   : > { %v6818_v2 = vsel %vm6811_vm15, %v6814_v48, %v6817_v32  ;;  %v7090_v14 = vshrl.u32 %v7089_v25, 30  ;;  %v3609_v36 = vshrl.u32 %v3608_v19, 5  ;;  %v3614_v6 = vshrl.u32 %v9402_v54, %v3611_v29 }
 0x621   : > { %v6819_v44 = vsel %vm6808_vm8, nan, %v6818_v2  ;;  %v3780_v22 = vand.u32 2147483647, %v3779_v37  ;;  %v3617_v52 = vshrl.u32 %v9403_v56, %v3611_v29  ;;  %v3620_v47 = vshrl.u32 %v9404_v58, %v3611_v29 }
 0x622   : > { %7605 = vst.msk [vmem:[%s9945_s25 + $0x1c0] sm:$0xff] %vm7548_vm14, %v6819_v44  ;;  %v7091_v5 = vshll.u32 %v7090_v14, 30  ;;  %v3619_v31 = vshll.u32 %v9403_v56, %v3610_v61  ;;  %v3623_v20 = vshrl.u32 %v9405_v60, %v3611_v29  ;;  %vm7030_vm2 = vcmp.lt.s32.totalorder %v14102_v9, 0 }
 0x623   : > { %v3783_v38 = vmul.f32 %v3782_v16, %v3780_v22  ;;  %v3613_v63 = vshll.u32 %v9401_v50, %v3610_v61  ;;  %v3616_v43 = vshll.u32 %v9402_v54, %v3610_v61  ;;  %v3622_v49 = vshll.u32 %v9404_v58, %v3610_v61 }
 0x624   : > { %v3626_v21 = vshrl.u32 %v9406_v3, %v3611_v29  ;;  %v14295_v62 = vand.u32 3, %v3793_v28  ;;  %v14297_v41 = vsub.s32 %v7088_v30, %v7091_v5  ;;  %v3621_v57 = vor.u32 %v3620_v47, %v3619_v31  ;;  %v14318_v28 = vpop.f32.mrb[30].mxu1 }
 0x625   : > { %v3784_v15 = vxor.u32 2147483648, %v3783_v38  ;;  %v3615_v59 = vor.u32 %v3614_v6, %v3613_v63  ;;  %v3618_v19 = vor.u32 %v3617_v52, %v3616_v43  ;;  %v3624_v10 = vor.u32 %v3623_v20, %v3622_v49 }
 0x626   : > { %v3625_v46 = vshll.u32 %v9405_v60, %v3610_v61  ;;  %v7094_v11 = vsub.s32 0, %v14297_v41  ;;  %v3612_v7 = vshrl.u32 %v9401_v50, %v3611_v29  ;;  %v3644_v17 = vshll.u32 %v3604_v1, 8 }
 0x627   : > { %v3785_v18 = vsel %vm3702_vm11, %v3784_v15, %v3783_v38  ;;  %v7114_v13 = vsub.s32 4, %v7090_v14  ;;  %vm3631_vm4 = vcmp.lt.s32.totalorder %v3609_v36, 4  ;;  %vm14309_vm7 = vcmp.le.f32.partialorder %v7028_v24, 0.7853982 }
 0x628   : > { %v3788_v35 = vsel %vm14229_vm3, %v14042_v42, %v3785_v18  ;;  %v3627_v8 = vor.u32 %v3626_v21, %v3625_v46  ;;  %v8430_v33 = vmin.u32 %v7094_v11, %v14297_v41  ;;  %vm3628_vm6 = vcmp.lt.s32.totalorder %v3609_v36, 1 }
 0x629   : > { %9239 = vcosq.f32 %v3788_v35  ;;  %v3633_v39 = vsel %vm3631_vm4, %v3621_v57, 2102212464  ;;  %vm3629_vm5 = vcmp.lt.s32.totalorder %v3609_v36, 2  ;;  %v3636_v30 = vsel %vm3628_vm6, %v3615_v59, %v3618_v19 }
 0x62a   : > { %9241 = vsinq.f32 %v3788_v35  ;;  %v3637_v27 = vsel %vm3631_vm4, %v3624_v10, 920167782  ;;  %v7096_v32 = vclz %v8430_v33  ;;  %vm3630_vm3 = vcmp.lt.s32.totalorder %v3609_v36, 3 }
 0x62b   : > { %v3632_v29 = vsel %vm3628_vm6, %v3612_v7, %v3615_v59  ;;  %v3640_v48 = vsel %vm3628_vm6, %v3618_v19, %v3621_v57  ;;  %v3634_v37 = vsel %vm3630_vm3, %v3618_v19, %v3633_v39  ;;  %v3638_v25 = vsel %vm3630_vm3, %v3621_v57, %v3637_v27 }
 0x62c   : > { %v3641_v24 = vsel %vm3631_vm4, %v3627_v8, 1326507024  ;;  %v6927_v2 = vand.u32 2139095040, %v14274_v55  ;;  %v8431_v1 = vadd.s32 4294967294, %v7096_v32  ;;  %v7115_v44 = vsel %vm7030_vm2, %v7114_v13, %v7090_v14 }
 0x62d   : > { %v3639_v22 = vsel %vm3629_vm5, %v3636_v30, %v3638_v25  ;;  %v3642_v16 = vsel %vm3630_vm3, %v3624_v10, %v3641_v24  ;;  %v3635_v5 = vsel %vm3629_vm5, %v3632_v29, %v3634_v37  ;;  %vm3795_vm12 = vcmp.lt.s32.totalorder %v14295_v62, 2 }
 0x62e   : > { %v3643_v6 = vsel %vm3629_vm5, %v3640_v48, %v3642_v16  ;;  %v14324_v52 = vmul.u32.u64.low %v3644_v17, %v3639_v22  ;;  %v14325_v47 = vmul.u32.u64.high %v3644_v17, %v3639_v22, %v14324_v52  ;;  %v6928_v38 = vshrl.u32 %v6927_v2, 23 }
 0x62f   : > { %vm8432_vm10 = vcmp.lt.s32.totalorder %v8431_v1, 0  ;;  %v14329_v31 = vmul.u32.u64.low %v3644_v17, %v3643_v6  ;;  %v14330_v20 = vmul.u32.u64.high %v3644_v17, %v3643_v6, %v14329_v31  ;;  %vm3796_vm8 = vcmp.eq.s32.totalorder %v14295_v62, 0 }
 0x630   : > { %v7099_v14 = vsel %vm8432_vm10, 0, %v8431_v1  ;;  %v8425_v63 = vadd.s32 4294967169, %v6928_v38  ;;  %v7084_v43 = vadd.s32 %v14236_v53, %v14242_v45  ;;  %v6924_v15 = vand.u32 2147483647, %v14274_v55 }
 0x631   : > { %v7100_v49 = vsub.s32 32, %v7099_v14  ;;  %v7104_v21 = vsub.s32 4294967266, %v7099_v14  ;;  %v7117_v36 = vsel %vm14309_vm7, 0, %v7115_v44  ;;  %v3651_v57 = vmul.u32 %v3644_v17, %v3635_v5 }
 0x632   : > { %v3654_v59 = vadd.s32 1, %v14325_v47  ;;  %v6934_v19 = vadd.s32 1, %v8425_v63  ;;  %v7101_v46 = vshll.u32 %v14297_v41, %v7099_v14  ;;  %vm3653_vm9 = vc.u32 %v14330_v20, %v14324_v52 }
 0x633   : > { %v9240_v10 = vpop.eup %9239  ;;  %v7102_v18 = vshrl.u32 %v7084_v43, %v7100_v49  ;;  %v7105_v11 = vadd.s32 127, %v7104_v21  ;;  %vm3799_vm11 = vcmp.eq.s32.totalorder %v14295_v62, 2  ;;  %v7121_v39 = vadd.s32 3, %v7117_v36 }
 0x634   : > { %v9242_v53 = vpop.eup %9241  ;;  %v3800_v45 = vxor.u32 2147483648, %v9240_v10  ;;  %v3655_v7 = vsel %vm3653_vm9, %v3654_v59, %v14325_v47  ;;  %vm6935_vm0 = vcmp.gt.s32.totalorder %v6934_v19, 0  ;;  %v6931_v41 = vand.u32 8388607, %v6924_v15 }
 0x635   : > { %v3797_v35 = vxor.u32 2147483648, %v9242_v53  ;;  %v7103_v17 = vor.u32 %v7102_v18, %v7101_v46  ;;  %v7106_v13 = vshll.u32 %v7105_v11, 23  ;;  %v3656_v8 = vadd.s32 %v3655_v7, %v3651_v57 }
 0x636   : > { %v3801_v33 = vsel %vm3799_vm11, %v3800_v45, %v9242_v53  ;;  %v6936_v30 = vsel %vm6935_vm0, %v6934_v19, 0  ;;  %v3911_v48 = vand.u32 2139095040, %v14279_v23  ;;  %vm3792_vm1 = vweird.f32 %v14042_v42 }
 0x637   : > { %v3798_v27 = vsel %vm3796_vm8, %v9240_v10, %v3797_v35  ;;  %v7107_v32 = vor.u32 4788187, %v7106_v13  ;;  %v3657_v29 = vadd.s32 536870912, %v3656_v8  ;;  %v6938_v25 = vand.u32 31, %v6936_v30 }
 0x638   : > { %v3802_v37 = vsel %vm3795_vm12, %v3798_v27, %v3801_v33  ;;  %v7110_v1 = vcvt.s32.f32 %v7103_v17  ;;  %v14357_v22 = vand.u32 3, %v7121_v39  ;;  %v6932_v16 = vor.u32 8388608, %v6931_v41 }
 0x639   : > { %v3803_v24 = vsel %vm3792_vm1, nan, %v3802_v37  ;;  %v7108_v2 = vand.u32 2147483647, %v7107_v32  ;;  %v14353_v44 = vshrl.u32 %v3657_v29, 30  ;;  %v6939_v6 = vsub.s32 32, %v6938_v25 }
 0x63a   : > { %7576 = vst.msk [vmem:[%s9945_s25 + $0xd8] sm:$0xff] %vm7548_vm14, %v3803_v24  ;;  %v3908_v47 = vand.u32 2147483647, %v14279_v23  ;;  %v6941_v62 = vshll.u32 %v9401_v50, %v6938_v25  ;;  %v3912_v5 = vshrl.u32 %v3911_v48, 23  ;;  %v6944_v14 = vshll.u32 %v9402_v54, %v6938_v25 }
 0x63b   : > { %v7111_v38 = vmul.f32 %v7110_v1, %v7108_v2  ;;  %v3659_v42 = vshll.u32 %v14353_v44, 30  ;;  %v6942_v31 = vshrl.u32 %v9402_v54, %v6939_v6  ;;  %v6945_v63 = vshrl.u32 %v9403_v56, %v6939_v6 }
 0x63c   : > { %v6948_v43 = vshrl.u32 %v9404_v58, %v6939_v6  ;;  %v6947_v36 = vshll.u32 %v9403_v56, %v6938_v25  ;;  %v6951_v57 = vshrl.u32 %v9405_v60, %v6939_v6  ;;  %v6937_v59 = vshrl.u32 %v6936_v30, 5 }
 0x63d   : > { %v7112_v49 = vxor.u32 2147483648, %v7111_v38  ;;  %v14366_v21 = vsub.s32 %v3656_v8, %v3659_v42  ;;  %v6943_v19 = vor.u32 %v6942_v31, %v6941_v62  ;;  %v6950_v10 = vshll.u32 %v9404_v58, %v6938_v25 }
 0x63e   : > { %v14371_v46 = vshll.u32 %v6932_v16, 8  ;;  %v6946_v53 = vor.u32 %v6945_v63, %v6944_v14  ;;  %v6949_v45 = vor.u32 %v6948_v43, %v6947_v36  ;;  %vm3598_vm13 = vcmp.lt.s32.totalorder %v14112_v40, 0  ;;  %v14412_v36 = vpop.f32.mrb[31].mxu0 }
 0x63f   : > { %v7113_v18 = vsel %vm7030_vm2, %v7112_v49, %v7111_v38  ;;  %v3662_v11 = vsub.s32 0, %v14366_v21  ;;  %v6952_v35 = vor.u32 %v6951_v57, %v6950_v10  ;;  %v6953_v17 = vshll.u32 %v9405_v60, %v6938_v25 }
 0x640   : > { %v7116_v7 = vsel %vm14309_vm7, %v14102_v9, %v7113_v18  ;;  %v6954_v13 = vshrl.u32 %v9406_v3, %v6939_v6  ;;  %v3652_v8 = vadd.s32 %v14324_v52, %v14330_v20  ;;  %v8309_v39 = vadd.s32 4294967169, %v3912_v5 }
 0x641   : > { %9243 = vcosq.f32 %v7116_v7  ;;  %v8298_v33 = vmin.u32 %v3662_v11, %v14366_v21  ;;  %v3682_v41 = vsub.s32 4, %v14353_v44  ;;  %v6940_v61 = vshrl.u32 %v9401_v50, %v6939_v6 }
 0x642   : > { %9245 = vsinq.f32 %v7116_v7  ;;  %v6955_v30 = vor.u32 %v6954_v13, %v6953_v17  ;;  %vm14389_vm15 = vcmp.le.f32.partialorder %v3596_v51, 0.7853982  ;;  %vm6956_vm2 = vcmp.lt.s32.totalorder %v6937_v59, 1 }
 0x643   : > { %v3664_v32 = vclz %v8298_v33  ;;  %vm6957_vm4 = vcmp.lt.s32.totalorder %v6937_v59, 2  ;;  %vm6959_vm7 = vcmp.lt.s32.totalorder %v6937_v59, 4  ;;  %vm6958_vm6 = vcmp.lt.s32.totalorder %v6937_v59, 3 }
 0x644   : > { %v6961_v52 = vsel %vm6959_vm7, %v6949_v45, 2102212464  ;;  %v6964_v20 = vsel %vm6956_vm2, %v6943_v19, %v6946_v53  ;;  %v6965_v29 = vsel %vm6959_vm7, %v6952_v35, 920167782  ;;  %vm7127_vm5 = vcmp.eq.s32.totalorder %v14357_v22, 2 }
 0x645   : > { %v8299_v48 = vadd.s32 4294967294, %v3664_v32  ;;  %v6960_v37 = vsel %vm6956_vm2, %v6940_v61, %v6943_v19  ;;  %v6966_v25 = vsel %vm6958_vm6, %v6949_v45, %v6965_v29  ;;  %v6968_v24 = vsel %vm6956_vm2, %v6946_v53, %v6949_v45 }
 0x646   : > { %vm7124_vm3 = vcmp.eq.s32.totalorder %v14357_v22, 0  ;;  %v6962_v51 = vsel %vm6958_vm6, %v6946_v53, %v6961_v52  ;;  %v6967_v2 = vsel %vm6957_vm4, %v6964_v20, %v6966_v25  ;;  %v6969_v1 = vsel %vm6959_vm7, %v6955_v30, 1326507024 }
 0x647   : > { %v3918_v16 = vadd.s32 1, %v8309_v39  ;;  %vm7123_vm10 = vcmp.lt.s32.totalorder %v14357_v22, 2  ;;  %vm8300_vm12 = vcmp.lt.s32.totalorder %v8299_v48, 0  ;;  %v6970_v6 = vsel %vm6958_vm6, %v6952_v35, %v6969_v1 }
 0x648   : > { %v14401_v38 = vmul.u32.u64.low %v14371_v46, %v6967_v2  ;;  %v14402_v42 = vmul.u32.u64.high %v14371_v46, %v6967_v2, %v14401_v38  ;;  %vm7120_vm8 = vweird.f32 %v14102_v9  ;;  %v3667_v62 = vsel %vm8300_vm12, 0, %v8299_v48 }
 0x649   : > { %v6971_v5 = vsel %vm6957_vm4, %v6968_v24, %v6970_v6  ;;  %v3915_v31 = vand.u32 8388607, %v3908_v47  ;;  %vm3919_vm9 = vcmp.gt.s32.totalorder %v3918_v16, 0  ;;  %v3668_v14 = vsub.s32 32, %v3667_v62 }
 0x64a   : > { %v3672_v63 = vsub.s32 4294967266, %v3667_v62  ;;  %v3683_v43 = vsel %vm3598_vm13, %v3682_v41, %v14353_v44  ;;  %v3920_v49 = vsel %vm3919_vm9, %v3918_v16, 0  ;;  %v6963_v57 = vsel %vm6957_vm4, %v6960_v37, %v6962_v51 }
 0x64b   : > { %v14416_v19 = vmul.u32.u64.low %v14371_v46, %v6971_v5  ;;  %v14417_v10 = vmul.u32.u64.high %v14371_v46, %v6971_v5, %v14416_v19  ;;  %v3922_v18 = vand.u32 31, %v3920_v49  ;;  %v9244_v11 = vpop.eup %9243  ;;  %v3669_v53 = vshll.u32 %v14366_v21, %v3667_v62 }
 0x64c   : > { %v3670_v45 = vshrl.u32 %v3652_v8, %v3668_v14  ;;  %v3673_v7 = vadd.s32 127, %v3672_v63  ;;  %v6982_v35 = vadd.s32 1, %v14402_v42  ;;  %v9246_v17 = vpop.eup %9245  ;;  %v7128_v13 = vxor.u32 2147483648, %v9244_v11 }
 0x64d   : > { %v3685_v44 = vsel %vm14389_vm15, 0, %v3683_v43  ;;  %v3916_v33 = vor.u32 8388608, %v3915_v31  ;;  %v3923_v59 = vsub.s32 32, %v3922_v18  ;;  %v7125_v39 = vxor.u32 2147483648, %v9246_v17 }
 0x64e   : > { %v3671_v41 = vor.u32 %v3670_v45, %v3669_v53  ;;  %v3674_v61 = vshll.u32 %v3673_v7, 23  ;;  %v6979_v30 = vmul.u32 %v14371_v46, %v6963_v57  ;;  %v7129_v32 = vsel %vm7127_vm5, %v7128_v13, %v9246_v17 }
 0x64f   : > { %vm6981_vm11 = vc.u32 %v14417_v10, %v14401_v38  ;;  %v14428_v21 = vshrl.u32 %v3920_v49, 5  ;;  %v3925_v8 = vshll.u32 %v9401_v50, %v3922_v18  ;;  %v7126_v52 = vsel %vm7124_vm3, %v9244_v11, %v7125_v39 }
 0x650   : > { %v3675_v20 = vor.u32 4788187, %v3674_v61  ;;  %v6983_v29 = vsel %vm6981_vm11, %v6982_v35, %v14402_v42  ;;  %v3928_v48 = vshll.u32 %v9402_v54, %v3922_v18  ;;  %v7130_v46 = vsel %vm7123_vm10, %v7126_v52, %v7129_v32 }
 0x651   : > { %v6984_v37 = vadd.s32 %v6983_v29, %v6979_v30  ;;  %v3926_v25 = vshrl.u32 %v9402_v54, %v3923_v59  ;;  %v3929_v24 = vshrl.u32 %v9403_v56, %v3923_v59  ;;  %v7131_v51 = vsel %vm7120_vm8, nan, %v7130_v46 }
 0x652   : > { %v3676_v2 = vand.u32 2147483647, %v3675_v20  ;;  %v3678_v1 = vcvt.s32.f32 %v3671_v41  ;;  %v3932_v16 = vshrl.u32 %v9404_v58, %v3923_v59  ;;  %7608 = vst.msk [vmem:[%s9945_s25 + $0x1d8] sm:$0xff] %vm7548_vm14, %v7131_v51  ;;  %v3931_v42 = vshll.u32 %v9403_v56, %v3922_v18  ;;  %v14496_v51 = vpop.f32.mrb[31].mxu1 }
 0x653   : > { %v6985_v6 = vadd.s32 536870912, %v6984_v37  ;;  %v3934_v22 = vshll.u32 %v9404_v58, %v3922_v18  ;;  %v3935_v62 = vshrl.u32 %v9405_v60, %v3923_v59  ;;  %v3927_v31 = vor.u32 %v3926_v25, %v3925_v8 }
 0x654   : > { %v3679_v5 = vmul.f32 %v3678_v1, %v3676_v2  ;;  %v3930_v14 = vor.u32 %v3929_v24, %v3928_v48  ;;  %v3938_v63 = vshrl.u32 %v9406_v3, %v3923_v59  ;;  %v3689_v57 = vadd.s32 3, %v3685_v44 }
 0x655   : > { %v6986_v9 = vshrl.u32 %v6985_v6, 30  ;;  %v3936_v43 = vor.u32 %v3935_v62, %v3934_v22  ;;  %v3933_v19 = vor.u32 %v3932_v16, %v3931_v42  ;;  %v3937_v11 = vshll.u32 %v9405_v60, %v3922_v18 }
 0x656   : > { %v3680_v49 = vxor.u32 2147483648, %v3679_v5  ;;  %vm3940_vm0 = vcmp.lt.s32.totalorder %v14428_v21, 1  ;;  %vm3943_vm1 = vcmp.lt.s32.totalorder %v14428_v21, 4  ;;  %v14451_v45 = vshll.u32 %v3916_v33, 8 }
 0x657   : > { %v6987_v53 = vshll.u32 %v6986_v9, 30  ;;  %v3939_v35 = vor.u32 %v3938_v63, %v3937_v11  ;;  %v3948_v17 = vsel %vm3940_vm0, %v3927_v31, %v3930_v14  ;;  %v3949_v13 = vsel %vm3943_vm1, %v3936_v43, 920167782 }
 0x658   : > { %v3681_v7 = vsel %vm3598_vm13, %v3680_v49, %v3679_v5  ;;  %v3924_v39 = vshrl.u32 %v9401_v50, %v3923_v59  ;;  %vm3942_vm2 = vcmp.lt.s32.totalorder %v14428_v21, 3  ;;  %vm3941_vm13 = vcmp.lt.s32.totalorder %v14428_v21, 2 }
 0x659   : > { %v3684_v18 = vsel %vm14389_vm15, %v14112_v40, %v3681_v7  ;;  %v14462_v44 = vsub.s32 %v6984_v37, %v6987_v53  ;;  %v3945_v33 = vsel %vm3943_vm1, %v3933_v19, 2102212464  ;;  %v3950_v41 = vsel %vm3942_vm2, %v3933_v19, %v3949_v13 }
 0x65a   : > { %9247 = vcosq.f32 %v3684_v18  ;;  %v3951_v27 = vsel %vm3941_vm13, %v3948_v17, %v3950_v41  ;;  %v3952_v59 = vsel %vm3940_vm0, %v3930_v14, %v3933_v19  ;;  %v7010_v30 = vsub.s32 4, %v6986_v9 }
 0x65b   : > { %9249 = vsinq.f32 %v3684_v18  ;;  %v6990_v61 = vsub.s32 0, %v14462_v44  ;;  %v3953_v32 = vsel %vm3943_vm1, %v3939_v35, 1326507024  ;;  %v3690_v20 = vand.u32 3, %v3689_v57 }
 0x65c   : > { %v14479_v8 = vmul.u32.u64.low %v14451_v45, %v3951_v27  ;;  %v14480_v52 = vmul.u32.u64.high %v14451_v45, %v3951_v27, %v14479_v8  ;;  %v3954_v48 = vsel %vm3942_vm2, %v3936_v43, %v3953_v32  ;;  %v3944_v46 = vsel %vm3940_vm0, %v3924_v39, %v3927_v31 }
 0x65d   : > { %v8426_v29 = vmin.u32 %v6990_v61, %v14462_v44  ;;  %v3946_v37 = vsel %vm3942_vm2, %v3930_v14, %v3945_v33  ;;  %v3955_v25 = vsel %vm3941_vm13, %v3952_v59, %v3954_v48  ;;  %v14494_v24 = vadd.f32 %v14270_v4, %v14044_v0 }
 0x65e   : > { %vm6926_vm15 = vcmp.lt.s32.totalorder %v14274_v55, 0  ;;  %v14502_v16 = vmul.u32.u64.low %v14451_v45, %v3955_v25  ;;  %v14503_v6 = vmul.u32.u64.high %v14451_v45, %v3955_v25, %v14502_v16  ;;  %vm3688_vm4 = vweird.f32 %v14112_v40 }
 0x65f   : > { %v6992_v2 = vclz %v8426_v29  ;;  %v7011_v1 = vsel %vm6926_vm15, %v7010_v30, %v6986_v9  ;;  %v3947_v22 = vsel %vm3941_vm13, %v3944_v46, %v3946_v37  ;;  %v7239_v0 = vand.u32 2139095040, %v14494_v24 }
 0x660   : > { %v14511_v62 = vadd.f32 %v14270_v4, %v14095_v12  ;;  %vm3692_vm7 = vcmp.eq.s32.totalorder %v3690_v20, 0  ;;  %vm3695_vm6 = vcmp.eq.s32.totalorder %v3690_v20, 2  ;;  %vm14515_vm5 = vcmp.le.f32.partialorder %v6924_v15, 0.7853982 }
 0x661   : > { %v8427_v42 = vadd.s32 4294967294, %v6992_v2  ;;  %v3966_v31 = vadd.s32 1, %v14480_v52  ;;  %v6980_v21 = vadd.s32 %v14401_v38, %v14417_v10  ;;  %v7013_v14 = vsel %vm14515_vm5, 0, %v7011_v1 }
 0x662   : > { %v7240_v63 = vshrl.u32 %v7239_v0, 23  ;;  %v3963_v43 = vmul.u32 %v14451_v45, %v3947_v22  ;;  %vm3965_vm10 = vc.u32 %v14503_v6, %v14479_v8  ;;  %v7236_v15 = vand.u32 2147483647, %v14494_v24 }
 0x663   : > { %vm8428_vm3 = vcmp.lt.s32.totalorder %v8427_v42, 0  ;;  %v3807_v38 = vand.u32 2139095040, %v14511_v62  ;;  %v3967_v7 = vsel %vm3965_vm10, %v3966_v31, %v14480_v52  ;;  %vm3691_vm12 = vcmp.lt.s32.totalorder %v3690_v20, 2 }
 0x664   : > { %v9248_v12 = vpop.eup %9247  ;;  %v6995_v9 = vsel %vm8428_vm3, 0, %v8427_v42  ;;  %v8437_v35 = vadd.s32 4294967169, %v7240_v63  ;;  %v3968_v18 = vadd.s32 %v3967_v7, %v3963_v43  ;;  %v7017_v33 = vadd.s32 3, %v7013_v14 }
 0x665   : > { %v9250_v49 = vpop.eup %9249  ;;  %v3696_v57 = vxor.u32 2147483648, %v9248_v12  ;;  %v6996_v19 = vsub.s32 32, %v6995_v9  ;;  %v7000_v11 = vsub.s32 4294967266, %v6995_v9  ;;  %v6997_v53 = vshll.u32 %v14462_v44, %v6995_v9 }
 0x666   : > { %v3693_v10 = vxor.u32 2147483648, %v9250_v49  ;;  %v7246_v41 = vadd.s32 1, %v8437_v35  ;;  %v3969_v30 = vadd.s32 536870912, %v3968_v18  ;;  %v7243_v32 = vand.u32 8388607, %v7236_v15 }
 0x667   : > { %v3697_v45 = vsel %vm3695_vm6, %v3696_v57, %v9250_v49  ;;  %v6998_v17 = vshrl.u32 %v6980_v21, %v6996_v19  ;;  %v7001_v13 = vadd.s32 127, %v7000_v11  ;;  %v3808_v20 = vshrl.u32 %v3807_v38, 23 }
 0x668   : > { %v3694_v39 = vsel %vm3692_vm7, %v9248_v12, %v3693_v10  ;;  %vm7247_vm8 = vcmp.gt.s32.totalorder %v7246_v41, 0  ;;  %v3970_v29 = vshrl.u32 %v3969_v30, 30  ;;  %v14539_v46 = vand.u32 3, %v7017_v33 }
 0x669   : > { %v3698_v61 = vsel %vm3691_vm12, %v3694_v39, %v3697_v45  ;;  %v6999_v27 = vor.u32 %v6998_v17, %v6997_v53  ;;  %v7002_v59 = vshll.u32 %v7001_v13, 23  ;;  %v7248_v48 = vsel %vm7247_vm8, %v7246_v41, 0 }
 0x66a   : > { %v3699_v44 = vsel %vm3688_vm4, nan, %v3698_v61  ;;  %v7250_v37 = vand.u32 31, %v7248_v48  ;;  %vm3910_vm9 = vcmp.lt.s32.totalorder %v14279_v23, 0  ;;  %v3971_v1 = vshll.u32 %v3970_v29, 30 }
 0x66b   : > { %7575 = vst.msk [vmem:[%s9945_s25 + $0xd0] sm:$0xff] %vm7548_vm14, %v3699_v44  ;;  %v7003_v52 = vor.u32 4788187, %v7002_v59  ;;  %v7006_v2 = vcvt.s32.f32 %v6999_v27  ;;  %v14544_v40 = vadd.f32 %v14270_v4, %v14158_v26  ;;  %v3964_v16 = vadd.s32 %v14479_v8, %v14503_v6 }
 0x66c   : > { %v7244_v42 = vor.u32 8388608, %v7243_v32  ;;  %v7251_v22 = vsub.s32 32, %v7250_v37  ;;  %v3804_v0 = vand.u32 2147483647, %v14511_v62  ;;  %v14549_v21 = vsub.s32 %v3968_v18, %v3971_v1 }
 0x66d   : > { %v7004_v25 = vand.u32 2147483647, %v7003_v52  ;;  %v7249_v14 = vshrl.u32 %v7248_v48, 5  ;;  %v8305_v63 = vadd.s32 4294967169, %v3808_v20  ;;  %v3994_v12 = vsub.s32 4, %v3970_v29 }
 0x66e   : > { %v7253_v9 = vshll.u32 %v9401_v50, %v7250_v37  ;;  %v7254_v43 = vshrl.u32 %v9402_v54, %v7251_v22  ;;  %v7257_v26 = vshrl.u32 %v9403_v56, %v7251_v22  ;;  %v3974_v57 = vsub.s32 0, %v14549_v21 }
 0x66f   : > { %v7007_v31 = vmul.f32 %v7006_v2, %v7004_v25  ;;  %v7256_v8 = vshll.u32 %v9402_v54, %v7250_v37  ;;  %v7260_v6 = vshrl.u32 %v9404_v58, %v7251_v22  ;;  %v7259_v11 = vshll.u32 %v9403_v56, %v7250_v37 }
 0x670   : > { %v7255_v19 = vor.u32 %v7254_v43, %v7253_v9  ;;  %v7262_v38 = vshll.u32 %v9404_v58, %v7250_v37  ;;  %v7263_v10 = vshrl.u32 %v9405_v60, %v7251_v22  ;;  %v8310_v7 = vmin.u32 %v3974_v57, %v14549_v21 }
 0x671   : > { %v7008_v49 = vxor.u32 2147483648, %v7007_v31  ;;  %v7258_v35 = vor.u32 %v7257_v26, %v7256_v8  ;;  %v7265_v45 = vshll.u32 %v9405_v60, %v7250_v37  ;;  %v7261_v13 = vor.u32 %v7260_v6, %v7259_v11 }
 0x672   : > { %v7264_v18 = vor.u32 %v7263_v10, %v7262_v38  ;;  %v7266_v39 = vshrl.u32 %v9406_v3, %v7251_v22  ;;  %v3976_v33 = vclz %v8310_v7  ;;  %v14568_v41 = vshll.u32 %v7244_v42, 8 }
 0x673   : > { %v7009_v53 = vsel %vm6926_vm15, %v7008_v49, %v7007_v31  ;;  %v3814_v61 = vadd.s32 1, %v8305_v63  ;;  %vm14572_vm11 = vcmp.le.f32.partialorder %v3908_v47, 0.7853982  ;;  %v3995_v5 = vsel %vm3910_vm9, %v3994_v12, %v3970_v29 }
 0x674   : > { %v7012_v17 = vsel %vm14515_vm5, %v14274_v55, %v7009_v53  ;;  %v7252_v59 = vshrl.u32 %v9401_v50, %v7251_v22  ;;  %v7267_v30 = vor.u32 %v7266_v39, %v7265_v45  ;;  %v8311_v44 = vadd.s32 4294967294, %v3976_v33 }
 0x675   : > { %9251 = vcosq.f32 %v7012_v17  ;;  %vm7268_vm0 = vcmp.lt.s32.totalorder %v7249_v14, 1  ;;  %vm7270_vm1 = vcmp.lt.s32.totalorder %v7249_v14, 3  ;;  %vm7271_vm2 = vcmp.lt.s32.totalorder %v7249_v14, 4 }
 0x676   : > { %9253 = vsinq.f32 %v7012_v17  ;;  %v7273_v32 = vsel %vm7271_vm2, %v7261_v13, 2102212464  ;;  %v7276_v52 = vsel %vm7268_vm0, %v7255_v19, %v7258_v35  ;;  %v7277_v48 = vsel %vm7271_vm2, %v7264_v18, 920167782 }
 0x677   : > { %v7280_v20 = vsel %vm7268_vm0, %v7258_v35, %v7261_v13  ;;  %vm8312_vm13 = vcmp.lt.s32.totalorder %v8311_v44, 0  ;;  %vm7269_vm15 = vcmp.lt.s32.totalorder %v7249_v14, 2  ;;  %v7278_v47 = vsel %vm7270_vm1, %v7261_v13, %v7277_v48 }
 0x678   : > { %v7281_v37 = vsel %vm7271_vm2, %v7267_v30, 1326507024  ;;  %v3979_v25 = vsel %vm8312_vm13, 0, %v8311_v44  ;;  %v7272_v2 = vsel %vm7268_vm0, %v7252_v59, %v7255_v19  ;;  %v7279_v29 = vsel %vm7269_vm15, %v7276_v52, %v7278_v47 }
 0x679   : > { %v7282_v1 = vsel %vm7270_vm1, %v7264_v18, %v7281_v37  ;;  %vm7019_vm4 = vcmp.lt.s32.totalorder %v14539_v46, 2  ;;  %v3980_v42 = vsub.s32 32, %v3979_v25  ;;  %v3984_v22 = vsub.s32 4294967266, %v3979_v25 }
 0x67a   : > { %v7274_v31 = vsel %vm7270_vm1, %v7258_v35, %v7273_v32  ;;  %v7283_v63 = vsel %vm7269_vm15, %v7280_v20, %v7282_v1  ;;  %vm7016_vm7 = vweird.f32 %v14274_v55  ;;  %v3981_v49 = vshll.u32 %v14549_v21, %v3979_v25 }
 0x67b   : > { %v14587_v12 = vmul.u32.u64.low %v14568_v41, %v7283_v63  ;;  %v14588_v9 = vmul.u32.u64.high %v14568_v41, %v7283_v63, %v14587_v12  ;;  %v14591_v43 = vmul.u32.u64.low %v14568_v41, %v7279_v29  ;;  %v14592_v26 = vmul.u32.u64.high %v14568_v41, %v7279_v29, %v14591_v43 }
 0x67c   : > { %v3982_v57 = vshrl.u32 %v3964_v16, %v3980_v42  ;;  %v3985_v8 = vadd.s32 127, %v3984_v22  ;;  %vm3815_vm6 = vcmp.gt.s32.totalorder %v3814_v61, 0  ;;  %vm7020_vm5 = vcmp.eq.s32.totalorder %v14539_v46, 0 }
 0x67d   : > { %v7275_v6 = vsel %vm7269_vm15, %v7272_v2, %v7274_v31  ;;  %v3811_v19 = vand.u32 8388607, %v3804_v0  ;;  %v3816_v11 = vsel %vm3815_vm6, %v3814_v61, 0  ;;  %v3997_v7 = vsel %vm14572_vm11, 0, %v3995_v5 }
 0x67e   : > { %v3983_v10 = vor.u32 %v3982_v57, %v3981_v49  ;;  %v3986_v53 = vshll.u32 %v3985_v8, 23  ;;  %v3818_v35 = vand.u32 31, %v3816_v11  ;;  %vm7023_vm3 = vcmp.eq.s32.totalorder %v14539_v46, 2 }
 0x67f   : > { %v9252_v38 = vpop.eup %9251  ;;  %vm7293_vm10 = vc.u32 %v14588_v9, %v14591_v43  ;;  %v7294_v21 = vadd.s32 1, %v14592_v26  ;;  %v7291_v13 = vmul.u32 %v14568_v41, %v7275_v6  ;;  %v4001_v33 = vadd.s32 3, %v3997_v7 }
 0x680   : > { %v9254_v45 = vpop.eup %9253  ;;  %v7024_v16 = vxor.u32 2147483648, %v9252_v38  ;;  %v3987_v17 = vor.u32 4788187, %v3986_v53  ;;  %v3819_v18 = vsub.s32 32, %v3818_v35  ;;  %v3812_v5 = vor.u32 8388608, %v3811_v19 }
 0x681   : > { %v7021_v14 = vxor.u32 2147483648, %v9254_v45  ;;  %v7295_v61 = vsel %vm7293_vm10, %v7294_v21, %v14592_v26  ;;  %v3990_v44 = vcvt.s32.f32 %v3983_v10  ;;  %v3821_v48 = vshll.u32 %v9401_v50, %v3818_v35 }
 0x682   : > { %v7025_v39 = vsel %vm7023_vm3, %v7024_v16, %v9254_v45  ;;  %v3988_v30 = vand.u32 2147483647, %v3987_v17  ;;  %v7296_v32 = vadd.s32 %v7295_v61, %v7291_v13  ;;  %v3822_v41 = vshrl.u32 %v9402_v54, %v3819_v18 }
 0x683   : > { %v7022_v59 = vsel %vm7020_vm5, %v9252_v38, %v7021_v14  ;;  %v3825_v20 = vshrl.u32 %v9403_v56, %v3819_v18  ;;  %v3828_v2 = vshrl.u32 %v9404_v58, %v3819_v18  ;;  %v3817_v29 = vshrl.u32 %v3816_v11, 5 }
 0x684   : > { %v7026_v52 = vsel %vm7019_vm4, %v7022_v59, %v7025_v39  ;;  %v3991_v37 = vmul.f32 %v3990_v44, %v3988_v30  ;;  %v7297_v25 = vadd.s32 536870912, %v7296_v32  ;;  %v3824_v1 = vshll.u32 %v9402_v54, %v3818_v35 }
 0x685   : > { %v7027_v47 = vsel %vm7016_vm7, nan, %v7026_v52  ;;  %v3827_v46 = vshll.u32 %v9403_v56, %v3818_v35  ;;  %v3831_v42 = vshrl.u32 %v9405_v60, %v3819_v18  ;;  %v3823_v63 = vor.u32 %v3822_v41, %v3821_v48 }
 0x686   : > { %7607 = vst.msk [vmem:[%s9945_s25 + $0x1d0] sm:$0xff] %vm7548_vm14, %v7027_v47  ;;  %v3992_v22 = vxor.u32 2147483648, %v3991_v37  ;;  %v7298_v31 = vshrl.u32 %v7297_v25, 30  ;;  %v3830_v12 = vshll.u32 %v9404_v58, %v3818_v35  ;;  %vm7238_vm12 = vcmp.lt.s32.totalorder %v14494_v24, 0 }
 0x687   : > { %v3826_v55 = vor.u32 %v3825_v20, %v3824_v1  ;;  %v3829_v26 = vor.u32 %v3828_v2, %v3827_v46  ;;  %v3833_v49 = vshll.u32 %v9405_v60, %v3818_v35  ;;  %v3834_v57 = vshrl.u32 %v9406_v3, %v3819_v18 }
 0x688   : > { %v3993_v8 = vsel %vm3910_vm9, %v3992_v22, %v3991_v37  ;;  %v14629_v6 = vand.u32 3, %v4001_v33  ;;  %v7299_v19 = vshll.u32 %v7298_v31, 30  ;;  %v3832_v11 = vor.u32 %v3831_v42, %v3830_v12 }
 0x689   : > { %v3996_v38 = vsel %vm14572_vm11, %v14279_v23, %v3993_v8  ;;  %v3820_v10 = vshrl.u32 %v9401_v50, %v3819_v18  ;;  %v3835_v53 = vor.u32 %v3834_v57, %v3833_v49  ;;  %v3852_v7 = vshll.u32 %v3812_v5, 8 }
 0x68a   : > { %9255 = vcosq.f32 %v3996_v38  ;;  %v14635_v45 = vsub.s32 %v7296_v32, %v7299_v19  ;;  %vm3836_vm8 = vcmp.lt.s32.totalorder %v3817_v29, 1  ;;  %vm3839_vm0 = vcmp.lt.s32.totalorder %v3817_v29, 4 }
 0x68b   : > { %9257 = vsinq.f32 %v3996_v38  ;;  %vm3837_vm1 = vcmp.lt.s32.totalorder %v3817_v29, 2  ;;  %v3841_v35 = vsel %vm3839_vm0, %v3829_v26, 2102212464  ;;  %v3844_v16 = vsel %vm3836_vm8, %v3823_v63, %v3826_v55 }
 0x68c   : > { %v7302_v21 = vsub.s32 0, %v14635_v45  ;;  %v7322_v14 = vsub.s32 4, %v7298_v31  ;;  %vm3838_vm9 = vcmp.lt.s32.totalorder %v3817_v29, 3  ;;  %v3845_v17 = vsel %vm3839_vm0, %v3832_v11, 920167782 }
 0x68d   : > { %v3840_v27 = vsel %vm3836_vm8, %v3820_v10, %v3823_v63  ;;  %v3846_v13 = vsel %vm3838_vm9, %v3829_v26, %v3845_v17  ;;  %v3848_v39 = vsel %vm3836_vm8, %v3826_v55, %v3829_v26  ;;  %v3849_v18 = vsel %vm3839_vm0, %v3835_v53, 1326507024 }
 0x68e   : > { %v8438_v33 = vmin.u32 %v7302_v21, %v14635_v45  ;;  %v3842_v61 = vsel %vm3838_vm9, %v3826_v55, %v3841_v35  ;;  %v3847_v5 = vsel %vm3837_vm1, %v3844_v16, %v3846_v13  ;;  %v3850_v59 = vsel %vm3838_vm9, %v3832_v11, %v3849_v18 }
 0x68f   : > { %v3851_v30 = vsel %vm3837_vm1, %v3848_v39, %v3850_v59  ;;  %v14641_v44 = vmul.u32.u64.low %v3852_v7, %v3847_v5  ;;  %v14642_v32 = vmul.u32.u64.high %v3852_v7, %v3847_v5, %v14641_v44  ;;  %v7135_v52 = vand.u32 2139095040, %v14544_v40 }
 0x690   : > { %v7304_v48 = vclz %v8438_v33  ;;  %v7323_v41 = vsel %vm7238_vm12, %v7322_v14, %v7298_v31  ;;  %v7132_v20 = vand.u32 2147483647, %v14544_v40  ;;  %v3843_v47 = vsel %vm3837_vm1, %v3840_v27, %v3842_v61 }
 0x691   : > { %v14649_v37 = vmul.u32.u64.low %v3852_v7, %v3851_v30  ;;  %v14650_v25 = vmul.u32.u64.high %v3852_v7, %v3851_v30, %v14649_v37  ;;  %v7136_v2 = vshrl.u32 %v7135_v52, 23  ;;  %vm4003_vm11 = vcmp.lt.s32.totalorder %v14629_v6, 2 }
 0x692   : > { %vm14655_vm2 = vcmp.le.f32.partialorder %v7236_v15, 0.7853982  ;;  %v8439_v46 = vadd.s32 4294967294, %v7304_v48  ;;  %v14661_v42 = vadd.f32 %v14270_v4, %v14262_v34  ;;  %vm4004_vm13 = vcmp.eq.s32.totalorder %v14629_v6, 0 }
 0x693   : > { %vm4007_vm15 = vcmp.eq.s32.totalorder %v14629_v6, 2  ;;  %v3862_v29 = vadd.s32 1, %v14642_v32  ;;  %v8433_v22 = vadd.s32 4294967169, %v7136_v2  ;;  %v7292_v63 = vadd.s32 %v14591_v43, %v14588_v9 }
 0x694   : > { %v9256_v31 = vpop.eup %9255  ;;  %vm8440_vm4 = vcmp.lt.s32.totalorder %v8439_v46, 0  ;;  %v7325_v15 = vsel %vm14655_vm2, 0, %v7323_v41  ;;  %v3859_v12 = vmul.u32 %v3852_v7, %v3843_v47  ;;  %vm3861_vm7 = vc.u32 %v14650_v25, %v14641_v44 }
 0x695   : > { %v9258_v55 = vpop.eup %9257  ;;  %v4008_v26 = vxor.u32 2147483648, %v9256_v31  ;;  %v7307_v34 = vsel %vm8440_vm4, 0, %v8439_v46  ;;  %v7139_v4 = vand.u32 8388607, %v7132_v20  ;;  %v4119_v19 = vand.u32 2139095040, %v14661_v42 }
 0x696   : > { %v4005_v49 = vxor.u32 2147483648, %v9258_v55  ;;  %v7308_v57 = vsub.s32 32, %v7307_v34  ;;  %v7312_v8 = vsub.s32 4294967266, %v7307_v34  ;;  %v7309_v43 = vshll.u32 %v14635_v45, %v7307_v34 }
 0x697   : > { %v4009_v9 = vsel %vm4007_vm15, %v4008_v26, %v9258_v55  ;;  %v3863_v11 = vsel %vm3861_vm7, %v3862_v29, %v14642_v32  ;;  %v7142_v38 = vadd.s32 1, %v8433_v22  ;;  %vm4000_vm6 = vweird.f32 %v14279_v23 }
 0x698   : > { %v4006_v10 = vsel %vm4004_vm13, %v9256_v31, %v4005_v49  ;;  %v7310_v53 = vshrl.u32 %v7292_v63, %v7308_v57  ;;  %v7313_v7 = vadd.s32 127, %v7312_v8  ;;  %v3864_v35 = vadd.s32 %v3863_v11, %v3859_v12 }
 0x699   : > { %v4010_v16 = vsel %vm4003_vm11, %v4006_v10, %v4009_v9  ;;  %v7329_v21 = vadd.s32 3, %v7325_v15  ;;  %vm7143_vm5 = vcmp.gt.s32.totalorder %v7142_v38, 0  ;;  %v7140_v13 = vor.u32 8388608, %v7139_v4 }
 0x69a   : > { %v4011_v14 = vsel %vm4000_vm6, nan, %v4010_v16  ;;  %v7311_v17 = vor.u32 %v7310_v53, %v7309_v43  ;;  %v7314_v27 = vshll.u32 %v7313_v7, 23  ;;  %v3865_v45 = vadd.s32 536870912, %v3864_v35 }
 0x69b   : > { %7578 = vst.msk [vmem:[%s9945_s25 + $0xe8] sm:$0xff] %vm7548_vm14, %v4011_v14  ;;  %v7144_v39 = vsel %vm7143_vm5, %v7142_v38, 0  ;;  %v4120_v61 = vshrl.u32 %v4119_v19, 23  ;;  %v14685_v23 = vand.u32 3, %v7329_v21  ;;  %vm3806_vm3 = vcmp.lt.s32.totalorder %v14511_v62, 0 }
 0x69c   : > { %v7315_v18 = vor.u32 4788187, %v7314_v27  ;;  %v3866_v33 = vshrl.u32 %v3865_v45, 30  ;;  %v7146_v5 = vand.u32 31, %v7144_v39  ;;  %v7318_v30 = vcvt.s32.f32 %v7311_v17 }
 0x69d   : > { %v3860_v32 = vadd.s32 %v14641_v44, %v14650_v25  ;;  %v14689_v48 = vshll.u32 %v7140_v13, 8  ;;  %v4116_v41 = vand.u32 2147483647, %v14661_v42  ;;  %v7145_v2 = vshrl.u32 %v7144_v39, 5 }
 0x69e   : > { %v7316_v59 = vand.u32 2147483647, %v7315_v18  ;;  %v3867_v6 = vshll.u32 %v3866_v33, 30  ;;  %v7147_v52 = vsub.s32 32, %v7146_v5  ;;  %v8317_v46 = vadd.s32 4294967169, %v4120_v61 }
 0x69f   : > { %v3890_v29 = vsub.s32 4, %v3866_v33  ;;  %v7149_v22 = vshll.u32 %v9401_v50, %v7146_v5  ;;  %vm14699_vm10 = vcmp.le.f32.partialorder %v3804_v0, 0.7853982  ;;  %v7152_v12 = vshll.u32 %v9402_v54, %v7146_v5 }
 0x6a0   : > { %v7319_v47 = vmul.f32 %v7318_v30, %v7316_v59  ;;  %v14692_v37 = vsub.s32 %v3864_v35, %v3867_v6  ;;  %v7150_v31 = vshrl.u32 %v9402_v54, %v7147_v52  ;;  %v7153_v63 = vshrl.u32 %v9403_v56, %v7147_v52 }
 0x6a1   : > { %v7156_v55 = vshrl.u32 %v9404_v58, %v7147_v52  ;;  %v7155_v34 = vshll.u32 %v9403_v56, %v7146_v5  ;;  %v7158_v4 = vshll.u32 %v9404_v58, %v7146_v5  ;;  %v7159_v49 = vshrl.u32 %v9405_v60, %v7147_v52 }
 0x6a2   : > { %v7320_v15 = vxor.u32 2147483648, %v7319_v47  ;;  %v3870_v25 = vsub.s32 0, %v14692_v37  ;;  %v7151_v26 = vor.u32 %v7150_v31, %v7149_v22  ;;  %v7154_v8 = vor.u32 %v7153_v63, %v7152_v12 }
 0x6a3   : > { %v7161_v19 = vshll.u32 %v9405_v60, %v7146_v5  ;;  %v7157_v43 = vor.u32 %v7156_v55, %v7155_v34  ;;  %v7160_v11 = vor.u32 %v7159_v49, %v7158_v4  ;;  %v7162_v38 = vshrl.u32 %v9406_v3, %v7147_v52 }
 0x6a4   : > { %v7321_v57 = vsel %vm7238_vm12, %v7320_v15, %v7319_v47  ;;  %v8306_v0 = vmin.u32 %v3870_v25, %v14692_v37  ;;  %vm7164_vm8 = vcmp.lt.s32.totalorder %v7145_v2, 1  ;;  %v4126_v53 = vadd.s32 1, %v8317_v46 }
 0x6a5   : > { %v7324_v9 = vsel %vm14655_vm2, %v14494_v24, %v7321_v57  ;;  %v3891_v7 = vsel %vm3806_vm3, %v3890_v29, %v3866_v33  ;;  %v7148_v35 = vshrl.u32 %v9401_v50, %v7147_v52  ;;  %v7163_v16 = vor.u32 %v7162_v38, %v7161_v19 }
 0x6a6   : > { %9259 = vcosq.f32 %v7324_v9  ;;  %v3872_v10 = vclz %v8306_v0  ;;  %vm7166_vm12 = vcmp.lt.s32.totalorder %v7145_v2, 3  ;;  %vm7167_vm0 = vcmp.lt.s32.totalorder %v7145_v2, 4 }
 0x6a7   : > { %9261 = vsinq.f32 %v7324_v9  ;;  %v7172_v1 = vsel %vm7164_vm8, %v7151_v26, %v7154_v8  ;;  %v7169_v14 = vsel %vm7167_vm0, %v7157_v43, 2102212464  ;;  %v7173_v17 = vsel %vm7167_vm0, %v7160_v11, 920167782 }
 0x6a8   : > { %v8307_v21 = vadd.s32 4294967294, %v3872_v10  ;;  %v7176_v27 = vsel %vm7164_vm8, %v7154_v8, %v7157_v43  ;;  %v7177_v45 = vsel %vm7167_vm0, %v7163_v16, 1326507024  ;;  %vm7165_vm9 = vcmp.lt.s32.totalorder %v7145_v2, 2  ;;  %v14755_v10 = vld [vmem:[%s15263_s2] ss:$0 sm:$0xff] }
 0x6a9   : > { %v7174_v13 = vsel %vm7166_vm12, %v7157_v43, %v7173_v17  ;;  %v7178_v39 = vsel %vm7166_vm12, %v7160_v11, %v7177_v45  ;;  %v3893_v33 = vsel %vm14699_vm10, 0, %v3891_v7  ;;  %vm7331_vm11 = vcmp.lt.s32.totalorder %v14685_v23, 2 }
 0x6aa   : > { %vm8308_vm1 = vcmp.lt.s32.totalorder %v8307_v21, 0  ;;  %v7175_v61 = vsel %vm7165_vm9, %v7172_v1, %v7174_v13  ;;  %v7179_v5 = vsel %vm7165_vm9, %v7176_v27, %v7178_v39  ;;  %v7168_v6 = vsel %vm7164_vm8, %v7148_v35, %v7151_v26 }
 0x6ab   : > { %v3875_v18 = vsel %vm8308_vm1, 0, %v8307_v21  ;;  %v7170_v52 = vsel %vm7166_vm12, %v7154_v8, %v7169_v14  ;;  %vm7328_vm2 = vweird.f32 %v14494_v24  ;;  %vm4127_vm13 = vcmp.gt.s32.totalorder %v4126_v53, 0 }
 0x6ac   : > { %v3876_v59 = vsub.s32 32, %v3875_v18  ;;  %v3880_v30 = vsub.s32 4294967266, %v3875_v18  ;;  %v14733_v47 = vmul.u32.u64.low %v14689_v48, %v7179_v5  ;;  %v14734_v46 = vmul.u32.u64.high %v14689_v48, %v7179_v5, %v14733_v47 }
 0x6ad   : > { %v14737_v29 = vmul.u32.u64.low %v14689_v48, %v7175_v61  ;;  %v14738_v22 = vmul.u32.u64.high %v14689_v48, %v7175_v61, %v14737_v29  ;;  %v3877_v31 = vshll.u32 %v14692_v37, %v3875_v18  ;;  %vm7332_vm15 = vcmp.eq.s32.totalorder %v14685_v23, 0 }
 0x6ae   : > { %v3878_v63 = vshrl.u32 %v3860_v32, %v3876_v59  ;;  %v3881_v15 = vadd.s32 127, %v3880_v30  ;;  %v7171_v25 = vsel %vm7165_vm9, %v7168_v6, %v7170_v52  ;;  %v4123_v12 = vand.u32 8388607, %v4116_v41 }
 0x6af   : > { %v4128_v55 = vsel %vm4127_vm13, %v4126_v53, 0  ;;  %vm7335_vm4 = vcmp.eq.s32.totalorder %v14685_v23, 2  ;;  %v3897_v37 = vadd.s32 3, %v3893_v33  ;;  %vm7189_vm7 = vc.u32 %v14734_v46, %v14737_v29 }
 0x6b0   : > { %v9260_v26 = vpop.eup %9259  ;;  %v3879_v34 = vor.u32 %v3878_v63, %v3877_v31  ;;  %v3882_v4 = vshll.u32 %v3881_v15, 23  ;;  %v4130_v49 = vand.u32 31, %v4128_v55  ;;  %v7190_v32 = vadd.s32 1, %v14738_v22 }
 0x6b1   : > { %v9262_v57 = vpop.eup %9261  ;;  %v7336_v0 = vxor.u32 2147483648, %v9260_v26  ;;  %v7187_v19 = vmul.u32 %v14689_v48, %v7171_v25  ;;  %v4124_v38 = vor.u32 8388608, %v4123_v12  ;;  %v14759_v53 = vadd.f32 %v14755_v10, %v14318_v28 }
 0x6b2   : > { %v7333_v2 = vxor.u32 2147483648, %v9262_v57  ;;  %v3883_v8 = vor.u32 4788187, %v3882_v4  ;;  %v4131_v9 = vsub.s32 32, %v4130_v49  ;;  %v7191_v11 = vsel %vm7189_vm7, %v7190_v32, %v14738_v22 }
 0x6b3   : > { %v7337_v43 = vsel %vm7335_vm4, %v7336_v0, %v9262_v57  ;;  %v3886_v48 = vcvt.s32.f32 %v3879_v34  ;;  %v7192_v16 = vadd.s32 %v7191_v11, %v7187_v19  ;;  %v14765_v1 = vand.u32 3, %v3897_v37 }
 0x6b4   : > { %v7334_v7 = vsel %vm7332_vm15, %v9260_v26, %v7333_v2  ;;  %v3884_v35 = vand.u32 2147483647, %v3883_v8  ;;  %v4134_v14 = vshrl.u32 %v9402_v54, %v4131_v9  ;;  %v4137_v17 = vshrl.u32 %v9403_v56, %v4131_v9 }
 0x6b5   : > { %v7338_v21 = vsel %vm7331_vm11, %v7334_v7, %v7337_v43  ;;  %v7193_v45 = vadd.s32 536870912, %v7192_v16  ;;  %v4129_v13 = vshrl.u32 %v4128_v55, 5  ;;  %vm7134_vm6 = vcmp.lt.s32.totalorder %v14544_v40, 0 }
 0x6b6   : > { %v7339_v27 = vsel %vm7328_vm2, nan, %v7338_v21  ;;  %v3887_v28 = vmul.f32 %v3886_v48, %v3884_v35  ;;  %v4133_v39 = vshll.u32 %v9401_v50, %v4130_v49  ;;  %v4136_v23 = vshll.u32 %v9402_v54, %v4130_v49 }
 0x6b7   : > { %7610 = vst.msk [vmem:[%s9945_s25 + $0x1e8] sm:$0xff] %vm7548_vm14, %v7339_v27  ;;  %v4140_v18 = vshrl.u32 %v9404_v58, %v4131_v9  ;;  %v4143_v33 = vshrl.u32 %v9405_v60, %v4131_v9  ;;  %v7194_v5 = vshrl.u32 %v7193_v45, 30  ;;  %v4139_v24 = vshll.u32 %v9403_v56, %v4130_v49 }
 0x6b8   : > { %v3888_v61 = vxor.u32 2147483648, %v3887_v28  ;;  %v4142_v59 = vshll.u32 %v9404_v58, %v4130_v49  ;;  %v4135_v30 = vor.u32 %v4134_v14, %v4133_v39  ;;  %v4138_v6 = vor.u32 %v4137_v17, %v4136_v23 }
 0x6b9   : > { %v4145_v52 = vshll.u32 %v9405_v60, %v4130_v49  ;;  %v4146_v47 = vshrl.u32 %v9406_v3, %v4131_v9  ;;  %v7195_v31 = vshll.u32 %v7194_v5, 30  ;;  %v14784_v15 = vshll.u32 %v4124_v38, 8 }
 0x6ba   : > { %v3889_v22 = vsel %vm3806_vm3, %v3888_v61, %v3887_v28  ;;  %v4144_v63 = vor.u32 %v4143_v33, %v4142_v59  ;;  %v4141_v12 = vor.u32 %v4140_v18, %v4139_v24  ;;  %v7447_v26 = vand.u32 2139095040, %v14759_v53 }
 0x6bb   : > { %v3892_v25 = vsel %vm14699_vm10, %v14511_v62, %v3889_v22  ;;  %v4147_v55 = vor.u32 %v4146_v47, %v4145_v52  ;;  %v14790_v34 = vsub.s32 %v7192_v16, %v7195_v31  ;;  %v7218_v4 = vsub.s32 4, %v7194_v5 }
 0x6bc   : > { %9263 = vcosq.f32 %v3892_v25  ;;  %vm4148_vm5 = vcmp.lt.s32.totalorder %v4129_v13, 1  ;;  %v4132_v49 = vshrl.u32 %v9401_v50, %v4131_v9  ;;  %vm4151_vm3 = vcmp.lt.s32.totalorder %v4129_v13, 4 }
 0x6bd   : > { %9265 = vsinq.f32 %v3892_v25  ;;  %v4156_v57 = vsel %vm4148_vm5, %v4135_v30, %v4138_v6  ;;  %v7198_v0 = vsub.s32 0, %v14790_v34  ;;  %vm4149_vm8 = vcmp.lt.s32.totalorder %v4129_v13, 2 }
 0x6be   : > { %vm4150_vm12 = vcmp.lt.s32.totalorder %v4129_v13, 3  ;;  %v4157_v44 = vsel %vm4151_vm3, %v4144_v63, 920167782  ;;  %v4153_v37 = vsel %vm4151_vm3, %v4141_v12, 2102212464  ;;  %v4160_v2 = vsel %vm4148_vm5, %v4138_v6, %v4141_v12 }
 0x6bf   : > { %v4158_v32 = vsel %vm4150_vm12, %v4141_v12, %v4157_v44  ;;  %v4161_v8 = vsel %vm4151_vm3, %v4147_v55, 1326507024  ;;  %v8434_v19 = vmin.u32 %v7198_v0, %v14790_v34  ;;  %v7219_v43 = vsel %vm7134_vm6, %v7218_v4, %v7194_v5 }
 0x6c0   : > { %v4159_v9 = vsel %vm4149_vm8, %v4156_v57, %v4158_v32  ;;  %v4162_v11 = vsel %vm4150_vm12, %v4144_v63, %v4161_v8  ;;  %v7448_v48 = vshrl.u32 %v7447_v26, 23  ;;  %v4152_v21 = vsel %vm4148_vm5, %v4132_v49, %v4135_v30 }
 0x6c1   : > { %v4163_v38 = vsel %vm4149_vm8, %v4160_v2, %v4162_v11  ;;  %v14802_v7 = vmul.u32.u64.low %v14784_v15, %v4159_v9  ;;  %v14803_v35 = vmul.u32.u64.high %v14784_v15, %v4159_v9, %v14802_v7  ;;  %v7200_v16 = vclz %v8434_v19 }
 0x6c2   : > { %v4154_v14 = vsel %vm4150_vm12, %v4138_v6, %v4153_v37  ;;  %vm3896_vm10 = vweird.f32 %v14511_v62  ;;  %vm14809_vm0 = vcmp.le.f32.partialorder %v7132_v20, 0.7853982  ;;  %v8445_v45 = vadd.s32 4294967169, %v7448_v48 }
 0x6c3   : > { %v14814_v27 = vmul.u32.u64.low %v14784_v15, %v4163_v38  ;;  %v14815_v28 = vmul.u32.u64.high %v14784_v15, %v4163_v38, %v14814_v27  ;;  %v8435_v39 = vadd.s32 4294967294, %v7200_v16  ;;  %v7221_v23 = vsel %vm14809_vm0, 0, %v7219_v43 }
 0x6c4   : > { %v7444_v18 = vand.u32 2147483647, %v14759_v53  ;;  %v14822_v33 = vadd.f32 %v14755_v10, %v14412_v36  ;;  %vm3899_vm1 = vcmp.lt.s32.totalorder %v14765_v1, 2  ;;  %v4155_v20 = vsel %vm4149_vm8, %v4152_v21, %v4154_v14 }
 0x6c5   : > { %v4174_v61 = vadd.s32 1, %v14803_v35  ;;  %v7454_v5 = vadd.s32 1, %v8445_v45  ;;  %vm3900_vm9 = vcmp.eq.s32.totalorder %v14765_v1, 0  ;;  %vm3903_vm11 = vcmp.eq.s32.totalorder %v14765_v1, 2 }
 0x6c6   : > { %v9264_v24 = vpop.eup %9263  ;;  %v7188_v59 = vadd.s32 %v14737_v29, %v14734_v46  ;;  %vm8436_vm2 = vcmp.lt.s32.totalorder %v8435_v39, 0  ;;  %v7225_v52 = vadd.s32 3, %v7221_v23  ;;  %vm4173_vm13 = vc.u32 %v14815_v28, %v14802_v7 }
 0x6c7   : > { %v9266_v30 = vpop.eup %9265  ;;  %v3904_v6 = vxor.u32 2147483648, %v9264_v24  ;;  %v7203_v36 = vsel %vm8436_vm2, 0, %v8435_v39  ;;  %v4171_v31 = vmul.u32 %v14784_v15, %v4155_v20  ;;  %v4175_v12 = vsel %vm4173_vm13, %v4174_v61, %v14803_v35 }
 0x6c8   : > { %v3901_v13 = vxor.u32 2147483648, %v9266_v30  ;;  %v7204_v47 = vsub.s32 32, %v7203_v36  ;;  %v7208_v22 = vsub.s32 4294967266, %v7203_v36  ;;  %v7205_v25 = vshll.u32 %v14790_v34, %v7203_v36 }
 0x6c9   : > { %v3905_v63 = vsel %vm3903_vm11, %v3904_v6, %v9266_v30  ;;  %vm7455_vm15 = vcmp.gt.s32.totalorder %v7454_v5, 0  ;;  %v4176_v26 = vadd.s32 %v4175_v12, %v4171_v31  ;;  %v7451_v49 = vand.u32 8388607, %v7444_v18 }
 0x6ca   : > { %v3902_v46 = vsel %vm3900_vm9, %v9264_v24, %v3901_v13  ;;  %v7206_v29 = vshrl.u32 %v7188_v59, %v7204_v47  ;;  %v7209_v55 = vadd.s32 127, %v7208_v22  ;;  %v7456_v15 = vsel %vm7455_vm15, %v7454_v5, 0 }
 0x6cb   : > { %v3906_v4 = vsel %vm3899_vm1, %v3902_v46, %v3905_v63  ;;  %v4012_v57 = vand.u32 2147483647, %v14822_v33  ;;  %v4177_v37 = vadd.s32 536870912, %v4176_v26  ;;  %v7458_v32 = vand.u32 31, %v7456_v15 }
 0x6cc   : > { %v3907_v34 = vsel %vm3896_vm10, nan, %v3906_v4  ;;  %v7207_v0 = vor.u32 %v7206_v29, %v7205_v25  ;;  %v7210_v44 = vshll.u32 %v7209_v55, 23  ;;  %v14848_v1 = vand.u32 3, %v7225_v52 }
 0x6cd   : > { %7577 = vst.msk [vmem:[%s9945_s25 + $0xe0] sm:$0xff] %vm7548_vm14, %v3907_v34  ;;  %v14846_v8 = vshrl.u32 %v4177_v37, 30  ;;  %v7452_v19 = vor.u32 8388608, %v7451_v49  ;;  %v7459_v43 = vsub.s32 32, %v7458_v32  ;;  %v4015_v9 = vand.u32 2139095040, %v14822_v33 }
 0x6ce   : > { %v7211_v2 = vor.u32 4788187, %v7210_v44  ;;  %v7214_v38 = vcvt.s32.f32 %v7207_v0  ;;  %v14854_v35 = vand.u32 8388607, %v4012_v57  ;;  %v4172_v48 = vadd.s32 %v14802_v7, %v14815_v28 }
 0x6cf   : > { %v4179_v62 = vshll.u32 %v14846_v8, 30  ;;  %v7462_v16 = vshrl.u32 %v9402_v54, %v7459_v43  ;;  %v7465_v21 = vshrl.u32 %v9403_v56, %v7459_v43  ;;  %v7468_v14 = vshrl.u32 %v9404_v58, %v7459_v43 }
 0x6d0   : > { %v7212_v11 = vand.u32 2147483647, %v7211_v2  ;;  %v7461_v39 = vshll.u32 %v9401_v50, %v7458_v32  ;;  %v7471_v23 = vshrl.u32 %v9405_v60, %v7459_v43  ;;  %v7457_v20 = vshrl.u32 %v7456_v15, 5 }
 0x6d1   : > { %v14860_v45 = vsub.s32 %v4176_v26, %v4179_v62  ;;  %v7464_v61 = vshll.u32 %v9402_v54, %v7458_v32  ;;  %v7467_v5 = vshll.u32 %v9403_v56, %v7458_v32  ;;  %v4016_v24 = vshrl.u32 %v4015_v9, 23 }
 0x6d2   : > { %v7215_v27 = vmul.f32 %v7214_v38, %v7212_v11  ;;  %v7463_v59 = vor.u32 %v7462_v16, %v7461_v39  ;;  %v7470_v30 = vshll.u32 %v9404_v58, %v7458_v32  ;;  %v7473_v52 = vshll.u32 %v9405_v60, %v7458_v32 }
 0x6d3   : > { %v4182_v28 = vsub.s32 0, %v14860_v45  ;;  %v7466_v6 = vor.u32 %v7465_v21, %v7464_v61  ;;  %v7469_v36 = vor.u32 %v7468_v14, %v7467_v5  ;;  %v7474_v13 = vshrl.u32 %v9406_v3, %v7459_v43 }
 0x6d4   : > { %v7216_v7 = vxor.u32 2147483648, %v7215_v27  ;;  %v7472_v31 = vor.u32 %v7471_v23, %v7470_v30  ;;  %v14873_v63 = vshll.u32 %v7452_v19, 8  ;;  %v7460_v12 = vshrl.u32 %v9401_v50, %v7459_v43 }
 0x6d5   : > { %v8318_v22 = vmin.u32 %v4182_v28, %v14860_v45  ;;  %v7475_v46 = vor.u32 %v7474_v13, %v7473_v52  ;;  %v8313_v29 = vadd.s32 4294967169, %v4016_v24  ;;  %vm7476_vm4 = vcmp.lt.s32.totalorder %v7457_v20, 1 }
 0x6d6   : > { %v7217_v47 = vsel %vm7134_vm6, %v7216_v7, %v7215_v27  ;;  %vm7479_vm7 = vcmp.lt.s32.totalorder %v7457_v20, 4  ;;  %vm4118_vm6 = vcmp.lt.s32.totalorder %v14661_v42, 0  ;;  %vm7477_vm5 = vcmp.lt.s32.totalorder %v7457_v20, 2 }
 0x6d7   : > { %v7220_v25 = vsel %vm14809_vm0, %v14544_v40, %v7217_v47  ;;  %v4184_v55 = vclz %v8318_v22  ;;  %v7481_v26 = vsel %vm7479_vm7, %v7469_v36, 2102212464  ;;  %v7484_v4 = vsel %vm7476_vm4, %v7463_v59, %v7466_v6 }
 0x6d8   : > { %9267 = vcosq.f32 %v7220_v25  ;;  %vm7478_vm3 = vcmp.lt.s32.totalorder %v7457_v20, 3  ;;  %v7485_v15 = vsel %vm7479_vm7, %v7472_v31, 920167782  ;;  %v7488_v34 = vsel %vm7476_vm4, %v7466_v6, %v7469_v36 }
 0x6d9   : > { %9269 = vsinq.f32 %v7220_v25  ;;  %v8319_v49 = vadd.s32 4294967294, %v4184_v55  ;;  %v7480_v17 = vsel %vm7476_vm4, %v7460_v12, %v7463_v59  ;;  %v7486_v0 = vsel %vm7478_vm3, %v7469_v36, %v7485_v15 }
 0x6da   : > { %v7489_v44 = vsel %vm7479_vm7, %v7475_v46, 1326507024  ;;  %v4022_v37 = vadd.s32 1, %v8313_v29  ;;  %v7482_v32 = vsel %vm7478_vm3, %v7466_v6, %v7481_v26  ;;  %v7487_v2 = vsel %vm7477_vm5, %v7484_v4, %v7486_v0 }
 0x6db   : > { %vm8320_vm8 = vcmp.lt.s32.totalorder %v8319_v49, 0  ;;  %v7490_v19 = vsel %vm7478_vm3, %v7472_v31, %v7489_v44  ;;  %v14883_v11 = vmul.u32.u64.low %v14873_v63, %v7487_v2  ;;  %v14884_v38 = vmul.u32.u64.high %v14873_v63, %v7487_v2, %v14883_v11 }
 0x6dc   : > { %v4187_v43 = vsel %vm8320_vm8, 0, %v8319_v49  ;;  %v7491_v9 = vsel %vm7477_vm5, %v7488_v34, %v7490_v19  ;;  %v4202_v21 = vsub.s32 4, %v14846_v8  ;;  %vm4023_vm12 = vcmp.gt.s32.totalorder %v4022_v37, 0 }
 0x6dd   : > { %v4188_v62 = vsub.s32 32, %v4187_v43  ;;  %v4192_v16 = vsub.s32 4294967266, %v4187_v43  ;;  %vm7224_vm10 = vweird.f32 %v14544_v40  ;;  %v7483_v14 = vsel %vm7477_vm5, %v7480_v17, %v7482_v32 }
 0x6de   : > { %v14891_v27 = vmul.u32.u64.low %v14873_v63, %v7491_v9  ;;  %v14892_v39 = vmul.u32.u64.high %v14873_v63, %v7491_v9, %v14891_v27  ;;  %v4024_v23 = vsel %vm4023_vm12, %v4022_v37, 0  ;;  %v4189_v61 = vshll.u32 %v14860_v45, %v4187_v43 }
 0x6df   : > { %v4190_v5 = vshrl.u32 %v4172_v48, %v4188_v62  ;;  %v4193_v24 = vadd.s32 127, %v4192_v16  ;;  %v4026_v7 = vand.u32 31, %v4024_v23  ;;  %vm7227_vm0 = vcmp.lt.s32.totalorder %v14848_v1, 2 }
 0x6e0   : > { %vm7228_vm1 = vcmp.eq.s32.totalorder %v14848_v1, 0  ;;  %vm14899_vm9 = vcmp.le.f32.partialorder %v4116_v41, 0.7853982  ;;  %v7502_v20 = vadd.s32 1, %v14884_v38  ;;  %vm7231_vm11 = vcmp.eq.s32.totalorder %v14848_v1, 2 }
 0x6e1   : > { %v4191_v30 = vor.u32 %v4190_v5, %v4189_v61  ;;  %v4194_v45 = vshll.u32 %v4193_v24, 23  ;;  %v4203_v48 = vsel %vm4118_vm6, %v4202_v21, %v14846_v8  ;;  %v7499_v52 = vmul.u32 %v14873_v63, %v7483_v14 }
 0x6e2   : > { %v9268_v59 = vpop.eup %9267  ;;  %vm7501_vm2 = vc.u32 %v14892_v39, %v14883_v11  ;;  %v4027_v41 = vsub.s32 32, %v4026_v7  ;;  %v4020_v31 = vor.u32 8388608, %v14854_v35  ;;  %v4205_v12 = vsel %vm14899_vm9, 0, %v4203_v48 }
 0x6e3   : > { %v9270_v6 = vpop.eup %9269  ;;  %v7232_v36 = vxor.u32 2147483648, %v9268_v59  ;;  %v4195_v47 = vor.u32 4788187, %v4194_v45  ;;  %v7503_v22 = vsel %vm7501_vm2, %v7502_v20, %v14884_v38  ;;  %v14917_v46 = vadd.f32 %v14755_v10, %v14496_v51 }
 0x6e4   : > { %v7229_v13 = vxor.u32 2147483648, %v9270_v6  ;;  %v7504_v8 = vadd.s32 %v7503_v22, %v7499_v52  ;;  %v4198_v55 = vcvt.s32.f32 %v4191_v30  ;;  %v4025_v26 = vshrl.u32 %v4024_v23, 5 }
 0x6e5   : > { %v7233_v25 = vsel %vm7231_vm11, %v7232_v36, %v9270_v6  ;;  %v4196_v29 = vand.u32 2147483647, %v4195_v47  ;;  %v4030_v49 = vshrl.u32 %v9402_v54, %v4027_v41  ;;  %v4033_v15 = vshrl.u32 %v9403_v56, %v4027_v41 }
 0x6e6   : > { %v7230_v63 = vsel %vm7228_vm1, %v9268_v59, %v7229_v13  ;;  %v7505_v35 = vadd.s32 536870912, %v7504_v8  ;;  %v4029_v51 = vshll.u32 %v9401_v50, %v4026_v7  ;;  %v4036_v10 = vshrl.u32 %v9404_v58, %v4027_v41 }
 0x6e7   : > { %v7234_v4 = vsel %vm7227_vm0, %v7230_v63, %v7233_v25  ;;  %v4199_v17 = vmul.f32 %v4198_v55, %v4196_v29  ;;  %v4032_v1 = vshll.u32 %v9402_v54, %v4026_v7  ;;  %v4035_v44 = vshll.u32 %v9403_v56, %v4026_v7 }
 0x6e8   : > { %v7235_v34 = vsel %vm7224_vm10, nan, %v7234_v4  ;;  %v14931_v0 = vshrl.u32 %v7505_v35, 30  ;;  %v4039_v37 = vshrl.u32 %v9405_v60, %v4027_v41  ;;  %v4038_v2 = vshll.u32 %v9404_v58, %v4026_v7 }
 0x6e9   : > { %7609 = vst.msk [vmem:[%s9945_s25 + $0x1e0] sm:$0xff] %vm7548_vm14, %v7235_v34  ;;  %v4200_v32 = vxor.u32 2147483648, %v4199_v17  ;;  %v4041_v40 = vshll.u32 %v9405_v60, %v4026_v7  ;;  %v4042_v19 = vshrl.u32 %v9406_v3, %v4027_v41  ;;  %v4031_v9 = vor.u32 %v4030_v49, %v4029_v51 }
 0x6ea   : > { %v7507_v43 = vshll.u32 %v14931_v0, 30  ;;  %v4034_v38 = vor.u32 %v4033_v15, %v4032_v1  ;;  %v14940_v62 = vshll.u32 %v4020_v31, 8  ;;  %v4037_v21 = vor.u32 %v4036_v10, %v4035_v44 }
 0x6eb   : > { %v4201_v16 = vsel %vm4118_vm6, %v4200_v32, %v4199_v17  ;;  %v4040_v14 = vor.u32 %v4039_v37, %v4038_v2  ;;  %v4043_v27 = vor.u32 %v4042_v19, %v4041_v40  ;;  %v4209_v61 = vadd.s32 3, %v4205_v12 }
 0x6ec   : > { %v4204_v23 = vsel %vm14899_vm9, %v14661_v42, %v4201_v16  ;;  %v7508_v5 = vsub.s32 %v7504_v8, %v7507_v43  ;;  %v7343_v24 = vand.u32 2139095040, %v14917_v46  ;;  %v4028_v7 = vshrl.u32 %v9401_v50, %v4027_v41 }
 0x6ed   : > { %9271 = vcosq.f32 %v4204_v23  ;;  %vm4044_vm13 = vcmp.lt.s32.totalorder %v4025_v26, 1  ;;  %vm4046_vm15 = vcmp.lt.s32.totalorder %v4025_v26, 3  ;;  %vm4047_vm4 = vcmp.lt.s32.totalorder %v4025_v26, 4 }
 0x6ee   : > { %9273 = vsinq.f32 %v4204_v23  ;;  %v7510_v20 = vsub.s32 0, %v7508_v5  ;;  %v4052_v59 = vsel %vm4044_vm13, %v4031_v9, %v4034_v38  ;;  %v4049_v30 = vsel %vm4047_vm4, %v4037_v21, 2102212464 }
 0x6ef   : > { %v4053_v45 = vsel %vm4047_vm4, %v4040_v14, 920167782  ;;  %v4056_v48 = vsel %vm4044_vm13, %v4034_v38, %v4037_v21  ;;  %v4057_v28 = vsel %vm4047_vm4, %v4043_v27, 1326507024  ;;  %vm4045_vm7 = vcmp.lt.s32.totalorder %v4025_v26, 2 }
 0x6f0   : > { %v8446_v6 = vmin.u32 %v7510_v20, %v7508_v5  ;;  %v4054_v36 = vsel %vm4046_vm15, %v4037_v21, %v4053_v45  ;;  %v4058_v52 = vsel %vm4046_vm15, %v4040_v14, %v4057_v28  ;;  %v4210_v13 = vand.u32 3, %v4209_v61 }
 0x6f1   : > { %v4055_v41 = vsel %vm4045_vm7, %v4052_v59, %v4054_v36  ;;  %v4059_v47 = vsel %vm4045_vm7, %v4056_v48, %v4058_v52  ;;  %v7344_v22 = vshrl.u32 %v7343_v24, 23  ;;  %v4048_v25 = vsel %vm4044_vm13, %v4028_v7, %v4031_v9 }
 0x6f2   : > { %v7512_v31 = vclz %v8446_v6  ;;  %v4050_v12 = vsel %vm4046_vm15, %v4034_v38, %v4049_v30  ;;  %v14958_v8 = vmul.u32.u64.low %v14940_v62, %v4059_v47  ;;  %v14959_v63 = vmul.u32.u64.high %v14940_v62, %v4059_v47, %v14958_v8 }
 0x6f3   : > { %v14962_v29 = vmul.u32.u64.low %v14940_v62, %v4055_v41  ;;  %v14963_v55 = vmul.u32.u64.high %v14940_v62, %v4055_v41, %v14962_v29  ;;  %v8441_v35 = vadd.s32 4294967169, %v7344_v22  ;;  %vm4208_vm6 = vweird.f32 %v14661_v42 }
 0x6f4   : > { %v8447_v4 = vadd.s32 4294967294, %v7512_v31  ;;  %vm4212_vm5 = vcmp.eq.s32.totalorder %v4210_v13, 0  ;;  %v4051_v49 = vsel %vm4045_vm7, %v4048_v25, %v4050_v12  ;;  %vm4215_vm3 = vcmp.eq.s32.totalorder %v4210_v13, 2 }
 0x6f5   : > { %v7500_v15 = vadd.s32 %v14883_v11, %v14892_v39  ;;  %v7350_v34 = vadd.s32 1, %v8441_v35  ;;  %v7530_v10 = vsub.s32 4, %v14931_v0  ;;  %vm4069_vm12 = vc.u32 %v14959_v63, %v14962_v29 }
 0x6f6   : > { %vm8448_vm8 = vcmp.lt.s32.totalorder %v8447_v4, 0  ;;  %v4070_v1 = vadd.s32 1, %v14963_v55  ;;  %v4067_v2 = vmul.u32 %v14940_v62, %v4051_v49  ;;  %vm4211_vm0 = vcmp.lt.s32.totalorder %v4210_v13, 2 }
 0x6f7   : > { %v9272_v17 = vpop.eup %9271  ;;  %v7515_v51 = vsel %vm8448_vm8, 0, %v8447_v4  ;;  %vm7351_vm10 = vcmp.gt.s32.totalorder %v7350_v34, 0  ;;  %v7340_v21 = vand.u32 2147483647, %v14917_v46  ;;  %vm7446_vm1 = vcmp.lt.s32.totalorder %v14759_v53, 0 }
 0x6f8   : > { %v9274_v44 = vpop.eup %9273  ;;  %v4216_v37 = vxor.u32 2147483648, %v9272_v17  ;;  %v7516_v32 = vsub.s32 32, %v7515_v51  ;;  %v7520_v26 = vsub.s32 4294967266, %v7515_v51  ;;  %v7517_v19 = vshll.u32 %v7508_v5, %v7515_v51 }
 0x6f9   : > { %v4213_v40 = vxor.u32 2147483648, %v9274_v44  ;;  %v4071_v11 = vsel %vm4069_vm12, %v4070_v1, %v14963_v55  ;;  %v7352_v14 = vsel %vm7351_vm10, %v7350_v34, 0  ;;  %v7531_v20 = vsel %vm7446_vm1, %v7530_v10, %v14931_v0 }
 0x6fa   : > { %v4217_v39 = vsel %vm4215_vm3, %v4216_v37, %v9274_v44  ;;  %v7518_v43 = vshrl.u32 %v7500_v15, %v7516_v32  ;;  %v7521_v9 = vadd.s32 127, %v7520_v26  ;;  %v4072_v38 = vadd.s32 %v4071_v11, %v4067_v2 }
 0x6fb   : > { %v4214_v16 = vsel %vm4212_vm5, %v9272_v17, %v4213_v40  ;;  %v7354_v24 = vand.u32 31, %v7352_v14  ;;  %v7347_v30 = vand.u32 8388607, %v7340_v21  ;;  %vm14993_vm9 = vcmp.le.f32.partialorder %v7444_v18, 0.7853982 }
 0x6fc   : > { %v4218_v27 = vsel %vm4211_vm0, %v4214_v16, %v4217_v39  ;;  %v7519_v23 = vor.u32 %v7518_v43, %v7517_v19  ;;  %v7522_v62 = vshll.u32 %v7521_v9, 23  ;;  %v4073_v61 = vadd.s32 536870912, %v4072_v38 }
 0x6fd   : > { %v4219_v5 = vsel %vm4208_vm6, nan, %v4218_v27  ;;  %v7355_v45 = vsub.s32 32, %v7354_v24  ;;  %v7533_v36 = vsel %vm14993_vm9, 0, %v7531_v20  ;;  %v7357_v18 = vshll.u32 %v9401_v50, %v7354_v24 }
 0x6fe   : > { %7580 = vst.msk [vmem:[%s9945_s25 + $0xf8] sm:$0xff] %vm7548_vm14, %v4219_v5  ;;  %v7523_v7 = vor.u32 4788187, %v7522_v62  ;;  %v14987_v59 = vshrl.u32 %v4073_v61, 30  ;;  %v7526_v28 = vcvt.s32.f32 %v7519_v23  ;;  %v7348_v31 = vor.u32 8388608, %v7347_v30 }
 0x6ff   : > { %v7358_v0 = vshrl.u32 %v9402_v54, %v7355_v45  ;;  %v7361_v52 = vshrl.u32 %v9403_v56, %v7355_v45  ;;  %v7364_v13 = vshrl.u32 %v9404_v58, %v7355_v45  ;;  %v7367_v22 = vshrl.u32 %v9405_v60, %v7355_v45 }
 0x700   : > { %v7524_v48 = vand.u32 2147483647, %v7523_v7  ;;  %v4075_v6 = vshll.u32 %v14987_v59, 30  ;;  %v7353_v25 = vshrl.u32 %v7352_v14, 5  ;;  %v7360_v12 = vshll.u32 %v9402_v54, %v7354_v24 }
 0x701   : > { %v7363_v8 = vshll.u32 %v9403_v56, %v7354_v24  ;;  %v7359_v35 = vor.u32 %v7358_v0, %v7357_v18  ;;  %v7366_v49 = vshll.u32 %v9404_v58, %v7354_v24  ;;  %v7369_v17 = vshll.u32 %v9405_v60, %v7354_v24 }
 0x702   : > { %v7527_v41 = vmul.f32 %v7526_v28, %v7524_v48  ;;  %v4076_v47 = vsub.s32 %v4072_v38, %v4075_v6  ;;  %v7362_v15 = vor.u32 %v7361_v52, %v7360_v12  ;;  %v7370_v51 = vshrl.u32 %v9406_v3, %v7355_v45 }
 0x703   : > { %v7365_v34 = vor.u32 %v7364_v13, %v7363_v8  ;;  %v7368_v44 = vor.u32 %v7367_v22, %v7366_v49  ;;  %v7537_v56 = vadd.s32 3, %v7533_v36  ;;  %v7388_v32 = vshll.u32 %v7348_v31, 8 }
 0x704   : > { %v7528_v55 = vxor.u32 2147483648, %v7527_v41  ;;  %v4078_v4 = vsub.s32 0, %v4076_v47  ;;  %v7371_v37 = vor.u32 %v7370_v51, %v7369_v17  ;;  %vm7372_vm11 = vcmp.lt.s32.totalorder %v7353_v25, 1 }
 0x705   : > { %vm7375_vm2 = vcmp.lt.s32.totalorder %v7353_v25, 4  ;;  %v7356_v60 = vshrl.u32 %v9401_v50, %v7355_v45  ;;  %v7380_v26 = vsel %vm7372_vm11, %v7359_v35, %v7362_v15  ;;  %vm7374_vm13 = vcmp.lt.s32.totalorder %v7353_v25, 3 }
 0x706   : > { %v7529_v10 = vsel %vm7446_vm1, %v7528_v55, %v7527_v41  ;;  %v8314_v1 = vmin.u32 %v4078_v4, %v4076_v47  ;;  %v7377_v3 = vsel %vm7375_vm2, %v7365_v34, 2102212464  ;;  %v7381_v40 = vsel %vm7375_vm2, %v7368_v44, 920167782 }
 0x707   : > { %v7532_v54 = vsel %vm14993_vm9, %v14759_v53, %v7529_v10  ;;  %v7384_v19 = vsel %vm7372_vm11, %v7362_v15, %v7365_v34  ;;  %vm7373_vm15 = vcmp.lt.s32.totalorder %v7353_v25, 2  ;;  %v7376_v11 = vsel %vm7372_vm11, %v7356_v60, %v7359_v35 }
 0x708   : > { %9275 = vcosq.f32 %v7532_v54  ;;  %v4080_v58 = vclz %v8314_v1  ;;  %v7382_v39 = vsel %vm7374_vm13, %v7365_v34, %v7381_v40  ;;  %v7385_v43 = vsel %vm7375_vm2, %v7371_v37, 1326507024 }
 0x709   : > { %9277 = vsinq.f32 %v7532_v54  ;;  %v7378_v9 = vsel %vm7374_vm13, %v7362_v15, %v7377_v3  ;;  %v7383_v38 = vsel %vm7373_vm15, %v7380_v26, %v7382_v39  ;;  %v7386_v16 = vsel %vm7374_vm13, %v7368_v44, %v7385_v43 }
 0x70a   : > { %v8315_v2 = vadd.s32 4294967294, %v4080_v58  ;;  %v7387_v27 = vsel %vm7373_vm15, %v7384_v19, %v7386_v16  ;;  %v15018_v23 = vmul.u32.u64.low %v7388_v32, %v7383_v38  ;;  %v15019_v50 = vmul.u32.u64.high %v7388_v32, %v7383_v38, %v15018_v23 }
 0x70b   : > { %v4068_v62 = vadd.s32 %v14962_v29, %v14959_v63  ;;  %v7538_v24 = vand.u32 3, %v7537_v56  ;;  %v15023_v7 = vmul.u32.u64.low %v7388_v32, %v7387_v27  ;;  %v15024_v20 = vmul.u32.u64.high %v7388_v32, %v7387_v27, %v15023_v7 }
 0x70c   : > { %vm8316_vm4 = vcmp.lt.s32.totalorder %v8315_v2, 0  ;;  %v7379_v48 = vsel %vm7373_vm15, %v7376_v11, %v7378_v9  ;;  %v7398_v28 = vadd.s32 1, %v15019_v50  ;;  %vm7536_vm8 = vweird.f32 %v14759_v53 }
 0x70d   : > { %v4083_v14 = vsel %vm8316_vm4, 0, %v8315_v2  ;;  %v7395_v41 = vmul.u32 %v7388_v32, %v7379_v48  ;;  %vm7397_vm7 = vc.u32 %v15024_v20, %v15018_v23  ;;  %vm7543_vm6 = vcmp.eq.s32.totalorder %v7538_v24, 2 }
 0x70e   : > { %v4084_v61 = vsub.s32 32, %v4083_v14  ;;  %v4088_v5 = vsub.s32 4294967266, %v4083_v14  ;;  %v4085_v30 = vshll.u32 %v4076_v47, %v4083_v14  ;;  %v7399_v47 = vsel %vm7397_vm7, %v7398_v28, %v15019_v50 }
 0x70f   : > { %vm7540_vm5 = vcmp.eq.s32.totalorder %v7538_v24, 0  ;;  %v7400_v22 = vadd.s32 %v7399_v47, %v7395_v41  ;;  %vm7539_vm3 = vcmp.lt.s32.totalorder %v7538_v24, 2  ;;  %v4098_v49 = vsub.s32 4, %v14987_v59 }
 0x710   : > { %v4086_v45 = vshrl.u32 %v4068_v62, %v4084_v61  ;;  %v4089_v42 = vadd.s32 127, %v4088_v5  ;;  %vm4014_vm12 = vcmp.lt.s32.totalorder %v14822_v33, 0  ;;  %vm4013_vm10 = vcmp.le.f32.partialorder %v4012_v57, 0.7853982 }
 0x711   : > { %v7401_v55 = vadd.s32 536870912, %v7400_v22  ;;  %v4099_v10 = vsel %vm4014_vm12, %v4098_v49, %v14987_v59  ;;  %v7396_v40 = vadd.s32 %v15018_v23, %v15024_v20  ;;  %vm4104_vm2 = vweird.f32 %v14822_v33 }
 0x712   : > { %v9276_v6 = vpop.eup %9275  ;;  %v4087_v36 = vor.u32 %v4086_v45, %v4085_v30  ;;  %v4090_v0 = vshll.u32 %v4089_v42, 23  ;;  %v4101_v44 = vsel %vm4013_vm10, 0, %v4099_v10  ;;  %vm7342_vm13 = vcmp.lt.s32.totalorder %v14917_v46, 0 }
 0x713   : > { %v9278_v52 = vpop.eup %9277  ;;  %v7544_v13 = vxor.u32 2147483648, %v9276_v6  ;;  %v7402_v15 = vshrl.u32 %v7401_v55, 30  ;;  %v4105_v37 = vadd.s32 3, %v4101_v44  ;;  %vm7341_vm15 = vcmp.le.f32.partialorder %v7340_v21, 0.7853982 }
 0x714   : > { %v7541_v63 = vxor.u32 2147483648, %v9278_v52  ;;  %v4091_v29 = vor.u32 4788187, %v4090_v0  ;;  %v4094_v12 = vcvt.s32.f32 %v4087_v36 }
 0x715   : > { %v7545_v18 = vsel %vm7543_vm6, %v7544_v13, %v9278_v52  ;;  %v7403_v17 = vshll.u32 %v7402_v15, 30  ;;  %v4106_v60 = vand.u32 3, %v4105_v37  ;;  %v7426_v7 = vsub.s32 4, %v7402_v15 }
 0x716   : > { %v7542_v31 = vsel %vm7540_vm5, %v9276_v6, %v7541_v63  ;;  %v4092_v25 = vand.u32 2147483647, %v4091_v29  ;;  %vm7432_vm5 = vweird.f32 %v14917_v46 }
 0x717   : > { %v7546_v8 = vsel %vm7539_vm3, %v7542_v31, %v7545_v18  ;;  %v7404_v1 = vsub.s32 %v7400_v22, %v7403_v17  ;;  %vm4108_vm1 = vcmp.eq.s32.totalorder %v4106_v60, 0  ;;  %vm4111_vm9 = vcmp.eq.s32.totalorder %v4106_v60, 2 }
 0x718   : > { %v7547_v4 = vsel %vm7536_vm8, nan, %v7546_v8  ;;  %v4095_v35 = vmul.f32 %v4094_v12, %v4092_v25  ;;  %vm4107_vm11 = vcmp.lt.s32.totalorder %v4106_v60, 2  ;;  %v7427_v45 = vsel %vm7342_vm13, %v7426_v7, %v7402_v15 }
 0x719   : > { %7612 = vst.msk [vmem:[%s9945_s25 + $0x1f8] sm:$0xff] %vm7548_vm14, %v7547_v4  ;;  %v7406_v54 = vsub.s32 0, %v7404_v1  ;;  %v7429_v42 = vsel %vm7341_vm15, 0, %v7427_v45 }
 0x71a   : > { %v4096_v34 = vxor.u32 2147483648, %v4095_v35  ;;  %v7433_v48 = vadd.s32 3, %v7429_v42 }
 0x71b   : > { %v8442_v56 = vmin.u32 %v7406_v54, %v7404_v1 }
 0x71c   : > { %v4097_v51 = vsel %vm4014_vm12, %v4096_v34, %v4095_v35  ;;  %v7434_v28 = vand.u32 3, %v7433_v48 }
 0x71d   : > { %v4100_v53 = vsel %vm4013_vm10, %v14822_v33, %v4097_v51  ;;  %v7408_v32 = vclz %v8442_v56 }
 0x71e   : > { %9279 = vcosq.f32 %v4100_v53  ;;  %vm7439_vm4 = vcmp.eq.s32.totalorder %v7434_v28, 2  ;;  %vm7436_vm7 = vcmp.eq.s32.totalorder %v7434_v28, 0  ;;  %vm7435_vm6 = vcmp.lt.s32.totalorder %v7434_v28, 2 }
 0x71f   : > { %9281 = vsinq.f32 %v4100_v53  ;;  %v8443_v58 = vadd.s32 4294967294, %v7408_v32 }
 0x721   : > { %vm8444_vm0 = vcmp.lt.s32.totalorder %v8443_v58, 0 }
 0x722   : > { %v7411_v26 = vsel %vm8444_vm0, 0, %v8443_v58 }
 0x723   : > { %v7412_v59 = vsub.s32 32, %v7411_v26  ;;  %v7416_v19 = vsub.s32 4294967266, %v7411_v26  ;;  %v7413_v43 = vshll.u32 %v7404_v1, %v7411_v26 }
 0x725   : > { %v7414_v9 = vshrl.u32 %v7396_v40, %v7412_v59  ;;  %v7417_v38 = vadd.s32 127, %v7416_v19 }
 0x727   : > { %v7415_v27 = vor.u32 %v7414_v9, %v7413_v43  ;;  %v7418_v50 = vshll.u32 %v7417_v38, 23 }
 0x728   : > { %v9280_v3 = vpop.eup %9279 }
 0x729   : > { %v9282_v2 = vpop.eup %9281  ;;  %v4112_v57 = vxor.u32 2147483648, %v9280_v3  ;;  %v7419_v23 = vor.u32 4788187, %v7418_v50  ;;  %v7422_v5 = vcvt.s32.f32 %v7415_v27 }
 0x72a   : > { %v4109_v11 = vxor.u32 2147483648, %v9282_v2 }
 0x72b   : > { %v4113_v39 = vsel %vm4111_vm9, %v4112_v57, %v9282_v2  ;;  %v7420_v61 = vand.u32 2147483647, %v7419_v23 }
 0x72c   : > { %v4110_v16 = vsel %vm4108_vm1, %v9280_v3, %v4109_v11 }
 0x72d   : > { %v4114_v14 = vsel %vm4107_vm11, %v4110_v16, %v4113_v39  ;;  %v7423_v24 = vmul.f32 %v7422_v5, %v7420_v61 }
 0x72e   : > { %v4115_v62 = vsel %vm4104_vm2, nan, %v4114_v14 }
 0x72f   : > { %7579 = vst.msk [vmem:[%s9945_s25 + $0xf0] sm:$0xff] %vm7548_vm14, %v4115_v62  ;;  %v7424_v20 = vxor.u32 2147483648, %v7423_v24 }
 0x731   : > { %v7425_v30 = vsel %vm7342_vm13, %v7424_v20, %v7423_v24 }
 0x732   : > { %v7428_v33 = vsel %vm7341_vm15, %v14917_v46, %v7425_v30 }
 0x733   : > { %9283 = vcosq.f32 %v7428_v33 }
 0x734   : > { %9285 = vsinq.f32 %v7428_v33 }
 0x73d   : > { %v9284_v6 = vpop.eup %9283 }
 0x73e   : > { %v9286_v36 = vpop.eup %9285  ;;  %v7440_v0 = vxor.u32 2147483648, %v9284_v6  ;;  %7619 = sbr.rel (!%p9459_p3) target bundleno = 1933 (0x78d), region = 36 }
 0x73f   : > { %v7437_v52 = vxor.u32 2147483648, %v9286_v36 }
 0x740   : > { %v7441_v13 = vsel %vm7439_vm4, %v7440_v0, %v9286_v36 }
 0x741   : > { %v7438_v41 = vsel %vm7436_vm7, %v9284_v6, %v7437_v52 }
 0x742   : > { %v7442_v21 = vsel %vm7435_vm6, %v7438_v41, %v7441_v13 }
 0x743   : > { %v7443_v63 = vsel %vm7432_vm5, nan, %v7442_v21 }
 0x744   : > { %7611 = vst.msk [vmem:[%s9945_s25 + $0x1f0] sm:$0xff] %vm7548_vm14, %v7443_v63 }
 0x745   : > { %s15402_s28 = smov (!%p7622_p9, %s7621_s28), 64 }
 0x746   : > { %s8451_s7 = sshll.u32 %s15402_s28, 7 }
 0x747   : > { %p8454_p10 = scmp.eq.s32.totalorder %s8451_s7, 0 }
 0x748   : > { %s15063_s8 = sshrl.u32 (!%p8454_p10), %s15402_s28, 6 }
 0x749   : > { %7631 = sbr.rel (%p8454_p10) target bundleno = 1933 (0x78d), region = 40  ;;  %p8455_p11 = scmp.le.s32.totalorder (!%p8454_p10), %s15063_s8, 0 }
 0x750   : > { %8048 = sbr.rel (%p8455_p11) target bundleno = 1912 (0x778), region = 122  ;;  %s15390_s14 = smov (!%p8455_p11), %s15057_s6 }
 0x751   : > { %s15391_s20 = smov (!%p8455_p11), %s9945_s25  ;;  %s15072_s29 = smov (!%p8455_p11), 0  }
 0x752   : > { %s15074_s9 = smov (!%p8455_p11), 0  }
 0x757 LB: >> { %v7819_v46 = vld [vmem:[%s9375_s20] sm:$0xff]  ;;  %v7821_v29 = vld [vmem:[%s9375_s20 + $0x8] sm:$0xff]  ;;  %v7823_v47 = vld [vmem:[%s9375_s20 + $0x10] sm:$0xff]  ;;  %s7947_s10 = sadd.s32 1, %s9379_s29  ;;  %s7813_s9 = sadd.s32 1, %s9383_s9   ;;  %s9383_s9 = sphi %s15074_s9, %s7813_s9   ;;  %s9379_s29 = sphi %s15072_s29, %s15394_s29   ;;  %s9375_s20 = sphi %s15391_s20, %s15393_s20   ;;  %s9371_s14 = sphi %s15390_s14, %s15392_s14  }
 0x758   : >> { %7820 = vst [vmem:[%s9371_s14] sm:$0xff] %v7819_v46  ;;  %7822 = vst [vmem:[%s9371_s14 + $0x8] sm:$0xff] %v7821_v29  ;;  %v7825_v18 = vld [vmem:[%s9375_s20 + $0x18] sm:$0xff]  ;;  %v7827_v22 = vld [vmem:[%s9375_s20 + $0x20] sm:$0xff]  ;;  %p7948_p12 = scmp.ge.s32.totalorder %s7947_s10, %s15063_s8  ;;  %p7812_p13 = scmp.ge.s32.totalorder %s7813_s9, %s15063_s8 }
 0x759   : >> { %7824 = vst [vmem:[%s9371_s14 + $0x10] sm:$0xff] %v7823_v47  ;;  %v7829_v31 = vld [vmem:[%s9375_s20 + $0x28] sm:$0xff]  ;;  %7826 = vst [vmem:[%s9371_s14 + $0x18] sm:$0xff] %v7825_v18  ;;  %v7831_v25 = vld [vmem:[%s9375_s20 + $0x30] sm:$0xff] }
 0x75a   : >> { %7828 = vst [vmem:[%s9371_s14 + $0x20] sm:$0xff] %v7827_v22  ;;  %7830 = vst [vmem:[%s9371_s14 + $0x28] sm:$0xff] %v7829_v31  ;;  %v7833_v12 = vld [vmem:[%s9375_s20 + $0x38] sm:$0xff]  ;;  %v7835_v8 = vld [vmem:[%s9375_s20 + $0x40] sm:$0xff]  ;;  %s15404_s10 = smov (%p7948_p12, %s7947_s10), 0 }
 0x75b   : >> { %7832 = vst [vmem:[%s9371_s14 + $0x30] sm:$0xff] %v7831_v25  ;;  %7834 = vst [vmem:[%s9371_s14 + $0x38] sm:$0xff] %v7833_v12  ;;  %v7837_v55 = vld [vmem:[%s9375_s20 + $0x48] sm:$0xff]  ;;  %v7839_v4 = vld [vmem:[%s9375_s20 + $0x50] sm:$0xff]  ;;  %s8456_s11 = sshll.u32 %s15404_s10, 9  ;;  %s15394_s29 = smov %s15404_s10 }
 0x75c   : >> { %7836 = vst [vmem:[%s9371_s14 + $0x40] sm:$0xff] %v7835_v8  ;;  %v7841_v35 = vld [vmem:[%s9375_s20 + $0x58] sm:$0xff]  ;;  %7838 = vst [vmem:[%s9371_s14 + $0x48] sm:$0xff] %v7837_v55  ;;  %v7843_v49 = vld [vmem:[%s9375_s20 + $0x60] sm:$0xff]  ;;  %s15130_s17 = scalar_lea.vmem %s9945_s25, %s8456_s11 [#allocation2]   ;;  %s15133_s19 = scalar_lea.vmem %s15057_s6, %s8456_s11  }
 0x75d   : >> { %7840 = vst [vmem:[%s9371_s14 + $0x50] sm:$0xff] %v7839_v4  ;;  %7842 = vst [vmem:[%s9371_s14 + $0x58] sm:$0xff] %v7841_v35  ;;  %v7845_v15 = vld [vmem:[%s9375_s20 + $0x68] sm:$0xff]  ;;  %v7847_v34 = vld [vmem:[%s9375_s20 + $0x70] sm:$0xff] }
 0x75e   : >> { %7844 = vst [vmem:[%s9371_s14 + $0x60] sm:$0xff] %v7843_v49  ;;  %7846 = vst [vmem:[%s9371_s14 + $0x68] sm:$0xff] %v7845_v15  ;;  %v7849_v17 = vld [vmem:[%s9375_s20 + $0x78] sm:$0xff]  ;;  %v7851_v51 = vld [vmem:[%s9375_s20 + $0x80] sm:$0xff] }
 0x75f   : >> { %7848 = vst [vmem:[%s9371_s14 + $0x70] sm:$0xff] %v7847_v34  ;;  %v7853_v10 = vld [vmem:[%s9375_s20 + $0x88] sm:$0xff]  ;;  %7850 = vst [vmem:[%s9371_s14 + $0x78] sm:$0xff] %v7849_v17  ;;  %v7855_v53 = vld [vmem:[%s9375_s20 + $0x90] sm:$0xff] }
 0x760   : >> { %7852 = vst [vmem:[%s9371_s14 + $0x80] sm:$0xff] %v7851_v51  ;;  %7854 = vst [vmem:[%s9371_s14 + $0x88] sm:$0xff] %v7853_v10  ;;  %v7857_v1 = vld [vmem:[%s9375_s20 + $0x98] sm:$0xff]  ;;  %v7859_v44 = vld [vmem:[%s9375_s20 + $0xa0] sm:$0xff] }
 0x761   : >> { %7856 = vst [vmem:[%s9371_s14 + $0x90] sm:$0xff] %v7855_v53  ;;  %7858 = vst [vmem:[%s9371_s14 + $0x98] sm:$0xff] %v7857_v1  ;;  %v7861_v54 = vld [vmem:[%s9375_s20 + $0xa8] sm:$0xff]  ;;  %v7863_v56 = vld [vmem:[%s9375_s20 + $0xb0] sm:$0xff] }
 0x762   : >> { %7860 = vst [vmem:[%s9371_s14 + $0xa0] sm:$0xff] %v7859_v44  ;;  %v7865_v37 = vld [vmem:[%s9375_s20 + $0xb8] sm:$0xff]  ;;  %7862 = vst [vmem:[%s9371_s14 + $0xa8] sm:$0xff] %v7861_v54  ;;  %v7867_v32 = vld [vmem:[%s9375_s20 + $0xc0] sm:$0xff] }
 0x763   : >> { %7864 = vst [vmem:[%s9371_s14 + $0xb0] sm:$0xff] %v7863_v56  ;;  %7866 = vst [vmem:[%s9371_s14 + $0xb8] sm:$0xff] %v7865_v37  ;;  %v7869_v58 = vld [vmem:[%s9375_s20 + $0xc8] sm:$0xff]  ;;  %v7871_v60 = vld [vmem:[%s9375_s20 + $0xd0] sm:$0xff] }
 0x764   : >> { %7868 = vst [vmem:[%s9371_s14 + $0xc0] sm:$0xff] %v7867_v32  ;;  %7870 = vst [vmem:[%s9371_s14 + $0xc8] sm:$0xff] %v7869_v58  ;;  %v7873_v3 = vld [vmem:[%s9375_s20 + $0xd8] sm:$0xff]  ;;  %v7875_v26 = vld [vmem:[%s9375_s20 + $0xe0] sm:$0xff] }
 0x765   : >> { %7872 = vst [vmem:[%s9371_s14 + $0xd0] sm:$0xff] %v7871_v60  ;;  %v7877_v2 = vld [vmem:[%s9375_s20 + $0xe8] sm:$0xff]  ;;  %7874 = vst [vmem:[%s9371_s14 + $0xd8] sm:$0xff] %v7873_v3  ;;  %v7879_v57 = vld [vmem:[%s9375_s20 + $0xf0] sm:$0xff] }
 0x766   : >> { %7876 = vst [vmem:[%s9371_s14 + $0xe0] sm:$0xff] %v7875_v26  ;;  %7878 = vst [vmem:[%s9371_s14 + $0xe8] sm:$0xff] %v7877_v2  ;;  %v7881_v40 = vld [vmem:[%s9375_s20 + $0xf8] sm:$0xff]  ;;  %v7883_v59 = vld [vmem:[%s9375_s20 + $0x100] sm:$0xff] }
 0x767   : >> { %7880 = vst [vmem:[%s9371_s14 + $0xf0] sm:$0xff] %v7879_v57  ;;  %7882 = vst [vmem:[%s9371_s14 + $0xf8] sm:$0xff] %v7881_v40  ;;  %v7885_v19 = vld [vmem:[%s9375_s20 + $0x108] sm:$0xff]  ;;  %v7887_v11 = vld [vmem:[%s9375_s20 + $0x110] sm:$0xff] }
 0x768   : >> { %7884 = vst [vmem:[%s9371_s14 + $0x100] sm:$0xff] %v7883_v59  ;;  %v7889_v39 = vld [vmem:[%s9375_s20 + $0x118] sm:$0xff]  ;;  %7886 = vst [vmem:[%s9371_s14 + $0x108] sm:$0xff] %v7885_v19  ;;  %v7891_v43 = vld [vmem:[%s9375_s20 + $0x120] sm:$0xff] }
 0x769   : >> { %7888 = vst [vmem:[%s9371_s14 + $0x110] sm:$0xff] %v7887_v11  ;;  %7890 = vst [vmem:[%s9371_s14 + $0x118] sm:$0xff] %v7889_v39  ;;  %v7893_v9 = vld [vmem:[%s9375_s20 + $0x128] sm:$0xff]  ;;  %v7895_v38 = vld [vmem:[%s9375_s20 + $0x130] sm:$0xff] }
 0x76a   : >> { %7892 = vst [vmem:[%s9371_s14 + $0x120] sm:$0xff] %v7891_v43  ;;  %7894 = vst [vmem:[%s9371_s14 + $0x128] sm:$0xff] %v7893_v9  ;;  %v7897_v16 = vld [vmem:[%s9375_s20 + $0x138] sm:$0xff]  ;;  %v7899_v14 = vld [vmem:[%s9375_s20 + $0x140] sm:$0xff] }
 0x76b   : >> { %7896 = vst [vmem:[%s9371_s14 + $0x130] sm:$0xff] %v7895_v38  ;;  %v7901_v27 = vld [vmem:[%s9375_s20 + $0x148] sm:$0xff]  ;;  %7898 = vst [vmem:[%s9371_s14 + $0x138] sm:$0xff] %v7897_v16  ;;  %v7903_v50 = vld [vmem:[%s9375_s20 + $0x150] sm:$0xff] }
 0x76c   : >> { %7900 = vst [vmem:[%s9371_s14 + $0x140] sm:$0xff] %v7899_v14  ;;  %7902 = vst [vmem:[%s9371_s14 + $0x148] sm:$0xff] %v7901_v27  ;;  %v7905_v62 = vld [vmem:[%s9375_s20 + $0x158] sm:$0xff]  ;;  %v7907_v23 = vld [vmem:[%s9375_s20 + $0x160] sm:$0xff] }
 0x76d   : >> { %7904 = vst [vmem:[%s9371_s14 + $0x150] sm:$0xff] %v7903_v50  ;;  %7906 = vst [vmem:[%s9371_s14 + $0x158] sm:$0xff] %v7905_v62  ;;  %v7909_v61 = vld [vmem:[%s9375_s20 + $0x168] sm:$0xff]  ;;  %v7911_v5 = vld [vmem:[%s9375_s20 + $0x170] sm:$0xff] }
 0x76e   : >> { %7908 = vst [vmem:[%s9371_s14 + $0x160] sm:$0xff] %v7907_v23  ;;  %v7913_v24 = vld [vmem:[%s9375_s20 + $0x178] sm:$0xff]  ;;  %7910 = vst [vmem:[%s9371_s14 + $0x168] sm:$0xff] %v7909_v61  ;;  %v7915_v7 = vld [vmem:[%s9375_s20 + $0x180] sm:$0xff] }
 0x76f   : >> { %7912 = vst [vmem:[%s9371_s14 + $0x170] sm:$0xff] %v7911_v5  ;;  %7914 = vst [vmem:[%s9371_s14 + $0x178] sm:$0xff] %v7913_v24  ;;  %v7917_v20 = vld [vmem:[%s9375_s20 + $0x188] sm:$0xff]  ;;  %v7919_v30 = vld [vmem:[%s9375_s20 + $0x190] sm:$0xff] }
 0x770   : >> { %7916 = vst [vmem:[%s9371_s14 + $0x180] sm:$0xff] %v7915_v7  ;;  %7918 = vst [vmem:[%s9371_s14 + $0x188] sm:$0xff] %v7917_v20  ;;  %v7921_v45 = vld [vmem:[%s9375_s20 + $0x198] sm:$0xff]  ;;  %v7923_v33 = vld [vmem:[%s9375_s20 + $0x1a0] sm:$0xff] }
 0x771   : >> { %7920 = vst [vmem:[%s9371_s14 + $0x190] sm:$0xff] %v7919_v30  ;;  %v7925_v42 = vld [vmem:[%s9375_s20 + $0x1a8] sm:$0xff]  ;;  %7922 = vst [vmem:[%s9371_s14 + $0x198] sm:$0xff] %v7921_v45  ;;  %v7927_v48 = vld [vmem:[%s9375_s20 + $0x1b0] sm:$0xff]  ;;  %7815 = sbr.rel (!%p7812_p13) target bundleno = 1879 (0x757), region = 128 }
 0x772   : >> { %7924 = vst [vmem:[%s9371_s14 + $0x1a0] sm:$0xff] %v7923_v33  ;;  %7926 = vst [vmem:[%s9371_s14 + $0x1a8] sm:$0xff] %v7925_v42  ;;  %v7929_v28 = vld [vmem:[%s9375_s20 + $0x1b8] sm:$0xff]  ;;  %v7931_v6 = vld [vmem:[%s9375_s20 + $0x1c0] sm:$0xff] }
 0x773   : >> { %7928 = vst [vmem:[%s9371_s14 + $0x1b0] sm:$0xff] %v7927_v48  ;;  %7930 = vst [vmem:[%s9371_s14 + $0x1b8] sm:$0xff] %v7929_v28  ;;  %v7933_v36 = vld [vmem:[%s9375_s20 + $0x1c8] sm:$0xff]  ;;  %v7935_v0 = vld [vmem:[%s9375_s20 + $0x1d0] sm:$0xff] }
 0x774   : >> { %7932 = vst [vmem:[%s9371_s14 + $0x1c0] sm:$0xff] %v7931_v6  ;;  %v7937_v52 = vld [vmem:[%s9375_s20 + $0x1d8] sm:$0xff]  ;;  %7934 = vst [vmem:[%s9371_s14 + $0x1c8] sm:$0xff] %v7933_v36  ;;  %v7939_v13 = vld [vmem:[%s9375_s20 + $0x1e0] sm:$0xff] }
 0x775   : >> { %7936 = vst [vmem:[%s9371_s14 + $0x1d0] sm:$0xff] %v7935_v0  ;;  %7938 = vst [vmem:[%s9371_s14 + $0x1d8] sm:$0xff] %v7937_v52  ;;  %v7941_v41 = vld [vmem:[%s9375_s20 + $0x1e8] sm:$0xff]  ;;  %v7943_v21 = vld [vmem:[%s9375_s20 + $0x1f0] sm:$0xff] }
 0x776   : >> { %7940 = vst [vmem:[%s9371_s14 + $0x1e0] sm:$0xff] %v7939_v13  ;;  %7942 = vst [vmem:[%s9371_s14 + $0x1e8] sm:$0xff] %v7941_v41  ;;  %v7945_v63 = vld [vmem:[%s9375_s20 + $0x1f8] sm:$0xff]  ;;  %s15393_s20 = smov %s15130_s17 }
 0x777   : >> { %7944 = vst [vmem:[%s9371_s14 + $0x1f0] sm:$0xff] %v7943_v21  ;;  %7946 = vst [vmem:[%s9371_s14 + $0x1f8] sm:$0xff] %v7945_v63  ;;  %s15392_s14 = smov %s15133_s19 }
 0x778 PF: > { %s15238_s21 = sand.u32 63, %s15402_s28   ;;  %s8467_s23 = sshll.u32 %s15063_s8, 9 }
 0x779   : > { %s7958_s24 = scalar_lea.vmem %s9945_s25, %s8467_s23 [#allocation2]   ;;  %s7960_s12 = scalar_lea.vmem %s15057_s6, %s8467_s23  }
 0x77a   : > { %p8461_p0 = scmp.le.s32.totalorder %s15238_s21, 0 }
 0x77b   : > { %s9385_s26 = smov (!%p8461_p0), %s7960_s12   ;;  %s9389_s27 = smov (!%p8461_p0), %s7958_s24  }
 0x77c   : > { %8062 = sbr.rel (%p8461_p0) target bundleno = 1933 (0x78d), region = 133  ;;  %s9393_s30 = smov (!%p8461_p0), 0  }
 0x77d   : > { %s9397_s4 = smov (!%p8461_p0), 0  }
 0x783 LB: >> { %v7970_v46 = vld [vmem:[%s9391_s27] sm:$0xff]  ;;  %s7972_s28 = sadd.s32 1, %s9395_s30  ;;  %s7964_s4 = sadd.s32 1, %s9399_s4   ;;  %s9399_s4 = sphi %s9397_s4, %s7964_s4   ;;  %s9395_s30 = sphi %s9393_s30, %s9394_s30   ;;  %s9391_s27 = sphi %s9389_s27, %s7977_s27   ;;  %s9387_s26 = sphi %s9385_s26, %s7978_s26  }
 0x784   : >> { %7971 = vst [vmem:[%s9387_s26] sm:$0xff] %v7970_v46  ;;  %p7973_p1 = scmp.ge.s32.totalorder %s7972_s28, %s15238_s21  ;;  %p7963_p2 = scmp.ge.s32.totalorder %s7964_s4, %s15238_s21 }
 0x786   : >> { %s15406_s28 = smov (%p7973_p1, %s7972_s28), 0  ;;  %7966 = sbr.rel (!%p7963_p2) target bundleno = 1923 (0x783), region = 139 }
 0x787   : >> { %s8462_s25 = sshll.u32 %s15406_s28, 3  ;;  %s9394_s30 = smov %s15406_s28  }
 0x788   : >> { %s7977_s27 = scalar_lea.vmem %s7958_s24, %s8462_s25 [#allocation2]   ;;  %s7978_s26 = scalar_lea.vmem %s7960_s12, %s8462_s25  }
 0x78d PF: > { %s13_s16 = sadd.s32 1, %s9367_s16   ;;  %s15395_s12 = smov %s9355_s13 }
 0x78e   : > { %p10_p3 = scmp.ge.s32.totalorder %s13_s16, 4   ;;  %s15396_s13 = smov %s9468_s22 }
 0x78f   : > { %s15397_s14 = smov %s9363_s15  ;;  %s15398_s15 = smov %s15400_s18 }
 0x790   :  { %12 = sbr.rel (!%p10_p3) target bundleno = 3 (0x3), region = 150 }

</bundles_post_ra>
